<compile_context>
chip_gen: v5e
topology: v5e:2x2
jax: 0.10.0
libtpu: 0.0.40
codegen_flags: <defaults>
</compile_context>

<pallas_src>
import functools

import numpy as np
import jax
import jax.numpy as jnp
from jax.experimental import pallas as pl
from jax.experimental.pallas import tpu as pltpu

FEA_DIM = 3            # module default fea_dim
OUT_PT_FEA_DIM = 64    # module default out_pt_fea_dim
W1_ROWS = 8            # W1 stored with 8 (sublane-aligned) rows; only rows 0..2 are used
TN = 256               # points per tile (fills the 256-row MXU on v6e/v7x)
TS = TN + 8            # voxel-slab rows per tile (8-aligned base + slack)


def _pick_ncores_and_chip():
    """1 TensorCore on v5e/v6e, 2 on v7x (detected from device_kind, default 1)."""
    kind = ""
    try:
        kind = jax.devices()[0].device_kind.lower()
    except Exception:
        pass
    is_v7 = ("v7" in kind) or ("7x" in kind)
    return (2 if is_v7 else 1), is_v7


# ------------------------------ fused Pallas kernel ------------------------------

def _fused_kernel(meta_ref,        # [3, T] int32 SMEM: (vlo, first_id, last_id) per tile
                  x_ref,           # [TN, 3]  f32 point features (sorted by voxel id)
                  invc_ref,        # [TN, 1]  int32 voxel id per point (sublane oriented)
                  invr_ref,        # [1, 1, TN] int32 voxel id per point (lane oriented)
                  w1, b1, w2, b2, w3, b3, w4, b4,
                  acc_ref,         # [v_pad, 64] f32 voxel accumulator (VMEM resident)
                  *, tiles_per_core):
    c = pl.program_id(0)
    j = pl.program_id(1)

    @pl.when(j == 0)
    def _init():
        acc_ref[...] = jnp.full(acc_ref.shape, -jnp.inf, acc_ref.dtype)

    # ---- PPmodel MLP (folded BN).  Layer 1 (3->64) as VPU broadcast FMAs in f32;
    # ---- layers 2-4 as bf16-input MXU matmuls with f32 accumulation. -----------------
    xf = x_ref[...]                                      # [TN, 3] f32
    w1f = w1[...]                                        # [W1_ROWS, 64] f32
    h = xf[:, 0:1] * w1f[0:1, :]
    for kf in range(1, FEA_DIM):
        h = h + xf[:, kf:kf + 1] * w1f[kf:kf + 1, :]
    h = jnp.maximum(h + b1[...], 0.0)
    h = jnp.dot(h.astype(w2.dtype), w2[...], preferred_element_type=jnp.float32) + b2[...]
    h = jnp.maximum(h, 0.0)
    h = jnp.dot(h.astype(w3.dtype), w3[...], preferred_element_type=jnp.float32) + b3[...]
    h = jnp.maximum(h, 0.0)
    feat = jnp.dot(h.astype(w4.dtype), w4[...], preferred_element_type=jnp.float32) + b4[...]
    # feat: [TN, 64] f32

    # ---- one-directional log-step segmented max over sorted voxel runs ---------------
    # Points are sorted by voxel id, so every voxel is a contiguous run of rows.
    # Each level combines row i with the row at a fixed rotation offset, gated on
    # equal voxel id; because ids are sorted, a wrapped comparison can only match
    # inside the same run, so wraparound never corrupts the max.  After log2(TN)
    # levels the run's boundary row on the rotation's "upstream" side holds the
    # full-run max.
    ids_col = invc_ref[...]                              # [TN, 1] int32
    scan = feat
    s = 1
    while s < TN:
        v_sh = pltpu.roll(scan, shift=s, axis=0)
        i_sh = pltpu.roll(ids_col, shift=s, axis=0)
        scan = jnp.where(i_sh == ids_col, jnp.maximum(scan, v_sh), scan)
        s *= 2

    # ---- pick exactly one representative row per run (direction-agnostic) ------------
    # The representative is the row whose neighbour at rotation offset TN-1 (i.e. one
    # step "upstream" of the scan direction, whichever sign the hardware rotate uses)
    # has a different voxel id.  If the whole tile is a single run that rule marks no
    # row, but then every row already holds the full max, so row 0 is used instead.
    t = c * tiles_per_core + j
    v_lo = pl.multiple_of(meta_ref[0, t], 8)             # 8-aligned slab base (host guaranteed)
    first_id = meta_ref[1, t]
    last_id = meta_ref[2, t]
    prev_ids = pltpu.roll(ids_col, shift=TN - 1, axis=0)
    row0 = jax.lax.broadcasted_iota(jnp.int32, (TN, 1), 0) == 0
    is_rep = (prev_ids != ids_col) | (row0 & (first_id == last_id))
    sel = jnp.where(is_rep, scan, 0.0).astype(jnp.bfloat16)       # [TN, 64] bf16

    # ---- compact runs into a dense 8-aligned voxel slab via a bf16 one-hot matmul ----
    # onehot has one column set per point of a voxel, but only the representative row
    # of `sel` is nonzero, so the f32-accumulated dot yields exactly that run's max.
    rel_row = invr_ref[0] - v_lo                                   # [1, TN] int32
    onehot = (jax.lax.broadcasted_iota(jnp.int32, (TS, TN), 0) == rel_row)
    slab = jnp.dot(onehot.astype(jnp.bfloat16), sel,
                   preferred_element_type=jnp.float32)             # [TS, 64]

    # voxel ids inside a tile form the contiguous range [first_id, last_id] (dense ids)
    slab_rel = jax.lax.broadcasted_iota(jnp.int32, (TS, 1), 0)
    present = (slab_rel >= first_id - v_lo) & (slab_rel <= last_id - v_lo)
    slab = jnp.where(present, slab, -jnp.inf)

    # one bulk read-max-write into the resident accumulator (no per-row stores)
    cur = acc_ref[pl.ds(v_lo, TS), :]
    acc_ref[pl.ds(v_lo, TS), :] = jnp.maximum(cur, slab)


def fused_pp_scatter(x_pad, inv_col, inv_row, meta, params, v_pad_acc,
                     ncores, tiles_per_core, vmem_limit_bytes):
    """Fused PPmodel MLP + scatter-max.  Returns per-core (or single) voxel maxima."""
    w1, b1, w2, b2, w3, b3, w4, b4 = params
    kernel = functools.partial(_fused_kernel, tiles_per_core=tiles_per_core)
    const = lambda c, j, m: (0, 0)
    tile2 = lambda c, j, m: (c * tiles_per_core + j, 0)
    tile3 = lambda c, j, m: (c * tiles_per_core + j, 0, 0)

    if ncores == 1:
        out_shape = jax.ShapeDtypeStruct((v_pad_acc, OUT_PT_FEA_DIM), jnp.float32)
        out_spec = pl.BlockSpec((v_pad_acc, OUT_PT_FEA_DIM), lambda c, j, m: (0, 0))
    else:
        out_shape = jax.ShapeDtypeStruct((ncores, v_pad_acc, OUT_PT_FEA_DIM), jnp.float32)
        out_spec = pl.BlockSpec((None, v_pad_acc, OUT_PT_FEA_DIM),
                                lambda c, j, m: (c, 0, 0))

    return pl.pallas_call(
        kernel,
        out_shape=out_shape,
        grid_spec=pltpu.PrefetchScalarGridSpec(
            num_scalar_prefetch=1,
            grid=(ncores, tiles_per_core),
            in_specs=[
                pl.BlockSpec((TN, FEA_DIM), tile2),
                pl.BlockSpec((TN, 1), tile2),
                pl.BlockSpec((1, 1, TN), tile3),
                pl.BlockSpec(w1.shape, const), pl.BlockSpec(b1.shape, const),
                pl.BlockSpec(w2.shape, const), pl.BlockSpec(b2.shape, const),
                pl.BlockSpec(w3.shape, const), pl.BlockSpec(b3.shape, const),
                pl.BlockSpec(w4.shape, const), pl.BlockSpec(b4.shape, const),
            ],
            out_specs=out_spec,
        ),
        compiler_params=pltpu.CompilerParams(
            dimension_semantics=("parallel", "arbitrary"),
            vmem_limit_bytes=int(vmem_limit_bytes),
        ),
    )(meta, x_pad, inv_col, inv_row, w1, b1, w2, b2, w3, b3, w4, b4)


# ------------------------------ parameter glue -----------------------------

def build_folded_params(key):
    """Deterministic PyTorch-style init, BN folded into adjacent Linears."""
    dims = [FEA_DIM, 64, 128, 256, OUT_PT_FEA_DIM]
    keys = jax.random.split(key, 8)
    Ws, bs = [], []
    for li in range(4):
        fan_in = dims[li]
        bound = 1.0 / float(np.sqrt(fan_in))
        W = jax.random.uniform(keys[2 * li], (dims[li], dims[li + 1]),
                               jnp.float32, -bound, bound)
        b = jax.random.uniform(keys[2 * li + 1], (dims[li + 1],),
                               jnp.float32, -bound, bound)
        Ws.append(W)
        bs.append(b)

    eps = 1e-5

    def bn_affine(cdim):
        # PyTorch BatchNorm1d init: gamma=1, beta=0, running_mean=0, running_var=1
        gamma = jnp.ones((cdim,), jnp.float32)
        beta = jnp.zeros((cdim,), jnp.float32)
        rm = jnp.zeros((cdim,), jnp.float32)
        rv = jnp.ones((cdim,), jnp.float32)
        scale = gamma / jnp.sqrt(rv + eps)
        shift = beta - rm * scale
        return scale, shift

    s0, t0 = bn_affine(FEA_DIM)
    s1, t1 = bn_affine(64)
    s2, t2 = bn_affine(128)
    s3, t3 = bn_affine(256)

    W1 = (s0[:, None] * Ws[0]) * s1[None, :]
    b1 = (t0 @ Ws[0] + bs[0]) * s1 + t1
    W2 = Ws[1] * s2[None, :]
    b2 = bs[1] * s2 + t2
    W3 = Ws[2] * s3[None, :]
    b3 = bs[2] * s3 + t3
    W4, b4 = Ws[3], bs[3]

    # W1 stays f32 (used as VPU FMAs in the kernel), padded to 8 sublane rows.
    W1p = jnp.zeros((W1_ROWS, 64), jnp.float32).at[:FEA_DIM].set(W1)
    bf = lambda w: w.astype(jnp.bfloat16)
    return (W1p, b1[None, :], bf(W2), b2[None, :],
            bf(W3), b3[None, :], bf(W4), b4[None, :])


# ------------------------------- forward glue ------------------------------

def cylinder_fea_forward(pt_fea, xy_ind, params, perm_key):
    ncores, is_v7x = _pick_ncores_and_chip()

    # concat per-batch indices with batch id prepended (F.pad(..., (1,0), value=i))
    cat_pt_ind = jnp.concatenate(
        [jnp.pad(ind, ((0, 0), (1, 0)), constant_values=b)
         for b, ind in enumerate(xy_ind)], axis=0)
    cat_pt_fea = jnp.concatenate(pt_fea, axis=0)
    pt_num = cat_pt_ind.shape[0]

    # deterministic shuffle (torch.randperm equivalent; result is order-invariant)
    perm = jax.random.permutation(perm_key, pt_num)
    cat_pt_fea = cat_pt_fea[perm]
    cat_pt_ind = cat_pt_ind[perm]

    # row-unique with inverse (host-side, sorted rows like torch.unique)
    unq_np, unq_inv_np = np.unique(np.asarray(cat_pt_ind), axis=0, return_inverse=True)
    unq = jnp.asarray(unq_np, dtype=jnp.int32)   # torch casts to int64; int32 here (x64 off)
    unq_inv_np = unq_inv_np.reshape(-1).astype(np.int32)
    n_unq = int(unq_np.shape[0])

    # sort points by voxel id so scatter_max becomes a segmented (run-wise) max
    order_np = np.argsort(unq_inv_np, kind="stable")
    inv_sorted_np = unq_inv_np[order_np]

    # pad points so the tile grid divides evenly; dummy points land in voxel `n_unq`
    points_per_block = TN * ncores
    n_pad = int(-(-pt_num // points_per_block) * points_per_block)
    pad_n = n_pad - pt_num
    inv_padded_np = np.concatenate(
        [inv_sorted_np, np.full((pad_n,), n_unq, np.int32)]).astype(np.int32)
    num_tiles = n_pad // TN
    tiles_per_core = num_tiles // ncores

    # per-tile metadata (scalar prefetch, SMEM): 8-aligned slab base, first / last id
    tiled = inv_padded_np.reshape(num_tiles, TN)
    first_np = tiled[:, 0].astype(np.int32)
    last_np = tiled[:, -1].astype(np.int32)
    vlo_np = ((first_np // 8) * 8).astype(np.int32)
    meta_np = np.stack([vlo_np, first_np, last_np], axis=0).astype(np.int32)   # [3, T]

    v_pad_acc = int(vlo_np.max()) + TS
    v_pad_acc = int(-(-max(v_pad_acc, n_unq) // 8) * 8)

    # invariants the kernel relies on:
    #  (a) every point's voxel id falls inside its tile's [vlo, vlo+TS) slab window,
    #  (b) sorted voxel ids are dense (consecutive values differ by <= 1), so a tile's
    #      ids form the contiguous range [first, last] used for the presence mask.
    assert np.all(last_np < vlo_np + TS) and int(vlo_np.max()) + TS <= v_pad_acc
    assert np.all(np.diff(inv_padded_np.astype(np.int64)) <= 1)

    fea_sorted = jnp.take(cat_pt_fea, jnp.asarray(order_np), axis=0)
    x_pad = jnp.pad(fea_sorted, ((0, pad_n), (0, 0))).astype(jnp.float32)
    inv_col = jnp.asarray(inv_padded_np.reshape(n_pad, 1))
    inv_row = jnp.asarray(inv_padded_np.reshape(num_tiles, 1, TN))
    meta = jnp.asarray(meta_np)

    # VMEM budget: resident f32 accumulator + bf16 weights + tiles + intermediates.
    acc_bytes = v_pad_acc * OUT_PT_FEA_DIM * 4
    cap = (60 << 20) if is_v7x else (100 << 20)
    vmem_limit = min(cap, acc_bytes + (24 << 20))

    out = fused_pp_scatter(x_pad, inv_col, inv_row, meta, params, v_pad_acc,
                           ncores, tiles_per_core, vmem_limit)
    pooled_full = out if ncores == 1 else jnp.max(out, axis=0)
    pooled = pooled_full[:n_unq]

    # fea_compre is None -> no compression head
    return unq, pooled, (cat_pt_fea, jnp.asarray(unq_inv_np), n_unq)


def reference_forward(cat_pt_fea, unq_inv, n_unq, params):
    """Plain-JAX reference mirroring the kernel's numeric recipe."""
    w1, b1, w2, b2, w3, b3, w4, b4 = params
    h = jnp.maximum(jnp.dot(cat_pt_fea, w1[:FEA_DIM]) + b1, 0.0)           # f32 layer 1
    h = jnp.maximum(jnp.dot(h.astype(jnp.bfloat16), w2,
                            preferred_element_type=jnp.float32) + b2, 0.0)
    h = jnp.maximum(jnp.dot(h.astype(jnp.bfloat16), w3,
                            preferred_element_type=jnp.float32) + b3, 0.0)
    out = jnp.dot(h.astype(jnp.bfloat16), w4,
                  preferred_element_type=jnp.float32) + b4
    return jax.ops.segment_max(out, unq_inv, num_segments=n_unq)


# ---------------------------------- main ------------------------------------

if __name__ == "__main__":
    key = jax.random.PRNGKey(0)
    k_params, k_fea, k_ind, k_perm = jax.random.split(key, 4)

    params = build_folded_params(k_params)

    batch = 2
    n_per_batch = 512        # 2 * 512 = 1024 points total (4 tiles of 256)
    grid_xy = 16             # grid_size = (16, 16)

    pt_fea = [jax.random.normal(jax.random.fold_in(k_fea, b),
                                (n_per_batch, FEA_DIM), jnp.float32)
              for b in range(batch)]
    xy_ind = [jax.random.randint(jax.random.fold_in(k_ind, b),
                                 (n_per_batch, 2), 0, grid_xy).astype(jnp.int32)
              for b in range(batch)]

    unq, pooled, (cat_fea, unq_inv, n_unq) = cylinder_fea_forward(
        pt_fea, xy_ind, params, k_perm)
    jax.block_until_ready((unq, pooled))

    # sanity check vs. plain-JAX reference (kernel run maxima are bf16-rounded by the
    # bf16 compaction matmul -> compare at 1e-2 tolerance)
    ref = reference_forward(cat_fea, unq_inv, n_unq, params)
    assert unq.shape == (n_unq, 3)
    assert pooled.shape == (n_unq, OUT_PT_FEA_DIM)
    np.testing.assert_allclose(np.asarray(pooled), np.asarray(ref),
                               rtol=1e-2, atol=1e-2)

    print("KERNEL_OK")
</pallas_src>

<mosaic_0001>
module attributes {stable_mosaic.version = 11 : i64} {
  func.func @_fused_kernel(%arg0: i32, %arg1: i32, %arg2: memref<3x4xi32, #tpu.memory_space<smem>>, %arg3: memref<256x3xf32, #tpu.memory_space<vmem>>, %arg4: memref<256x1xi32, #tpu.memory_space<vmem>>, %arg5: memref<1x1x256xi32, #tpu.memory_space<vmem>>, %arg6: memref<8x64xf32, #tpu.memory_space<vmem>>, %arg7: memref<1x64xf32, #tpu.memory_space<vmem>>, %arg8: memref<64x128xbf16, #tpu.memory_space<vmem>>, %arg9: memref<1x128xf32, #tpu.memory_space<vmem>>, %arg10: memref<128x256xbf16, #tpu.memory_space<vmem>>, %arg11: memref<1x256xf32, #tpu.memory_space<vmem>>, %arg12: memref<256x64xbf16, #tpu.memory_space<vmem>>, %arg13: memref<1x64xf32, #tpu.memory_space<vmem>>, %arg14: memref<592x64xf32, #tpu.memory_space<vmem>>) attributes {dimension_semantics = [#tpu.dimension_semantics<parallel>, #tpu.dimension_semantics<arbitrary>], iteration_bounds = array<i64: 1, 4>, scalar_prefetch = 1 : i64, scratch_operands = 0 : i64, tpu.core_type = #tpu.core_type<tc>, window_params = [{transform_indices = @transform_0, window_bounds = array<i64: 256, 3>}, {transform_indices = @transform_1, window_bounds = array<i64: 256, 1>}, {transform_indices = @transform_2, window_bounds = array<i64: 1, 1, 256>}, {pipeline_mode = #tpu.pipeline_mode<synchronous>, transform_indices = @transform_3, window_bounds = array<i64: 8, 64>}, {pipeline_mode = #tpu.pipeline_mode<synchronous>, transform_indices = @transform_4, window_bounds = array<i64: 1, 64>}, {pipeline_mode = #tpu.pipeline_mode<synchronous>, transform_indices = @transform_5, window_bounds = array<i64: 64, 128>}, {pipeline_mode = #tpu.pipeline_mode<synchronous>, transform_indices = @transform_6, window_bounds = array<i64: 1, 128>}, {pipeline_mode = #tpu.pipeline_mode<synchronous>, transform_indices = @transform_7, window_bounds = array<i64: 128, 256>}, {pipeline_mode = #tpu.pipeline_mode<synchronous>, transform_indices = @transform_8, window_bounds = array<i64: 1, 256>}, {pipeline_mode = #tpu.pipeline_mode<synchronous>, transform_indices = @transform_9, window_bounds = array<i64: 256, 64>}, {pipeline_mode = #tpu.pipeline_mode<synchronous>, transform_indices = @transform_10, window_bounds = array<i64: 1, 64>}, {pipeline_mode = #tpu.pipeline_mode<synchronous>, transform_indices = @transform_11, window_bounds = array<i64: 592, 64>}]} {
    %c0_i32 = arith.constant 0 : i32
    %0 = arith.cmpi eq, %arg1, %c0_i32 : i32
    %1 = arith.extui %0 : i1 to i32
    %c0_i32_0 = arith.constant 0 : i32
    %2 = arith.cmpi ne, %1, %c0_i32_0 : i32
    scf.if %2 {
      %cst_44 = arith.constant 0xFF800000 : f32
      %157 = vector.broadcast %cst_44 : f32 to vector<592x64xf32>
      %c0_45 = arith.constant 0 : index
      %c0_46 = arith.constant 0 : index
      %158 = vector.load %arg14[%c0_45, %c0_46] : memref<592x64xf32, #tpu.memory_space<vmem>>, vector<592x64xf32>
      tpu.vector_store %arg14[%c0_45, %c0_46], %157 {strides = array<i32>} : memref<592x64xf32, #tpu.memory_space<vmem>>, vector<592x64xf32>,
    } else {
    }
    %c0 = arith.constant 0 : index
    %c0_1 = arith.constant 0 : index
    %3 = vector.load %arg3[%c0, %c0_1] : memref<256x3xf32, #tpu.memory_space<vmem>>, vector<256x3xf32>
    %c0_2 = arith.constant 0 : index
    %c0_3 = arith.constant 0 : index
    %4 = vector.load %arg6[%c0_2, %c0_3] : memref<8x64xf32, #tpu.memory_space<vmem>>, vector<8x64xf32>
    %5 = vector.extract_strided_slice %3 {offsets = [0, 0], sizes = [256, 1], strides = [1, 1]} : vector<256x3xf32> to vector<256x1xf32>
    %6 = vector.extract_strided_slice %4 {offsets = [0, 0], sizes = [1, 64], strides = [1, 1]} : vector<8x64xf32> to vector<1x64xf32>
    %7 = vector.broadcast %5 : vector<256x1xf32> to vector<256x64xf32>
    %8 = vector.broadcast %6 : vector<1x64xf32> to vector<256x64xf32>
    %9 = arith.mulf %7, %8 : vector<256x64xf32>
    %10 = vector.extract_strided_slice %3 {offsets = [0, 1], sizes = [256, 1], strides = [1, 1]} : vector<256x3xf32> to vector<256x1xf32>
    %11 = vector.extract_strided_slice %4 {offsets = [1, 0], sizes = [1, 64], strides = [1, 1]} : vector<8x64xf32> to vector<1x64xf32>
    %12 = vector.broadcast %10 : vector<256x1xf32> to vector<256x64xf32>
    %13 = vector.broadcast %11 : vector<1x64xf32> to vector<256x64xf32>
    %14 = arith.mulf %12, %13 : vector<256x64xf32>
    %15 = arith.addf %9, %14 : vector<256x64xf32>
    %16 = vector.extract_strided_slice %3 {offsets = [0, 2], sizes = [256, 1], strides = [1, 1]} : vector<256x3xf32> to vector<256x1xf32>
    %17 = vector.extract_strided_slice %4 {offsets = [2, 0], sizes = [1, 64], strides = [1, 1]} : vector<8x64xf32> to vector<1x64xf32>
    %18 = vector.broadcast %16 : vector<256x1xf32> to vector<256x64xf32>
    %19 = vector.broadcast %17 : vector<1x64xf32> to vector<256x64xf32>
    %20 = arith.mulf %18, %19 : vector<256x64xf32>
    %21 = arith.addf %15, %20 : vector<256x64xf32>
    %c0_4 = arith.constant 0 : index
    %c0_5 = arith.constant 0 : index
    %22 = vector.load %arg7[%c0_4, %c0_5] : memref<1x64xf32, #tpu.memory_space<vmem>>, vector<1x64xf32>
    %23 = vector.broadcast %22 : vector<1x64xf32> to vector<256x64xf32>
    %24 = arith.addf %21, %23 : vector<256x64xf32>
    %cst = arith.constant 0.000000e+00 : f32
    %25 = vector.broadcast %cst : f32 to vector<256x64xf32>
    %26 = arith.maximumf %24, %25 : vector<256x64xf32>
    %27 = arith.truncf %26 : vector<256x64xf32> to vector<256x64xbf16>
    %c0_6 = arith.constant 0 : index
    %c0_7 = arith.constant 0 : index
    %28 = vector.load %arg8[%c0_6, %c0_7] : memref<64x128xbf16, #tpu.memory_space<vmem>>, vector<64x128xbf16>
    %cst_8 = arith.constant dense<0.000000e+00> : vector<256x128xf32>
    %29 = tpu.matmul %27, %28, %cst_8 {dimension_numbers = #tpu.dot_dimension_numbers<[1], [0], [0], [1], [0, 0, 1, 1], [], []>} : vector<256x64xbf16>, vector<64x128xbf16>, vector<256x128xf32> -> vector<256x128xf32>
    %c0_9 = arith.constant 0 : index
    %c0_10 = arith.constant 0 : index
    %30 = vector.load %arg9[%c0_9, %c0_10] : memref<1x128xf32, #tpu.memory_space<vmem>>, vector<1x128xf32>
    %31 = vector.broadcast %30 : vector<1x128xf32> to vector<256x128xf32>
    %32 = arith.addf %29, %31 : vector<256x128xf32>
    %cst_11 = arith.constant 0.000000e+00 : f32
    %33 = vector.broadcast %cst_11 : f32 to vector<256x128xf32>
    %34 = arith.maximumf %32, %33 : vector<256x128xf32>
    %35 = arith.truncf %34 : vector<256x128xf32> to vector<256x128xbf16>
    %c0_12 = arith.constant 0 : index
    %c0_13 = arith.constant 0 : index
    %36 = vector.load %arg10[%c0_12, %c0_13] : memref<128x256xbf16, #tpu.memory_space<vmem>>, vector<128x256xbf16>
    %cst_14 = arith.constant dense<0.000000e+00> : vector<256x256xf32>
    %37 = tpu.matmul %35, %36, %cst_14 {dimension_numbers = #tpu.dot_dimension_numbers<[1], [0], [0], [1], [0, 0, 1, 1], [], []>} : vector<256x128xbf16>, vector<128x256xbf16>, vector<256x256xf32> -> vector<256x256xf32>
    %c0_15 = arith.constant 0 : index
    %c0_16 = arith.constant 0 : index
    %38 = vector.load %arg11[%c0_15, %c0_16] : memref<1x256xf32, #tpu.memory_space<vmem>>, vector<1x256xf32>
    %39 = vector.broadcast %38 : vector<1x256xf32> to vector<256x256xf32>
    %40 = arith.addf %37, %39 : vector<256x256xf32>
    %cst_17 = arith.constant 0.000000e+00 : f32
    %41 = vector.broadcast %cst_17 : f32 to vector<256x256xf32>
    %42 = arith.maximumf %40, %41 : vector<256x256xf32>
    %43 = arith.truncf %42 : vector<256x256xf32> to vector<256x256xbf16>
    %c0_18 = arith.constant 0 : index
    %c0_19 = arith.constant 0 : index
    %44 = vector.load %arg12[%c0_18, %c0_19] : memref<256x64xbf16, #tpu.memory_space<vmem>>, vector<256x64xbf16>
    %cst_20 = arith.constant dense<0.000000e+00> : vector<256x64xf32>
    %45 = tpu.matmul %43, %44, %cst_20 {dimension_numbers = #tpu.dot_dimension_numbers<[1], [0], [0], [1], [0, 0, 1, 1], [], []>} : vector<256x256xbf16>, vector<256x64xbf16>, vector<256x64xf32> -> vector<256x64xf32>
    %c0_21 = arith.constant 0 : index
    %c0_22 = arith.constant 0 : index
    %46 = vector.load %arg13[%c0_21, %c0_22] : memref<1x64xf32, #tpu.memory_space<vmem>>, vector<1x64xf32>
    %47 = vector.broadcast %46 : vector<1x64xf32> to vector<256x64xf32>
    %48 = arith.addf %45, %47 : vector<256x64xf32>
    %c0_23 = arith.constant 0 : index
    %c0_24 = arith.constant 0 : index
    %49 = vector.load %arg4[%c0_23, %c0_24] : memref<256x1xi32, #tpu.memory_space<vmem>>, vector<256x1xi32>
    %c1_i32 = arith.constant 1 : i32
    %50 = tpu.dynamic_rotate %48 by %c1_i32 dim 0 : vector<256x64xf32>, i32 -> vector<256x64xf32>
    %c1_i32_25 = arith.constant 1 : i32
    %51 = tpu.dynamic_rotate %49 by %c1_i32_25 dim 0 : vector<256x1xi32>, i32 -> vector<256x1xi32>
    %52 = arith.cmpi eq, %51, %49 : vector<256x1xi32>
    %53 = arith.maximumf %48, %50 : vector<256x64xf32>
    %54 = vector.shape_cast %52 : vector<256x1xi1> to vector<256x1xi1>
    %55 = vector.broadcast %54 : vector<256x1xi1> to vector<256x64xi1>
    %56 = arith.select %55, %53, %48 : vector<256x64xi1>, vector<256x64xf32>
    %c2_i32 = arith.constant 2 : i32
    %57 = tpu.dynamic_rotate %56 by %c2_i32 dim 0 : vector<256x64xf32>, i32 -> vector<256x64xf32>
    %c2_i32_26 = arith.constant 2 : i32
    %58 = tpu.dynamic_rotate %49 by %c2_i32_26 dim 0 : vector<256x1xi32>, i32 -> vector<256x1xi32>
    %59 = arith.cmpi eq, %58, %49 : vector<256x1xi32>
    %60 = arith.maximumf %56, %57 : vector<256x64xf32>
    %61 = vector.shape_cast %59 : vector<256x1xi1> to vector<256x1xi1>
    %62 = vector.broadcast %61 : vector<256x1xi1> to vector<256x64xi1>
    %63 = arith.select %62, %60, %56 : vector<256x64xi1>, vector<256x64xf32>
    %c4_i32 = arith.constant 4 : i32
    %64 = tpu.dynamic_rotate %63 by %c4_i32 dim 0 : vector<256x64xf32>, i32 -> vector<256x64xf32>
    %c4_i32_27 = arith.constant 4 : i32
    %65 = tpu.dynamic_rotate %49 by %c4_i32_27 dim 0 : vector<256x1xi32>, i32 -> vector<256x1xi32>
    %66 = arith.cmpi eq, %65, %49 : vector<256x1xi32>
    %67 = arith.maximumf %63, %64 : vector<256x64xf32>
    %68 = vector.shape_cast %66 : vector<256x1xi1> to vector<256x1xi1>
    %69 = vector.broadcast %68 : vector<256x1xi1> to vector<256x64xi1>
    %70 = arith.select %69, %67, %63 : vector<256x64xi1>, vector<256x64xf32>
    %c8_i32 = arith.constant 8 : i32
    %71 = tpu.dynamic_rotate %70 by %c8_i32 dim 0 : vector<256x64xf32>, i32 -> vector<256x64xf32>
    %c8_i32_28 = arith.constant 8 : i32
    %72 = tpu.dynamic_rotate %49 by %c8_i32_28 dim 0 : vector<256x1xi32>, i32 -> vector<256x1xi32>
    %73 = arith.cmpi eq, %72, %49 : vector<256x1xi32>
    %74 = arith.maximumf %70, %71 : vector<256x64xf32>
    %75 = vector.shape_cast %73 : vector<256x1xi1> to vector<256x1xi1>
    %76 = vector.broadcast %75 : vector<256x1xi1> to vector<256x64xi1>
    %77 = arith.select %76, %74, %70 : vector<256x64xi1>, vector<256x64xf32>
    %c16_i32 = arith.constant 16 : i32
    %78 = tpu.dynamic_rotate %77 by %c16_i32 dim 0 : vector<256x64xf32>, i32 -> vector<256x64xf32>
    %c16_i32_29 = arith.constant 16 : i32
    %79 = tpu.dynamic_rotate %49 by %c16_i32_29 dim 0 : vector<256x1xi32>, i32 -> vector<256x1xi32>
    %80 = arith.cmpi eq, %79, %49 : vector<256x1xi32>
    %81 = arith.maximumf %77, %78 : vector<256x64xf32>
    %82 = vector.shape_cast %80 : vector<256x1xi1> to vector<256x1xi1>
    %83 = vector.broadcast %82 : vector<256x1xi1> to vector<256x64xi1>
    %84 = arith.select %83, %81, %77 : vector<256x64xi1>, vector<256x64xf32>
    %c32_i32 = arith.constant 32 : i32
    %85 = tpu.dynamic_rotate %84 by %c32_i32 dim 0 : vector<256x64xf32>, i32 -> vector<256x64xf32>
    %c32_i32_30 = arith.constant 32 : i32
    %86 = tpu.dynamic_rotate %49 by %c32_i32_30 dim 0 : vector<256x1xi32>, i32 -> vector<256x1xi32>
    %87 = arith.cmpi eq, %86, %49 : vector<256x1xi32>
    %88 = arith.maximumf %84, %85 : vector<256x64xf32>
    %89 = vector.shape_cast %87 : vector<256x1xi1> to vector<256x1xi1>
    %90 = vector.broadcast %89 : vector<256x1xi1> to vector<256x64xi1>
    %91 = arith.select %90, %88, %84 : vector<256x64xi1>, vector<256x64xf32>
    %c64_i32 = arith.constant 64 : i32
    %92 = tpu.dynamic_rotate %91 by %c64_i32 dim 0 : vector<256x64xf32>, i32 -> vector<256x64xf32>
    %c64_i32_31 = arith.constant 64 : i32
    %93 = tpu.dynamic_rotate %49 by %c64_i32_31 dim 0 : vector<256x1xi32>, i32 -> vector<256x1xi32>
    %94 = arith.cmpi eq, %93, %49 : vector<256x1xi32>
    %95 = arith.maximumf %91, %92 : vector<256x64xf32>
    %96 = vector.shape_cast %94 : vector<256x1xi1> to vector<256x1xi1>
    %97 = vector.broadcast %96 : vector<256x1xi1> to vector<256x64xi1>
    %98 = arith.select %97, %95, %91 : vector<256x64xi1>, vector<256x64xf32>
    %c128_i32 = arith.constant 128 : i32
    %99 = tpu.dynamic_rotate %98 by %c128_i32 dim 0 : vector<256x64xf32>, i32 -> vector<256x64xf32>
    %c128_i32_32 = arith.constant 128 : i32
    %100 = tpu.dynamic_rotate %49 by %c128_i32_32 dim 0 : vector<256x1xi32>, i32 -> vector<256x1xi32>
    %101 = arith.cmpi eq, %100, %49 : vector<256x1xi32>
    %102 = arith.maximumf %98, %99 : vector<256x64xf32>
    %103 = vector.shape_cast %101 : vector<256x1xi1> to vector<256x1xi1>
    %104 = vector.broadcast %103 : vector<256x1xi1> to vector<256x64xi1>
    %105 = arith.select %104, %102, %98 : vector<256x64xi1>, vector<256x64xf32>
    %c4_i32_33 = arith.constant 4 : i32
    %106 = arith.muli %arg0, %c4_i32_33 : i32
    %107 = arith.addi %106, %arg1 : i32
    %c0_34 = arith.constant 0 : index
    %108 = arith.index_cast %107 : i32 to index
    %109 = memref.load %arg2[%c0_34, %108] : memref<3x4xi32, #tpu.memory_space<smem>>
    %110 = tpu.assume_multiple %109, 8 : i32
    %c1 = arith.constant 1 : index
    %111 = arith.index_cast %107 : i32 to index
    %112 = memref.load %arg2[%c1, %111] : memref<3x4xi32, #tpu.memory_space<smem>>
    %c2 = arith.constant 2 : index
    %113 = arith.index_cast %107 : i32 to index
    %114 = memref.load %arg2[%c2, %113] : memref<3x4xi32, #tpu.memory_space<smem>>
    %c255_i32 = arith.constant 255 : i32
    %115 = tpu.dynamic_rotate %49 by %c255_i32 dim 0 : vector<256x1xi32>, i32 -> vector<256x1xi32>
    %116 = tpu.iota {dimensions = array<i32: 0>} : vector<256x1xi32>
    %c0_i32_35 = arith.constant 0 : i32
    %117 = vector.broadcast %c0_i32_35 : i32 to vector<256x1xi32>
    %118 = arith.cmpi eq, %116, %117 : vector<256x1xi32>
    %119 = arith.cmpi ne, %115, %49 : vector<256x1xi32>
    %120 = arith.cmpi eq, %112, %114 : i32
    %121 = vector.broadcast %120 : i1 to vector<256x1xi1>
    %122 = arith.andi %118, %121 : vector<256x1xi1>
    %123 = arith.ori %119, %122 : vector<256x1xi1>
    %cst_36 = arith.constant 0.000000e+00 : f32
    %124 = vector.shape_cast %123 : vector<256x1xi1> to vector<256x1xi1>
    %125 = vector.broadcast %124 : vector<256x1xi1> to vector<256x64xi1>
    %126 = vector.broadcast %cst_36 : f32 to vector<256x64xf32>
    %127 = arith.select %125, %105, %126 : vector<256x64xi1>, vector<256x64xf32>
    %128 = arith.truncf %127 : vector<256x64xf32> to vector<256x64xbf16>
    %c0_37 = arith.constant 0 : index
    %c0_38 = arith.constant 0 : index
    %c0_39 = arith.constant 0 : index
    %129 = vector.load %arg5[%c0_37, %c0_38, %c0_39] : memref<1x1x256xi32, #tpu.memory_space<vmem>>, vector<1x1x256xi32>
    %130 = vector.shape_cast %129 : vector<1x1x256xi32> to vector<1x256xi32>
    %131 = vector.broadcast %110 : i32 to vector<1x256xi32>
    %132 = arith.subi %130, %131 : vector<1x256xi32>
    %133 = tpu.iota {dimensions = array<i32: 0>} : vector<264x256xi32>
    %134 = vector.broadcast %132 : vector<1x256xi32> to vector<264x256xi32>
    %135 = arith.cmpi eq, %133, %134 : vector<264x256xi32>
    %136 = arith.extui %135 : vector<264x256xi1> to vector<264x256xi32>
    %137 = arith.sitofp %136 : vector<264x256xi32> to vector<264x256xf32>
    %138 = arith.truncf %137 : vector<264x256xf32> to vector<264x256xbf16>
    %cst_40 = arith.constant dense<0.000000e+00> : vector<264x64xf32>
    %139 = tpu.matmul %138, %128, %cst_40 {dimension_numbers = #tpu.dot_dimension_numbers<[1], [0], [0], [1], [0, 0, 1, 1], [], []>} : vector<264x256xbf16>, vector<256x64xbf16>, vector<264x64xf32> -> vector<264x64xf32>
    %140 = tpu.iota {dimensions = array<i32: 0>} : vector<264x1xi32>
    %141 = arith.subi %112, %110 : i32
    %142 = vector.broadcast %141 : i32 to vector<264x1xi32>
    %143 = arith.cmpi sge, %140, %142 : vector<264x1xi32>
    %144 = arith.subi %114, %110 : i32
    %145 = vector.broadcast %144 : i32 to vector<264x1xi32>
    %146 = arith.cmpi sle, %140, %145 : vector<264x1xi32>
    %147 = arith.andi %143, %146 : vector<264x1xi1>
    %cst_41 = arith.constant 0xFF800000 : f32
    %148 = vector.shape_cast %147 : vector<264x1xi1> to vector<264x1xi1>
    %149 = vector.broadcast %148 : vector<264x1xi1> to vector<264x64xi1>
    %150 = vector.broadcast %cst_41 : f32 to vector<264x64xf32>
    %151 = arith.select %149, %139, %150 : vector<264x64xi1>, vector<264x64xf32>
    %152 = arith.index_cast %110 : i32 to index
    %c0_42 = arith.constant 0 : index
    %153 = vector.load %arg14[%152, %c0_42] : memref<592x64xf32, #tpu.memory_space<vmem>>, vector<264x64xf32>
    %154 = arith.maximumf %153, %151 : vector<264x64xf32>
    %155 = arith.index_cast %110 : i32 to index
    %c0_43 = arith.constant 0 : index
    %156 = vector.load %arg14[%155, %c0_43] : memref<592x64xf32, #tpu.memory_space<vmem>>, vector<264x64xf32>
    tpu.vector_store %arg14[%155, %c0_43], %154 {strides = array<i32>} : memref<592x64xf32, #tpu.memory_space<vmem>>, vector<264x64xf32>,
    return
  }
  func.func @transform_0(%arg0: i32, %arg1: i32, %arg2: memref<3x4xi32, #tpu.memory_space<smem>>) -> (i32, i32) {
    %c4_i32 = arith.constant 4 : i32
    %0 = arith.muli %arg0, %c4_i32 : i32
    %1 = arith.addi %0, %arg1 : i32
    %c0_i32 = arith.constant 0 : i32
    %c0_i32_0 = arith.constant 0 : i32
    return %1, %c0_i32 : i32, i32
  }
  func.func @transform_1(%arg0: i32, %arg1: i32, %arg2: memref<3x4xi32, #tpu.memory_space<smem>>) -> (i32, i32) {
    %c4_i32 = arith.constant 4 : i32
    %0 = arith.muli %arg0, %c4_i32 : i32
    %1 = arith.addi %0, %arg1 : i32
    %c0_i32 = arith.constant 0 : i32
    %c0_i32_0 = arith.constant 0 : i32
    return %1, %c0_i32 : i32, i32
  }
  func.func @transform_2(%arg0: i32, %arg1: i32, %arg2: memref<3x4xi32, #tpu.memory_space<smem>>) -> (i32, i32, i32) {
    %c4_i32 = arith.constant 4 : i32
    %0 = arith.muli %arg0, %c4_i32 : i32
    %1 = arith.addi %0, %arg1 : i32
    %c0_i32 = arith.constant 0 : i32
    %c0_i32_0 = arith.constant 0 : i32
    %c0_i32_1 = arith.constant 0 : i32
    return %1, %c0_i32, %c0_i32_0 : i32, i32, i32
  }
  func.func @transform_3(%arg0: i32, %arg1: i32, %arg2: memref<3x4xi32, #tpu.memory_space<smem>>) -> (i32, i32) {
    %c0_i32 = arith.constant 0 : i32
    %c0_i32_0 = arith.constant 0 : i32
    %c0_i32_1 = arith.constant 0 : i32
    return %c0_i32, %c0_i32_0 : i32, i32
  }
  func.func @transform_4(%arg0: i32, %arg1: i32, %arg2: memref<3x4xi32, #tpu.memory_space<smem>>) -> (i32, i32) {
    %c0_i32 = arith.constant 0 : i32
    %c0_i32_0 = arith.constant 0 : i32
    %c0_i32_1 = arith.constant 0 : i32
    return %c0_i32, %c0_i32_0 : i32, i32
  }
  func.func @transform_5(%arg0: i32, %arg1: i32, %arg2: memref<3x4xi32, #tpu.memory_space<smem>>) -> (i32, i32) {
    %c0_i32 = arith.constant 0 : i32
    %c0_i32_0 = arith.constant 0 : i32
    %c0_i32_1 = arith.constant 0 : i32
    return %c0_i32, %c0_i32_0 : i32, i32
  }
  func.func @transform_6(%arg0: i32, %arg1: i32, %arg2: memref<3x4xi32, #tpu.memory_space<smem>>) -> (i32, i32) {
    %c0_i32 = arith.constant 0 : i32
    %c0_i32_0 = arith.constant 0 : i32
    %c0_i32_1 = arith.constant 0 : i32
    return %c0_i32, %c0_i32_0 : i32, i32
  }
  func.func @transform_7(%arg0: i32, %arg1: i32, %arg2: memref<3x4xi32, #tpu.memory_space<smem>>) -> (i32, i32) {
    %c0_i32 = arith.constant 0 : i32
    %c0_i32_0 = arith.constant 0 : i32
    %c0_i32_1 = arith.constant 0 : i32
    return %c0_i32, %c0_i32_0 : i32, i32
  }
  func.func @transform_8(%arg0: i32, %arg1: i32, %arg2: memref<3x4xi32, #tpu.memory_space<smem>>) -> (i32, i32) {
    %c0_i32 = arith.constant 0 : i32
    %c0_i32_0 = arith.constant 0 : i32
    %c0_i32_1 = arith.constant 0 : i32
    return %c0_i32, %c0_i32_0 : i32, i32
  }
  func.func @transform_9(%arg0: i32, %arg1: i32, %arg2: memref<3x4xi32, #tpu.memory_space<smem>>) -> (i32, i32) {
    %c0_i32 = arith.constant 0 : i32
    %c0_i32_0 = arith.constant 0 : i32
    %c0_i32_1 = arith.constant 0 : i32
    return %c0_i32, %c0_i32_0 : i32, i32
  }
  func.func @transform_10(%arg0: i32, %arg1: i32, %arg2: memref<3x4xi32, #tpu.memory_space<smem>>) -> (i32, i32) {
    %c0_i32 = arith.constant 0 : i32
    %c0_i32_0 = arith.constant 0 : i32
    %c0_i32_1 = arith.constant 0 : i32
    return %c0_i32, %c0_i32_0 : i32, i32
  }
  func.func @transform_11(%arg0: i32, %arg1: i32, %arg2: memref<3x4xi32, #tpu.memory_space<smem>>) -> (i32, i32) {
    %c0_i32 = arith.constant 0 : i32
    %c0_i32_0 = arith.constant 0 : i32
    %c0_i32_1 = arith.constant 0 : i32
    return %c0_i32, %c0_i32_0 : i32, i32
  }
}

</mosaic_0001>

<bundles_post_ra>
// kernel: tpu_custom_call.1
= control target key start
LH: loop header
LB: loop body
LE: loop exit
PB: predicated region body
PF: predicated region fallthrough
CT: control target
= control target key end

     0   :  { %s6458_s24 = smov [#allocation3]   ;;  %s12583_s0 = inlined_call_operand.vmem [shape: s32[3,4], index: 0, kind: input, shape index: {}]   ;;  %s12584_s1 = inlined_call_operand.vmem [shape: f32[1024,3], index: 1, kind: input, shape index: {}]   ;;  %s12585_s2 = inlined_call_operand.vmem [shape: s32[1024,1], index: 2, kind: input, shape index: {}]   ;;  %s12586_s3 = inlined_call_operand.vmem [shape: s32[4,1,256], index: 3, kind: input, shape index: {}]   ;;  %s12587_s4 = inlined_call_operand.vmem [shape: f32[8,64], index: 4, kind: input, shape index: {}]   ;;  %s12588_s5 = inlined_call_operand.vmem [shape: f32[1,64], index: 5, kind: input, shape index: {}]   ;;  %s12589_s6 = inlined_call_operand.vmem [shape: bf16[64,128], index: 6, kind: input, shape index: {}]   ;;  %s12590_s7 = inlined_call_operand.vmem [shape: f32[1,128], index: 7, kind: input, shape index: {}]   ;;  %s12591_s8 = inlined_call_operand.vmem [shape: bf16[128,256], index: 8, kind: input, shape index: {}]   ;;  %s12592_s9 = inlined_call_operand.vmem [shape: f32[1,256], index: 9, kind: input, shape index: {}]   ;;  %s12593_s10 = inlined_call_operand.vmem [shape: bf16[256,64], index: 10, kind: input, shape index: {}]   ;;  %s12594_s11 = inlined_call_operand.vmem [shape: f32[1,64], index: 11, kind: input, shape index: {}]   ;;  %s12595_s12 = inlined_call_operand.vmem [shape: f32[592,64], index: 12, kind: output, shape index: {}]  }
   0x1   :  { %s18_s23 = sshll.u32 %s12583_s0, 4  ;;  %s19_s23 = int_to_ptr.vmem [resolvable:$true] %s18_s23 }
   0x2   :  { %21 = dma.vmem_to_smem %s19_s23, 64, %s6458_s24, [#allocation2] }
   0x3   :  { %6444 = dma.done.wait [#allocation2], 64 }
   0x4   :  { %6445 = vsyncadd [#allocation2], 4294967232 }
   0x5   :  { %24 = sfence }
   0x6   :  { %s6532_s25 = smov 0   ;;  %s6534_s26 = smov 0  }
   0x7   :  { %s6536_s27 = smov 0  }
   0x8 LB: > { %s39_s0 = sadd.s32 1, %s6452_s26  ;;  %p5854_p0 = scmp.ge.s32.totalorder %s6456_s27, 1  ;;  %s6456_s27 = sphi %s6536_s27, %s30_s27   ;;  %s6452_s26 = sphi %s6534_s26, %s13772_s26   ;;  %s6448_s25 = sphi %s6532_s25, %s13771_s25  }
   0x9   : > { %p40_p1 = scmp.ge.s32.totalorder %s39_s0, 4  ;;  %p398_p2 = scmp.lt.s32.totalorder %s6456_s27, 5 }
   0xb   : > { %s13774_s0 = smov (%p40_p1, %s39_s0), 0  ;;  %p399_p3 = pnand %p5854_p0, %p398_p2 }
   0xd   : > { %402 = sbr.rel (%p399_p3) target bundleno = 1731 (0x6c3), region = 64 }
  0x12   : > { %s5855_s28 = sshll.u32 %s6448_s25, 5  ;;  %p470_p4 = scmp.lt.s32.totalorder %s6448_s25, 3 }
  0x13   : > { %p451_p5 = scmp.lt.s32.totalorder %s5855_s28, 127  ;;  %p5860_p6 = scmp.ne.s32.totalorder %s6448_s25, 0 }
  0x14   : > { %s471_s29 = scalar_select %p470_p4, %s6448_s25, 3 }
  0x15   : > { %s13776_s28 = smov (!%p451_p5, %s5855_s28), 127  ;;  %480 = sbr.rel (%p5860_p6) target bundleno = 101 (0x65), region = 68 }
  0x16   : > { %s5859_s30 = sshll.u32 %s471_s29, 1  ;;  %s5856_s13 = sshll.u32 %s13776_s28, 3 }
  0x17   : > { %s6558_s16 = scalar_lea.vmem %s12586_s3, %s5859_s30  ;;  %s6563_s19 = scalar_lea.vmem %s12584_s1, %s5856_s13 }
  0x18   : > { %s6568_s22 = scalar_lea.vmem %s12585_s2, %s5856_s13 }
  0x1a   : > { %vm481_vm0 = vcmask 523264   ;;  %v6459_v0 = vmov -inf  }
  0x1b   : > { %482 = vst.msk [vmem:[%s12595_s12] sm:$0xff] %vm481_vm0, %v6459_v0 }
  0x1c   : > { %483 = vst.msk [vmem:[%s12595_s12 + $0x8] sm:$0xff] %vm481_vm0, %v6459_v0 }
  0x1d   : > { %484 = vst.msk [vmem:[%s12595_s12 + $0x10] sm:$0xff] %vm481_vm0, %v6459_v0 }
  0x1e   : > { %485 = vst.msk [vmem:[%s12595_s12 + $0x18] sm:$0xff] %vm481_vm0, %v6459_v0 }
  0x1f   : > { %486 = vst.msk [vmem:[%s12595_s12 + $0x20] sm:$0xff] %vm481_vm0, %v6459_v0 }
  0x20   : > { %487 = vst.msk [vmem:[%s12595_s12 + $0x28] sm:$0xff] %vm481_vm0, %v6459_v0 }
  0x21   : > { %488 = vst.msk [vmem:[%s12595_s12 + $0x30] sm:$0xff] %vm481_vm0, %v6459_v0 }
  0x22   : > { %489 = vst.msk [vmem:[%s12595_s12 + $0x38] sm:$0xff] %vm481_vm0, %v6459_v0 }
  0x23   : > { %490 = vst.msk [vmem:[%s12595_s12 + $0x40] sm:$0xff] %vm481_vm0, %v6459_v0 }
  0x24   : > { %491 = vst.msk [vmem:[%s12595_s12 + $0x48] sm:$0xff] %vm481_vm0, %v6459_v0 }
  0x25   : > { %492 = vst.msk [vmem:[%s12595_s12 + $0x50] sm:$0xff] %vm481_vm0, %v6459_v0 }
  0x26   : > { %493 = vst.msk [vmem:[%s12595_s12 + $0x58] sm:$0xff] %vm481_vm0, %v6459_v0 }
  0x27   : > { %494 = vst.msk [vmem:[%s12595_s12 + $0x60] sm:$0xff] %vm481_vm0, %v6459_v0 }
  0x28   : > { %495 = vst.msk [vmem:[%s12595_s12 + $0x68] sm:$0xff] %vm481_vm0, %v6459_v0 }
  0x29   : > { %496 = vst.msk [vmem:[%s12595_s12 + $0x70] sm:$0xff] %vm481_vm0, %v6459_v0 }
  0x2a   : > { %497 = vst.msk [vmem:[%s12595_s12 + $0x78] sm:$0xff] %vm481_vm0, %v6459_v0 }
  0x2b   : > { %498 = vst.msk [vmem:[%s12595_s12 + $0x80] sm:$0xff] %vm481_vm0, %v6459_v0 }
  0x2c   : > { %499 = vst.msk [vmem:[%s12595_s12 + $0x88] sm:$0xff] %vm481_vm0, %v6459_v0 }
  0x2d   : > { %500 = vst.msk [vmem:[%s12595_s12 + $0x90] sm:$0xff] %vm481_vm0, %v6459_v0 }
  0x2e   : > { %501 = vst.msk [vmem:[%s12595_s12 + $0x98] sm:$0xff] %vm481_vm0, %v6459_v0 }
  0x2f   : > { %502 = vst.msk [vmem:[%s12595_s12 + $0xa0] sm:$0xff] %vm481_vm0, %v6459_v0 }
  0x30   : > { %503 = vst.msk [vmem:[%s12595_s12 + $0xa8] sm:$0xff] %vm481_vm0, %v6459_v0 }
  0x31   : > { %504 = vst.msk [vmem:[%s12595_s12 + $0xb0] sm:$0xff] %vm481_vm0, %v6459_v0 }
  0x32   : > { %505 = vst.msk [vmem:[%s12595_s12 + $0xb8] sm:$0xff] %vm481_vm0, %v6459_v0 }
  0x33   : > { %506 = vst.msk [vmem:[%s12595_s12 + $0xc0] sm:$0xff] %vm481_vm0, %v6459_v0 }
  0x34   : > { %507 = vst.msk [vmem:[%s12595_s12 + $0xc8] sm:$0xff] %vm481_vm0, %v6459_v0 }
  0x35   : > { %508 = vst.msk [vmem:[%s12595_s12 + $0xd0] sm:$0xff] %vm481_vm0, %v6459_v0 }
  0x36   : > { %509 = vst.msk [vmem:[%s12595_s12 + $0xd8] sm:$0xff] %vm481_vm0, %v6459_v0 }
  0x37   : > { %510 = vst.msk [vmem:[%s12595_s12 + $0xe0] sm:$0xff] %vm481_vm0, %v6459_v0 }
  0x38   : > { %511 = vst.msk [vmem:[%s12595_s12 + $0xe8] sm:$0xff] %vm481_vm0, %v6459_v0 }
  0x39   : > { %512 = vst.msk [vmem:[%s12595_s12 + $0xf0] sm:$0xff] %vm481_vm0, %v6459_v0 }
  0x3a   : > { %513 = vst.msk [vmem:[%s12595_s12 + $0xf8] sm:$0xff] %vm481_vm0, %v6459_v0 }
  0x3b   : > { %514 = vst.msk [vmem:[%s12595_s12 + $0x100] sm:$0xff] %vm481_vm0, %v6459_v0 }
  0x3c   : > { %515 = vst.msk [vmem:[%s12595_s12 + $0x108] sm:$0xff] %vm481_vm0, %v6459_v0 }
  0x3d   : > { %516 = vst.msk [vmem:[%s12595_s12 + $0x110] sm:$0xff] %vm481_vm0, %v6459_v0 }
  0x3e   : > { %517 = vst.msk [vmem:[%s12595_s12 + $0x118] sm:$0xff] %vm481_vm0, %v6459_v0 }
  0x3f   : > { %518 = vst.msk [vmem:[%s12595_s12 + $0x120] sm:$0xff] %vm481_vm0, %v6459_v0 }
  0x40   : > { %519 = vst.msk [vmem:[%s12595_s12 + $0x128] sm:$0xff] %vm481_vm0, %v6459_v0 }
  0x41   : > { %520 = vst.msk [vmem:[%s12595_s12 + $0x130] sm:$0xff] %vm481_vm0, %v6459_v0 }
  0x42   : > { %521 = vst.msk [vmem:[%s12595_s12 + $0x138] sm:$0xff] %vm481_vm0, %v6459_v0 }
  0x43   : > { %522 = vst.msk [vmem:[%s12595_s12 + $0x140] sm:$0xff] %vm481_vm0, %v6459_v0 }
  0x44   : > { %523 = vst.msk [vmem:[%s12595_s12 + $0x148] sm:$0xff] %vm481_vm0, %v6459_v0 }
  0x45   : > { %524 = vst.msk [vmem:[%s12595_s12 + $0x150] sm:$0xff] %vm481_vm0, %v6459_v0 }
  0x46   : > { %525 = vst.msk [vmem:[%s12595_s12 + $0x158] sm:$0xff] %vm481_vm0, %v6459_v0 }
  0x47   : > { %526 = vst.msk [vmem:[%s12595_s12 + $0x160] sm:$0xff] %vm481_vm0, %v6459_v0 }
  0x48   : > { %527 = vst.msk [vmem:[%s12595_s12 + $0x168] sm:$0xff] %vm481_vm0, %v6459_v0 }
  0x49   : > { %528 = vst.msk [vmem:[%s12595_s12 + $0x170] sm:$0xff] %vm481_vm0, %v6459_v0 }
  0x4a   : > { %529 = vst.msk [vmem:[%s12595_s12 + $0x178] sm:$0xff] %vm481_vm0, %v6459_v0 }
  0x4b   : > { %530 = vst.msk [vmem:[%s12595_s12 + $0x180] sm:$0xff] %vm481_vm0, %v6459_v0 }
  0x4c   : > { %531 = vst.msk [vmem:[%s12595_s12 + $0x188] sm:$0xff] %vm481_vm0, %v6459_v0 }
  0x4d   : > { %532 = vst.msk [vmem:[%s12595_s12 + $0x190] sm:$0xff] %vm481_vm0, %v6459_v0 }
  0x4e   : > { %533 = vst.msk [vmem:[%s12595_s12 + $0x198] sm:$0xff] %vm481_vm0, %v6459_v0 }
  0x4f   : > { %534 = vst.msk [vmem:[%s12595_s12 + $0x1a0] sm:$0xff] %vm481_vm0, %v6459_v0 }
  0x50   : > { %535 = vst.msk [vmem:[%s12595_s12 + $0x1a8] sm:$0xff] %vm481_vm0, %v6459_v0 }
  0x51   : > { %536 = vst.msk [vmem:[%s12595_s12 + $0x1b0] sm:$0xff] %vm481_vm0, %v6459_v0 }
  0x52   : > { %537 = vst.msk [vmem:[%s12595_s12 + $0x1b8] sm:$0xff] %vm481_vm0, %v6459_v0 }
  0x53   : > { %538 = vst.msk [vmem:[%s12595_s12 + $0x1c0] sm:$0xff] %vm481_vm0, %v6459_v0 }
  0x54   : > { %539 = vst.msk [vmem:[%s12595_s12 + $0x1c8] sm:$0xff] %vm481_vm0, %v6459_v0 }
  0x55   : > { %540 = vst.msk [vmem:[%s12595_s12 + $0x1d0] sm:$0xff] %vm481_vm0, %v6459_v0 }
  0x56   : > { %541 = vst.msk [vmem:[%s12595_s12 + $0x1d8] sm:$0xff] %vm481_vm0, %v6459_v0 }
  0x57   : > { %542 = vst.msk [vmem:[%s12595_s12 + $0x1e0] sm:$0xff] %vm481_vm0, %v6459_v0 }
  0x58   : > { %543 = vst.msk [vmem:[%s12595_s12 + $0x1e8] sm:$0xff] %vm481_vm0, %v6459_v0 }
  0x59   : > { %544 = vst.msk [vmem:[%s12595_s12 + $0x1f0] sm:$0xff] %vm481_vm0, %v6459_v0 }
  0x5a   : > { %545 = vst.msk [vmem:[%s12595_s12 + $0x1f8] sm:$0xff] %vm481_vm0, %v6459_v0 }
  0x5b   : > { %546 = vst.msk [vmem:[%s12595_s12 + $0x200] sm:$0xff] %vm481_vm0, %v6459_v0 }
  0x5c   : > { %547 = vst.msk [vmem:[%s12595_s12 + $0x208] sm:$0xff] %vm481_vm0, %v6459_v0 }
  0x5d   : > { %548 = vst.msk [vmem:[%s12595_s12 + $0x210] sm:$0xff] %vm481_vm0, %v6459_v0 }
  0x5e   : > { %549 = vst.msk [vmem:[%s12595_s12 + $0x218] sm:$0xff] %vm481_vm0, %v6459_v0 }
  0x5f   : > { %550 = vst.msk [vmem:[%s12595_s12 + $0x220] sm:$0xff] %vm481_vm0, %v6459_v0 }
  0x60   : > { %551 = vst.msk [vmem:[%s12595_s12 + $0x228] sm:$0xff] %vm481_vm0, %v6459_v0 }
  0x61   : > { %552 = vst.msk [vmem:[%s12595_s12 + $0x230] sm:$0xff] %vm481_vm0, %v6459_v0 }
  0x62   : > { %553 = vst.msk [vmem:[%s12595_s12 + $0x238] sm:$0xff] %vm481_vm0, %v6459_v0 }
  0x63   : > { %554 = vst.msk [vmem:[%s12595_s12 + $0x240] sm:$0xff] %vm481_vm0, %v6459_v0 }
  0x64   : > { %555 = vst.msk [vmem:[%s12595_s12 + $0x248] sm:$0xff] %vm481_vm0, %v6459_v0 }
  0x65 PF: > { %v6942_v1 = vld [vmem:[%s6563_s19 + $0x20] sm:$0xff]  ;;  %v6945_v2 = vld [vmem:[%s6563_s19 + $0x10] sm:$0xff]  ;;  %v12596_v4 = vmov 0   ;;  %v6957_v5 = vld [vmem:[%s6563_s19 + $0x28] sm:$0xff]  ;;  %v6461_v22 = vmov 1   ;;  %v6462_v44 = vmov 2  }
  0x66   : > { %v6948_v3 = vld [vmem:[%s6563_s19] sm:$0xff]  ;;  %6307 = vset.pattern.permute.xlu2 %v12596_v4  ;;  %6306 = vset.pattern.permute.xlu1 %v12596_v4  ;;  %v6960_v6 = vld [vmem:[%s6563_s19 + $0x18] sm:$0xff]  ;;  %v6963_v7 = vld [vmem:[%s6563_s19 + $0x8] sm:$0xff]  ;;  %vm12792_vm8 = vcmask 523264   ;;  %s4616_s30 = sshra.s32 %s6448_s25, 7  ;;  %s4621_s15 = sand.u32 127, %s6448_s25 }
  0x67   : > { %6305 = vset.pattern.permute.xlu0 %v12596_v4  ;;  %611 = vperm.xlu2 %6307, %v6942_v1   ;;  %v6969_v8 = vld [vmem:[%s6563_s19 + $0x40] sm:$0xff]  ;;  %v6972_v9 = vld [vmem:[%s6563_s19 + $0x38] sm:$0xff]  ;;  %v6975_v10 = vld [vmem:[%s6563_s19 + $0x30] sm:$0xff]  ;;  %s10611_s13 = sshll.u32 %s4616_s30, 7  ;;  %s11898_s30 = sld [smem:[#allocation3 + %s6448_s25]] }
  0x68   : > { %601 = vperm.xlu1 %6306, %v6945_v2   ;;  %591 = vperm.xlu0 %6305, %v6948_v3   ;;  %v6981_v11 = vld [vmem:[%s6563_s19 + $0x58] sm:$0xff]  ;;  %v6984_v12 = vld [vmem:[%s6563_s19 + $0x50] sm:$0xff]  ;;  %v6987_v13 = vld [vmem:[%s6563_s19 + $0x48] sm:$0xff]  ;;  %s6244_s14 = sadd.s32 128, %s10611_s13  ;;  %s6246_s17 = sadd.s32 256, %s10611_s13 }
  0x69   : > { %v6993_v14 = vld [vmem:[%s6563_s19 + $0x70] sm:$0xff]  ;;  %v6996_v15 = vld [vmem:[%s6563_s19 + $0x68] sm:$0xff]  ;;  %v6999_v16 = vld [vmem:[%s6563_s19 + $0x60] sm:$0xff]  ;;  %s4622_s21 = sadd.s32 %s6244_s14, %s4621_s15  ;;  %s4626_s23 = sadd.s32 %s6246_s17, %s4621_s15 }
  0x6a   : > { %v7005_v17 = vld [vmem:[%s6563_s19 + $0x88] sm:$0xff]  ;;  %v7008_v18 = vld [vmem:[%s6563_s19 + $0x80] sm:$0xff]  ;;  %v7011_v19 = vld [vmem:[%s6563_s19 + $0x78] sm:$0xff]  ;;  %s10715_s24 = sld [smem:[#allocation3 + %s4622_s21]] }
  0x6b   : > { %v7017_v20 = vld [vmem:[%s6563_s19 + $0xa0] sm:$0xff]  ;;  %v7020_v21 = vld [vmem:[%s6563_s19 + $0x98] sm:$0xff]  ;;  %v7029_v24 = vld [vmem:[%s6563_s19 + $0xb0] sm:$0xff]  ;;  %s10728_s28 = sld [smem:[#allocation3 + %s4626_s23]] }
  0x6c   : > { %v7026_v23 = vld [vmem:[%s6563_s19 + $0xb8] sm:$0xff]  ;;  %v7035_v25 = vld [vmem:[%s6563_s19 + $0xd0] sm:$0xff]  ;;  %v7038_v26 = vld [vmem:[%s6563_s19 + $0xc8] sm:$0xff] }
  0x6d   : > { %v7044_v27 = vld [vmem:[%s6563_s19 + $0xe8] sm:$0xff]  ;;  %v7047_v28 = vld [vmem:[%s6563_s19 + $0xe0] sm:$0xff]  ;;  %v7053_v29 = vld [vmem:[%s6563_s19 + $0xf8] sm:$0xff]  ;;  %s12224_s15 = scalar_lea.vmem %s12595_s12, %s11898_s30 }
  0x6e   : > { %v7059_v30 = vld [vmem:[%s6563_s19 + $0x90] sm:$0xff]  ;;  %v7067_v32 = vld [vmem:[%s6563_s19 + $0xa8] sm:$0xff]  ;;  %v7075_v34 = vld [vmem:[%s6563_s19 + $0xc0] sm:$0xff] }
  0x6f   : > { %616 = vperm.xlu2 %6307, %v6957_v5   ;;  %v7083_v36 = vld [vmem:[%s6563_s19 + $0xd8] sm:$0xff]  ;;  %v7095_v40 = vld [vmem:[%s6563_s19 + $0xf0] sm:$0xff] }
  0x70   : > { %606 = vperm.xlu1 %6306, %v6960_v6   ;;  %596 = vperm.xlu0 %6305, %v6963_v7   ;;  %s5488_s25 = ssub.s32 %s10715_s24, %s11898_s30 }
  0x71   : > { %p4788_p7 = scmp.eq.s32.totalorder %s10715_s24, %s10728_s28 }
  0x73   : > { %s10873_s29 = scalar_select %p4788_p7, 1, 0 }
  0x77   : > { %631 = vperm.xlu2 %6307, %v6969_v8  }
  0x78   : > { %626 = vperm.xlu1 %6306, %v6972_v9   ;;  %621 = vperm.xlu0 %6305, %v6975_v10  }
  0x7f   : > { %646 = vperm.xlu2 %6307, %v6981_v11  }
  0x80   : > { %641 = vperm.xlu1 %6306, %v6984_v12   ;;  %636 = vperm.xlu0 %6305, %v6987_v13  }
  0x87   : > { %661 = vperm.xlu2 %6307, %v6993_v14  }
  0x88   : > { %656 = vperm.xlu1 %6306, %v6996_v15   ;;  %651 = vperm.xlu0 %6305, %v6999_v16  }
  0x8f   : > { %676 = vperm.xlu2 %6307, %v7005_v17  }
  0x90   : > { %671 = vperm.xlu1 %6306, %v7008_v18   ;;  %666 = vperm.xlu0 %6305, %v7011_v19  }
  0x97   : > { %691 = vperm.xlu2 %6307, %v7017_v20  }
  0x98   : > { %686 = vperm.xlu1 %6306, %v7020_v21   ;;  %6309 = vset.pattern.permute.xlu0 %v6461_v22 }
  0x99   : > { %787 = vperm.xlu0 %6309, %v6963_v7  }
  0x9f   : > { %706 = vperm.xlu2 %6307, %v7026_v23  }
  0xa0   : > { %701 = vperm.xlu1 %6306, %v7029_v24  }
  0xa1   : > { %807 = vperm.xlu0 %6309, %v6975_v10  }
  0xa7   : > { %721 = vperm.xlu2 %6307, %v7035_v25  }
  0xa8   : > { %716 = vperm.xlu1 %6306, %v7038_v26  }
  0xa9   : > { %819 = vperm.xlu0 %6309, %v6987_v13  }
  0xaf   : > { %736 = vperm.xlu2 %6307, %v7044_v27  }
  0xb0   : > { %731 = vperm.xlu1 %6306, %v7047_v28  }
  0xb1   : > { %831 = vperm.xlu0 %6309, %v6999_v16  }
  0xb7   : > { %6308 = vset.pattern.permute.xlu2 %v6461_v22 }
  0xb8   : > { %746 = vperm.xlu1 %6306, %v7053_v29   ;;  %783 = vperm.xlu2 %6308, %v6948_v3  }
  0xb9   : > { %843 = vperm.xlu0 %6309, %v7011_v19  }
  0xc0   : > { %6310 = vset.pattern.permute.xlu1 %v6461_v22  ;;  %795 = vperm.xlu2 %6308, %v6960_v6  }
  0xc1   : > { %791 = vperm.xlu1 %6310, %v6945_v2   ;;  %855 = vperm.xlu0 %6309, %v7059_v30   ;;  %v7064_v31 = vpop.permute.xlu2 %611 }
  0xc8   : > { %803 = vperm.xlu2 %6308, %v6957_v5  }
  0xc9   : > { %799 = vperm.xlu1 %6310, %v6942_v1   ;;  %867 = vperm.xlu0 %6309, %v7067_v32   ;;  %v7072_v33 = vpop.permute.xlu2 %616 }
  0xd0   : > { %815 = vperm.xlu2 %6308, %v6969_v8  }
  0xd1   : > { %811 = vperm.xlu1 %6310, %v6972_v9   ;;  %879 = vperm.xlu0 %6309, %v7075_v34   ;;  %v7080_v35 = vpop.permute.xlu2 %631 }
  0xd8   : > { %827 = vperm.xlu2 %6308, %v6981_v11  }
  0xd9   : > { %823 = vperm.xlu1 %6310, %v6984_v12   ;;  %891 = vperm.xlu0 %6309, %v7083_v36   ;;  %v7088_v37 = vpop.permute.xlu2 %646 }
  0xda   : > { %v7090_v38 = vpop.permute.xlu1 %601  ;;  %v7092_v39 = vpop.permute.xlu0 %591 }
  0xe0   : > { %839 = vperm.xlu2 %6308, %v6993_v14  }
  0xe1   : > { %835 = vperm.xlu1 %6310, %v6996_v15   ;;  %903 = vperm.xlu0 %6309, %v7095_v40   ;;  %v7100_v41 = vpop.permute.xlu2 %661 }
  0xe2   : > { %12851 = vst [vmem:[#allocation5_spill] sm:$0xff] %v7100_v41  ;;  %v7102_v42 = vpop.permute.xlu1 %606  ;;  %v7104_v43 = vpop.permute.xlu0 %596 }
  0xe8   : > { %851 = vperm.xlu2 %6308, %v7005_v17  }
  0xe9   : > { %847 = vperm.xlu1 %6310, %v7008_v18   ;;  %6312 = vset.pattern.permute.xlu0 %v6462_v44  ;;  %v7108_v45 = vpop.permute.xlu2 %676 }
  0xea   : > { %12852 = vst [vmem:[#allocation6_spill] sm:$0xff] %v7108_v45  ;;  %v7110_v46 = vpop.permute.xlu1 %626  ;;  %980 = vperm.xlu0 %6312, %v6963_v7   ;;  %v7113_v47 = vpop.permute.xlu0 %621 }
  0xf0   : > { %863 = vperm.xlu2 %6308, %v7017_v20  }
  0xf1   : > { %859 = vperm.xlu1 %6310, %v7020_v21   ;;  %v7117_v48 = vpop.permute.xlu2 %691 }
  0xf2   : > { %12853 = vst [vmem:[#allocation7_spill] sm:$0xff] %v7117_v48  ;;  %v7119_v49 = vpop.permute.xlu1 %641  ;;  %1000 = vperm.xlu0 %6312, %v6975_v10   ;;  %v7122_v50 = vpop.permute.xlu0 %636 }
  0xf8   : > { %875 = vperm.xlu2 %6308, %v7026_v23  }
  0xf9   : > { %871 = vperm.xlu1 %6310, %v7029_v24   ;;  %v7126_v51 = vpop.permute.xlu2 %706 }
  0xfa   : > { %12854 = vst [vmem:[#allocation8_spill] sm:$0xff] %v7126_v51  ;;  %v7128_v52 = vpop.permute.xlu1 %656  ;;  %1012 = vperm.xlu0 %6312, %v6987_v13   ;;  %v7131_v53 = vpop.permute.xlu0 %651  ;;  %v7263_v51 = vld [vmem:[%s6568_s22 + $0xf8] sm:$0xff] }
  0xfb   : > { %12878 = vst [vmem:[#allocation32_spill] sm:$0xff] %v7263_v51 }
 0x100   : > { %887 = vperm.xlu2 %6308, %v7035_v25  }
 0x101   : > { %883 = vperm.xlu1 %6310, %v7038_v26   ;;  %v7135_v54 = vpop.permute.xlu2 %721 }
 0x102   : > { %v7137_v55 = vpop.permute.xlu1 %671  ;;  %1024 = vperm.xlu0 %6312, %v6999_v16   ;;  %v7140_v56 = vpop.permute.xlu0 %666 }
 0x103   : > { %12855 = vst [vmem:[#allocation9_spill] sm:$0xff] %v7137_v55  ;;  %v7301_v55 = vld [vmem:[%s6568_s22 + $0x10] sm:$0xff] }
 0x104   : > { %12856 = vst [vmem:[#allocation10_spill] sm:$0xff] %v7140_v56 }
 0x108   : > { %899 = vperm.xlu2 %6308, %v7044_v27  }
 0x109   : > { %895 = vperm.xlu1 %6310, %v7047_v28   ;;  %v7144_v57 = vpop.permute.xlu2 %736 }
 0x10a   : > { %12857 = vst [vmem:[#allocation11_spill] sm:$0xff] %v7144_v57  ;;  %v7146_v58 = vpop.permute.xlu1 %686  ;;  %1036 = vperm.xlu0 %6312, %v7011_v19  }
 0x10b   : > { %12858 = vst [vmem:[#allocation12_spill] sm:$0xff] %v7146_v58  ;;  %v7149_v59 = vpop.permute.xlu0 %787 }
 0x110   : > { %6311 = vset.pattern.permute.xlu2 %v6462_v44 }
 0x111   : > { %907 = vperm.xlu1 %6310, %v7053_v29   ;;  %976 = vperm.xlu2 %6311, %v6948_v3  }
 0x112   : > { %v7153_v60 = vpop.permute.xlu1 %701  ;;  %1048 = vperm.xlu0 %6312, %v7059_v30   ;;  %v7156_v61 = vpop.permute.xlu2 %783 }
 0x113   : > { %12859 = vst [vmem:[#allocation13_spill] sm:$0xff] %v7153_v60  ;;  %v7158_v62 = vpop.permute.xlu0 %807 }
 0x119   : > { %6313 = vset.pattern.permute.xlu1 %v6462_v44  ;;  %988 = vperm.xlu2 %6311, %v6960_v6  }
 0x11a   : > { %984 = vperm.xlu1 %6313, %v6945_v2   ;;  %v7162_v63 = vpop.permute.xlu1 %716  ;;  %1060 = vperm.xlu0 %6312, %v7067_v32   ;;  %v7165_v0 = vpop.permute.xlu2 %795 }
 0x11b   : > { %12860 = vst [vmem:[#allocation14_spill] sm:$0xff] %v7162_v63  ;;  %v7167_v3 = vpop.permute.xlu0 %819 }
 0x121   : > { %996 = vperm.xlu2 %6311, %v6957_v5  }
 0x122   : > { %992 = vperm.xlu1 %6313, %v6942_v1   ;;  %v7171_v7 = vpop.permute.xlu1 %731  ;;  %1072 = vperm.xlu0 %6312, %v7075_v34   ;;  %v7174_v10 = vpop.permute.xlu2 %803 }
 0x123   : > { %12861 = vst [vmem:[#allocation15_spill] sm:$0xff] %v7171_v7  ;;  %v7176_v6 = vpop.permute.xlu0 %831 }
 0x124   : > { %12862 = vst [vmem:[#allocation16_spill] sm:$0xff] %v7176_v6 }
 0x129   : > { %1008 = vperm.xlu2 %6311, %v6969_v8  }
 0x12a   : > { %1004 = vperm.xlu1 %6313, %v6972_v9   ;;  %v7180_v2 = vpop.permute.xlu1 %746  ;;  %1084 = vperm.xlu0 %6312, %v7083_v36   ;;  %v7183_v13 = vpop.permute.xlu2 %815 }
 0x12b   : > { %12863 = vst [vmem:[#allocation17_spill] sm:$0xff] %v7180_v2  ;;  %v7185_v5 = vpop.permute.xlu0 %843  ;;  %v7353_v2 = vld [vmem:[%s6568_s22 + $0x20] sm:$0xff] }
 0x12c   : > { %12864 = vst [vmem:[#allocation18_spill] sm:$0xff] %v7185_v5 }
 0x131   : > { %1020 = vperm.xlu2 %6311, %v6981_v11  }
 0x132   : > { %1016 = vperm.xlu1 %6313, %v6984_v12   ;;  %1096 = vperm.xlu0 %6312, %v7095_v40   ;;  %v7190_v1 = vpop.permute.xlu2 %827 }
 0x133   : > { %12865 = vst [vmem:[#allocation19_spill] sm:$0xff] %v7190_v1  ;;  %v7192_v16 = vpop.permute.xlu1 %791  ;;  %v7194_v8 = vpop.permute.xlu0 %855  ;;  %v7394_v1 = vld [vmem:[%s6568_s22 + $0x70] sm:$0xff] }
 0x134   : > { %12866 = vst [vmem:[#allocation20_spill] sm:$0xff] %v7194_v8 }
 0x135   : > { %12894 = vst [vmem:[#allocation43_spill] sm:$0xff] %v7394_v1 }
 0x139   : > { %1032 = vperm.xlu2 %6311, %v6993_v14  }
 0x13a   : > { %1028 = vperm.xlu1 %6313, %v6996_v15   ;;  %6314 = vset.pattern.permute.xlu0 %v12596_v4  ;;  %v7199_v9 = vpop.permute.xlu2 %839  ;;  %v6210_v15 = vld [vmem:[%s12589_s6 + $0x18] sm:$0xff]  ;;  %v7246_v4 = vld [vmem:[%s6568_s22] sm:$0xff] }
 0x13b   : > { %12867 = vst [vmem:[#allocation21_spill] sm:$0xff] %v7199_v9  ;;  %v7201_v19 = vpop.permute.xlu1 %799  ;;  %681 = vperm.xlu0 %6314, %v7059_v30   ;;  %v7204_v11 = vpop.permute.xlu0 %867  ;;  %1341 = vmatpush.bf16.msra.mxu0 %v6210_v15 }
 0x13c   : > { %12868 = vst [vmem:[#allocation22_spill] sm:$0xff] %v7204_v11  ;;  %6247 = vmatpush.bf16.msra.mxu3 %v6210_v15  ;;  %v12881_v11 = vmov 0  }
 0x141   : > { %1044 = vperm.xlu2 %6311, %v7005_v17  }
 0x142   : > { %1040 = vperm.xlu1 %6313, %v7008_v18   ;;  %v7208_v12 = vpop.permute.xlu2 %851  ;;  %v6209_v18 = vld [vmem:[%s12589_s6 + $0x10] sm:$0xff] }
 0x143   : > { %12869 = vst [vmem:[#allocation23_spill] sm:$0xff] %v7208_v12  ;;  %v7210_v22 = vpop.permute.xlu1 %811  ;;  %696 = vperm.xlu0 %6314, %v7067_v32   ;;  %v7213_v14 = vpop.permute.xlu0 %879  ;;  %1342 = vmatpush.bf16.msra.mxu0 %v6209_v18 }
 0x144   : > { %12870 = vst [vmem:[#allocation24_spill] sm:$0xff] %v7213_v14  ;;  %6248 = vmatpush.bf16.msra.mxu3 %v6209_v18 }
 0x149   : > { %1056 = vperm.xlu2 %6311, %v7017_v20   ;;  %v6208_v20 = vld [vmem:[%s12589_s6 + $0x8] sm:$0xff] }
 0x14a   : > { %1052 = vperm.xlu1 %6313, %v7020_v21   ;;  %v7220_v17 = vpop.permute.xlu2 %863  ;;  %v2224_v21 = vlaneseq  ;;  %1343 = vmatpush.bf16.msra.mxu0 %v6208_v20 }
 0x14b   : > { %12871 = vst [vmem:[#allocation25_spill] sm:$0xff] %v7220_v17  ;;  %v7225_v30 = vpop.permute.xlu1 %823  ;;  %711 = vperm.xlu0 %6314, %v7075_v34   ;;  %v7228_v32 = vpop.permute.xlu0 %891  ;;  %6249 = vmatpush.bf16.msra.mxu3 %v6208_v20  ;;  %v6207_v34 = vld [vmem:[%s12589_s6] sm:$0xff]  ;;  %v2259_v20 = vrot.slane %v7246_v4, 7 }
 0x14c   : > { %12872 = vst [vmem:[#allocation26_spill] sm:$0xff] %v7228_v32 }
 0x14e   : > { %1344 = vmatpush.bf16.msra.mxu0 %v6207_v34 }
 0x14f   : > { %6250 = vmatpush.bf16.msra.mxu3 %v6207_v34  ;;  %v7269_v34 = vld [vmem:[%s6568_s22 + $0x28] sm:$0xff] }
 0x150   : > { %12880 = vst [vmem:[#allocation34_spill] sm:$0xff] %v7269_v34  ;;  %v12883_v45 = vrot.slane %v7269_v34, 7 }
 0x151   : > { %1068 = vperm.xlu2 %6311, %v7026_v23   ;;  %v7249_v23 = vld [vmem:[%s6568_s22 + $0x8] sm:$0xff] }
 0x152   : > { %1064 = vperm.xlu1 %6313, %v7029_v24   ;;  %v7235_v44 = vpop.permute.xlu2 %875  ;;  %v7251_v24 = vshrl.u32 %v2224_v21, 7  ;;  %v2260_v14 = vrot.slane %v7249_v23, 7 }
 0x153   : > { %12873 = vst [vmem:[#allocation27_spill] sm:$0xff] %v7235_v44  ;;  %v7240_v15 = vpop.permute.xlu1 %835  ;;  %726 = vperm.xlu0 %6314, %v7083_v36   ;;  %v7243_v18 = vpop.permute.xlu0 %903  ;;  %v7272_v44 = vld [vmem:[%s6568_s22 + $0x30] sm:$0xff] }
 0x154   : > { %12874 = vst [vmem:[#allocation28_spill] sm:$0xff] %v7240_v15  ;;  %vm12793_vm1 = vcmp.lt.s32.totalorder %v7251_v24, 1  ;;  %v12599_v48 = vrot.slane %v7272_v44, 7 }
 0x155   : > { %12875 = vst [vmem:[#allocation29_spill] sm:$0xff] %v7243_v18  ;;  %v2321_v63 = vsel %vm12793_vm1, %v2259_v20, %v2260_v14 }
 0x156   : > { %12876 = vst [vmem:[#allocation30_spill] sm:$0xff] %v7251_v24  ;;  %vm2324_vm2 = vcmp.eq.s32.totalorder %v2321_v63, %v7249_v23  ;;  %v2316_v12 = vsel %vm12793_vm1, %v12883_v45, %v12599_v48  ;;  %v2261_v45 = vrot.slane %v7301_v55, 7 }
 0x157   : > { %v2388_v8 = vsel %vm2324_vm2, 1, %v12881_v11  ;;  %vm2329_vm4 = vcmp.eq.s32.totalorder %v2316_v12, %v7272_v44 }
 0x159   : > { %1080 = vperm.xlu2 %6311, %v7035_v25  }
 0x15a   : > { %1076 = vperm.xlu1 %6313, %v7038_v26   ;;  %v7258_v36 = vpop.permute.xlu2 %887  ;;  %v12598_v26 = vrot.slane %v7263_v51, 7 }
 0x15b   : > { %12877 = vst [vmem:[#allocation31_spill] sm:$0xff] %v7258_v36  ;;  %v7265_v21 = vpop.permute.xlu1 %847  ;;  %741 = vperm.xlu0 %6314, %v7095_v40   ;;  %v588_v40 = vld [vmem:[%s12587_s4] sm:$0xff] }
 0x15c   : > { %12879 = vst [vmem:[#allocation33_spill] sm:$0xff] %v7265_v21  ;;  %v981_v25 = vpop.permute.xlu0 %980  ;;  %v7281_v17 = vperm.slane %v588_v40, 1  ;;  %v2322_v63 = vsel %vm12793_vm1, %v12598_v26, %v2259_v20  ;;  %v7289_v58 = vperm.slane %v588_v40, 2  ;;  %v7309_v20 = vld [vmem:[%s6568_s22 + $0x40] sm:$0xff]  ;;  %v7312_v26 = vld [vmem:[%s6568_s22 + $0x48] sm:$0xff] }
 0x15d   : > { %12885 = vst [vmem:[#allocation37_spill] sm:$0xff] %v7309_v20  ;;  %vm2323_vm3 = vcmp.eq.s32.totalorder %v2322_v63, %v7246_v4  ;;  %v2393_v63 = vsel %vm2329_vm4, 1, %v12881_v11 }
 0x15e   : > { %12886 = vst [vmem:[#allocation38_spill] sm:$0xff] %v7312_v26  ;;  %v912_v5 = vmul.f32 %v7281_v17, %v7149_v59  ;;  %v12600_v59 = vrot.slane %v7312_v26, 7  ;;  %v2387_v18 = vsel %vm2323_vm3, 1, %v12881_v11  ;;  %v911_v12 = vmul.f32 %v7281_v17, %v7156_v61 }
 0x15f   : > { %v2320_v61 = vsel %vm12793_vm1, %v2260_v14, %v2261_v45 }
 0x160   : > { %vm2325_vm6 = vcmp.eq.s32.totalorder %v2320_v61, %v7301_v55 }
 0x161   : > { %1092 = vperm.xlu2 %6311, %v7044_v27   ;;  %v7304_v27 = vld [vmem:[%s6568_s22 + $0x18] sm:$0xff] }
 0x162   : > { %1088 = vperm.xlu1 %6313, %v7047_v28   ;;  %v7292_v60 = vpop.permute.xlu2 %899  ;;  %v7314_v28 = vperm.slane %v588_v40, 0  ;;  %v2262_v48 = vrot.slane %v7304_v27, 7  ;;  %v7341_v40 = vld [vmem:[%s12588_s5] ss:$0 sm:$0xff] }
 0x163   : > { %12882 = vst [vmem:[#allocation35_spill] sm:$0xff] %v7292_v60  ;;  %v7306_v21 = vpop.permute.xlu1 %859  ;;  %2423 = vperm.xlu0 %6314, %v2388_v8   ;;  %v7389_v60 = vld [vmem:[%s6568_s22 + $0x38] sm:$0xff] }
 0x164   : > { %12884 = vst [vmem:[#allocation36_spill] sm:$0xff] %v7306_v21  ;;  %v7318_v56 = vpop.permute.xlu0 %1000  ;;  %v751_v8 = vmul.f32 %v7314_v28, %v7104_v43  ;;  %v1105_v21 = vmul.f32 %v7289_v58, %v981_v25  ;;  %v750_v43 = vmul.f32 %v7314_v28, %v7092_v39  ;;  %v2319_v25 = vsel %vm12793_vm1, %v2261_v45, %v2262_v48 }
 0x165   : > { %v12887_v39 = vrot.slane %v7309_v20, 7  ;;  %vm2326_vm5 = vcmp.eq.s32.totalorder %v2319_v25, %v7304_v27  ;;  %v2263_v45 = vrot.slane %v7353_v2, 7  ;;  %v2389_v25 = vsel %vm2325_vm6, 1, %v12881_v11 }
 0x166   : > { %v944_v9 = vadd.f32 %v912_v5, %v751_v8 }
 0x167   : > { %v2313_v8 = vsel %vm12793_vm1, %v12887_v39, %v12600_v59 }
 0x168   : > { %v1137_v5 = vadd.f32 %v1105_v21, %v944_v9  ;;  %v7358_v9 = vld [vmem:[%s6568_s22 + $0x58] sm:$0xff]  ;;  %vm2332_vm7 = vcmp.eq.s32.totalorder %v2313_v8, %v7312_v26  ;;  %v12891_v8 = vrot.slane %v7269_v34, 7 }
 0x169   : > { %6315 = vset.pattern.permute.xlu2 %v12881_v11  ;;  %12889 = vst [vmem:[#allocation40_spill] sm:$0xff] %v7358_v9  ;;  %v2270_v59 = vrot.slane %v7358_v9, 7  ;;  %v2396_v61 = vsel %vm2332_vm7, 1, %v12881_v11 }
 0x16a   : > { %1100 = vperm.xlu1 %6313, %v7053_v29   ;;  %2420 = vperm.xlu2 %6315, %v2387_v18   ;;  %v7361_v29 = vld [vmem:[%s6568_s22 + $0x60] sm:$0xff]  ;;  %v943_v18 = vadd.f32 %v911_v12, %v750_v43  ;;  %v2318_v12 = vsel %vm12793_vm1, %v2262_v48, %v2263_v45 }
 0x16b   : > { %v7355_v41 = vpop.permute.xlu1 %871  ;;  %2438 = vperm.xlu0 %6314, %v2393_v63   ;;  %v977_v15 = vpop.permute.xlu2 %976  ;;  %12890 = vst [vmem:[#allocation41_spill] sm:$0xff] %v7361_v29  ;;  %v1173_v63 = vadd.f32 %v7341_v40, %v1137_v5  ;;  %v2317_v5 = vsel %vm12793_vm1, %v2263_v45, %v12891_v8  ;;  %vm2327_vm10 = vcmp.eq.s32.totalorder %v2318_v12, %v7353_v2  ;;  %v2266_v45 = vrot.slane %v7389_v60, 7 }
 0x16c   : > { %12888 = vst [vmem:[#allocation39_spill] sm:$0xff] %v7355_v41  ;;  %v1104_v14 = vmul.f32 %v7289_v58, %v977_v15  ;;  %v7364_v21 = vpop.permute.xlu0 %1012  ;;  %v2390_v15 = vsel %vm2326_vm5, 1, %v12881_v11  ;;  %vm2328_vm9 = vcmp.eq.s32.totalorder %v2317_v5, %v7269_v34  ;;  %v12896_v12 = vrot.slane %v7309_v20, 7 }
 0x16e   : > { %v1136_v39 = vadd.f32 %v1104_v14, %v943_v18  ;;  %v1205_v14 = vmax.f32 %v1173_v63, 0.0 }
 0x170   : > { %v1172_v43 = vadd.f32 %v7341_v40, %v1136_v39  ;;  %v12892_v39 = vrot.slane %v7361_v29, 7 }
 0x172   : > { %6316 = vset.pattern.permute.xlu1 %v12881_v11  ;;  %2429 = vperm.xlu2 %6315, %v2390_v15   ;;  %v1204_v18 = vmax.f32 %v1172_v43, 0.0  ;;  %v2310_v41 = vsel %vm12793_vm1, %v2270_v59, %v12892_v39  ;;  %v7397_v15 = vld [vmem:[%s6568_s22 + $0x78] sm:$0xff]  ;;  %v2273_v43 = vrot.slane %v7394_v1, 7 }
 0x173   : > { %2426 = vperm.xlu1 %6316, %v2389_v25   ;;  %v7391_v32 = vpop.permute.xlu1 %883  ;;  %2447 = vperm.xlu0 %6314, %v2396_v61   ;;  %v989_v8 = vpop.permute.xlu2 %988  ;;  %vm2335_vm11 = vcmp.eq.s32.totalorder %v2310_v41, %v7361_v29  ;;  %v12603_v25 = vrot.slane %v7397_v15, 7  ;;  %v2392_v61 = vsel %vm2328_vm9, 1, %v12881_v11  ;;  %v2314_v41 = vsel %vm12793_vm1, %v2266_v45, %v12896_v12  ;;  %v7431_v12 = vld [vmem:[%s6568_s22 + $0x88] sm:$0xff] }
 0x174   : > { %12893 = vst [vmem:[#allocation42_spill] sm:$0xff] %v7391_v32  ;;  %v7399_v63 = vpop.permute.xlu0 %1024  ;;  %v1236_v48 = vpack.c.bf16 %v1205_v14, %v1204_v18  ;;  %v2391_v18 = vsel %vm2327_vm10, 1, %v12881_v11  ;;  %v2399_v5 = vsel %vm2335_vm11, 1, %v12881_v11  ;;  %v12897_v14 = vrot.slane %v7272_v44, 7  ;;  %v7424_v32 = vld [vmem:[%s6568_s22 + $0x50] sm:$0xff] }
 0x175   : > { %12895 = vst [vmem:[#allocation44_spill] sm:$0xff] %v7399_v63  ;;  %vm2331_vm12 = vcmp.eq.s32.totalorder %v2314_v41, %v7309_v20  ;;  %v7458_v20 = vld [vmem:[%s6568_s22 + $0x68] sm:$0xff] }
 0x176   : > { %5877 = vmatmul.msk.bf16.vlgmr.msra.gmra.mxu0 %vm12792_vm8, %v1236_v48  ;;  %v2315_v39 = vsel %vm12793_vm1, %v12897_v14, %v2266_v45  ;;  %v2307_v48 = vsel %vm12793_vm1, %v2273_v43, %v12603_v25  ;;  %12898 = vst [vmem:[#allocation45_spill] sm:$0xff] %v7424_v32  ;;  %v2269_v45 = vrot.slane %v7424_v32, 7  ;;  %v2395_v14 = vsel %vm2331_vm12, 1, %v12881_v11 }
 0x177   : > { %12900 = vst [vmem:[#allocation47_spill] sm:$0xff] %v7431_v12  ;;  %vm2330_vm13 = vcmp.eq.s32.totalorder %v2315_v39, %v7389_v60  ;;  %vm2338_vm14 = vcmp.eq.s32.totalorder %v2307_v48, %v7397_v15  ;;  %v12902_v39 = vrot.slane %v7312_v26, 7 }
 0x178   : > { %v2394_v25 = vsel %vm2330_vm13, 1, %v12881_v11  ;;  %v2311_v41 = vsel %vm12793_vm1, %v2269_v45, %v2270_v59  ;;  %v7465_v59 = vld [vmem:[%s6568_s22 + $0xa0] sm:$0xff] }
 0x179   : > { %v2312_v48 = vsel %vm12793_vm1, %v12902_v39, %v2269_v45  ;;  %12904 = vst [vmem:[#allocation50_spill] sm:$0xff] %v7465_v59  ;;  %vm2334_vm15 = vcmp.eq.s32.totalorder %v2311_v41, %v7358_v9  ;;  %v914_v45 = vmul.f32 %v7281_v17, %v7165_v0  ;;  %v913_v0 = vmul.f32 %v7281_v17, %v7192_v16 }
 0x17a   : > { %2435 = vperm.xlu2 %6315, %v2392_v61   ;;  %v7434_v61 = vld [vmem:[%s6568_s22 + $0x90] sm:$0xff]  ;;  %vm2333_vm0 = vcmp.eq.s32.totalorder %v2312_v48, %v7424_v32  ;;  %v2398_v41 = vsel %vm2334_vm15, 1, %v12881_v11  ;;  %v12908_v16 = vrot.slane %v7465_v59, 7 }
 0x17b   : > { %2432 = vperm.xlu1 %6316, %v2391_v18   ;;  %v7426_v63 = vpop.permute.xlu1 %895  ;;  %2456 = vperm.xlu0 %6314, %v2399_v5   ;;  %v7428_v34 = vpop.permute.xlu2 %996  ;;  %v2276_v18 = vrot.slane %v7431_v12, 7  ;;  %v12606_v5 = vrot.slane %v7434_v61, 7 }
 0x17c   : > { %12899 = vst [vmem:[#allocation46_spill] sm:$0xff] %v7426_v63  ;;  %v7436_v36 = vpop.permute.xlu0 %1036 }
 0x17d   : > { %12901 = vst [vmem:[#allocation48_spill] sm:$0xff] %v7436_v36  ;;  %v2402_v36 = vsel %vm2338_vm14, 1, %v12881_v11  ;;  %v2304_v63 = vsel %vm12793_vm1, %v2276_v18, %v12606_v5  ;;  %v753_v5 = vmul.f32 %v7314_v28, %v7102_v42  ;;  %v752_v42 = vmul.f32 %v7314_v28, %v7090_v38  ;;  %v7508_v38 = vld [vmem:[%s6568_s22 + $0xb8] sm:$0xff] }
 0x17e   : > { %vm2341_vm2 = vcmp.eq.s32.totalorder %v2304_v63, %v7434_v61  ;;  %v2397_v63 = vsel %vm2333_vm0, 1, %v12881_v11  ;;  %vm12825_vm0 = vcmp.lt.s32.totalorder %v7251_v24, 2 }
 0x17f   : > { %v2405_v48 = vsel %vm2341_vm2, 1, %v12881_v11 }
 0x182   : > { %2444 = vperm.xlu2 %6315, %v2395_v14   ;;  %v7468_v14 = vld [vmem:[%s6568_s22 + $0xa8] sm:$0xff] }
 0x183   : > { %2441 = vperm.xlu1 %6316, %v2394_v25   ;;  %v7460_v6 = vpop.permute.xlu1 %907  ;;  %2465 = vperm.xlu0 %6314, %v2402_v36   ;;  %v7462_v7 = vpop.permute.xlu2 %1008  ;;  %v2272_v36 = vrot.slane %v7458_v20, 7  ;;  %v12907_v9 = vrot.slane %v7468_v14, 7 }
 0x184   : > { %12903 = vst [vmem:[#allocation49_spill] sm:$0xff] %v7460_v6  ;;  %v7470_v57 = vpop.permute.xlu0 %1048  ;;  %v946_v6 = vadd.f32 %v914_v45, %v753_v5  ;;  %v7503_v5 = vld [vmem:[%s6568_s22 + $0x80] sm:$0xff] }
 0x185   : > { %12905 = vst [vmem:[#allocation51_spill] sm:$0xff] %v7470_v57  ;;  %v1107_v57 = vmul.f32 %v7289_v58, %v989_v8  ;;  %v2308_v25 = vsel %vm12793_vm1, %v2272_v36, %v2273_v43  ;;  %v12906_v8 = vrot.slane %v7361_v29, 7  ;;  %v2301_v32 = vsel %vm12793_vm1, %v12908_v16, %v12907_v9 }
 0x186   : > { %v945_v29 = vadd.f32 %v913_v0, %v752_v42  ;;  %vm2337_vm3 = vcmp.eq.s32.totalorder %v2308_v25, %v7394_v1  ;;  %vm2344_vm5 = vcmp.eq.s32.totalorder %v2301_v32, %v7468_v14  ;;  %v12910_v32 = vrot.slane %v7397_v15, 7 }
 0x187   : > { %v2309_v39 = vsel %vm12793_vm1, %v12906_v8, %v2272_v36  ;;  %v1139_v45 = vadd.f32 %v1107_v57, %v946_v6  ;;  %v2275_v57 = vrot.slane %v7503_v5, 7  ;;  %v12616_v6 = vrot.slane %v7508_v38, 7 }
 0x188   : > { %vm2336_vm4 = vcmp.eq.s32.totalorder %v2309_v39, %v7458_v20  ;;  %v2408_v42 = vsel %vm2344_vm5, 1, %v12881_v11 }
 0x189   : > { %v1175_v0 = vadd.f32 %v7341_v40, %v1139_v45  ;;  %v2400_v25 = vsel %vm2336_vm4, 1, %v12881_v11  ;;  %v2306_v16 = vsel %vm12793_vm1, %v12910_v32, %v2275_v57  ;;  %v915_v45 = vmul.f32 %v7281_v17, %v7201_v19 }
 0x18a   : > { %2453 = vperm.xlu2 %6315, %v2398_v41   ;;  %v7511_v41 = vld [vmem:[%s6568_s22 + $0xc0] sm:$0xff]  ;;  %vm2339_vm6 = vcmp.eq.s32.totalorder %v2306_v16, %v7503_v5  ;;  %v1109_v16 = vmul.f32 %v7289_v58, %v7428_v34  ;;  %v12915_v34 = vrot.slane %v7434_v61, 7 }
 0x18b   : > { %2450 = vperm.xlu1 %6316, %v2397_v63   ;;  %2474 = vperm.xlu0 %6314, %v2405_v48   ;;  %v7505_v43 = vpop.permute.xlu2 %1020  ;;  %v12615_v9 = vrot.slane %v7511_v41, 7  ;;  %v2401_v48 = vsel %vm2337_vm3, 1, %v12881_v11 }
 0x18c   : > { %v985_v36 = vpop.permute.xlu1 %984  ;;  %v7513_v8 = vpop.permute.xlu0 %1060 }
 0x18d   : > { %12909 = vst [vmem:[#allocation52_spill] sm:$0xff] %v7513_v8  ;;  %v1106_v26 = vmul.f32 %v7289_v58, %v985_v36  ;;  %v2305_v36 = vsel %vm12793_vm1, %v2275_v57, %v2276_v18  ;;  %v1207_v8 = vmax.f32 %v1175_v0, 0.0  ;;  %v7547_v18 = vld [vmem:[%s6568_s22 + $0xd0] sm:$0xff]  ;;  %v7550_v57 = vld [vmem:[%s6568_s22 + $0xd8] sm:$0xff] }
 0x18e   : > { %12912 = vst [vmem:[#allocation54_spill] sm:$0xff] %v7547_v18  ;;  %vm2340_vm7 = vcmp.eq.s32.totalorder %v2305_v36, %v7431_v12 }
 0x18f   : > { %v1138_v63 = vadd.f32 %v1106_v26, %v945_v29  ;;  %v2298_v26 = vsel %vm12793_vm1, %v12616_v6, %v12615_v9  ;;  %v7540_v29 = vld [vmem:[%s6568_s22 + $0x98] sm:$0xff]  ;;  %v916_v9 = vmul.f32 %v7281_v17, %v7174_v10  ;;  %v755_v10 = vmul.f32 %v7314_v28, %v7072_v33 }
 0x190   : > { %vm2347_vm9 = vcmp.eq.s32.totalorder %v2298_v26, %v7511_v41 }
 0x191   : > { %v1174_v39 = vadd.f32 %v7341_v40, %v1138_v63  ;;  %v2411_v36 = vsel %vm2347_vm9, 1, %v12881_v11  ;;  %v948_v26 = vadd.f32 %v916_v9, %v755_v10  ;;  %v7588_v9 = vld [vmem:[%s6568_s22 + $0xb0] sm:$0xff] }
 0x192   : > { %2462 = vperm.xlu2 %6315, %v2401_v48   ;;  %v754_v48 = vmul.f32 %v7314_v28, %v7064_v31  ;;  %v12914_v31 = vrot.slane %v7465_v59, 7 }
 0x193   : > { %2459 = vperm.xlu1 %6316, %v2400_v25   ;;  %2483 = vperm.xlu0 %6314, %v2408_v42   ;;  %v7544_v63 = vpop.permute.xlu2 %1032  ;;  %v1206_v32 = vmax.f32 %v1174_v39, 0.0  ;;  %v2278_v25 = vrot.slane %v7540_v29, 7  ;;  %v12619_v42 = vrot.slane %v7550_v57, 7 }
 0x194   : > { %12911 = vst [vmem:[#allocation53_spill] sm:$0xff] %v7544_v63  ;;  %v993_v6 = vpop.permute.xlu1 %992  ;;  %v7556_v1 = vpop.permute.xlu0 %1072  ;;  %v947_v39 = vadd.f32 %v915_v45, %v754_v48  ;;  %v12916_v48 = vrot.slane %v7547_v18, 7 }
 0x195   : > { %12913 = vst [vmem:[#allocation55_spill] sm:$0xff] %v7556_v1  ;;  %v1108_v19 = vmul.f32 %v7289_v58, %v993_v6  ;;  %v1237_v0 = vpack.c.bf16 %v1207_v8, %v1206_v32  ;;  %v2404_v8 = vsel %vm2340_vm7, 1, %v12881_v11  ;;  %v2403_v6 = vsel %vm2339_vm6, 1, %v12881_v11 }
 0x196   : > { %v2302_v33 = vsel %vm12793_vm1, %v2278_v25, %v12914_v31  ;;  %v2303_v45 = vsel %vm12793_vm1, %v12915_v34, %v2278_v25  ;;  %v7593_v31 = vld [vmem:[%s6568_s22 + $0xe8] sm:$0xff] }
 0x197   : > { %5878 = vmatmul.msk.bf16.gmra.mxu0 %vm12792_vm8, %v1237_v0  ;;  %v1140_v32 = vadd.f32 %v1108_v19, %v947_v39  ;;  %v2295_v0 = vsel %vm12793_vm1, %v12916_v48, %v12619_v42  ;;  %v1141_v19 = vadd.f32 %v1109_v16, %v948_v26  ;;  %12918 = vst [vmem:[#allocation57_spill] sm:$0xff] %v7593_v31  ;;  %v7596_v39 = vld [vmem:[%s6568_s22 + $0xf0] sm:$0xff]  ;;  %v2281_v16 = vrot.slane %v7588_v9, 7 }
 0x198   : > { %12919 = vst [vmem:[#allocation58_spill] sm:$0xff] %v7596_v39  ;;  %vm2343_vm10 = vcmp.eq.s32.totalorder %v2302_v33, %v7465_v59  ;;  %vm2342_vm11 = vcmp.eq.s32.totalorder %v2303_v45, %v7540_v29  ;;  %vm2350_vm12 = vcmp.eq.s32.totalorder %v2295_v0, %v7550_v57  ;;  %v12921_v0 = vrot.slane %v7508_v38, 7  ;;  %v7626_v59 = vld [vmem:[%s6568_s22 + $0xc8] sm:$0xff] }
 0x199   : > { %v1176_v34 = vadd.f32 %v7341_v40, %v1140_v32  ;;  %v1177_v26 = vadd.f32 %v7341_v40, %v1141_v19  ;;  %v2407_v48 = vsel %vm2343_vm10, 1, %v12881_v11  ;;  %v2406_v42 = vsel %vm2342_vm11, 1, %v12881_v11 }
 0x19a   : > { %2471 = vperm.xlu2 %6315, %v2404_v8   ;;  %v2414_v33 = vsel %vm2350_vm12, 1, %v12881_v11  ;;  %v12920_v32 = vrot.slane %v7468_v14, 7  ;;  %v12922_v19 = vrot.slane %v7593_v31, 7 }
 0x19b   : > { %2468 = vperm.xlu1 %6316, %v2403_v6   ;;  %2492 = vperm.xlu0 %6314, %v2411_v36   ;;  %v7590_v10 = vpop.permute.xlu2 %1044  ;;  %v12625_v36 = vrot.slane %v7596_v39, 7  ;;  %v1208_v1 = vmax.f32 %v1176_v34, 0.0  ;;  %v2299_v6 = vsel %vm12793_vm1, %v2281_v16, %v12921_v0  ;;  %v918_v34 = vmul.f32 %v7281_v17, %v7210_v22 }
 0x19c   : > { %12917 = vst [vmem:[#allocation56_spill] sm:$0xff] %v7590_v10  ;;  %v1005_v8 = vpop.permute.xlu1 %1004  ;;  %v7598_v25 = vpop.permute.xlu0 %1084  ;;  %v2300_v45 = vsel %vm12793_vm1, %v12920_v32, %v2281_v16  ;;  %v1209_v12 = vmax.f32 %v1177_v26, 0.0  ;;  %v757_v16 = vmul.f32 %v7314_v28, %v7110_v46  ;;  %vm2346_vm14 = vcmp.eq.s32.totalorder %v2299_v6, %v7508_v38 }
 0x19d   : > { %v2292_v10 = vsel %vm12793_vm1, %v12922_v19, %v12625_v36  ;;  %vm2345_vm13 = vcmp.eq.s32.totalorder %v2300_v45, %v7588_v9  ;;  %v1111_v22 = vmul.f32 %v7289_v58, %v1005_v8  ;;  %v2284_v26 = vrot.slane %v7626_v59, 7 }
 0x19e   : > { %vm2353_vm15 = vcmp.eq.s32.totalorder %v2292_v10, %v7596_v39  ;;  %v756_v46 = vmul.f32 %v7314_v28, %v7113_v47  ;;  %v950_v19 = vadd.f32 %v918_v34, %v757_v16  ;;  %v1110_v45 = vmul.f32 %v7289_v58, %v7318_v56 }
 0x19f   : > { %v2417_v10 = vsel %vm2353_vm15, 1, %v12881_v11  ;;  %v12924_v6 = vrot.slane %v7547_v18, 7  ;;  %v12925_v56 = vrot.slane %v7511_v41, 7  ;;  %v12929_v36 = vrot.slane %v7550_v57, 7 }
 0x1a0   : > { %v1143_v8 = vadd.f32 %v1111_v22, %v950_v19 }
 0x1a1   : > { %v2296_v34 = vsel %vm12793_vm1, %v2284_v26, %v12924_v6  ;;  %v2297_v16 = vsel %vm12793_vm1, %v12925_v56, %v2284_v26 }
 0x1a2   : > { %2480 = vperm.xlu2 %6315, %v2407_v48   ;;  %v917_v48 = vmul.f32 %v7281_v17, %v7158_v62  ;;  %v12626_v62 = vrot.slane %v7246_v4, 6  ;;  %vm2349_vm2 = vcmp.eq.s32.totalorder %v2296_v34, %v7547_v18  ;;  %v1179_v26 = vadd.f32 %v7341_v40, %v1143_v8 }
 0x1a3   : > { %2477 = vperm.xlu1 %6316, %v2406_v42   ;;  %2501 = vperm.xlu0 %6314, %v2414_v33   ;;  %v7630_v32 = vpop.permute.xlu2 %1056  ;;  %v1238_v42 = vpack.c.bf16 %v1209_v12, %v1208_v1  ;;  %v12624_v33 = vrot.slane %v7249_v23, 6  ;;  %v2410_v1 = vsel %vm2346_vm14, 1, %v12881_v11  ;;  %v2409_v12 = vsel %vm2345_vm13, 1, %v12881_v11 }
 0x1a4   : > { %12923 = vst [vmem:[#allocation59_spill] sm:$0xff] %v7630_v32  ;;  %v7636_v0 = vpop.permute.xlu1 %1016  ;;  %v7638_v63 = vpop.permute.xlu0 %1096  ;;  %v949_v47 = vadd.f32 %v917_v48, %v756_v46  ;;  %v7671_v48 = vld [vmem:[%s6568_s22 + $0xe0] sm:$0xff]  ;;  %vm2348_vm3 = vcmp.eq.s32.totalorder %v2297_v16, %v7626_v59  ;;  %v1211_v56 = vmax.f32 %v1179_v26, 0.0 }
 0x1a5   : > { %v2287_v6 = vrot.slane %v7671_v48, 7  ;;  %v2412_v34 = vsel %vm2348_vm3, 1, %v12881_v11 }
 0x1a6   : > { %v1142_v22 = vadd.f32 %v1110_v45, %v949_v47  ;;  %v12631_v45 = vrot.slane %v7304_v27, 6  ;;  %v2413_v47 = vsel %vm2349_vm2, 1, %v12881_v11 }
 0x1a7   : > { %5879 = vmatmul.msk.bf16.gmra.mxu0 %vm12792_vm8, %v1238_v42  ;;  %v2706_v42 = vsel %vm12825_vm0, %v12626_v62, %v12624_v33  ;;  %v12928_v33 = vrot.slane %v7593_v31, 7  ;;  %v758_v62 = vmul.f32 %v7314_v28, %v7080_v35 }
 0x1a8   : > { %vm2709_vm4 = vcmp.eq.s32.totalorder %v2706_v42, %v7249_v23  ;;  %v919_v42 = vmul.f32 %v7281_v17, %v7183_v13 }
 0x1a9   : > { %v2773_v8 = vsel %vm2709_vm4, 1, %v12881_v11  ;;  %v2293_v16 = vsel %vm12793_vm1, %v2287_v6, %v12928_v33 }
 0x1aa   : > { %2489 = vperm.xlu2 %6315, %v2410_v1   ;;  %vm2352_vm5 = vcmp.eq.s32.totalorder %v2293_v16, %v7593_v31 }
 0x1ab   : > { %2486 = vperm.xlu1 %6316, %v2409_v12   ;;  %2510 = vperm.xlu0 %6314, %v2417_v10   ;;  %v7673_v46 = vpop.permute.xlu2 %1068  ;;  %v12627_v12 = vrot.slane %v7353_v2, 6  ;;  %v1178_v10 = vadd.f32 %v7341_v40, %v1142_v22  ;;  %v2294_v22 = vsel %vm12793_vm1, %v12929_v36, %v2287_v6  ;;  %v920_v36 = vmul.f32 %v7281_v17, %v7167_v3 }
 0x1ac   : > { %12926 = vst [vmem:[#allocation60_spill] sm:$0xff] %v7673_v46  ;;  %v7675_v19 = vpop.permute.xlu1 %1028  ;;  %v1112_v6 = vmul.f32 %v7289_v58, %v7462_v7  ;;  %vm2351_vm6 = vcmp.eq.s32.totalorder %v2294_v22, %v7671_v48  ;;  %v1113_v3 = vmul.f32 %v7289_v58, %v7364_v21  ;;  %v12629_v7 = vrot.slane %v7389_v60, 6 }
 0x1ad   : > { %v7679_v1 = vpop.permute.xlu0 %681  ;;  %v2703_v26 = vsel %vm12825_vm0, %v12631_v45, %v12627_v12  ;;  %v1210_v13 = vmax.f32 %v1178_v10, 0.0  ;;  %v12628_v10 = vrot.slane %v7263_v51, 6  ;;  %v2415_v22 = vsel %vm2351_vm6, 1, %v12881_v11 }
 0x1ae   : > { %12927 = vst [vmem:[#allocation61_spill] sm:$0xff] %v7679_v1  ;;  %vm2712_vm7 = vcmp.eq.s32.totalorder %v2703_v26, %v7353_v2 }
 0x1af   : > { %v1239_v35 = vpack.c.bf16 %v1211_v56, %v1210_v13  ;;  %v2776_v26 = vsel %vm2712_vm7, 1, %v12881_v11  ;;  %v12931_v13 = vrot.slane %v7246_v4, 6 }
 0x1b1   : > { %v2707_v21 = vsel %vm12825_vm0, %v12628_v10, %v12931_v13  ;;  %v12939_v10 = vld [vmem:[#allocation15_spill] sm:$0xff] }
 0x1b2   : > { %2498 = vperm.xlu2 %6315, %v2413_v47   ;;  %v759_v47 = vmul.f32 %v7314_v28, %v7122_v50  ;;  %v951_v50 = vadd.f32 %v919_v42, %v758_v62  ;;  %v12932_v42 = vrot.slane %v7263_v51, 7  ;;  %vm2708_vm9 = vcmp.eq.s32.totalorder %v2707_v21, %v7246_v4  ;;  %v12938_v21 = vld [vmem:[#allocation11_spill] sm:$0xff] }
 0x1b3   : > { %2495 = vperm.xlu1 %6316, %v2412_v34   ;;  %2808 = vperm.xlu0 %6314, %v2773_v8   ;;  %v1081_v33 = vpop.permute.xlu2 %1080  ;;  %v12630_v34 = vrot.slane %v7272_v44, 6  ;;  %v2416_v8 = vsel %vm2352_vm5, 1, %v12881_v11 }
 0x1b4   : > { %v7714_v46 = vpop.permute.xlu1 %1040  ;;  %v952_v16 = vadd.f32 %v920_v36, %v759_v47  ;;  %v1144_v56 = vadd.f32 %v1112_v6, %v951_v50  ;;  %v7750_v6 = vmul.f32 %v7314_v28, %v7088_v37  ;;  %v760_v50 = vmul.f32 %v7314_v28, %v7119_v49 }
 0x1b5   : > { %v7717_v12 = vpop.permute.xlu0 %696  ;;  %v2700_v36 = vsel %vm12825_vm0, %v12630_v34, %v12629_v7  ;;  %v921_v37 = vmul.f32 %v7281_v17, %v7225_v30  ;;  %v7782_v30 = vmul.f32 %v7314_v28, %v12938_v21  ;;  %v12941_v34 = vld [vmem:[#allocation31_spill] sm:$0xff] }
 0x1b6   : > { %12930 = vst [vmem:[#allocation62_spill] sm:$0xff] %v7717_v12  ;;  %v1145_v62 = vadd.f32 %v1113_v3, %v952_v16  ;;  %v7762_v16 = vmul.f32 %v7314_v28, %v7131_v53  ;;  %v1180_v13 = vadd.f32 %v7341_v40, %v1144_v56  ;;  %vm2715_vm11 = vcmp.eq.s32.totalorder %v2700_v36, %v7389_v60  ;;  %v12940_v36 = vld [vmem:[#allocation16_spill] sm:$0xff]  ;;  %v12942_v21 = vld [vmem:[#allocation19_spill] sm:$0xff] }
 0x1b7   : > { %5880 = vmatmul.msk.bf16.gmra.mxu0 %vm12792_vm8, %v1239_v35  ;;  %v12933_v35 = vrot.slane %v7596_v39, 7  ;;  %v776_v53 = vmul.f32 %v7314_v28, %v7135_v54  ;;  %v7790_v7 = vmul.f32 %v7281_v17, %v12940_v36  ;;  %v2772_v54 = vsel %vm2708_vm9, 1, %v12881_v11 }
 0x1b8   : > { %v1181_v56 = vadd.f32 %v7341_v40, %v1145_v62  ;;  %v937_v62 = vmul.f32 %v7281_v17, %v12941_v34  ;;  %v2779_v4 = vsel %vm2715_vm11, 1, %v12881_v11  ;;  %v1212_v45 = vmax.f32 %v1180_v13, 0.0  ;;  %v5951_v34 = vld [vmem:[%s12591_s8 + $0x70] sm:$0xf]  ;;  %v6226_v13 = vld [vmem:[%s12591_s8 + $0x74] sm:$0xf0] }
 0x1b9   : > { %v2291_v47 = vsel %vm12793_vm1, %v12933_v35, %v12932_v42  ;;  %v12937_v35 = vld [vmem:[#allocation45_spill] sm:$0xff]  ;;  %v953_v32 = vadd.f32 %v921_v37, %v760_v50  ;;  %v12944_v36 = vrot.slane %v7304_v27, 6  ;;  %v6225_v50 = vld [vmem:[%s12591_s8 + $0x74] sm:$0xf]  ;;  %v1130_v37 = vmul.f32 %v7289_v58, %v1081_v33 }
 0x1ba   : > { %2507 = vperm.xlu2 %6315, %v2416_v8   ;;  %v7758_v8 = vmul.f32 %v7314_v28, %v7128_v52  ;;  %vm2354_vm10 = vcmp.eq.s32.totalorder %v2291_v47, %v7263_v51  ;;  %v2646_v52 = vrot.slane %v7301_v55, 6  ;;  %v7786_v47 = vmul.f32 %v7314_v28, %v12939_v10  ;;  %v12943_v10 = vld [vmem:[#allocation26_spill] sm:$0xff]  ;;  %v5953_v51 = vld [vmem:[%s12591_s8 + $0x78] sm:$0xf0] }
 0x1bb   : > { %2504 = vperm.xlu1 %6316, %v2415_v22   ;;  %2817 = vperm.xlu0 %6314, %v2776_v26   ;;  %v7754_v3 = vpop.permute.xlu2 %1092  ;;  %v12936_v22 = vld [vmem:[#allocation38_spill] sm:$0xff]  ;;  %v2418_v26 = vsel %vm2354_vm10, 1, %v12881_v11  ;;  %v938_v12 = vmul.f32 %v7281_v17, %v12943_v10  ;;  %v12945_v10 = vrot.slane %v7249_v23, 6  ;;  %v1114_v33 = vmul.f32 %v7289_v58, %v7636_v0 }
 0x1bc   : > { %v7765_v42 = vpop.permute.xlu1 %1052  ;;  %v2704_v31 = vsel %vm12825_vm0, %v2646_v52, %v12944_v36  ;;  %v12947_v1 = vrot.slane %v12936_v22, 6  ;;  %v5952_v23 = vor.u32 %v6226_v13, %v5951_v34  ;;  %v12949_v0 = vld [vmem:[#allocation34_spill] sm:$0xff]  ;;  %v12639_v34 = vrot.slane %v7458_v20, 6 }
 0x1bd   : > { %12934 = vst [vmem:[#allocation63_spill] sm:$0xff] %v7765_v42  ;;  %v7770_v49 = vpop.permute.xlu0 %711  ;;  %v2705_v36 = vsel %vm12825_vm0, %v12945_v10, %v2646_v52  ;;  %v12946_v42 = vrot.slane %v12937_v35, 6  ;;  %v969_v52 = vadd.f32 %v937_v62, %v776_v53  ;;  %vm2711_vm12 = vcmp.eq.s32.totalorder %v2704_v31, %v7304_v27 }
 0x1be   : > { %12935 = vst [vmem:[#allocation64_spill] sm:$0xff] %v7770_v49  ;;  %v922_v49 = vmul.f32 %v7281_v17, %v12942_v21  ;;  %v1213_v21 = vmax.f32 %v1181_v56, 0.0  ;;  %v7830_v56 = vor.u32 %v6225_v50, %v5953_v51  ;;  %vm2710_vm13 = vcmp.eq.s32.totalorder %v2705_v36, %v7301_v55  ;;  %v12950_v51 = vld [vmem:[#allocation41_spill] sm:$0xff]  ;;  %1576 = vmatpush.bf16.msra.mxu1 %v5952_v23  ;;  %v5935_v55 = vld [vmem:[%s12591_s8 + $0x50] sm:$0xf] }
 0x1bf   : > { %v2697_v18 = vsel %vm12825_vm0, %v12947_v1, %v12946_v42  ;;  %v1162_v53 = vadd.f32 %v1130_v37, %v969_v52  ;;  %v6223_v50 = vld [vmem:[%s12591_s8 + $0x64] sm:$0xf]  ;;  %6251 = vmatpush.bf16.msrb.mxu3 %v5952_v23  ;;  %v2775_v37 = vsel %vm2711_vm12, 1, %v12881_v11  ;;  %v12952_v31 = vrot.slane %v7272_v44, 6 }
 0x1c0   : > { %v1240_v1 = vpack.c.bf16 %v1213_v21, %v1212_v45  ;;  %vm2718_vm14 = vcmp.eq.s32.totalorder %v2697_v18, %v12937_v35  ;;  %1665 = vmatpush.bf16.msra.mxu2 %v7830_v56  ;;  %v6224_v45 = vld [vmem:[%s12591_s8 + $0x64] sm:$0xf0]  ;;  %v5945_v21 = vld [vmem:[%s12591_s8 + $0x68] sm:$0xf0]  ;;  %v6222_v18 = vld [vmem:[%s12591_s8 + $0x54] sm:$0xf0] }
 0x1c1   : > { %v7863_v52 = vor.u32 %v6223_v50, %v5945_v21 }
 0x1c2   : > { %2805 = vperm.xlu2 %6315, %v2772_v54   ;;  %v1115_v54 = vmul.f32 %v7289_v58, %v7505_v43  ;;  %v5943_v43 = vld [vmem:[%s12591_s8 + $0x60] sm:$0xf] }
 0x1c3   : > { %2513 = vperm.xlu1 %6316, %v2418_v26   ;;  %2826 = vperm.xlu0 %6314, %v2779_v4   ;;  %v2649_v26 = vrot.slane %v12949_v0, 6  ;;  %v5944_v13 = vor.u32 %v6224_v45, %v5943_v43  ;;  %v954_v4 = vadd.f32 %v922_v49, %v7750_v6  ;;  %v2774_v45 = vsel %vm2710_vm13, 1, %v12881_v11 }
 0x1c4   : > { %v7834_v10 = vpop.permute.xlu1 %1064  ;;  %v7836_v39 = vpop.permute.xlu2 %2420  ;;  %v12951_v49 = vrot.slane %v7353_v2, 6  ;;  %1666 = vmatpush.bf16.msra.mxu2 %v7863_v52  ;;  %v6221_v2 = vld [vmem:[%s12591_s8 + $0x54] sm:$0xf] }
 0x1c5   : > { %12948 = vst [vmem:[#allocation38_spill] sm:$0xff] %v7836_v39  ;;  %v727_v42 = vpop.permute.xlu0 %726  ;;  %v1146_v39 = vadd.f32 %v1114_v33, %v953_v32  ;;  %v2782_v32 = vsel %vm2718_vm14, 1, %v12881_v11  ;;  %v1147_v6 = vadd.f32 %v1115_v54, %v954_v4  ;;  %1577 = vmatpush.bf16.msra.mxu1 %v5944_v13  ;;  %v12953_v33 = vrot.slane %v12950_v51, 6  ;;  %v5937_v54 = vld [vmem:[%s12591_s8 + $0x58] sm:$0xf0]  ;;  %6252 = vmatpush.bf16.msrb.mxu3 %v5944_v13 }
 0x1c6   : > { %v777_v62 = vmul.f32 %v7314_v28, %v727_v42  ;;  %v1131_v42 = vmul.f32 %v7289_v58, %v7598_v25  ;;  %v2702_v27 = vsel %vm12825_vm0, %v12951_v49, %v2649_v26  ;;  %v2701_v25 = vsel %vm12825_vm0, %v2649_v26, %v12952_v31  ;;  %v6220_v49 = vld [vmem:[%s12591_s8 + $0x44] sm:$0xf0] }
 0x1c7   : > { %5881 = vmatmul.msk.bf16.gmra.mxu0 %vm12792_vm8, %v1240_v1  ;;  %v2694_v23 = vsel %vm12825_vm0, %v12953_v33, %v12639_v34  ;;  %v1182_v1 = vadd.f32 %v7341_v40, %v1146_v39  ;;  %v5936_v26 = vor.u32 %v6222_v18, %v5935_v55  ;;  %v7902_v4 = vor.u32 %v6221_v2, %v5937_v54  ;;  %v5929_v33 = vld [vmem:[%s12591_s8 + $0x48] sm:$0xf0] }
 0x1c8   : > { %v970_v43 = vadd.f32 %v938_v12, %v777_v62  ;;  %v1198_v12 = vadd.f32 %v7341_v40, %v1162_v53  ;;  %v12954_v53 = vld [vmem:[#allocation35_spill] sm:$0xff]  ;;  %vm2714_vm15 = vcmp.eq.s32.totalorder %v2701_v25, %v7272_v44  ;;  %vm2713_vm2 = vcmp.eq.s32.totalorder %v2702_v27, %v12949_v0  ;;  %v12956_v54 = vld [vmem:[#allocation46_spill] sm:$0xff]  ;;  %v12957_v44 = vld [vmem:[#allocation28_spill] sm:$0xff] }
 0x1c9   : > { %v940_v62 = vmul.f32 %v7281_v17, %v12954_v53  ;;  %vm2721_vm3 = vcmp.eq.s32.totalorder %v2694_v23, %v7458_v20  ;;  %v12643_v39 = vrot.slane %v7397_v15, 6  ;;  %1578 = vmatpush.bf16.msra.mxu1 %v5936_v26  ;;  %1667 = vmatpush.bf16.msra.mxu2 %v7902_v4  ;;  %v1183_v31 = vadd.f32 %v7341_v40, %v1147_v6  ;;  %v5919_v0 = vld [vmem:[%s12591_s8 + $0x30] sm:$0xf] }
 0x1ca   : > { %v1163_v36 = vadd.f32 %v1131_v42, %v970_v43  ;;  %2814 = vperm.xlu2 %6315, %v2775_v37   ;;  %v12955_v42 = vld [vmem:[#allocation37_spill] sm:$0xff]  ;;  %v1230_v55 = vmax.f32 %v1198_v12, 0.0  ;;  %6253 = vmatpush.bf16.msrb.mxu3 %v5936_v26  ;;  %v939_v53 = vmul.f32 %v7281_v17, %v12956_v54  ;;  %v2778_v34 = vsel %vm2714_vm15, 1, %v12881_v11 }
 0x1cb   : > { %2811 = vperm.xlu1 %6316, %v2774_v45   ;;  %2835 = vperm.xlu0 %6314, %v2782_v32   ;;  %v2652_v13 = vrot.slane %v12955_v42, 6  ;;  %v12641_v45 = vrot.slane %v7503_v5, 6  ;;  %v5927_v32 = vld [vmem:[%s12591_s8 + $0x40] sm:$0xf]  ;;  %v1214_v6 = vmax.f32 %v1182_v1, 0.0  ;;  %v2785_v26 = vsel %vm2721_vm3, 1, %v12881_v11 }
 0x1cc   : > { %v7906_v50 = vpop.permute.xlu1 %1076  ;;  %v7908_v21 = vpop.permute.xlu2 %2429  ;;  %v1199_v37 = vadd.f32 %v7341_v40, %v1163_v36  ;;  %v5928_v2 = vor.u32 %v6220_v49, %v5927_v32  ;;  %v6219_v36 = vld [vmem:[%s12591_s8 + $0x44] sm:$0xf]  ;;  %v2777_v49 = vsel %vm2713_vm2, 1, %v12881_v11  ;;  %v7950_v54 = vadd.f32 %v7790_v7, %v7762_v16  ;;  %v6218_v7 = vld [vmem:[%s12591_s8 + $0x34] sm:$0xf0] }
 0x1cd   : > { %v7913_v43 = vpop.permute.xlu0 %741  ;;  %v7938_v12 = vor.u32 %v6219_v36, %v5929_v33  ;;  %v924_v25 = vmul.f32 %v7281_v17, %v12957_v44  ;;  %v12958_v1 = vrot.slane %v12936_v22, 6  ;;  %v6217_v16 = vld [vmem:[%s12591_s8 + $0x34] sm:$0xf]  ;;  %v972_v27 = vadd.f32 %v940_v62, %v7782_v30  ;;  %v5921_v30 = vld [vmem:[%s12591_s8 + $0x38] sm:$0xf0] }
 0x1ce   : > { %v1231_v18 = vmax.f32 %v1199_v37, 0.0  ;;  %v1133_v37 = vmul.f32 %v7289_v58, %v7754_v3  ;;  %1579 = vmatpush.bf16.msra.mxu1 %v5928_v2  ;;  %v1215_v23 = vmax.f32 %v1183_v31, 0.0  ;;  %v2691_v36 = vsel %vm12825_vm0, %v12643_v39, %v12641_v45  ;;  %6254 = vmatpush.bf16.msrb.mxu3 %v5928_v2  ;;  %v6216_v2 = vld [vmem:[%s12591_s8 + $0x24] sm:$0xf0] }
 0x1cf   : > { %v2698_v3 = vsel %vm12825_vm0, %v2652_v13, %v12958_v1  ;;  %1668 = vmatpush.bf16.msra.mxu2 %v7938_v12  ;;  %v971_v62 = vadd.f32 %v939_v53, %v7786_v47  ;;  %vm2724_vm6 = vcmp.eq.s32.totalorder %v2691_v36, %v7503_v5  ;;  %v12960_v47 = vld [vmem:[#allocation40_spill] sm:$0xff]  ;;  %v12964_v36 = vld [vmem:[#allocation5_spill] sm:$0xff] }
 0x1d0   : > { %v1249_v32 = vpack.c.bf16 %v1231_v18, %v1230_v55  ;;  %v12959_v55 = vrot.slane %v7389_v60, 6  ;;  %v7984_v60 = vor.u32 %v6217_v16, %v5921_v30  ;;  %v1165_v31 = vadd.f32 %v1133_v37, %v972_v27  ;;  %v12961_v16 = vld [vmem:[#allocation44_spill] sm:$0xff] }
 0x1d1   : > { %v1241_v44 = vpack.c.bf16 %v1215_v23, %v1214_v6  ;;  %vm2717_vm4 = vcmp.eq.s32.totalorder %v2698_v3, %v12936_v22  ;;  %v2655_v53 = vrot.slane %v12960_v47, 6  ;;  %v956_v6 = vadd.f32 %v924_v25, %v7758_v8 }
 0x1d2   : > { %5890 = vmatmul.msk.bf16.vlgmr.msra.gmra.mxu3 %vm12792_vm8, %v1249_v32  ;;  %2823 = vperm.xlu2 %6315, %v2778_v34   ;;  %v2699_v18 = vsel %vm12825_vm0, %v12959_v55, %v2652_v13  ;;  %v5920_v34 = vor.u32 %v6218_v7, %v5919_v0  ;;  %v1117_v13 = vmul.f32 %v7289_v58, %v7675_v19  ;;  %v5911_v19 = vld [vmem:[%s12591_s8 + $0x20] sm:$0xf]  ;;  %v12642_v37 = vrot.slane %v7434_v61, 6  ;;  %v6215_v0 = vld [vmem:[%s12591_s8 + $0x24] sm:$0xf] }
 0x1d3   : > { %2820 = vperm.xlu1 %6316, %v2777_v49   ;;  %2844 = vperm.xlu0 %6314, %v2785_v26   ;;  %vm2716_vm5 = vcmp.eq.s32.totalorder %v2699_v18, %v12955_v42  ;;  %v12640_v49 = vrot.slane %v7540_v29, 6  ;;  %v5912_v26 = vor.u32 %v6216_v2, %v5911_v19  ;;  %v5913_v7 = vld [vmem:[%s12591_s8 + $0x28] sm:$0xf0]  ;;  %v1116_v27 = vmul.f32 %v7289_v58, %v12961_v16  ;;  %v5903_v42 = vld [vmem:[%s12591_s8 + $0x10] sm:$0xf] }
 0x1d4   : > { %v1089_v33 = vpop.permute.xlu1 %1088  ;;  %v7988_v32 = vpop.permute.xlu2 %2435  ;;  %1580 = vmatpush.bf16.msra.mxu1 %v5920_v34  ;;  %1669 = vmatpush.bf16.msra.mxu2 %v7984_v60  ;;  %v2781_v8 = vsel %vm2717_vm4, 1, %v12881_v11  ;;  %v8019_v25 = vor.u32 %v6215_v0, %v5913_v7  ;;  %v1149_v30 = vadd.f32 %v1117_v13, %v956_v6  ;;  %v2780_v19 = vsel %vm2716_vm5, 1, %v12881_v11  ;;  %v6214_v18 = vld [vmem:[%s12591_s8 + $0x14] sm:$0xf0]  ;;  %v5905_v0 = vld [vmem:[%s12591_s8 + $0x18] sm:$0xf0] }
 0x1d5   : > { %v1132_v1 = vmul.f32 %v7289_v58, %v1089_v33  ;;  %v7992_v55 = vpop.permute.xlu0 %2423  ;;  %v1201_v33 = vadd.f32 %v7341_v40, %v1165_v31  ;;  %v2788_v2 = vsel %vm2724_vm6, 1, %v12881_v11  ;;  %6255 = vmatpush.bf16.msrb.mxu3 %v5920_v34  ;;  %v12963_v3 = vrot.slane %v12950_v51, 6  ;;  %v12965_v31 = vld [vmem:[#allocation17_spill] sm:$0xff] }
 0x1d6   : > { %v764_v34 = vmul.f32 %v7314_v28, %v12964_v36  ;;  %v5904_v6 = vor.u32 %v6214_v18, %v5903_v42  ;;  %v12966_v7 = vld [vmem:[#allocation21_spill] sm:$0xff]  ;;  %v1185_v18 = vadd.f32 %v7341_v40, %v1149_v30 }
 0x1d7   : > { %v1164_v23 = vadd.f32 %v1132_v1, %v971_v62  ;;  %5882 = vmatmul.msk.bf16.gmra.mxu0 %vm12792_vm8, %v1241_v44  ;;  %v12962_v44 = vrot.slane %v12937_v35, 6  ;;  %v2695_v13 = vsel %vm12825_vm0, %v2655_v53, %v12963_v3  ;;  %v6213_v35 = vld [vmem:[%s12591_s8 + $0x14] sm:$0xf]  ;;  %v781_v1 = vmul.f32 %v7314_v28, %v12965_v31 }
 0x1d8   : > { %1581 = vmatpush.bf16.msra.mxu1 %v5912_v26  ;;  %1670 = vmatpush.bf16.msra.mxu2 %v8019_v25  ;;  %v925_v16 = vmul.f32 %v7281_v17, %v12966_v7  ;;  %vm2720_vm9 = vcmp.eq.s32.totalorder %v2695_v13, %v12950_v51  ;;  %v8069_v42 = vor.u32 %v6213_v35, %v5905_v0  ;;  %v6211_v0 = vld [vmem:[%s12591_s8 + $0x4] sm:$0xf] }
 0x1d9   : > { %v1200_v62 = vadd.f32 %v7341_v40, %v1164_v23  ;;  %v2696_v22 = vsel %vm12825_vm0, %v12962_v44, %v2655_v53  ;;  %v2688_v53 = vsel %vm12825_vm0, %v12642_v37, %v12640_v49  ;;  %v1148_v23 = vadd.f32 %v1116_v27, %v7950_v54  ;;  %v12967_v44 = vld [vmem:[#allocation49_spill] sm:$0xff]  ;;  %6256 = vmatpush.bf16.msrb.mxu3 %v5912_v26  ;;  %v12970_v27 = vld [vmem:[#allocation43_spill] sm:$0xff] }
 0x1da   : > { %2832 = vperm.xlu2 %6315, %v2781_v8   ;;  %v942_v8 = vmul.f32 %v7281_v17, %v12967_v44  ;;  %vm2719_vm7 = vcmp.eq.s32.totalorder %v2696_v22, %v12960_v47  ;;  %v1233_v54 = vmax.f32 %v1201_v33, 0.0  ;;  %vm2727_vm10 = vcmp.eq.s32.totalorder %v2688_v53, %v7540_v29  ;;  %v5897_v44 = vld [vmem:[%s12591_s8 + $0x8] sm:$0xf0]  ;;  %v12971_v49 = vld [vmem:[#allocation29_spill] sm:$0xff] }
 0x1db   : > { %2829 = vperm.xlu1 %6316, %v2780_v19   ;;  %2853 = vperm.xlu0 %6314, %v2788_v2   ;;  %v1232_v31 = vmax.f32 %v1200_v62, 0.0  ;;  %v2658_v19 = vrot.slane %v12970_v27, 6  ;;  %v5895_v2 = vld [vmem:[%s12591_s8] sm:$0xf]  ;;  %v6212_v62 = vld [vmem:[%s12591_s8 + $0x4] sm:$0xf0]  ;;  %v780_v26 = vmul.f32 %v7314_v28, %v7913_v43  ;;  %v941_v45 = vmul.f32 %v7281_v17, %v12971_v49 }
 0x1dc   : > { %v1101_v3 = vpop.permute.xlu1 %1100  ;;  %v8065_v36 = vpop.permute.xlu2 %2444  ;;  %1582 = vmatpush.bf16.msra.mxu1 %v5904_v6  ;;  %1671 = vmatpush.bf16.msra.mxu2 %v8069_v42  ;;  %v5896_v35 = vor.u32 %v6212_v62, %v5895_v2  ;;  %v1184_v43 = vadd.f32 %v7341_v40, %v1148_v23  ;;  %v2783_v37 = vsel %vm2719_vm7, 1, %v12881_v11  ;;  %v2784_v2 = vsel %vm2720_vm9, 1, %v12881_v11  ;;  %v12972_v49 = vld [vmem:[#allocation10_spill] sm:$0xff] }
 0x1dd   : > { %12968 = vst [vmem:[#allocation45_spill] sm:$0xff] %v8065_v36  ;;  %v8072_v7 = vpop.permute.xlu0 %2438  ;;  %v1135_v62 = vmul.f32 %v7289_v58, %v1101_v3  ;;  %v1250_v30 = vpack.c.bf16 %v1233_v54, %v1232_v31  ;;  %v2791_v33 = vsel %vm2727_vm10, 1, %v12881_v11  ;;  %v8106_v39 = vor.u32 %v6211_v0, %v5897_v44  ;;  %6257 = vmatpush.bf16.msrb.mxu3 %v5904_v6  ;;  %v12977_v31 = vld [vmem:[#allocation18_spill] sm:$0xff] }
 0x1de   : > { %12969 = vst [vmem:[#allocation11_spill] sm:$0xff] %v8072_v7  ;;  %v765_v40 = vmul.f32 %v7314_v28, %v12972_v49  ;;  %v974_v23 = vadd.f32 %v942_v8, %v781_v1  ;;  %v1217_v47 = vmax.f32 %v1185_v18, 0.0  ;;  %v12973_v22 = vrot.slane %v7397_v15, 6 }
 0x1df   : > { %v973_v13 = vadd.f32 %v941_v45, %v780_v26  ;;  %v12974_v53 = vrot.slane %v7458_v20, 6  ;;  %v12975_v3 = vrot.slane %v7588_v9, 6  ;;  %v12976_v1 = vrot.slane %v7468_v14, 6  ;;  %v12978_v45 = vld [vmem:[#allocation53_spill] sm:$0xff] }
 0x1e0   : > { %v2692_v51 = vsel %vm12825_vm0, %v2658_v19, %v12973_v22  ;;  %1583 = vmatpush.bf16.msra.mxu1 %v5896_v35  ;;  %v926_v18 = vmul.f32 %v7281_v17, %v12977_v31  ;;  %v957_v54 = vadd.f32 %v925_v16, %v764_v34  ;;  %v1118_v26 = vmul.f32 %v7289_v58, %v12978_v45 }
 0x1e1   : > { %v2693_v6 = vsel %vm12825_vm0, %v12974_v53, %v2658_v19  ;;  %v2685_v8 = vsel %vm12825_vm0, %v12976_v1, %v12975_v3  ;;  %v1216_v20 = vmax.f32 %v1184_v43, 0.0  ;;  %v1134_v19 = vmul.f32 %v7289_v58, %v7638_v63  ;;  %1672 = vmatpush.bf16.msra.mxu2 %v8106_v39  ;;  %6258 = vmatpush.bf16.msrb.mxu3 %v5896_v35  ;;  %v12982_v63 = vld [vmem:[#allocation48_spill] sm:$0xff] }
 0x1e2   : > { %5891 = vmatmul.msk.bf16.gmra.mxu3 %vm12792_vm8, %v1250_v30  ;;  %2841 = vperm.xlu2 %6315, %v2784_v2   ;;  %v1167_v30 = vadd.f32 %v1135_v62, %v974_v23  ;;  %vm2723_vm11 = vcmp.eq.s32.totalorder %v2692_v51, %v7397_v15  ;;  %vm2722_vm12 = vcmp.eq.s32.totalorder %v2693_v6, %v12970_v27  ;;  %v2668_v62 = vrot.slane %v7511_v41, 6 }
 0x1e3   : > { %2838 = vperm.xlu1 %6316, %v2783_v37   ;;  %2862 = vperm.xlu0 %6314, %v2791_v33   ;;  %v1242_v16 = vpack.c.bf16 %v1217_v47, %v1216_v20  ;;  %vm2730_vm13 = vcmp.eq.s32.totalorder %v2685_v8, %v7588_v9  ;;  %v12981_v37 = vld [vmem:[#allocation47_spill] sm:$0xff]  ;;  %v1119_v43 = vmul.f32 %v7289_v58, %v12982_v63  ;;  %v2669_v35 = vrot.slane %v7626_v59, 6 }
 0x1e4   : > { %v8131_v0 = vpop.permute.xlu2 %2453  ;;  %v2661_v33 = vrot.slane %v12981_v37, 6  ;;  %v1166_v2 = vadd.f32 %v1134_v19, %v973_v13  ;;  %v958_v49 = vadd.f32 %v926_v18, %v765_v40  ;;  %v2787_v27 = vsel %vm2723_vm11, 1, %v12881_v11 }
 0x1e5   : > { %12979 = vst [vmem:[#allocation15_spill] sm:$0xff] %v8131_v0  ;;  %v8135_v44 = vpop.permute.xlu1 %2426  ;;  %v8137_v34 = vpop.permute.xlu0 %2447  ;;  %6259 = vmatpush.bf16.msra.mxu3 %v7830_v56  ;;  %v1150_v23 = vadd.f32 %v1118_v26, %v957_v54  ;;  %v8154_v56 = vld [vmem:[%s12588_s5] ss:$0 sm:$0xff]  ;;  %v2786_v22 = vsel %vm2722_vm12, 1, %v12881_v11  ;;  %v2794_v13 = vsel %vm2730_vm13, 1, %v12881_v11  ;;  %v12983_v40 = vrot.slane %v7434_v61, 6 }
 0x1e6   : > { %12980 = vst [vmem:[#allocation16_spill] sm:$0xff] %v8137_v34  ;;  %v1203_v47 = vadd.f32 %v8154_v56, %v1167_v30  ;;  %v1151_v15 = vadd.f32 %v1119_v43, %v958_v49  ;;  %v1202_v51 = vadd.f32 %v8154_v56, %v1166_v2  ;;  %v12984_v6 = vrot.slane %v7503_v5, 6  ;;  %v12987_v54 = vld [vmem:[#allocation50_spill] sm:$0xff] }
 0x1e7   : > { %5883 = vmatmul.msk.bf16.gmra.mxu0 %vm12792_vm8, %v1242_v16  ;;  %v2689_v53 = vsel %vm12825_vm0, %v2661_v33, %v12983_v40  ;;  %v2682_v1 = vsel %vm12825_vm0, %v2668_v62, %v2669_v35  ;;  %v2664_v45 = vrot.slane %v12987_v54, 6  ;;  %v2671_v19 = vrot.slane %v7550_v57, 6 }
 0x1e8   : > { %v2690_v3 = vsel %vm12825_vm0, %v12984_v6, %v2661_v33  ;;  %v1235_v31 = vmax.f32 %v1203_v47, 0.0  ;;  %vm2726_vm14 = vcmp.eq.s32.totalorder %v2689_v53, %v7434_v61  ;;  %vm2733_vm2 = vcmp.eq.s32.totalorder %v2682_v1, %v7626_v59  ;;  %v12990_v47 = vld [vmem:[#allocation33_spill] sm:$0xff] }
 0x1e9   : > { %6260 = vmatpush.bf16.msra.mxu3 %v7863_v52  ;;  %v1186_v52 = vadd.f32 %v8154_v56, %v1150_v23  ;;  %vm2725_vm15 = vcmp.eq.s32.totalorder %v2690_v3, %v12981_v37  ;;  %v1187_v26 = vadd.f32 %v8154_v56, %v1151_v15  ;;  %v1234_v20 = vmax.f32 %v1202_v51, 0.0 }
 0x1ea   : > { %2850 = vperm.xlu2 %6315, %v2787_v27   ;;  %v2672_v30 = vrot.slane %v7671_v48, 6  ;;  %v2790_v61 = vsel %vm2726_vm14, 1, %v12881_v11  ;;  %v2789_v33 = vsel %vm2725_vm15, 1, %v12881_v11  ;;  %v2797_v37 = vsel %vm2733_vm2, 1, %v12881_v11 }
 0x1eb   : > { %2847 = vperm.xlu1 %6316, %v2786_v22   ;;  %2871 = vperm.xlu0 %6314, %v2794_v13   ;;  %v1251_v16 = vpack.c.bf16 %v1235_v31, %v1234_v20  ;;  %v1218_v63 = vmax.f32 %v1186_v52, 0.0  ;;  %v12988_v43 = vrot.slane %v7468_v14, 6  ;;  %v1219_v2 = vmax.f32 %v1187_v26, 0.0  ;;  %v12991_v13 = vld [vmem:[#allocation9_spill] sm:$0xff] }
 0x1ec   : > { %v8176_v8 = vpop.permute.xlu2 %2462  ;;  %v12989_v49 = vrot.slane %v7540_v29, 6  ;;  %v2679_v23 = vsel %vm12825_vm0, %v2671_v19, %v2672_v30  ;;  %v927_v22 = vmul.f32 %v7281_v17, %v12990_v47  ;;  %v766_v40 = vmul.f32 %v7314_v28, %v12991_v13  ;;  %v12992_v29 = vld [vmem:[#allocation23_spill] sm:$0xff]  ;;  %v8231_v31 = vld [vmem:[%s12590_s7] ss:$0 sm:$0xff] }
 0x1ed   : > { %12985 = vst [vmem:[#allocation31_spill] sm:$0xff] %v8176_v8  ;;  %v8179_v5 = vpop.permute.xlu1 %2432  ;;  %v8181_v18 = vpop.permute.xlu0 %2456  ;;  %6261 = vmatpush.bf16.msra.mxu3 %v7902_v4  ;;  %v2686_v4 = vsel %vm12825_vm0, %v2664_v45, %v12988_v43  ;;  %v928_v53 = vmul.f32 %v7281_v17, %v12992_v29  ;;  %v1243_v51 = vpack.c.bf16 %v1219_v2, %v1218_v63  ;;  %v2667_v52 = vrot.slane %v7508_v38, 6  ;;  %v8272_v29 = vld [vmem:[%s6568_s22 + $0xf8] sm:$0xff]  ;;  %v13053_v8 = vld [vmem:[#allocation42_spill] sm:$0xff] }
 0x1ee   : > { %12986 = vst [vmem:[#allocation19_spill] sm:$0xff] %v8181_v18  ;;  %v2687_v27 = vsel %vm12825_vm0, %v12989_v49, %v2664_v45  ;;  %vm2729_vm3 = vcmp.eq.s32.totalorder %v2686_v4, %v7468_v14  ;;  %v1120_v6 = vmul.f32 %v7289_v58, %v7714_v46  ;;  %vm2736_vm5 = vcmp.eq.s32.totalorder %v2679_v23, %v7671_v48  ;;  %v12996_v14 = vld [vmem:[#allocation58_spill] sm:$0xff]  ;;  %v13000_v49 = vld [vmem:[#allocation32_spill] sm:$0xff] }
 0x1ef   : > { %vm2728_vm4 = vcmp.eq.s32.totalorder %v2687_v27, %v12987_v54  ;;  %v2674_v45 = vrot.slane %v12996_v14, 6  ;;  %v12997_v46 = vld [vmem:[#allocation6_spill] sm:$0xff]  ;;  %v959_v20 = vadd.f32 %v927_v22, %v766_v40  ;;  %v2793_v38 = vsel %vm2729_vm3, 1, %v12881_v11  ;;  %v8268_v40 = vld [vmem:[%s6568_s22 + $0xb8] sm:$0xff] }
 0x1f0   : > { %v767_v26 = vmul.f32 %v7314_v28, %v12997_v46  ;;  %v2683_v63 = vsel %vm12825_vm0, %v2667_v52, %v2668_v62  ;;  %v12999_v4 = vrot.slane %v7588_v9, 6  ;;  %v13001_v27 = vrot.slane %v13000_v49, 6  ;;  %v8278_v46 = vld [vmem:[%s6568_s22 + $0x8] sm:$0xff] }
 0x1f1   : > { %6262 = vmatpush.bf16.msra.mxu3 %v7938_v12  ;;  %vm2732_vm6 = vcmp.eq.s32.totalorder %v2683_v63, %v7511_v41  ;;  %vm12823_vm10 = vcmp.lt.s32.totalorder %v7251_v24, 4  ;;  %v13006_v63 = vld [vmem:[#allocation36_spill] sm:$0xff] }
 0x1f2   : > { %5892 = vmatmul.msk.bf16.gmra.mxu3 %vm12792_vm8, %v1251_v16  ;;  %2859 = vperm.xlu2 %6315, %v2790_v61   ;;  %v12998_v61 = vld [vmem:[#allocation56_spill] sm:$0xff]  ;;  %v2800_v16 = vsel %vm2736_vm5, 1, %v12881_v11  ;;  %v2684_v2 = vsel %vm12825_vm0, %v12999_v4, %v2667_v52  ;;  %v2676_v23 = vsel %vm12825_vm0, %v2674_v45, %v13001_v27  ;;  %v13010_v27 = vld [vmem:[#allocation63_spill] sm:$0xff] }
 0x1f3   : > { %2856 = vperm.xlu1 %6316, %v2789_v33   ;;  %2880 = vperm.xlu0 %6314, %v2797_v37   ;;  %v1346_v12 = vpop.f32.mrf.mxu0  ;;  %v1121_v54 = vmul.f32 %v7289_v58, %v12998_v61  ;;  %v960_v33 = vadd.f32 %v928_v53, %v767_v26  ;;  %v1152_v37 = vadd.f32 %v1120_v6, %v959_v20  ;;  %v13005_v53 = vld [vmem:[#allocation54_spill] sm:$0xff]  ;;  %v3030_v26 = vrot.slane %v8278_v46, 4  ;;  %v8282_v20 = vld [vmem:[%s6568_s22 + $0x10] sm:$0xff]  ;;  %v13008_v4 = vld [vmem:[#allocation12_spill] sm:$0xff] }
 0x1f4   : > { %v8215_v15 = vpop.permute.xlu2 %2471  ;;  %v1347_v43 = vadd.f32 %v8231_v31, %v1346_v12  ;;  %vm2731_vm7 = vcmp.eq.s32.totalorder %v2684_v2, %v8268_v40  ;;  %vm2739_vm9 = vcmp.eq.s32.totalorder %v2676_v23, %v8272_v29  ;;  %v12646_v61 = vrot.slane %v8282_v20, 4  ;;  %v13009_v2 = vld [vmem:[#allocation20_spill] sm:$0xff] }
 0x1f5   : > { %12993 = vst [vmem:[#allocation26_spill] sm:$0xff] %v8215_v15  ;;  %v8220_v3 = vpop.permute.xlu1 %2441  ;;  %v8222_v1 = vpop.permute.xlu0 %2465  ;;  %6263 = vmatpush.bf16.msra.mxu3 %v7984_v60  ;;  %v2792_v60 = vsel %vm2728_vm4, 1, %v12881_v11  ;;  %v1153_v62 = vadd.f32 %v1121_v54, %v960_v33  ;;  %v1188_v9 = vadd.f32 %v8154_v56, %v1152_v37  ;;  %v929_v49 = vmul.f32 %v7281_v17, %v13009_v2 }
 0x1f6   : > { %12994 = vst [vmem:[#allocation34_spill] sm:$0xff] %v8220_v3  ;;  %v1426_v6 = vmax.f32 %v1347_v43, 0.0  ;;  %v3090_v57 = vsel %vm12823_vm10, %v3030_v26, %v12646_v61  ;;  %v13007_v43 = vld [vmem:[#allocation61_spill] sm:$0xff]  ;;  %v1123_v23 = vmul.f32 %v7289_v58, %v13010_v27 }
 0x1f7   : > { %12995 = vst [vmem:[#allocation41_spill] sm:$0xff] %v8222_v1  ;;  %5884 = vmatmul.msk.bf16.gmra.mxu0 %vm12792_vm8, %v1243_v51  ;;  %v2670_v51 = vrot.slane %v13005_v53, 6  ;;  %v1189_v54 = vadd.f32 %v8154_v56, %v1153_v62  ;;  %v1220_v33 = vmax.f32 %v1188_v9, 0.0  ;;  %vm3095_vm13 = vcmp.eq.s32.totalorder %v3090_v57, %v8282_v20 }
 0x1f8   : > { %v3159_v57 = vsel %vm3095_vm13, 1, %v12881_v11 }
 0x1f9   : > { %6264 = vmatpush.bf16.msra.mxu3 %v8019_v25  ;;  %v2680_v37 = vsel %vm12825_vm0, %v2670_v51, %v2671_v19  ;;  %v2681_v41 = vsel %vm12825_vm0, %v2669_v35, %v2670_v51  ;;  %v930_v19 = vmul.f32 %v7281_v17, %v13006_v63  ;;  %v1221_v59 = vmax.f32 %v1189_v54, 0.0  ;;  %v8328_v51 = vld [vmem:[%s6568_s22 + $0xd0] sm:$0xff]  ;;  %v8334_v54 = vld [vmem:[%s6568_s22 + $0x20] sm:$0xff] }
 0x1fa   : > { %2868 = vperm.xlu2 %6315, %v2793_v38   ;;  %v2796_v38 = vsel %vm2732_vm6, 1, %v12881_v11  ;;  %v769_v35 = vmul.f32 %v7314_v28, %v13008_v4  ;;  %vm2734_vm12 = vcmp.eq.s32.totalorder %v2681_v41, %v8328_v51  ;;  %v13015_v63 = vld [vmem:[#allocation51_spill] sm:$0xff] }
 0x1fb   : > { %2865 = vperm.xlu1 %6316, %v2792_v60   ;;  %2889 = vperm.xlu0 %6314, %v2800_v16   ;;  %v1348_v25 = vpop.f32.mrf.mxu0  ;;  %v2803_v60 = vsel %vm2739_vm9, 1, %v12881_v11  ;;  %v1244_v53 = vpack.c.bf16 %v1221_v59, %v1220_v33  ;;  %v2798_v41 = vsel %vm2734_vm12, 1, %v12881_v11 }
 0x1fc   : > { %v1349_v47 = vadd.f32 %v8231_v31, %v1348_v25  ;;  %v8259_v22 = vpop.permute.xlu2 %2480  ;;  %v8320_v25 = vld [vmem:[%s6568_s22 + $0xd8] sm:$0xff] }
 0x1fd   : > { %13002 = vst [vmem:[#allocation35_spill] sm:$0xff] %v8259_v22  ;;  %v8263_v12 = vpop.permute.xlu1 %2450  ;;  %v8265_v13 = vpop.permute.xlu0 %2474  ;;  %6265 = vmatpush.bf16.msra.mxu3 %v8069_v42  ;;  %v2795_v42 = vsel %vm2731_vm7, 1, %v12881_v11  ;;  %vm2735_vm11 = vcmp.eq.s32.totalorder %v2680_v37, %v8320_v25 }
 0x1fe   : > { %13003 = vst [vmem:[#allocation37_spill] sm:$0xff] %v8263_v12  ;;  %v1427_v52 = vmax.f32 %v1349_v47, 0.0  ;;  %v2799_v33 = vsel %vm2735_vm11, 1, %v12881_v11 }
 0x1ff   : > { %13004 = vst [vmem:[#allocation46_spill] sm:$0xff] %v8265_v13 }
 0x200   : > { %v1458_v16 = vpack.c.bf16 %v1427_v52, %v1426_v6  ;;  %v13014_v6 = vld [vmem:[#allocation57_spill] sm:$0xff] }
 0x201   : > { %6266 = vmatpush.bf16.msra.mxu3 %v8106_v39  ;;  %v768_v39 = vmul.f32 %v7314_v28, %v13007_v43  ;;  %v2673_v52 = vrot.slane %v13014_v6, 6  ;;  %v1122_v43 = vmul.f32 %v7289_v58, %v13015_v63 }
 0x202   : > { %2877 = vperm.xlu2 %6315, %v2796_v38   ;;  %1584 = vmatmul.bf16.vlgmr.msra.gmra.mxu1 %v1458_v16  ;;  %v12649_v38 = vrot.slane %v8334_v54, 4 }
 0x203   : > { %2874 = vperm.xlu1 %6316, %v2795_v42   ;;  %2898 = vperm.xlu0 %6314, %v2803_v60   ;;  %v8338_v42 = vld [vmem:[%s6568_s22 + $0x28] sm:$0xff]  ;;  %v961_v37 = vadd.f32 %v929_v49, %v768_v39  ;;  %v2677_v4 = vsel %vm12825_vm0, %v2673_v52, %v2674_v45  ;;  %v8372_v49 = vld [vmem:[%s6568_s22] sm:$0xff] }
 0x204   : > { %1673 = vmatmul.bf16.vlgmr.msra.gmra.mxu2 %v1458_v16  ;;  %v8317_v62 = vpop.permute.xlu2 %2489  ;;  %v12644_v60 = vrot.slane %v8338_v42, 4  ;;  %v962_v16 = vadd.f32 %v930_v19, %v769_v35  ;;  %v2678_v19 = vsel %vm12825_vm0, %v2672_v30, %v2673_v52  ;;  %vm2738_vm14 = vcmp.eq.s32.totalorder %v2677_v4, %v12996_v14  ;;  %v8381_v52 = vld [vmem:[%s6568_s22 + $0x40] sm:$0xff]  ;;  %v13020_v4 = vld [vmem:[#allocation22_spill] sm:$0xff] }
 0x205   : > { %13011 = vst [vmem:[#allocation28_spill] sm:$0xff] %v8317_v62  ;;  %v8323_v47 = vpop.permute.xlu1 %2459  ;;  %v8325_v9 = vpop.permute.xlu0 %2483  ;;  %v1154_v35 = vadd.f32 %v1122_v43, %v961_v37  ;;  %vm2737_vm15 = vcmp.eq.s32.totalorder %v2678_v19, %v13014_v6  ;;  %v3029_v27 = vrot.slane %v8372_v49, 4  ;;  %v2802_v37 = vsel %vm2738_vm14, 1, %v12881_v11 }
 0x206   : > { %13012 = vst [vmem:[#allocation40_spill] sm:$0xff] %v8323_v47  ;;  %v1155_v59 = vadd.f32 %v1123_v23, %v962_v16  ;;  %v3087_v39 = vsel %vm12823_vm10, %v12649_v38, %v12644_v60  ;;  %v12645_v23 = vrot.slane %v8272_v29, 4  ;;  %v12647_v16 = vrot.slane %v8381_v52, 4 }
 0x207   : > { %13013 = vst [vmem:[#allocation44_spill] sm:$0xff] %v8325_v9  ;;  %5885 = vmatmul.msk.bf16.gmra.mxu0 %vm12792_vm8, %v1244_v53  ;;  %vm3098_vm2 = vcmp.eq.s32.totalorder %v3087_v39, %v8338_v42  ;;  %v8377_v53 = vld [vmem:[%s6568_s22 + $0x38] sm:$0xff]  ;;  %v1190_v6 = vadd.f32 %v8154_v56, %v1154_v35  ;;  %v932_v19 = vmul.f32 %v7281_v17, %v13020_v4 }
 0x208   : > { %v1191_v48 = vadd.f32 %v8154_v56, %v1155_v59  ;;  %v12648_v14 = vrot.slane %v8377_v53, 4  ;;  %v3162_v63 = vsel %vm3098_vm2, 1, %v12881_v11  ;;  %v3091_v59 = vsel %vm12823_vm10, %v3029_v27, %v3030_v26 }
 0x209   : > { %v3092_v39 = vsel %vm12823_vm10, %v12645_v23, %v3029_v27  ;;  %v1222_v26 = vmax.f32 %v1190_v6, 0.0  ;;  %vm3094_vm3 = vcmp.eq.s32.totalorder %v3091_v59, %v8278_v46  ;;  %v8418_v6 = vld [vmem:[%s6568_s22 + $0x18] sm:$0xff] }
 0x20a   : > { %2886 = vperm.xlu2 %6315, %v2799_v33   ;;  %v13019_v33 = vld [vmem:[#allocation62_spill] sm:$0xff]  ;;  %v1223_v43 = vmax.f32 %v1191_v48, 0.0  ;;  %v3084_v35 = vsel %vm12823_vm10, %v12648_v14, %v12647_v16  ;;  %v13021_v48 = vld [vmem:[#allocation25_spill] sm:$0xff]  ;;  %vm3093_vm4 = vcmp.eq.s32.totalorder %v3092_v39, %v8372_v49  ;;  %v8428_v16 = vld [vmem:[%s6568_s22 + $0x58] sm:$0xff]  ;;  %v13028_v14 = vrot.slane %v8334_v54, 4 }
 0x20b   : > { %2883 = vperm.xlu1 %6316, %v2798_v41   ;;  %3196 = vperm.xlu0 %6314, %v3159_v57   ;;  %v771_v41 = vmul.f32 %v7314_v28, %v13019_v33  ;;  %v2801_v57 = vsel %vm2737_vm15, 1, %v12881_v11  ;;  %vm3101_vm5 = vcmp.eq.s32.totalorder %v3084_v35, %v8381_v52  ;;  %v13030_v59 = vrot.slane %v8428_v16, 4 }
 0x20c   : > { %v8361_v2 = vpop.permute.xlu2 %2498  ;;  %v1245_v61 = vpack.c.bf16 %v1223_v43, %v1222_v26  ;;  %v13026_v43 = vld [vmem:[#allocation7_spill] sm:$0xff] }
 0x20d   : > { %13016 = vst [vmem:[#allocation5_spill] sm:$0xff] %v8361_v2  ;;  %v8365_v45 = vpop.permute.xlu1 %2468  ;;  %v8367_v30 = vpop.permute.xlu0 %2492  ;;  %v964_v33 = vadd.f32 %v932_v19, %v771_v41  ;;  %v8424_v19 = vld [vmem:[%s6568_s22 + $0x50] sm:$0xff]  ;;  %v770_v39 = vmul.f32 %v7314_v28, %v13026_v43 }
 0x20e   : > { %13017 = vst [vmem:[#allocation17_spill] sm:$0xff] %v8365_v45  ;;  %v13027_v26 = vld [vmem:[#allocation59_spill] sm:$0xff] }
 0x20f   : > { %13018 = vst [vmem:[#allocation21_spill] sm:$0xff] %v8367_v30  ;;  %v1124_v35 = vmul.f32 %v7289_v58, %v13027_v26  ;;  %v13029_v26 = vrot.slane %v8282_v20, 4 }
 0x212   : > { %2895 = vperm.xlu2 %6315, %v2802_v37   ;;  %v931_v37 = vmul.f32 %v7281_v17, %v13021_v48  ;;  %v3165_v48 = vsel %vm3101_vm5, 1, %v12881_v11 }
 0x213   : > { %2892 = vperm.xlu1 %6316, %v2801_v57   ;;  %3205 = vperm.xlu0 %6314, %v3162_v63   ;;  %v3032_v57 = vrot.slane %v8418_v6, 4  ;;  %v13025_v63 = vld [vmem:[#allocation52_spill] sm:$0xff] }
 0x214   : > { %v1351_v4 = vpop.f32.mrf.mxu0  ;;  %v8408_v60 = vpop.permute.xlu2 %2507  ;;  %v1125_v41 = vmul.f32 %v7289_v58, %v13025_v63  ;;  %v3158_v63 = vsel %vm3094_vm3, 1, %v12881_v11 }
 0x215   : > { %13022 = vst [vmem:[#allocation49_spill] sm:$0xff] %v8408_v60  ;;  %v8411_v27 = vpop.permute.xlu1 %2477  ;;  %v8413_v23 = vpop.permute.xlu0 %2501  ;;  %v3157_v60 = vsel %vm3093_vm4, 1, %v12881_v11  ;;  %v3088_v43 = vsel %vm12823_vm10, %v3032_v57, %v13028_v14 }
 0x216   : > { %13023 = vst [vmem:[#allocation43_spill] sm:$0xff] %v8411_v27  ;;  %v1157_v38 = vadd.f32 %v1125_v41, %v964_v33  ;;  %v13031_v33 = vrot.slane %v8424_v19, 4  ;;  %vm3097_vm6 = vcmp.eq.s32.totalorder %v3088_v43, %v8334_v54  ;;  %v13044_v27 = vld [vmem:[#allocation8_spill] sm:$0xff] }
 0x217   : > { %13024 = vst [vmem:[#allocation29_spill] sm:$0xff] %v8413_v23  ;;  %5886 = vmatmul.msk.bf16.gmra.mxu0 %vm12792_vm8, %v1245_v61  ;;  %v963_v23 = vadd.f32 %v931_v37, %v770_v39  ;;  %v3089_v61 = vsel %vm12823_vm10, %v13029_v26, %v3032_v57  ;;  %v1352_v39 = vadd.f32 %v8231_v31, %v1351_v4  ;;  %v8472_v4 = vld [vmem:[%s6568_s22 + $0x68] sm:$0xff] }
 0x218   : > { %v3081_v41 = vsel %vm12823_vm10, %v13031_v33, %v13030_v59  ;;  %v1193_v57 = vadd.f32 %v8154_v56, %v1157_v38  ;;  %vm3096_vm7 = vcmp.eq.s32.totalorder %v3089_v61, %v8418_v6  ;;  %v3161_v61 = vsel %vm3097_vm6, 1, %v12881_v11  ;;  %v13036_v38 = vld [vmem:[#allocation39_spill] sm:$0xff] }
 0x219   : > { %v1156_v37 = vadd.f32 %v1124_v35, %v963_v23  ;;  %vm3104_vm9 = vcmp.eq.s32.totalorder %v3081_v41, %v8428_v16  ;;  %v8468_v23 = vld [vmem:[%s6568_s22 + $0x30] sm:$0xff]  ;;  %v1428_v33 = vmax.f32 %v1352_v39, 0.0  ;;  %v3160_v41 = vsel %vm3096_vm7, 1, %v12881_v11 }
 0x21a   : > { %3193 = vperm.xlu2 %6315, %v3158_v63   ;;  %v8476_v35 = vld [vmem:[%s6568_s22 + $0x70] sm:$0xff]  ;;  %v1225_v62 = vmax.f32 %v1193_v57, 0.0  ;;  %v13037_v39 = vrot.slane %v8338_v42, 4  ;;  %v13039_v9 = vrot.slane %v8472_v4, 4  ;;  %v13052_v1 = vrot.slane %v8472_v4, 4 }
 0x21b   : > { %3190 = vperm.xlu1 %6316, %v3157_v60   ;;  %3214 = vperm.xlu0 %6314, %v3165_v48   ;;  %v3035_v60 = vrot.slane %v8468_v23, 4  ;;  %v1192_v59 = vadd.f32 %v8154_v56, %v1156_v37  ;;  %v13035_v48 = vrot.slane %v8377_v53, 4  ;;  %v933_v37 = vmul.f32 %v7281_v17, %v13036_v38  ;;  %v13041_v38 = vld [vmem:[#allocation27_spill] sm:$0xff] }
 0x21c   : > { %v1353_v14 = vpop.f32.mrf.mxu0  ;;  %v8456_v63 = vpop.permute.xlu2 %2805 }
 0x21d   : > { %13032 = vst [vmem:[#allocation10_spill] sm:$0xff] %v8456_v63  ;;  %v1354_v26 = vadd.f32 %v8231_v31, %v1353_v14  ;;  %v8461_v2 = vpop.permute.xlu1 %2486  ;;  %v8463_v30 = vpop.permute.xlu0 %2510  ;;  %v3168_v63 = vsel %vm3104_vm9, 1, %v12881_v11  ;;  %v3086_v43 = vsel %vm12823_vm10, %v13037_v39, %v3035_v60 }
 0x21e   : > { %13033 = vst [vmem:[#allocation18_spill] sm:$0xff] %v8461_v2  ;;  %v3085_v2 = vsel %vm12823_vm10, %v3035_v60, %v13035_v48  ;;  %v1224_v48 = vmax.f32 %v1192_v59, 0.0  ;;  %v1126_v60 = vmul.f32 %v7289_v58, %v7834_v10  ;;  %vm3099_vm12 = vcmp.eq.s32.totalorder %v3086_v43, %v8468_v23  ;;  %v8517_v59 = vld [vmem:[%s6568_s22 + $0x48] sm:$0xff] }
 0x21f   : > { %13034 = vst [vmem:[#allocation53_spill] sm:$0xff] %v8463_v30  ;;  %v1429_v14 = vmax.f32 %v1354_v26, 0.0  ;;  %v13038_v26 = vrot.slane %v8476_v35, 4  ;;  %vm3100_vm11 = vcmp.eq.s32.totalorder %v3085_v2, %v8377_v53  ;;  %v3038_v10 = vrot.slane %v8517_v59, 4 }
 0x221   : > { %v1459_v30 = vpack.c.bf16 %v1429_v14, %v1428_v33  ;;  %v3078_v57 = vsel %vm12823_vm10, %v13039_v9, %v13038_v26  ;;  %v13040_v33 = vld [vmem:[#allocation13_spill] sm:$0xff] }
 0x222   : > { %3202 = vperm.xlu2 %6315, %v3161_v61   ;;  %v772_v14 = vmul.f32 %v7314_v28, %v13040_v33  ;;  %v934_v61 = vmul.f32 %v7281_v17, %v13041_v38  ;;  %vm3107_vm13 = vcmp.eq.s32.totalorder %v3078_v57, %v8476_v35  ;;  %v8525_v38 = vld [vmem:[%s6568_s22 + $0x88] sm:$0xff] }
 0x223   : > { %3199 = vperm.xlu1 %6316, %v3160_v41   ;;  %3223 = vperm.xlu0 %6314, %v3168_v63   ;;  %v1246_v63 = vpack.c.bf16 %v1225_v62, %v1224_v48  ;;  %v773_v62 = vmul.f32 %v7314_v28, %v13044_v27  ;;  %v13045_v48 = vld [vmem:[#allocation60_spill] sm:$0xff]  ;;  %v3171_v33 = vsel %vm3107_vm13, 1, %v12881_v11  ;;  %v13048_v2 = vrot.slane %v8525_v38, 4 }
 0x224   : > { %1589 = vmatmul.bf16.gmra.mxu1 %v1459_v30  ;;  %1678 = vmatmul.bf16.gmra.mxu2 %v1459_v30  ;;  %v1356_v39 = vpop.f32.mrf.mxu0  ;;  %v8507_v22 = vpop.permute.xlu2 %2814  ;;  %v965_v26 = vadd.f32 %v933_v37, %v772_v14  ;;  %v8521_v30 = vld [vmem:[%s6568_s22 + $0x80] sm:$0xff]  ;;  %v1127_v43 = vmul.f32 %v7289_v58, %v13045_v48  ;;  %v3164_v37 = vsel %vm3100_vm11, 1, %v12881_v11  ;;  %v3163_v14 = vsel %vm3099_vm12, 1, %v12881_v11 }
 0x225   : > { %v8510_v9 = vpop.permute.xlu1 %2495  ;;  %v8512_v41 = vpop.permute.xlu0 %2808  ;;  %v13047_v48 = vrot.slane %v8381_v52, 4 }
 0x226   : > { %13042 = vst [vmem:[#allocation47_spill] sm:$0xff] %v8510_v9  ;;  %v1158_v57 = vadd.f32 %v1126_v60, %v965_v26  ;;  %v13046_v9 = vrot.slane %v8424_v19, 4  ;;  %v13049_v60 = vrot.slane %v8521_v30, 4 }
 0x227   : > { %13043 = vst [vmem:[#allocation48_spill] sm:$0xff] %v8512_v41  ;;  %5887 = vmatmul.msk.bf16.gmra.mxu0 %vm12792_vm8, %v1246_v63  ;;  %v966_v41 = vadd.f32 %v934_v61, %v773_v62  ;;  %v3083_v63 = vsel %vm12823_vm10, %v13047_v48, %v3038_v10  ;;  %v1357_v62 = vadd.f32 %v8231_v31, %v1356_v39  ;;  %v8565_v39 = vld [vmem:[%s6568_s22 + $0x60] sm:$0xff] }
 0x228   : > { %v3082_v27 = vsel %vm12823_vm10, %v3038_v10, %v13046_v9  ;;  %v3075_v26 = vsel %vm12823_vm10, %v13049_v60, %v13048_v2  ;;  %v1194_v9 = vadd.f32 %v8154_v56, %v1158_v57  ;;  %vm3102_vm15 = vcmp.eq.s32.totalorder %v3083_v63, %v8517_v59  ;;  %v8573_v57 = vld [vmem:[%s6568_s22 + $0xa0] sm:$0xff] }
 0x229   : > { %v1159_v61 = vadd.f32 %v1127_v43, %v966_v41  ;;  %vm3103_vm14 = vcmp.eq.s32.totalorder %v3082_v27, %v8424_v19  ;;  %vm3110_vm2 = vcmp.eq.s32.totalorder %v3075_v26, %v8525_v38  ;;  %v3041_v41 = vrot.slane %v8565_v39, 4 }
 0x22a   : > { %3211 = vperm.xlu2 %6315, %v3164_v37   ;;  %v1430_v2 = vmax.f32 %v1357_v62, 0.0  ;;  %v3167_v63 = vsel %vm3103_vm14, 1, %v12881_v11  ;;  %v3166_v26 = vsel %vm3102_vm15, 1, %v12881_v11  ;;  %v1226_v45 = vmax.f32 %v1194_v9, 0.0 }
 0x22b   : > { %3208 = vperm.xlu1 %6316, %v3163_v14   ;;  %3232 = vperm.xlu0 %6314, %v3171_v33   ;;  %v8569_v33 = vld [vmem:[%s6568_s22 + $0x98] sm:$0xff]  ;;  %v1195_v27 = vadd.f32 %v8154_v56, %v1159_v61  ;;  %v3079_v43 = vsel %vm12823_vm10, %v3041_v41, %v13052_v1  ;;  %v936_v14 = vmul.f32 %v7281_v17, %v13053_v8  ;;  %v13054_v61 = vrot.slane %v8428_v16, 4 }
 0x22c   : > { %v1358_v37 = vpop.f32.mrf.mxu0  ;;  %v8554_v13 = vpop.permute.xlu2 %2823  ;;  %v13056_v47 = vrot.slane %v8569_v33, 4  ;;  %v13058_v1 = vld [vmem:[#allocation64_spill] sm:$0xff]  ;;  %vm3106_vm3 = vcmp.eq.s32.totalorder %v3079_v43, %v8472_v4  ;;  %v12669_v43 = vrot.slane %v8268_v40, 4  ;;  %v13068_v0 = vrot.slane %v8569_v33, 4 }
 0x22d   : > { %13050 = vst [vmem:[#allocation50_spill] sm:$0xff] %v8554_v13  ;;  %v1359_v10 = vadd.f32 %v8231_v31, %v1358_v37  ;;  %v8558_v48 = vpop.permute.xlu1 %2504  ;;  %v8560_v15 = vpop.permute.xlu0 %2817  ;;  %v3174_v37 = vsel %vm3110_vm2, 1, %v12881_v11  ;;  %v3080_v62 = vsel %vm12823_vm10, %v13054_v61, %v3041_v41  ;;  %v774_v18 = vmul.f32 %v7314_v28, %v13058_v1 }
 0x22e   : > { %13051 = vst [vmem:[#allocation33_spill] sm:$0xff] %v8558_v48  ;;  %v1227_v8 = vmax.f32 %v1195_v27, 0.0  ;;  %v1129_v61 = vmul.f32 %v7289_v58, %v7906_v50  ;;  %vm3105_vm4 = vcmp.eq.s32.totalorder %v3080_v62, %v8565_v39 }
 0x22f   : > { %v1431_v60 = vmax.f32 %v1359_v10, 0.0  ;;  %v13055_v10 = vrot.slane %v8573_v57, 4  ;;  %v3169_v62 = vsel %vm3105_vm4, 1, %v12881_v11 }
 0x231   : > { %v1460_v48 = vpack.c.bf16 %v1431_v60, %v1430_v2  ;;  %v3072_v9 = vsel %vm12823_vm10, %v13056_v47, %v13055_v10  ;;  %v13057_v2 = vld [vmem:[#allocation14_spill] sm:$0xff] }
 0x232   : > { %3220 = vperm.xlu2 %6315, %v3167_v63   ;;  %v775_v60 = vmul.f32 %v7314_v28, %v13057_v2  ;;  %v13059_v63 = vld [vmem:[#allocation24_spill] sm:$0xff]  ;;  %vm3113_vm5 = vcmp.eq.s32.totalorder %v3072_v9, %v8573_v57 }
 0x233   : > { %3217 = vperm.xlu1 %6316, %v3166_v26   ;;  %3241 = vperm.xlu0 %6314, %v3174_v37   ;;  %v935_v41 = vmul.f32 %v7281_v17, %v13059_v63  ;;  %v1247_v26 = vpack.c.bf16 %v1227_v8, %v1226_v45  ;;  %v8614_v17 = vld [vmem:[%s6568_s22 + $0x78] sm:$0xff]  ;;  %v3170_v45 = vsel %vm3106_vm3, 1, %v12881_v11  ;;  %v3177_v9 = vsel %vm3113_vm5, 1, %v12881_v11  ;;  %v13063_v63 = vld [vmem:[#allocation55_spill] sm:$0xff] }
 0x234   : > { %1594 = vmatmul.bf16.gmra.mxu1 %v1460_v48  ;;  %1683 = vmatmul.bf16.gmra.mxu2 %v1460_v48  ;;  %v1361_v47 = vpop.f32.mrf.mxu0  ;;  %v8604_v10 = vpop.permute.xlu2 %2832  ;;  %v3044_v50 = vrot.slane %v8614_v17, 4  ;;  %v968_v27 = vadd.f32 %v936_v14, %v775_v60  ;;  %v8618_v48 = vld [vmem:[%s6568_s22 + $0xb0] sm:$0xff]  ;;  %v13064_v14 = vrot.slane %v8521_v30, 4  ;;  %vm3349_vm5 = vcmp.eq.s32.totalorder %v8272_v29, %v8372_v49 }
 0x235   : > { %13060 = vst [vmem:[#allocation9_spill] sm:$0xff] %v8604_v10  ;;  %v8607_v2 = vpop.permute.xlu1 %2513  ;;  %v8609_v28 = vpop.permute.xlu0 %2826  ;;  %v12670_v37 = vrot.slane %v8618_v48, 4  ;;  %v967_v1 = vadd.f32 %v935_v41, %v774_v18  ;;  %v13065_v18 = vrot.slane %v8476_v35, 4 }
 0x236   : > { %13061 = vst [vmem:[#allocation23_spill] sm:$0xff] %v8607_v2  ;;  %v1161_v8 = vadd.f32 %v1129_v61, %v968_v27  ;;  %v1128_v2 = vmul.f32 %v7289_v58, %v13063_v63  ;;  %v3076_v60 = vsel %vm12823_vm10, %v3044_v50, %v13064_v14 }
 0x237   : > { %13062 = vst [vmem:[#allocation58_spill] sm:$0xff] %v8609_v28  ;;  %5888 = vmatmul.msk.bf16.gmra.mxu0 %vm12792_vm8, %v1247_v26  ;;  %v3077_v41 = vsel %vm12823_vm10, %v13065_v18, %v3044_v50  ;;  %v3069_v61 = vsel %vm12823_vm10, %v12670_v37, %v12669_v43  ;;  %v1362_v26 = vadd.f32 %v8231_v31, %v1361_v47  ;;  %v8655_v47 = vld [vmem:[%s6568_s22 + $0x90] sm:$0xff] }
 0x238   : > { %v1160_v58 = vadd.f32 %v1128_v2, %v967_v1  ;;  %v1197_v27 = vadd.f32 %v8154_v56, %v1161_v8  ;;  %vm3109_vm6 = vcmp.eq.s32.totalorder %v3076_v60, %v8521_v30  ;;  %vm3108_vm7 = vcmp.eq.s32.totalorder %v3077_v41, %v8614_v17  ;;  %v8659_v1 = vld [vmem:[%s6568_s22 + $0xc8] sm:$0xff] }
 0x239   : > { %vm3116_vm9 = vcmp.eq.s32.totalorder %v3069_v61, %v8268_v40  ;;  %v3047_v2 = vrot.slane %v8655_v47, 4  ;;  %v3054_v8 = vrot.slane %v8659_v1, 4  ;;  %v1432_v60 = vmax.f32 %v1362_v26, 0.0 }
 0x23a   : > { %3229 = vperm.xlu2 %6315, %v3170_v45   ;;  %v3173_v43 = vsel %vm3109_vm6, 1, %v12881_v11  ;;  %v3172_v41 = vsel %vm3108_vm7, 1, %v12881_v11  ;;  %v3180_v61 = vsel %vm3116_vm9, 1, %v12881_v11  ;;  %v1229_v37 = vmax.f32 %v1197_v27, 0.0 }
 0x23b   : > { %3226 = vperm.xlu1 %6316, %v3169_v62   ;;  %3250 = vperm.xlu0 %6314, %v3177_v9   ;;  %v1196_v9 = vadd.f32 %v8154_v56, %v1160_v58  ;;  %v13069_v62 = vrot.slane %v8525_v38, 4  ;;  %v13070_v58 = vrot.slane %v8328_v51, 4  ;;  %vm3352_vm9 = vcmp.eq.s32.totalorder %v8282_v20, %v8418_v6 }
 0x23c   : > { %v1363_v45 = vpop.f32.mrf.mxu0  ;;  %v8644_v63 = vpop.permute.xlu2 %2841 }
 0x23d   : > { %13066 = vst [vmem:[#allocation6_spill] sm:$0xff] %v8644_v63  ;;  %v1364_v50 = vadd.f32 %v8231_v31, %v1363_v45  ;;  %v8648_v14 = vpop.permute.xlu1 %2811  ;;  %v8650_v18 = vpop.permute.xlu0 %2835  ;;  %v3074_v56 = vsel %vm12823_vm10, %v13069_v62, %v3047_v2  ;;  %v3066_v26 = vsel %vm12823_vm10, %v3054_v8, %v13070_v58  ;;  %v1228_v27 = vmax.f32 %v1196_v9, 0.0  ;;  %v8689_v9 = vld [vmem:[%s6568_s22 + $0xa8] sm:$0xff] }
 0x23e   : > { %13067 = vst [vmem:[#allocation56_spill] sm:$0xff] %v8650_v18  ;;  %v3073_v18 = vsel %vm12823_vm10, %v3047_v2, %v13068_v0  ;;  %vm3111_vm12 = vcmp.eq.s32.totalorder %v3074_v56, %v8655_v47  ;;  %vm3119_vm13 = vcmp.eq.s32.totalorder %v3066_v26, %v8328_v51  ;;  %v13074_v58 = vrot.slane %v8618_v48, 4 }
 0x23f   : > { %v1433_v45 = vmax.f32 %v1364_v50, 0.0  ;;  %vm3112_vm11 = vcmp.eq.s32.totalorder %v3073_v18, %v8569_v33  ;;  %v1248_v62 = vpack.c.bf16 %v1229_v37, %v1228_v27  ;;  %v3183_v56 = vsel %vm3119_vm13, 1, %v12881_v11 }
 0x240   : > { %v3176_v37 = vsel %vm3112_vm11, 1, %v12881_v11  ;;  %v13075_v27 = vrot.slane %v8573_v57, 4  ;;  %vm3355_vm13 = vcmp.eq.s32.totalorder %v8338_v42, %v8468_v23 }
 0x241   : > { %v1461_v63 = vpack.c.bf16 %v1433_v45, %v1432_v60  ;;  %v3050_v60 = vrot.slane %v8689_v9, 4  ;;  %v8693_v45 = vld [vmem:[%s6568_s22 + $0xe0] sm:$0xff] }
 0x242   : > { %3238 = vperm.xlu2 %6315, %v3173_v43  }
 0x243   : > { %3235 = vperm.xlu1 %6316, %v3172_v41   ;;  %3259 = vperm.xlu0 %6314, %v3180_v61   ;;  %v8697_v41 = vld [vmem:[%s6568_s22 + $0xe8] sm:$0xff]  ;;  %v3175_v61 = vsel %vm3111_vm12, 1, %v12881_v11  ;;  %v3070_v26 = vsel %vm12823_vm10, %v3050_v60, %v13074_v58  ;;  %v3071_v18 = vsel %vm12823_vm10, %v13075_v27, %v3050_v60  ;;  %v8728_v60 = vld [vmem:[%s6568_s22 + $0xc0] sm:$0xff] }
 0x244   : > { %1599 = vmatmul.bf16.gmra.mxu1 %v1461_v63  ;;  %1688 = vmatmul.bf16.gmra.mxu2 %v1461_v63  ;;  %v1366_v0 = vpop.f32.mrf.mxu0  ;;  %v8679_v43 = vpop.permute.xlu2 %2850  ;;  %v3057_v63 = vrot.slane %v8693_v45, 4  ;;  %vm3115_vm14 = vcmp.eq.s32.totalorder %v3070_v26, %v8618_v48  ;;  %vm3114_vm15 = vcmp.eq.s32.totalorder %v3071_v18, %v8689_v9  ;;  %v13080_v18 = vrot.slane %v8268_v40, 4 }
 0x245   : > { %13071 = vst [vmem:[#allocation32_spill] sm:$0xff] %v8679_v43  ;;  %v8682_v50 = vpop.permute.xlu1 %2820  ;;  %v8684_v2 = vpop.permute.xlu0 %2844  ;;  %v3179_v27 = vsel %vm3115_vm14, 1, %v12881_v11  ;;  %v3178_v26 = vsel %vm3114_vm15, 1, %v12881_v11  ;;  %vm3351_vm14 = vcmp.eq.s32.totalorder %v8278_v46, %v8282_v20  ;;  %vm3350_vm15 = vcmp.eq.s32.totalorder %v8372_v49, %v8278_v46 }
 0x246   : > { %13072 = vst [vmem:[#allocation54_spill] sm:$0xff] %v8682_v50  ;;  %v3415_v20 = vsel %vm3351_vm14, 1, %v12881_v11  ;;  %vm3363_vm14 = vcmp.eq.s32.totalorder %v8472_v4, %v8476_v35 }
 0x247   : > { %13073 = vst [vmem:[#allocation36_spill] sm:$0xff] %v8684_v2  ;;  %5889 = vmatmul.msk.bf16.gmra.mxu0 %vm12792_vm8, %v1248_v62  ;;  %v13076_v62 = vrot.slane %v8697_v41, 4  ;;  %v1367_v2 = vadd.f32 %v8231_v31, %v1366_v0  ;;  %v3053_v0 = vrot.slane %v8728_v60, 4 }
 0x249   : > { %v3063_v43 = vsel %vm12823_vm10, %v3057_v63, %v13076_v62 }
 0x24a   : > { %3247 = vperm.xlu2 %6315, %v3176_v37   ;;  %vm3122_vm2 = vcmp.eq.s32.totalorder %v3063_v43, %v8697_v41  ;;  %v3068_v43 = vsel %vm12823_vm10, %v13080_v18, %v3053_v0  ;;  %v6241_v18 = vld [vmem:[%s12593_s10 + $0x70] sm:$0xff] }
 0x24b   : > { %3244 = vperm.xlu1 %6316, %v3175_v61   ;;  %3268 = vperm.xlu0 %6314, %v3183_v56   ;;  %v1434_v61 = vmax.f32 %v1367_v2, 0.0  ;;  %vm3117_vm4 = vcmp.eq.s32.totalorder %v3068_v43, %v8728_v60 }
 0x24c   : > { %v1368_v10 = vpop.f32.mrf.mxu0  ;;  %v8717_v12 = vpop.permute.xlu2 %2859 }
 0x24d   : > { %13077 = vst [vmem:[#allocation61_spill] sm:$0xff] %v8717_v12  ;;  %v1369_v37 = vadd.f32 %v8231_v31, %v1368_v10  ;;  %v8721_v58 = vpop.permute.xlu1 %2829  ;;  %v8723_v34 = vpop.permute.xlu0 %2853  ;;  %v3186_v10 = vsel %vm3122_vm2, 1, %v12881_v11  ;;  %v3067_v12 = vsel %vm12823_vm10, %v3053_v0, %v3054_v8  ;;  %v3056_v8 = vrot.slane %v8320_v25, 4 }
 0x24e   : > { %13078 = vst [vmem:[#allocation12_spill] sm:$0xff] %v8721_v58  ;;  %vm3118_vm3 = vcmp.eq.s32.totalorder %v3067_v12, %v8659_v1  ;;  %v6242_v12 = vld [vmem:[%s12593_s10 + $0x78] sm:$0xff]  ;;  %vm3358_vm2 = vcmp.eq.s32.totalorder %v8381_v52, %v8517_v59  ;;  %v9042_v58 = vld [vmem:[%s6568_s22] sm:$0xff] }
 0x24f   : > { %13079 = vst [vmem:[#allocation20_spill] sm:$0xff] %v8723_v34  ;;  %v1435_v56 = vmax.f32 %v1369_v37, 0.0  ;;  %v3182_v0 = vsel %vm3118_vm3, 1, %v12881_v11  ;;  %2071 = vmatpush.bf16.msrb.mxu0 %v6242_v12  ;;  %vm3354_vm3 = vcmp.eq.s32.totalorder %v8334_v54, %v8338_v42 }
 0x251   : > { %v1462_v62 = vpack.c.bf16 %v1435_v56, %v1434_v61  ;;  %v3181_v56 = vsel %vm3117_vm4, 1, %v12881_v11  ;;  %vm3353_vm4 = vcmp.eq.s32.totalorder %v8418_v6, %v8334_v54 }
 0x252   : > { %3256 = vperm.xlu2 %6315, %v3179_v27   ;;  %v3413_v27 = vsel %vm3349_vm5, 1, %v12881_v11  ;;  %vm3361_vm5 = vcmp.eq.s32.totalorder %v8428_v16, %v8565_v39 }
 0x253   : > { %3253 = vperm.xlu1 %6316, %v3178_v26   ;;  %3277 = vperm.xlu0 %6314, %v3186_v10   ;;  %v3064_v26 = vsel %vm12823_vm10, %v3056_v8, %v3057_v63  ;;  %v13084_v10 = vrot.slane %v8328_v51, 4  ;;  %v3425_v42 = vsel %vm3361_vm5, 1, %v12881_v11  ;;  %vm3373_vm5 = vcmp.eq.s32.totalorder %v8268_v40, %v8728_v60 }
 0x254   : > { %1604 = vmatmul.bf16.gmra.mxu1 %v1462_v62  ;;  %1693 = vmatmul.bf16.gmra.mxu2 %v1462_v62  ;;  %v1371_v2 = vpop.f32.mrf.mxu0  ;;  %v8740_v37 = vpop.permute.xlu2 %2868  ;;  %vm3121_vm6 = vcmp.eq.s32.totalorder %v3064_v26, %v8693_v45 }
 0x255   : > { %13081 = vst [vmem:[#allocation63_spill] sm:$0xff] %v8740_v37  ;;  %v8743_v34 = vpop.permute.xlu1 %2838  ;;  %v8749_v61 = vpop.permute.xlu0 %2862  ;;  %v3065_v62 = vsel %vm12823_vm10, %v13084_v10, %v3056_v8  ;;  %v1372_v43 = vadd.f32 %v8231_v31, %v1371_v2  ;;  %v8777_v8 = vld [vmem:[%s6568_s22 + $0xf0] sm:$0xff]  ;;  %2072 = vmatpush.bf16.msrb.mxu0 %v6241_v18  ;;  %v3185_v26 = vsel %vm3121_vm6, 1, %v12881_v11  ;;  %v3416_v10 = vsel %vm3352_vm9, 1, %v12881_v11 }
 0x256   : > { %13082 = vst [vmem:[#allocation57_spill] sm:$0xff] %v8743_v34  ;;  %vm3120_vm7 = vcmp.eq.s32.totalorder %v3065_v62, %v8320_v25  ;;  %v3059_v2 = vrot.slane %v8777_v8, 4  ;;  %v6240_v62 = vld [vmem:[%s12593_s10 + $0x68] sm:$0xff]  ;;  %v13089_v18 = vrot.slane %v8697_v41, 4  ;;  %vm3357_vm6 = vcmp.eq.s32.totalorder %v8377_v53, %v8381_v52 }
 0x257   : > { %13083 = vst [vmem:[#allocation51_spill] sm:$0xff] %v8749_v61  ;;  %vm3364_vm9 = vcmp.eq.s32.totalorder %v8476_v35, %v8614_v17 }
 0x258   : > { %v3428_v52 = vsel %vm3364_vm9, 1, %v12881_v11  ;;  %vm3376_vm9 = vcmp.eq.s32.totalorder %v8328_v51, %v8320_v25 }
 0x259   : > { %2073 = vmatpush.bf16.msrb.mxu0 %v6240_v62 }
 0x25a   : > { %3265 = vperm.xlu2 %6315, %v3182_v0  }
 0x25b   : > { %3262 = vperm.xlu1 %6316, %v3181_v56   ;;  %3446 = vperm.xlu0 %6314, %v3413_v27   ;;  %v1436_v27 = vmax.f32 %v1372_v43, 0.0  ;;  %v3062_v43 = vsel %vm12823_vm10, %v13089_v18, %v3059_v2  ;;  %v6237_v18 = vld [vmem:[%s12593_s10 + $0x50] sm:$0xff] }
 0x25c   : > { %v1373_v37 = vpop.f32.mrf.mxu0  ;;  %v8767_v61 = vpop.permute.xlu2 %2877  ;;  %vm3123_vm12 = vcmp.eq.s32.totalorder %v3062_v43, %v8777_v8 }
 0x25d   : > { %13085 = vst [vmem:[#allocation62_spill] sm:$0xff] %v8767_v61  ;;  %v1374_v63 = vadd.f32 %v8231_v31, %v1373_v37  ;;  %v8771_v0 = vpop.permute.xlu1 %2847  ;;  %v8780_v56 = vpop.permute.xlu0 %2871  ;;  %v3184_v37 = vsel %vm3120_vm7, 1, %v12881_v11  ;;  %vm3356_vm7 = vcmp.eq.s32.totalorder %v8468_v23, %v8377_v53 }
 0x25e   : > { %13086 = vst [vmem:[#allocation22_spill] sm:$0xff] %v8771_v0  ;;  %v13088_v0 = vrot.slane %v8272_v29, 4 }
 0x25f   : > { %13087 = vst [vmem:[#allocation25_spill] sm:$0xff] %v8780_v56  ;;  %v1437_v12 = vmax.f32 %v1374_v63, 0.0  ;;  %v6239_v63 = vld [vmem:[%s12593_s10 + $0x60] sm:$0xff] }
 0x260   : > { %v3061_v34 = vsel %vm12823_vm10, %v3059_v2, %v13088_v0  ;;  %2074 = vmatpush.bf16.msrb.mxu0 %v6239_v63 }
 0x261   : > { %v1463_v61 = vpack.c.bf16 %v1437_v12, %v1436_v27  ;;  %vm3124_vm11 = vcmp.eq.s32.totalorder %v3061_v34, %v8272_v29  ;;  %v6238_v34 = vld [vmem:[%s12593_s10 + $0x58] sm:$0xff] }
 0x262   : > { %3274 = vperm.xlu2 %6315, %v3185_v26   ;;  %v3188_v26 = vsel %vm3124_vm11, 1, %v12881_v11  ;;  %vm3360_vm11 = vcmp.eq.s32.totalorder %v8424_v19, %v8428_v16  ;;  %v8891_v16 = vld [vmem:[%s12592_s9] sm:$0x3] }
 0x263   : > { %3271 = vperm.xlu1 %6316, %v3184_v37   ;;  %3455 = vperm.xlu0 %6314, %v3416_v10   ;;  %v3187_v37 = vsel %vm3123_vm12, 1, %v12881_v11  ;;  %vm3359_vm12 = vcmp.eq.s32.totalorder %v8517_v59, %v8424_v19 }
 0x264   : > { %1609 = vmatmul.bf16.gmra.mxu1 %v1463_v61  ;;  %1698 = vmatmul.bf16.gmra.mxu2 %v1463_v61  ;;  %v1376_v27 = vpop.f32.mrf.mxu0  ;;  %v8799_v12 = vpop.permute.xlu2 %2886  ;;  %v3419_v61 = vsel %vm3355_vm13, 1, %v12881_v11  ;;  %vm3367_vm13 = vcmp.eq.s32.totalorder %v8525_v38, %v8655_v47 }
 0x265   : > { %13090 = vst [vmem:[#allocation52_spill] sm:$0xff] %v8799_v12  ;;  %v8802_v0 = vpop.permute.xlu1 %2856  ;;  %v8807_v2 = vpop.permute.xlu0 %2880  ;;  %2075 = vmatpush.bf16.msrb.mxu0 %v6238_v34  ;;  %v1377_v29 = vadd.f32 %v8231_v31, %v1376_v27  ;;  %v3422_v34 = vsel %vm3358_vm2, 1, %v12881_v11  ;;  %vm3370_vm2 = vcmp.eq.s32.totalorder %v8573_v57, %v8689_v9 }
 0x266   : > { %13091 = vst [vmem:[#allocation7_spill] sm:$0xff] %v8802_v0 }
 0x267   : > { %13092 = vst [vmem:[#allocation59_spill] sm:$0xff] %v8807_v2 }
 0x269   : > { %2076 = vmatpush.bf16.msrb.mxu0 %v6237_v18  ;;  %v6235_v18 = vld [vmem:[%s12593_s10 + $0x40] sm:$0xff] }
 0x26a   : > { %3283 = vperm.xlu2 %6315, %v3188_v26   ;;  %v1438_v26 = vmax.f32 %v1377_v29, 0.0 }
 0x26b   : > { %3280 = vperm.xlu1 %6316, %v3187_v37   ;;  %3464 = vperm.xlu0 %6314, %v3419_v61   ;;  %v3414_v61 = vsel %vm3350_vm15, 1, %v12881_v11  ;;  %vm3362_vm15 = vcmp.eq.s32.totalorder %v8565_v39, %v8472_v4 }
 0x26c   : > { %v1378_v10 = vpop.f32.mrf.mxu0  ;;  %v8816_v62 = vpop.permute.xlu2 %2895 }
 0x26d   : > { %13093 = vst [vmem:[#allocation39_spill] sm:$0xff] %v8816_v62  ;;  %v1379_v43 = vadd.f32 %v8231_v31, %v1378_v10  ;;  %v8824_v63 = vpop.permute.xlu1 %2865  ;;  %v8830_v27 = vpop.permute.xlu0 %2889  ;;  %v6236_v10 = vld [vmem:[%s12593_s10 + $0x48] sm:$0xff] }
 0x26e   : > { %13094 = vst [vmem:[#allocation13_spill] sm:$0xff] %v8824_v63  ;;  %2077 = vmatpush.bf16.msrb.mxu0 %v6236_v10 }
 0x26f   : > { %13095 = vst [vmem:[#allocation27_spill] sm:$0xff] %v8830_v27  ;;  %v1439_v37 = vmax.f32 %v1379_v43, 0.0 }
 0x271   : > { %v1464_v62 = vpack.c.bf16 %v1439_v37, %v1438_v26  ;;  %v3417_v37 = vsel %vm3353_vm4, 1, %v12881_v11  ;;  %vm3365_vm4 = vcmp.eq.s32.totalorder %v8614_v17, %v8521_v30 }
 0x272   : > { %3452 = vperm.xlu2 %6315, %v3415_v20   ;;  %2078 = vmatpush.bf16.msrb.mxu0 %v6235_v18 }
 0x273   : > { %3449 = vperm.xlu1 %6316, %v3414_v61   ;;  %3473 = vperm.xlu0 %6314, %v3422_v34  }
 0x274   : > { %1614 = vmatmul.bf16.gmra.mxu1 %v1464_v62  ;;  %1703 = vmatmul.bf16.gmra.mxu2 %v1464_v62  ;;  %v1381_v46 = vpop.f32.mrf.mxu0  ;;  %v8838_v29 = vpop.permute.xlu2 %3193  ;;  %v3418_v62 = vsel %vm3354_vm3, 1, %v12881_v11  ;;  %vm3366_vm3 = vcmp.eq.s32.totalorder %v8521_v30, %v8525_v38 }
 0x275   : > { %13096 = vst [vmem:[#allocation8_spill] sm:$0xff] %v8838_v29  ;;  %v8845_v43 = vpop.permute.xlu1 %2874  ;;  %v8851_v26 = vpop.permute.xlu0 %2898  ;;  %v1382_v20 = vadd.f32 %v8231_v31, %v1381_v46  ;;  %v3420_v29 = vsel %vm3356_vm7, 1, %v12881_v11  ;;  %vm3368_vm7 = vcmp.eq.s32.totalorder %v8655_v47, %v8569_v33 }
 0x276   : > { %13097 = vst [vmem:[#allocation60_spill] sm:$0xff] %v8845_v43  ;;  %v3427_v43 = vsel %vm3363_vm14, 1, %v12881_v11  ;;  %vm3375_vm14 = vcmp.eq.s32.totalorder %v8659_v1, %v8328_v51 }
 0x277   : > { %13098 = vst [vmem:[#allocation42_spill] sm:$0xff] %v8851_v26  ;;  %v1440_v46 = vmax.f32 %v1382_v20, 0.0 }
 0x27a   : > { %3461 = vperm.xlu2 %6315, %v3418_v62  }
 0x27b   : > { %3458 = vperm.xlu1 %6316, %v3417_v37   ;;  %3482 = vperm.xlu0 %6314, %v3425_v42   ;;  %v3421_v42 = vsel %vm3357_vm6, 1, %v12881_v11  ;;  %vm3369_vm6 = vcmp.eq.s32.totalorder %v8569_v33, %v8573_v57 }
 0x27c   : > { %v1383_v61 = vpop.f32.mrf.mxu0  ;;  %v8857_v34 = vpop.permute.xlu2 %3202 }
 0x27d   : > { %v1384_v10 = vadd.f32 %v8231_v31, %v1383_v61  ;;  %v8862_v18 = vpop.permute.xlu1 %2883  ;;  %v8868_v62 = vpop.permute.xlu0 %3196 }
 0x27e   : > { %13099 = vst [vmem:[#allocation14_spill] sm:$0xff] %v8862_v18 }
 0x27f   : > { %13100 = vst [vmem:[#allocation64_spill] sm:$0xff] %v8868_v62  ;;  %v1441_v37 = vmax.f32 %v1384_v10, 0.0 }
 0x281   : > { %v1465_v26 = vpack.c.bf16 %v1441_v37, %v1440_v46  ;;  %v3424_v46 = vsel %vm3360_vm11, 1, %v12881_v11  ;;  %v3431_v37 = vsel %vm3367_vm13, 1, %v12881_v11  ;;  %vm3372_vm11 = vcmp.eq.s32.totalorder %v8618_v48, %v8268_v40 }
 0x282   : > { %3470 = vperm.xlu2 %6315, %v3421_v42   ;;  %v8894_v42 = vperm.slane %v8891_v16, 1  ;;  %vm3379_vm13 = vcmp.eq.s32.totalorder %v8697_v41, %v8777_v8 }
 0x283   : > { %3467 = vperm.xlu1 %6316, %v3420_v29   ;;  %3491 = vperm.xlu0 %6314, %v3428_v52  }
 0x284   : > { %1619 = vmatmul.bf16.gmra.mxu1 %v1465_v26  ;;  %1708 = vmatmul.bf16.gmra.mxu2 %v1465_v26  ;;  %v1386_v61 = vpop.f32.mrf.mxu0  ;;  %v8873_v27 = vpop.permute.xlu2 %3211  ;;  %v3423_v26 = vsel %vm3359_vm12, 1, %v12881_v11  ;;  %vm3371_vm12 = vcmp.eq.s32.totalorder %v8689_v9, %v8618_v48 }
 0x285   : > { %13101 = vst [vmem:[#allocation24_spill] sm:$0xff] %v8873_v27  ;;  %v8877_v20 = vpop.permute.xlu1 %2892  ;;  %v8883_v10 = vpop.permute.xlu0 %3205  ;;  %v1387_v52 = vadd.f32 %v8231_v31, %v1386_v61 }
 0x286   : > { %13102 = vst [vmem:[#allocation55_spill] sm:$0xff] %v8877_v20 }
 0x287   : > { %13103 = vst [vmem:[#allocation65_spill] sm:$0xff] %v8883_v10  ;;  %v1674_v29 = vpop.f32.mrf.mxu2 }
 0x288   : > { %v1675_v61 = vadd.f32 %v1674_v29, %v8894_v42 }
 0x28a   : > { %3479 = vperm.xlu2 %6315, %v3424_v46   ;;  %v1755_v0 = vmax.f32 %v1675_v61, 0.0 }
 0x28b   : > { %3476 = vperm.xlu1 %6316, %v3423_v26   ;;  %3500 = vperm.xlu0 %6314, %v3431_v37   ;;  %v1442_v26 = vmax.f32 %v1387_v52, 0.0 }
 0x28c   : > { %v1388_v62 = vpop.f32.mrf.mxu0  ;;  %v8897_v20 = vpop.permute.xlu2 %3220 }
 0x28d   : > { %13104 = vst [vmem:[#allocation66_spill] sm:$0xff] %v8897_v20  ;;  %v1389_v12 = vadd.f32 %v8231_v31, %v1388_v62  ;;  %v8902_v18 = vpop.permute.xlu1 %3190  ;;  %v8909_v46 = vpop.permute.xlu0 %3214  ;;  %v3426_v62 = vsel %vm3362_vm15, 1, %v12881_v11  ;;  %vm3374_vm15 = vcmp.eq.s32.totalorder %v8728_v60, %v8659_v1 }
 0x28e   : > { %13105 = vst [vmem:[#allocation67_spill] sm:$0xff] %v8902_v18  ;;  %v3434_v18 = vsel %vm3370_vm2, 1, %v12881_v11 }
 0x28f   : > { %13106 = vst [vmem:[#allocation68_spill] sm:$0xff] %v8909_v46  ;;  %v1443_v37 = vmax.f32 %v1389_v12, 0.0  ;;  %v1676_v2 = vpop.f32.mrf.mxu2 }
 0x290   : > { %v1677_v56 = vadd.f32 %v1676_v2, %v8894_v42 }
 0x291   : > { %v1466_v63 = vpack.c.bf16 %v1443_v37, %v1442_v26  ;;  %v8938_v26 = vld [vmem:[%s12590_s7] ss:$0 sm:$0xff] }
 0x292   : > { %v1757_v20 = vmax.f32 %v1677_v56, 0.0  ;;  %3488 = vperm.xlu2 %6315, %v3427_v43   ;;  %v3437_v43 = vsel %vm3373_vm5, 1, %v12881_v11 }
 0x293   : > { %3485 = vperm.xlu1 %6316, %v3426_v62   ;;  %3509 = vperm.xlu0 %6314, %v3434_v18  }
 0x294   : > { %v1819_v29 = vpack.c.bf16 %v1757_v20, %v1755_v0  ;;  %1624 = vmatmul.bf16.gmra.mxu1 %v1466_v63  ;;  %1713 = vmatmul.bf16.gmra.mxu2 %v1466_v63  ;;  %v1391_v52 = vpop.f32.mrf.mxu0  ;;  %v8915_v12 = vpop.permute.xlu2 %3229  ;;  %v3430_v0 = vsel %vm3366_vm3, 1, %v12881_v11  ;;  %v3429_v63 = vsel %vm3365_vm4, 1, %v12881_v11  ;;  %vm3378_vm3 = vcmp.eq.s32.totalorder %v8693_v45, %v8697_v41 }
 0x295   : > { %13107 = vst [vmem:[#allocation69_spill] sm:$0xff] %v8915_v12  ;;  %v8919_v2 = vpop.permute.xlu1 %3199  ;;  %v8925_v56 = vpop.permute.xlu0 %3223  ;;  %v1392_v18 = vadd.f32 %v8231_v31, %v1391_v52 }
 0x296   : > { %2079 = vmatmul.bf16.vlgmr.msrb.gmra.mxu0 %v1819_v29  ;;  %13108 = vst [vmem:[#allocation70_spill] sm:$0xff] %v8925_v56 }
 0x297   : > { %v1444_v29 = vmax.f32 %v1392_v18, 0.0 }
 0x29a   : > { %3497 = vperm.xlu2 %6315, %v3430_v0   ;;  %v3433_v0 = vsel %vm3369_vm6, 1, %v12881_v11  ;;  %vm3605_vm6 = vcmp.eq.s32.totalorder %v8777_v8, %v8372_v49 }
 0x29b   : > { %3494 = vperm.xlu1 %6316, %v3429_v63   ;;  %3518 = vperm.xlu0 %6314, %v3437_v43   ;;  %v3432_v63 = vsel %vm3368_vm7, 1, %v12881_v11  ;;  %v3440_v43 = vsel %vm3376_vm9, 1, %v12881_v11  ;;  %v3669_v49 = vsel %vm3605_vm6, 1, %v12881_v11 }
 0x29c   : > { %v1393_v20 = vpop.f32.mrf.mxu0  ;;  %v8931_v61 = vpop.permute.xlu2 %3238 }
 0x29d   : > { %13109 = vst [vmem:[#allocation71_spill] sm:$0xff] %v8931_v61  ;;  %v1394_v37 = vadd.f32 %v8938_v26, %v1393_v20  ;;  %v8941_v62 = vpop.permute.xlu1 %3208  ;;  %v8947_v31 = vpop.permute.xlu0 %3232 }
 0x29e   : > { %13110 = vst [vmem:[#allocation72_spill] sm:$0xff] %v8941_v62 }
 0x29f   : > { %13111 = vst [vmem:[#allocation73_spill] sm:$0xff] %v8947_v31  ;;  %v1445_v52 = vmax.f32 %v1394_v37, 0.0 }
 0x2a1   : > { %v1467_v61 = vpack.c.bf16 %v1445_v52, %v1444_v29  ;;  %v3435_v29 = vsel %vm3371_vm12, 1, %v12881_v11  ;;  %v3443_v52 = vsel %vm3379_vm13, 1, %v12881_v11 }
 0x2a2   : > { %3506 = vperm.xlu2 %6315, %v3433_v0  }
 0x2a3   : > { %3503 = vperm.xlu1 %6316, %v3432_v63   ;;  %3527 = vperm.xlu0 %6314, %v3440_v43  }
 0x2a4   : > { %1629 = vmatmul.bf16.gmra.mxu1 %v1467_v61  ;;  %1718 = vmatmul.bf16.gmra.mxu2 %v1467_v61  ;;  %v1396_v20 = vpop.f32.mrf.mxu0  ;;  %v8952_v12 = vpop.permute.xlu2 %3247  ;;  %v3436_v61 = vsel %vm3372_vm11, 1, %v12881_v11 }
 0x2a5   : > { %13112 = vst [vmem:[#allocation74_spill] sm:$0xff] %v8952_v12  ;;  %v8956_v25 = vpop.permute.xlu1 %3217  ;;  %v8962_v18 = vpop.permute.xlu0 %3241  ;;  %v1397_v40 = vadd.f32 %v8938_v26, %v1396_v20 }
 0x2a6   : > { %13113 = vst [vmem:[#allocation75_spill] sm:$0xff] %v8956_v25 }
 0x2a7   : > { %13114 = vst [vmem:[#allocation76_spill] sm:$0xff] %v8962_v18  ;;  %v1679_v37 = vpop.f32.mrf.mxu2  ;;  %v8978_v18 = vld [vmem:[%s6568_s22 + $0x8] sm:$0xff] }
 0x2a8   : > { %v1680_v20 = vadd.f32 %v1679_v37, %v8894_v42  ;;  %vm3608_vm11 = vcmp.eq.s32.totalorder %v8978_v18, %v8418_v6 }
 0x2a9   : > { %v3672_v6 = vsel %vm3608_vm11, 1, %v12881_v11 }
 0x2aa   : > { %3515 = vperm.xlu2 %6315, %v3436_v61   ;;  %v8981_v61 = vld [vmem:[%s6568_s22 + $0xf8] sm:$0xff]  ;;  %v1759_v46 = vmax.f32 %v1680_v20, 0.0 }
 0x2ab   : > { %3512 = vperm.xlu1 %6316, %v3435_v29   ;;  %3536 = vperm.xlu0 %6314, %v3443_v52   ;;  %vm3606_vm2 = vcmp.eq.s32.totalorder %v8981_v61, %v8978_v18  ;;  %v1446_v52 = vmax.f32 %v1397_v40, 0.0  ;;  %vm3380_vm7 = vcmp.eq.s32.totalorder %v8777_v8, %v8981_v61 }
 0x2ac   : > { %v1398_v0 = vpop.f32.mrf.mxu0  ;;  %v8968_v63 = vpop.permute.xlu2 %3256  ;;  %v3670_v56 = vsel %vm3606_vm2, 1, %v12881_v11 }
 0x2ad   : > { %13115 = vst [vmem:[#allocation77_spill] sm:$0xff] %v8968_v63  ;;  %v1399_v43 = vadd.f32 %v8938_v26, %v1398_v0  ;;  %v8973_v12 = vpop.permute.xlu1 %3226  ;;  %v8986_v29 = vpop.permute.xlu0 %3250  ;;  %v3439_v0 = vsel %vm3375_vm14, 1, %v12881_v11 }
 0x2ae   : > { %13116 = vst [vmem:[#allocation78_spill] sm:$0xff] %v8973_v12  ;;  %v3438_v12 = vsel %vm3374_vm15, 1, %v12881_v11 }
 0x2af   : > { %13117 = vst [vmem:[#allocation79_spill] sm:$0xff] %v8986_v29  ;;  %v1447_v51 = vmax.f32 %v1399_v43, 0.0  ;;  %v1681_v63 = vpop.f32.mrf.mxu2  ;;  %v8999_v29 = vld [vmem:[%s6568_s22 + $0xd8] sm:$0xff] }
 0x2b0   : > { %v1682_v31 = vadd.f32 %v1681_v63, %v8894_v42  ;;  %vm3377_vm4 = vcmp.eq.s32.totalorder %v8999_v29, %v8693_v45 }
 0x2b1   : > { %v1468_v25 = vpack.c.bf16 %v1447_v51, %v1446_v52 }
 0x2b2   : > { %v1761_v27 = vmax.f32 %v1682_v31, 0.0  ;;  %3524 = vperm.xlu2 %6315, %v3439_v0   ;;  %v9004_v31 = vld [vmem:[%s6568_s22 + $0x10] sm:$0xff] }
 0x2b3   : > { %3521 = vperm.xlu1 %6316, %v3438_v12   ;;  %3705 = vperm.xlu0 %6314, %v3670_v56   ;;  %vm3609_vm5 = vcmp.eq.s32.totalorder %v9004_v31, %v8334_v54  ;;  %v3441_v56 = vsel %vm3377_vm4, 1, %v12881_v11  ;;  %vm3607_vm12 = vcmp.eq.s32.totalorder %v9042_v58, %v9004_v31 }
 0x2b4   : > { %1634 = vmatmul.bf16.gmra.mxu1 %v1468_v25  ;;  %1723 = vmatmul.bf16.gmra.mxu2 %v1468_v25  ;;  %v1401_v37 = vpop.f32.mrf.mxu0  ;;  %v8992_v40 = vpop.permute.xlu2 %3265  ;;  %v1821_v43 = vpack.c.bf16 %v1761_v27, %v1759_v46  ;;  %v3442_v46 = vsel %vm3378_vm3, 1, %v12881_v11  ;;  %v3673_v25 = vsel %vm3609_vm5, 1, %v12881_v11  ;;  %vm3621_vm5 = vcmp.eq.s32.totalorder %v8476_v35, %v8521_v30  ;;  %v9110_v35 = vld [vmem:[%s6568_s22 + $0x50] sm:$0xff] }
 0x2b5   : > { %13118 = vst [vmem:[#allocation80_spill] sm:$0xff] %v8992_v40  ;;  %v8996_v63 = vpop.permute.xlu1 %3235  ;;  %v9008_v12 = vpop.permute.xlu0 %3259  ;;  %v1402_v20 = vadd.f32 %v8938_v26, %v1401_v37  ;;  %v3444_v40 = vsel %vm3380_vm7, 1, %v12881_v11  ;;  %vm3617_vm6 = vcmp.eq.s32.totalorder %v9110_v35, %v8565_v39 }
 0x2b6   : > { %13119 = vst [vmem:[#allocation81_spill] sm:$0xff] %v8996_v63  ;;  %2084 = vmatmul.bf16.gmra.mxu0 %v1821_v43  ;;  %v9024_v43 = vld [vmem:[%s6568_s22 + $0x28] sm:$0xff] }
 0x2b7   : > { %13120 = vst [vmem:[#allocation82_spill] sm:$0xff] %v9008_v12  ;;  %v1684_v27 = vpop.f32.mrf.mxu2  ;;  %vm3612_vm9 = vcmp.eq.s32.totalorder %v9024_v43, %v8377_v53 }
 0x2b8   : > { %v1685_v37 = vadd.f32 %v1684_v27, %v8894_v42  ;;  %v3676_v12 = vsel %vm3612_vm9, 1, %v12881_v11  ;;  %vm3624_vm9 = vcmp.eq.s32.totalorder %v8525_v38, %v8569_v33 }
 0x2ba   : > { %3533 = vperm.xlu2 %6315, %v3442_v46   ;;  %v1763_v63 = vmax.f32 %v1685_v37, 0.0 }
 0x2bb   : > { %3530 = vperm.xlu1 %6316, %v3441_v56   ;;  %3714 = vperm.xlu0 %6314, %v3673_v25   ;;  %v1448_v56 = vmax.f32 %v1402_v20, 0.0 }
 0x2bc   : > { %v1403_v52 = vpop.f32.mrf.mxu0  ;;  %v9014_v51 = vpop.permute.xlu2 %3274 }
 0x2bd   : > { %13121 = vst [vmem:[#allocation83_spill] sm:$0xff] %v9014_v51  ;;  %v1404_v54 = vadd.f32 %v8938_v26, %v1403_v52  ;;  %v9019_v0 = vpop.permute.xlu1 %3244  ;;  %v9029_v46 = vpop.permute.xlu0 %3268 }
 0x2be   : > { %13122 = vst [vmem:[#allocation84_spill] sm:$0xff] %v9019_v0 }
 0x2bf   : > { %13123 = vst [vmem:[#allocation85_spill] sm:$0xff] %v9029_v46  ;;  %v1449_v25 = vmax.f32 %v1404_v54, 0.0  ;;  %v1686_v51 = vpop.f32.mrf.mxu2 }
 0x2c0   : > { %v1687_v52 = vadd.f32 %v1686_v51, %v8894_v42  ;;  %v1411_v51 = vpop.f32.mrf.mxu3 }
 0x2c1   : > { %v1469_v0 = vpack.c.bf16 %v1449_v25, %v1448_v56 }
 0x2c2   : > { %v1765_v53 = vmax.f32 %v1687_v52, 0.0  ;;  %3702 = vperm.xlu2 %6315, %v3669_v49  }
 0x2c3   : > { %3539 = vperm.xlu1 %6316, %v3444_v40   ;;  %3723 = vperm.xlu0 %6314, %v3676_v12   ;;  %v9047_v40 = vld [vmem:[%s6568_s22 + $0x40] sm:$0xff] }
 0x2c4   : > { %1639 = vmatmul.bf16.gmra.mxu1 %v1469_v0  ;;  %1728 = vmatmul.bf16.gmra.mxu2 %v1469_v0  ;;  %v1406_v27 = vpop.f32.mrf.mxu0  ;;  %v9035_v20 = vpop.permute.xlu2 %3283  ;;  %v1823_v54 = vpack.c.bf16 %v1765_v53, %v1763_v63  ;;  %vm3615_vm13 = vcmp.eq.s32.totalorder %v9047_v40, %v8424_v19  ;;  %v3671_v0 = vsel %vm3607_vm12, 1, %v12881_v11  ;;  %v9060_v19 = vld [vmem:[%s6568_s22 + $0x20] sm:$0xff]  ;;  %vm3613_vm4 = vcmp.eq.s32.totalorder %v8468_v23, %v9047_v40 }
 0x2c5   : > { %13124 = vst [vmem:[#allocation86_spill] sm:$0xff] %v9035_v20  ;;  %v9039_v46 = vpop.permute.xlu1 %3253  ;;  %v9051_v63 = vpop.permute.xlu0 %3277  ;;  %v3679_v37 = vsel %vm3615_vm13, 1, %v12881_v11  ;;  %v1407_v56 = vadd.f32 %v8938_v26, %v1406_v27  ;;  %vm3611_vm14 = vcmp.eq.s32.totalorder %v9060_v19, %v8468_v23  ;;  %v9073_v27 = vld [vmem:[%s6568_s22 + $0x58] sm:$0xff]  ;;  %v1412_v23 = vadd.f32 %v8938_v26, %v1411_v51 }
 0x2c6   : > { %13125 = vst [vmem:[#allocation87_spill] sm:$0xff] %v9039_v46  ;;  %2089 = vmatmul.bf16.gmra.mxu0 %v1823_v54  ;;  %v9068_v54 = vld [vmem:[%s6568_s22 + $0x18] sm:$0xff]  ;;  %vm3618_vm2 = vcmp.eq.s32.totalorder %v9073_v27, %v8472_v4  ;;  %vm3616_vm7 = vcmp.eq.s32.totalorder %v8517_v59, %v9073_v27  ;;  %vm3627_vm13 = vcmp.eq.s32.totalorder %v8573_v57, %v8618_v48 }
 0x2c7   : > { %13126 = vst [vmem:[#allocation88_spill] sm:$0xff] %v9051_v63  ;;  %v1689_v12 = vpop.f32.mrf.mxu2  ;;  %vm3610_vm15 = vcmp.eq.s32.totalorder %v9068_v54, %v9024_v43  ;;  %v3675_v63 = vsel %vm3611_vm14, 1, %v12881_v11  ;;  %v3682_v62 = vsel %vm3618_vm2, 1, %v12881_v11 }
 0x2c8   : > { %v3674_v46 = vsel %vm3610_vm15, 1, %v12881_v11 }
 0x2ca   : > { %3711 = vperm.xlu2 %6315, %v3672_v6   ;;  %v1690_v6 = vadd.f32 %v1689_v12, %v8894_v42 }
 0x2cb   : > { %3708 = vperm.xlu1 %6316, %v3671_v0   ;;  %3732 = vperm.xlu0 %6314, %v3679_v37   ;;  %v1413_v37 = vpop.f32.mrf.mxu3 }
 0x2cc   : > { %v1408_v25 = vpop.f32.mrf.mxu0  ;;  %v9057_v49 = vpop.permute.xlu2 %3452  ;;  %v1767_v4 = vmax.f32 %v1690_v6, 0.0  ;;  %v1414_v6 = vadd.f32 %v8938_v26, %v1413_v37 }
 0x2cd   : > { %13127 = vst [vmem:[#allocation89_spill] sm:$0xff] %v9057_v49  ;;  %v1409_v52 = vadd.f32 %v8938_v26, %v1408_v25  ;;  %v9065_v53 = vpop.permute.xlu1 %3262  ;;  %v9078_v0 = vpop.permute.xlu0 %3446  ;;  %v1450_v49 = vmax.f32 %v1407_v56, 0.0 }
 0x2ce   : > { %13128 = vst [vmem:[#allocation90_spill] sm:$0xff] %v9065_v53  ;;  %v1453_v37 = vmax.f32 %v1414_v6, 0.0 }
 0x2cf   : > { %13129 = vst [vmem:[#allocation91_spill] sm:$0xff] %v9078_v0  ;;  %v1451_v25 = vmax.f32 %v1409_v52, 0.0  ;;  %v1691_v20 = vpop.f32.mrf.mxu2  ;;  %v9090_v52 = vld [vmem:[%s6568_s22 + $0x38] sm:$0xff] }
 0x2d0   : > { %v1692_v53 = vadd.f32 %v1691_v20, %v8894_v42  ;;  %vm3614_vm3 = vcmp.eq.s32.totalorder %v9090_v52, %v8517_v59  ;;  %v3688_v59 = vsel %vm3624_vm9, 1, %v12881_v11  ;;  %vm3636_vm9 = vcmp.eq.s32.totalorder %v8697_v41, %v8981_v61 }
 0x2d1   : > { %v9084_v28 = vpack.c.bf16 %v1451_v25, %v1450_v49  ;;  %v3685_v49 = vsel %vm3621_vm5, 1, %v12881_v11 }
 0x2d2   : > { %v1769_v36 = vmax.f32 %v1692_v53, 0.0  ;;  %3720 = vperm.xlu2 %6315, %v3675_v63   ;;  %v3677_v63 = vsel %vm3613_vm4, 1, %v12881_v11 }
 0x2d3   : > { %3717 = vperm.xlu1 %6316, %v3674_v46   ;;  %3741 = vperm.xlu0 %6314, %v3682_v62   ;;  %v1416_v53 = vpop.f32.mrf.mxu3 }
 0x2d4   : > { %1644 = vmatmul.bf16.vlgmr.msrb.gmra.mxu3 %v9084_v28  ;;  %v9087_v12 = vpop.permute.xlu2 %3461  ;;  %v1825_v56 = vpack.c.bf16 %v1769_v36, %v1767_v4  ;;  %v3678_v36 = vsel %vm3614_vm3, 1, %v12881_v11 }
 0x2d5   : > { %13130 = vst [vmem:[#allocation92_spill] sm:$0xff] %v9087_v12  ;;  %v9094_v20 = vpop.permute.xlu1 %3271  ;;  %v9100_v62 = vpop.permute.xlu0 %3455  ;;  %v9192_v12 = vld [vmem:[%s6568_s22 + $0xa0] sm:$0xff] }
 0x2d6   : > { %13131 = vst [vmem:[#allocation93_spill] sm:$0xff] %v9094_v20  ;;  %2094 = vmatmul.bf16.gmra.mxu0 %v1825_v56  ;;  %vm3625_vm4 = vcmp.eq.s32.totalorder %v8655_v47, %v9192_v12 }
 0x2d7   : > { %13132 = vst [vmem:[#allocation94_spill] sm:$0xff] %v9100_v62  ;;  %v1694_v46 = vpop.f32.mrf.mxu2  ;;  %v3680_v62 = vsel %vm3616_vm7, 1, %v12881_v11 }
 0x2d8   : > { %v1695_v4 = vadd.f32 %v1694_v46, %v8894_v42 }
 0x2da   : > { %3729 = vperm.xlu2 %6315, %v3678_v36   ;;  %v3681_v36 = vsel %vm3617_vm6, 1, %v12881_v11  ;;  %v1771_v0 = vmax.f32 %v1695_v4, 0.0  ;;  %v9140_v4 = vld [vmem:[%s6568_s22 + $0x70] sm:$0xff]  ;;  %vm3629_vm6 = vcmp.eq.s32.totalorder %v8618_v48, %v8728_v60 }
 0x2db   : > { %3726 = vperm.xlu1 %6316, %v3677_v63   ;;  %3750 = vperm.xlu0 %6314, %v3685_v49   ;;  %v1452_v63 = vmax.f32 %v1412_v23, 0.0  ;;  %v1418_v33 = vpop.f32.mrf.mxu3  ;;  %v9133_v23 = vld [vmem:[%s6568_s22 + $0x68] sm:$0xff]  ;;  %vm3619_vm12 = vcmp.eq.s32.totalorder %v8565_v39, %v9140_v4  ;;  %v1417_v39 = vadd.f32 %v8938_v26, %v1416_v53 }
 0x2dc   : > { %v9107_v25 = vpop.permute.xlu2 %3470  ;;  %vm3620_vm11 = vcmp.eq.s32.totalorder %v9133_v23, %v8614_v17 }
 0x2dd   : > { %13133 = vst [vmem:[#allocation95_spill] sm:$0xff] %v9107_v25  ;;  %v9114_v30 = vpop.permute.xlu1 %3280  ;;  %v9121_v56 = vpop.permute.xlu0 %3464  ;;  %v9127_v38 = vpack.c.bf16 %v1453_v37, %v1452_v63  ;;  %v3683_v37 = vsel %vm3619_vm12, 1, %v12881_v11  ;;  %v1419_v63 = vadd.f32 %v8938_v26, %v1418_v33  ;;  %v9168_v33 = vld [vmem:[%s6568_s22 + $0xb8] sm:$0xff] }
 0x2de   : > { %13134 = vst [vmem:[#allocation96_spill] sm:$0xff] %v9114_v30  ;;  %vm3630_vm2 = vcmp.eq.s32.totalorder %v9168_v33, %v8659_v1  ;;  %vm3628_vm7 = vcmp.eq.s32.totalorder %v8689_v9, %v9168_v33 }
 0x2df   : > { %13135 = vst [vmem:[#allocation97_spill] sm:$0xff] %v9121_v56  ;;  %v1696_v51 = vpop.f32.mrf.mxu2  ;;  %v1455_v53 = vmax.f32 %v1419_v63, 0.0  ;;  %v3692_v48 = vsel %vm3628_vm7, 1, %v12881_v11  ;;  %vm3864_vm7 = vcmp.eq.s32.totalorder %v8981_v61, %v9068_v54 }
 0x2e0   : > { %v1697_v49 = vadd.f32 %v1696_v51, %v8894_v42 }
 0x2e2   : > { %v1773_v30 = vmax.f32 %v1697_v49, 0.0  ;;  %3738 = vperm.xlu2 %6315, %v3681_v36   ;;  %v3691_v36 = vsel %vm3627_vm13, 1, %v12881_v11  ;;  %v9156_v49 = vld [vmem:[%s6568_s22 + $0x80] sm:$0xff]  ;;  %vm3863_vm13 = vcmp.eq.s32.totalorder %v8777_v8, %v9004_v31 }
 0x2e3   : > { %3735 = vperm.xlu1 %6316, %v3680_v62   ;;  %3759 = vperm.xlu0 %6314, %v3688_v59   ;;  %vm3623_vm14 = vcmp.eq.s32.totalorder %v9156_v49, %v8655_v47  ;;  %v1421_v59 = vpop.f32.mrf.mxu3 }
 0x2e4   : > { %1649 = vmatmul.bf16.gmra.mxu3 %v9127_v38  ;;  %v9130_v46 = vpop.permute.xlu2 %3479  ;;  %v1827_v6 = vpack.c.bf16 %v1773_v30, %v1771_v0  ;;  %v3684_v30 = vsel %vm3620_vm11, 1, %v12881_v11  ;;  %v3687_v20 = vsel %vm3623_vm14, 1, %v12881_v11  ;;  %v1422_v47 = vadd.f32 %v8938_v26, %v1421_v59 }
 0x2e5   : > { %13136 = vst [vmem:[#allocation98_spill] sm:$0xff] %v9130_v46  ;;  %v9137_v51 = vpop.permute.xlu1 %3449  ;;  %v9146_v62 = vpop.permute.xlu0 %3473  ;;  %vm3632_vm11 = vcmp.eq.s32.totalorder %v8659_v1, %v8999_v29  ;;  %vm3635_vm14 = vcmp.eq.s32.totalorder %v8693_v45, %v8777_v8 }
 0x2e6   : > { %13137 = vst [vmem:[#allocation99_spill] sm:$0xff] %v9137_v51  ;;  %2099 = vmatmul.bf16.gmra.mxu0 %v1827_v6  ;;  %v9163_v51 = vld [vmem:[%s6568_s22 + $0x88] sm:$0xff]  ;;  %v1456_v59 = vmax.f32 %v1422_v47, 0.0 }
 0x2e7   : > { %13138 = vst [vmem:[#allocation100_spill] sm:$0xff] %v9146_v62  ;;  %v1699_v0 = vpop.f32.mrf.mxu2  ;;  %vm3622_vm15 = vcmp.eq.s32.totalorder %v8614_v17, %v9163_v51  ;;  %v3694_v62 = vsel %vm3630_vm2, 1, %v12881_v11  ;;  %vm3866_vm2 = vcmp.eq.s32.totalorder %v8978_v18, %v9024_v43 }
 0x2e8   : > { %v3686_v17 = vsel %vm3622_vm15, 1, %v12881_v11  ;;  %vm3634_vm15 = vcmp.eq.s32.totalorder %v8999_v29, %v8697_v41  ;;  %v3930_v8 = vsel %vm3866_vm2, 1, %v12881_v11  ;;  %vm3878_vm2 = vcmp.eq.s32.totalorder %v9133_v23, %v9163_v51 }
 0x2ea   : > { %3747 = vperm.xlu2 %6315, %v3684_v30   ;;  %v1700_v30 = vadd.f32 %v1699_v0, %v8894_v42 }
 0x2eb   : > { %3744 = vperm.xlu1 %6316, %v3683_v37   ;;  %3768 = vperm.xlu0 %6314, %v3691_v36  }
 0x2ec   : > { %v9153_v57 = vpop.permute.xlu2 %3488  ;;  %v1775_v25 = vmax.f32 %v1700_v30, 0.0 }
 0x2ed   : > { %13139 = vst [vmem:[#allocation101_spill] sm:$0xff] %v9153_v57  ;;  %v9160_v6 = vpop.permute.xlu1 %3458  ;;  %v9173_v37 = vpop.permute.xlu0 %3482  ;;  %v1454_v57 = vmax.f32 %v1417_v39, 0.0 }
 0x2ee   : > { %13140 = vst [vmem:[#allocation102_spill] sm:$0xff] %v9160_v6 }
 0x2ef   : > { %13141 = vst [vmem:[#allocation103_spill] sm:$0xff] %v9173_v37  ;;  %v1701_v36 = vpop.f32.mrf.mxu2  ;;  %v9179_v63 = vpack.c.bf16 %v1455_v53, %v1454_v57  ;;  %v9185_v37 = vld [vmem:[%s6568_s22 + $0x98] sm:$0xff]  ;;  %v3689_v57 = vsel %vm3625_vm4, 1, %v12881_v11  ;;  %vm3861_vm4 = vcmp.eq.s32.totalorder %v8693_v45, %v9042_v58 }
 0x2f0   : > { %v1702_v46 = vadd.f32 %v1701_v36, %v8894_v42  ;;  %vm3626_vm3 = vcmp.eq.s32.totalorder %v9185_v37, %v8689_v9 }
 0x2f2   : > { %v1777_v56 = vmax.f32 %v1702_v46, 0.0  ;;  %3756 = vperm.xlu2 %6315, %v3687_v20   ;;  %v9197_v20 = vld [vmem:[%s6568_s22 + $0xd0] sm:$0xff] }
 0x2f3   : > { %3753 = vperm.xlu1 %6316, %v3686_v17   ;;  %3777 = vperm.xlu0 %6314, %v3694_v62   ;;  %vm3633_vm5 = vcmp.eq.s32.totalorder %v9197_v20, %v8693_v45  ;;  %v3690_v62 = vsel %vm3626_vm3, 1, %v12881_v11  ;;  %vm3631_vm12 = vcmp.eq.s32.totalorder %v8728_v60, %v9197_v20  ;;  %vm3862_vm3 = vcmp.eq.s32.totalorder %v8697_v41, %v8978_v18 }
 0x2f4   : > { %1654 = vmatmul.bf16.gmra.mxu3 %v9179_v63  ;;  %v9182_v0 = vpop.permute.xlu2 %3497  ;;  %v1829_v39 = vpack.c.bf16 %v1777_v56, %v1775_v25  ;;  %v1423_v25 = vpop.f32.mrf.mxu3  ;;  %v3697_v53 = vsel %vm3633_vm5, 1, %v12881_v11  ;;  %vm3869_vm5 = vcmp.eq.s32.totalorder %v9060_v19, %v9047_v40  ;;  %v3925_v41 = vsel %vm3861_vm4, 1, %v12881_v11 }
 0x2f5   : > { %13142 = vst [vmem:[#allocation104_spill] sm:$0xff] %v9182_v0  ;;  %v9189_v36 = vpop.permute.xlu1 %3467  ;;  %v9201_v46 = vpop.permute.xlu0 %3491  ;;  %v1424_v30 = vadd.f32 %v8938_v26, %v1423_v25  ;;  %v3693_v26 = vsel %vm3629_vm6, 1, %v12881_v11  ;;  %vm3865_vm6 = vcmp.eq.s32.totalorder %v9042_v58, %v9060_v19 }
 0x2f6   : > { %13143 = vst [vmem:[#allocation105_spill] sm:$0xff] %v9189_v36  ;;  %2104 = vmatmul.bf16.gmra.mxu0 %v1829_v39 }
 0x2f7   : > { %13144 = vst [vmem:[#allocation106_spill] sm:$0xff] %v9201_v46  ;;  %v1704_v56 = vpop.f32.mrf.mxu2  ;;  %v1457_v0 = vmax.f32 %v1424_v30, 0.0 }
 0x2f8   : > { %v1705_v25 = vadd.f32 %v1704_v56, %v8894_v42 }
 0x2fa   : > { %3765 = vperm.xlu2 %6315, %v3690_v62   ;;  %v1779_v46 = vmax.f32 %v1705_v25, 0.0  ;;  %v3696_v25 = vsel %vm3632_vm11, 1, %v12881_v11  ;;  %vm3868_vm11 = vcmp.eq.s32.totalorder %v9068_v54, %v9090_v52 }
 0x2fb   : > { %3762 = vperm.xlu1 %6316, %v3689_v57   ;;  %3786 = vperm.xlu0 %6314, %v3697_v53  }
 0x2fc   : > { %v9208_v17 = vpop.permute.xlu2 %3506 }
 0x2fd   : > { %13145 = vst [vmem:[#allocation107_spill] sm:$0xff] %v9208_v17  ;;  %v9212_v39 = vpop.permute.xlu1 %3476  ;;  %v9219_v62 = vpop.permute.xlu0 %3500  ;;  %v3700_v17 = vsel %vm3636_vm9, 1, %v12881_v11  ;;  %vm3872_vm9 = vcmp.eq.s32.totalorder %v9090_v52, %v9073_v27 }
 0x2fe   : > { %13146 = vst [vmem:[#allocation108_spill] sm:$0xff] %v9212_v39  ;;  %v9225_v39 = vpack.c.bf16 %v1457_v0, %v1456_v59 }
 0x2ff   : > { %13147 = vst [vmem:[#allocation109_spill] sm:$0xff] %v9219_v62  ;;  %v1706_v57 = vpop.f32.mrf.mxu2 }
 0x300   : > { %v1707_v53 = vadd.f32 %v1706_v57, %v8894_v42  ;;  %v3695_v57 = vsel %vm3631_vm12, 1, %v12881_v11 }
 0x302   : > { %v1781_v9 = vmax.f32 %v1707_v53, 0.0  ;;  %3774 = vperm.xlu2 %6315, %v3693_v26  }
 0x303   : > { %3771 = vperm.xlu1 %6316, %v3692_v48   ;;  %3795 = vperm.xlu0 %6314, %v3700_v17   ;;  %v3699_v48 = vsel %vm3635_vm14, 1, %v12881_v11 }
 0x304   : > { %1659 = vmatmul.bf16.gmra.mxu3 %v9225_v39  ;;  %v9228_v56 = vpop.permute.xlu2 %3515  ;;  %v1831_v30 = vpack.c.bf16 %v1781_v9, %v1779_v46  ;;  %v3927_v46 = vsel %vm3863_vm13, 1, %v12881_v11  ;;  %vm3875_vm13 = vcmp.eq.s32.totalorder %v9110_v35, %v9140_v4 }
 0x305   : > { %13148 = vst [vmem:[#allocation110_spill] sm:$0xff] %v9228_v56  ;;  %v9232_v47 = vpop.permute.xlu1 %3485  ;;  %v9238_v0 = vpop.permute.xlu0 %3509 }
 0x306   : > { %13149 = vst [vmem:[#allocation111_spill] sm:$0xff] %v9232_v47  ;;  %2109 = vmatmul.bf16.gmra.mxu0 %v1831_v30  ;;  %v3698_v30 = vsel %vm3634_vm15, 1, %v12881_v11 }
 0x307   : > { %13150 = vst [vmem:[#allocation112_spill] sm:$0xff] %v9238_v0  ;;  %v1709_v17 = vpop.f32.mrf.mxu2  ;;  %v3942_v0 = vsel %vm3878_vm2, 1, %v12881_v11 }
 0x308   : > { %v1710_v26 = vadd.f32 %v1709_v17, %v8894_v42 }
 0x30a   : > { %3783 = vperm.xlu2 %6315, %v3696_v25   ;;  %v9260_v25 = vpop.f32.mrf.mxu1 }
 0x30b   : > { %3780 = vperm.xlu1 %6316, %v3695_v57   ;;  %3964 = vperm.xlu0 %6314, %v3927_v46   ;;  %v1783_v57 = vmax.f32 %v1710_v26, 0.0 }
 0x30c   : > { %v9243_v1 = vpop.permute.xlu2 %3524 }
 0x30d   : > { %13151 = vst [vmem:[#allocation113_spill] sm:$0xff] %v9243_v1  ;;  %v9247_v60 = vpop.permute.xlu1 %3494  ;;  %v9254_v59 = vpop.permute.xlu0 %3518 }
 0x30e   : > { %13152 = vst [vmem:[#allocation114_spill] sm:$0xff] %v9247_v60 }
 0x30f   : > { %13153 = vst [vmem:[#allocation115_spill] sm:$0xff] %v9254_v59  ;;  %v1711_v53 = vpop.f32.mrf.mxu2 }
 0x310   : > { %v1712_v9 = vadd.f32 %v1711_v53, %v8894_v42  ;;  %v6234_v53 = vld [vmem:[%s12593_s10 + $0x38] sm:$0xff] }
 0x311   : > { %1982 = vmatpush.bf16.msrb.mxu3 %v6234_v53 }
 0x312   : > { %v1785_v46 = vmax.f32 %v1712_v9, 0.0  ;;  %3792 = vperm.xlu2 %6315, %v3699_v48   ;;  %v3926_v48 = vsel %vm3862_vm3, 1, %v12881_v11  ;;  %v3933_v9 = vsel %vm3869_vm5, 1, %v12881_v11  ;;  %v9284_v45 = vpop.f32.mrf.mxu1  ;;  %vm3881_vm5 = vcmp.eq.s32.totalorder %v9156_v49, %v9192_v12 }
 0x313   : > { %3789 = vperm.xlu1 %6316, %v3698_v30   ;;  %3973 = vperm.xlu0 %6314, %v3930_v8   ;;  %v6233_v30 = vld [vmem:[%s12593_s10 + $0x30] sm:$0xff]  ;;  %v6232_v8 = vld [vmem:[%s12593_s10 + $0x28] sm:$0xff] }
 0x314   : > { %1733 = vmatmul.bf16.vlgmr.msra.gmra.mxu3 %v9084_v28  ;;  %v9263_v17 = vpop.permute.xlu2 %3533  ;;  %v1833_v1 = vpack.c.bf16 %v1785_v46, %v1783_v57 }
 0x315   : > { %13154 = vst [vmem:[#allocation116_spill] sm:$0xff] %v9263_v17  ;;  %v9270_v59 = vpop.permute.xlu1 %3503  ;;  %v9276_v28 = vpop.permute.xlu0 %3527  ;;  %1983 = vmatpush.bf16.msrb.mxu3 %v6233_v30  ;;  %v3928_v30 = vsel %vm3864_vm7, 1, %v12881_v11 }
 0x316   : > { %13155 = vst [vmem:[#allocation117_spill] sm:$0xff] %v9270_v59  ;;  %2114 = vmatmul.bf16.gmra.mxu0 %v1833_v1 }
 0x317   : > { %13156 = vst [vmem:[#allocation118_spill] sm:$0xff] %v9276_v28  ;;  %v1714_v26 = vpop.f32.mrf.mxu2 }
 0x318   : > { %v1715_v46 = vadd.f32 %v1714_v26, %v8894_v42  ;;  %v6231_v26 = vld [vmem:[%s12593_s10 + $0x20] sm:$0xff] }
 0x319   : > { %1984 = vmatpush.bf16.msrb.mxu3 %v6232_v8 }
 0x31a   : > { %3961 = vperm.xlu2 %6315, %v3926_v48   ;;  %v1787_v17 = vmax.f32 %v1715_v46, 0.0  ;;  %v9309_v56 = vpop.f32.mrf.mxu1  ;;  %v9319_v46 = vld [vmem:[%s6568_s22 + $0x30] sm:$0xff] }
 0x31b   : > { %3958 = vperm.xlu1 %6316, %v3925_v41   ;;  %3982 = vperm.xlu0 %6314, %v3933_v9   ;;  %v3929_v41 = vsel %vm3865_vm6, 1, %v12881_v11  ;;  %vm3867_vm12 = vcmp.eq.s32.totalorder %v9004_v31, %v9319_v46  ;;  %vm3871_vm14 = vcmp.eq.s32.totalorder %v9319_v46, %v9110_v35 }
 0x31c   : > { %v9286_v1 = vpop.permute.xlu2 %3702 }
 0x31d   : > { %13157 = vst [vmem:[#allocation119_spill] sm:$0xff] %v9286_v1  ;;  %v9293_v57 = vpop.permute.xlu1 %3512  ;;  %v9300_v53 = vpop.permute.xlu0 %3536  ;;  %v3936_v1 = vsel %vm3872_vm9, 1, %v12881_v11  ;;  %1985 = vmatpush.bf16.msrb.mxu3 %v6231_v26  ;;  %vm3884_vm9 = vcmp.eq.s32.totalorder %v9185_v37, %v9168_v33 }
 0x31e   : > { %13158 = vst [vmem:[#allocation120_spill] sm:$0xff] %v9293_v57  ;;  %v3948_v60 = vsel %vm3884_vm9, 1, %v12881_v11  ;;  %vm4120_vm9 = vcmp.eq.s32.totalorder %v8999_v29, %v9068_v54 }
 0x31f   : > { %13159 = vst [vmem:[#allocation121_spill] sm:$0xff] %v9300_v53  ;;  %v1716_v48 = vpop.f32.mrf.mxu2 }
 0x320   : > { %v1717_v9 = vadd.f32 %v1716_v48, %v8894_v42 }
 0x322   : > { %v1789_v28 = vmax.f32 %v1717_v9, 0.0  ;;  %3970 = vperm.xlu2 %6315, %v3929_v41   ;;  %v3931_v41 = vsel %vm3867_vm12, 1, %v12881_v11  ;;  %v3939_v9 = vsel %vm3875_vm13, 1, %v12881_v11 }
 0x323   : > { %3967 = vperm.xlu1 %6316, %v3928_v30   ;;  %3991 = vperm.xlu0 %6314, %v3936_v1   ;;  %v3932_v1 = vsel %vm3868_vm11, 1, %v12881_v11  ;;  %v6229_v30 = vld [vmem:[%s12593_s10 + $0x10] sm:$0xff] }
 0x324   : > { %1738 = vmatmul.bf16.gmra.mxu3 %v9127_v38  ;;  %v9312_v48 = vpop.permute.xlu2 %3711  ;;  %v1835_v53 = vpack.c.bf16 %v1789_v28, %v1787_v17  ;;  %v6230_v38 = vld [vmem:[%s12593_s10 + $0x18] sm:$0xff] }
 0x325   : > { %13160 = vst [vmem:[#allocation122_spill] sm:$0xff] %v9312_v48  ;;  %v9316_v8 = vpop.permute.xlu1 %3521  ;;  %v9328_v17 = vpop.permute.xlu0 %3705  ;;  %1986 = vmatpush.bf16.msrb.mxu3 %v6230_v38  ;;  %v9345_v48 = vld [vmem:[%s6568_s22 + $0x48] sm:$0xff] }
 0x326   : > { %13161 = vst [vmem:[#allocation123_spill] sm:$0xff] %v9316_v8  ;;  %2119 = vmatmul.bf16.gmra.mxu0 %v1835_v53  ;;  %v9340_v53 = vpop.f32.mrf.mxu1  ;;  %vm3870_vm15 = vcmp.eq.s32.totalorder %v9024_v43, %v9345_v48  ;;  %v6228_v38 = vld [vmem:[%s12593_s10 + $0x8] sm:$0xff]  ;;  %vm3874_vm3 = vcmp.eq.s32.totalorder %v9345_v48, %v9133_v23 }
 0x327   : > { %13162 = vst [vmem:[#allocation124_spill] sm:$0xff] %v9328_v17  ;;  %v1719_v28 = vpop.f32.mrf.mxu2  ;;  %v3934_v57 = vsel %vm3870_vm15, 1, %v12881_v11 }
 0x329   : > { %1987 = vmatpush.bf16.msrb.mxu3 %v6229_v30 }
 0x32a   : > { %3979 = vperm.xlu2 %6315, %v3932_v1   ;;  %v1720_v1 = vadd.f32 %v1719_v28, %v8894_v42  ;;  %v6227_v28 = vld [vmem:[%s12593_s10] sm:$0xff] }
 0x32b   : > { %3976 = vperm.xlu1 %6316, %v3931_v41   ;;  %4000 = vperm.xlu0 %6314, %v3939_v9  }
 0x32c   : > { %v9336_v26 = vpop.permute.xlu2 %3720  ;;  %v1791_v30 = vmax.f32 %v1720_v1, 0.0 }
 0x32d   : > { %13163 = vst [vmem:[#allocation125_spill] sm:$0xff] %v9336_v26  ;;  %v9342_v17 = vpop.permute.xlu1 %3530  ;;  %v9355_v41 = vpop.permute.xlu0 %3714  ;;  %1988 = vmatpush.bf16.msrb.mxu3 %v6228_v38  ;;  %v9372_v38 = vld [vmem:[%s6568_s22 + $0x60] sm:$0xff] }
 0x32e   : > { %13164 = vst [vmem:[#allocation126_spill] sm:$0xff] %v9342_v17  ;;  %v3935_v17 = vsel %vm3871_vm14, 1, %v12881_v11  ;;  %vm3873_vm4 = vcmp.eq.s32.totalorder %v9047_v40, %v9372_v38  ;;  %vm3877_vm6 = vcmp.eq.s32.totalorder %v9372_v38, %v9156_v49 }
 0x32f   : > { %13165 = vst [vmem:[#allocation127_spill] sm:$0xff] %v9355_v41  ;;  %v1721_v9 = vpop.f32.mrf.mxu2 }
 0x330   : > { %v1722_v8 = vadd.f32 %v1721_v9, %v8894_v42 }
 0x331   : > { %1989 = vmatpush.bf16.msrb.mxu3 %v6227_v28 }
 0x332   : > { %v1793_v59 = vmax.f32 %v1722_v8, 0.0  ;;  %3988 = vperm.xlu2 %6315, %v3935_v17   ;;  %v3937_v8 = vsel %vm3873_vm4, 1, %v12881_v11  ;;  %v3945_v17 = vsel %vm3881_vm5, 1, %v12881_v11 }
 0x333   : > { %3985 = vperm.xlu1 %6316, %v3934_v57   ;;  %4009 = vperm.xlu0 %6314, %v3942_v0   ;;  %v9380_v0 = vpop.f32.mrf.mxu1  ;;  %v3938_v57 = vsel %vm3874_vm3, 1, %v12881_v11 }
 0x334   : > { %1743 = vmatmul.bf16.gmra.mxu3 %v9179_v63  ;;  %v9365_v41 = vpop.permute.xlu2 %3729  ;;  %v1837_v62 = vpack.c.bf16 %v1793_v59, %v1791_v30  ;;  %v9392_v30 = vld [vmem:[%s6568_s22 + $0x78] sm:$0xff] }
 0x335   : > { %13166 = vst [vmem:[#allocation128_spill] sm:$0xff] %v9365_v41  ;;  %v9369_v9 = vpop.permute.xlu1 %3539  ;;  %v9378_v63 = vpop.permute.xlu0 %3723  ;;  %vm3876_vm7 = vcmp.eq.s32.totalorder %v9073_v27, %v9392_v30  ;;  %vm3880_vm11 = vcmp.eq.s32.totalorder %v9392_v30, %v9185_v37 }
 0x336   : > { %13167 = vst [vmem:[#allocation129_spill] sm:$0xff] %v9369_v9  ;;  %2124 = vmatmul.bf16.gmra.mxu0 %v1837_v62 }
 0x337   : > { %13168 = vst [vmem:[#allocation130_spill] sm:$0xff] %v9378_v63  ;;  %v1724_v59 = vpop.f32.mrf.mxu2  ;;  %v9415_v63 = vld [vmem:[%s6568_s22 + $0x90] sm:$0xff] }
 0x338   : > { %v1725_v28 = vadd.f32 %v1724_v59, %v8894_v42  ;;  %vm3879_vm12 = vcmp.eq.s32.totalorder %v9140_v4, %v9415_v63 }
 0x33a   : > { %3997 = vperm.xlu2 %6315, %v3938_v57  }
 0x33b   : > { %3994 = vperm.xlu1 %6316, %v3937_v8   ;;  %4018 = vperm.xlu0 %6314, %v3945_v17   ;;  %v3941_v17 = vsel %vm3877_vm6, 1, %v12881_v11  ;;  %v9405_v47 = vpop.f32.mrf.mxu1 }
 0x33c   : > { %v9385_v1 = vpop.permute.xlu2 %3738 }
 0x33d   : > { %13169 = vst [vmem:[#allocation131_spill] sm:$0xff] %v9385_v1  ;;  %v9389_v62 = vpop.permute.xlu1 %3708  ;;  %v9399_v57 = vpop.permute.xlu0 %3732  ;;  %v1795_v1 = vmax.f32 %v1725_v28, 0.0  ;;  %v9420_v28 = vld [vmem:[%s6568_s22 + $0xb0] sm:$0xff] }
 0x33e   : > { %13170 = vst [vmem:[#allocation132_spill] sm:$0xff] %v9389_v62  ;;  %v3940_v62 = vsel %vm3876_vm7, 1, %v12881_v11  ;;  %vm3887_vm13 = vcmp.eq.s32.totalorder %v9420_v28, %v9197_v20  ;;  %vm3883_vm14 = vcmp.eq.s32.totalorder %v9415_v63, %v9420_v28  ;;  %vm3888_vm7 = vcmp.eq.s32.totalorder %v9168_v33, %v8999_v29 }
 0x33f   : > { %13171 = vst [vmem:[#allocation133_spill] sm:$0xff] %v9399_v57  ;;  %v1726_v8 = vpop.f32.mrf.mxu2 }
 0x340   : > { %v1727_v9 = vadd.f32 %v1726_v8, %v8894_v42 }
 0x342   : > { %v1797_v41 = vmax.f32 %v1727_v9, 0.0  ;;  %4006 = vperm.xlu2 %6315, %v3941_v17   ;;  %v9428_v9 = vperm.slane %v8891_v16, 0 }
 0x343   : > { %4003 = vperm.xlu1 %6316, %v3940_v62   ;;  %4027 = vperm.xlu0 %6314, %v3948_v60   ;;  %v3951_v62 = vsel %vm3887_vm13, 1, %v12881_v11 }
 0x344   : > { %1748 = vmatmul.bf16.gmra.mxu3 %v9225_v39  ;;  %v9408_v59 = vpop.permute.xlu2 %3747  ;;  %v1839_v57 = vpack.c.bf16 %v1797_v41, %v1795_v1  ;;  %v3944_v41 = vsel %vm3880_vm11, 1, %v12881_v11  ;;  %v3943_v1 = vsel %vm3879_vm12, 1, %v12881_v11  ;;  %v1588_v17 = vadd.f32 %v9284_v45, %v9428_v9  ;;  %v9450_v45 = vld [vmem:[%s6568_s22 + $0xe8] sm:$0xff] }
 0x345   : > { %13172 = vst [vmem:[#allocation134_spill] sm:$0xff] %v9408_v59  ;;  %v9412_v8 = vpop.permute.xlu1 %3717  ;;  %v9424_v39 = vpop.permute.xlu0 %3741  ;;  %vm3892_vm11 = vcmp.eq.s32.totalorder %v8999_v29, %v8981_v61  ;;  %v1598_v29 = vadd.f32 %v9405_v47, %v9428_v9 }
 0x346   : > { %13173 = vst [vmem:[#allocation135_spill] sm:$0xff] %v9412_v8  ;;  %2129 = vmatmul.bf16.gmra.mxu0 %v1839_v57  ;;  %v9434_v57 = vpop.f32.mrf.mxu1  ;;  %v1586_v8 = vadd.f32 %v9260_v25, %v9428_v9  ;;  %v1756_v25 = vmax.f32 %v1588_v17, 0.0 }
 0x347   : > { %13174 = vst [vmem:[#allocation136_spill] sm:$0xff] %v9424_v39  ;;  %v1729_v60 = vpop.f32.mrf.mxu2  ;;  %v9445_v39 = vld [vmem:[%s6568_s22 + $0xa8] sm:$0xff]  ;;  %v1764_v47 = vmax.f32 %v1598_v29, 0.0 }
 0x348   : > { %vm3882_vm15 = vcmp.eq.s32.totalorder %v9163_v51, %v9445_v39  ;;  %v1754_v36 = vmax.f32 %v1586_v8, 0.0 }
 0x349   : > { %v3946_v13 = vsel %vm3882_vm15, 1, %v12881_v11 }
 0x34a   : > { %4015 = vperm.xlu2 %6315, %v3944_v41   ;;  %v9453_v41 = vld [vmem:[%s6568_s22 + $0xc8] sm:$0xff]  ;;  %v1818_v3 = vpack.c.bf16 %v1756_v25, %v1754_v36  ;;  %v1593_v36 = vadd.f32 %v9340_v53, %v9428_v9  ;;  %v9491_v25 = vld [vmem:[%s6568_s22 + $0xe0] sm:$0xff] }
 0x34b   : > { %4012 = vperm.xlu1 %6316, %v3943_v1   ;;  %4036 = vperm.xlu0 %6314, %v3951_v62   ;;  %vm3890_vm2 = vcmp.eq.s32.totalorder %v9453_v41, %v9450_v45  ;;  %v1730_v1 = vadd.f32 %v1729_v60, %v8894_v42  ;;  %vm3886_vm3 = vcmp.eq.s32.totalorder %v9445_v39, %v9453_v41 }
 0x34c   : > { %v9438_v59 = vpop.permute.xlu2 %3756  ;;  %v3954_v10 = vsel %vm3890_vm2, 1, %v12881_v11  ;;  %v1760_v53 = vmax.f32 %v1593_v36, 0.0  ;;  %vm4118_vm15 = vcmp.eq.s32.totalorder %v9453_v41, %v8978_v18  ;;  %vm4126_vm2 = vcmp.eq.s32.totalorder %v8978_v18, %v9345_v48 }
 0x34d   : > { %13175 = vst [vmem:[#allocation137_spill] sm:$0xff] %v9438_v59  ;;  %v9442_v16 = vpop.permute.xlu1 %3726  ;;  %v9458_v62 = vpop.permute.xlu0 %3750  ;;  %v1799_v6 = vmax.f32 %v1730_v1, 0.0 }
 0x34e   : > { %13176 = vst [vmem:[#allocation138_spill] sm:$0xff] %v9442_v16  ;;  %v3947_v16 = vsel %vm3883_vm14, 1, %v12881_v11  ;;  %v9468_v8 = vpop.f32.mrf.mxu1  ;;  %vm4119_vm14 = vcmp.eq.s32.totalorder %v9197_v20, %v9004_v31 }
 0x34f   : > { %13177 = vst [vmem:[#allocation139_spill] sm:$0xff] %v9458_v62  ;;  %v1731_v59 = vpop.f32.mrf.mxu2  ;;  %v9473_v62 = vld [vmem:[%s6568_s22 + $0xc0] sm:$0xff] }
 0x350   : > { %v1732_v26 = vadd.f32 %v1731_v59, %v8894_v42  ;;  %vm3885_vm4 = vcmp.eq.s32.totalorder %v9192_v12, %v9473_v62  ;;  %vm4117_vm5 = vcmp.eq.s32.totalorder %v9473_v62, %v9042_v58  ;;  %vm3889_vm6 = vcmp.eq.s32.totalorder %v9473_v62, %v9491_v25 }
 0x352   : > { %v1801_v50 = vmax.f32 %v1732_v26, 0.0  ;;  %4024 = vperm.xlu2 %6315, %v3947_v16   ;;  %v1591_v26 = vadd.f32 %v9309_v56, %v9428_v9 }
 0x353   : > { %4021 = vperm.xlu1 %6316, %v3946_v13   ;;  %4045 = vperm.xlu0 %6314, %v3954_v10   ;;  %v3949_v10 = vsel %vm3885_vm4, 1, %v12881_v11  ;;  %vm4121_vm4 = vcmp.eq.s32.totalorder %v9491_v25, %v9060_v19 }
 0x354   : > { %1990 = vmatmul.bf16.vlgmr.msrb.gmra.mxu3 %v1818_v3  ;;  %v9464_v60 = vpop.permute.xlu2 %3765  ;;  %v1841_v17 = vpack.c.bf16 %v1801_v50, %v1799_v6  ;;  %v3950_v50 = vsel %vm3886_vm3, 1, %v12881_v11  ;;  %v4181_v6 = vsel %vm4117_vm5, 1, %v12881_v11  ;;  %vm4122_vm3 = vcmp.eq.s32.totalorder %v9450_v45, %v9024_v43 }
 0x355   : > { %13178 = vst [vmem:[#allocation140_spill] sm:$0xff] %v9464_v60  ;;  %v9470_v59 = vpop.permute.xlu1 %3735  ;;  %v9479_v3 = vpop.permute.xlu0 %3759  ;;  %vm4129_vm5 = vcmp.eq.s32.totalorder %v9060_v19, %v9372_v38 }
 0x356   : > { %13179 = vst [vmem:[#allocation141_spill] sm:$0xff] %v9470_v59  ;;  %2134 = vmatmul.bf16.gmra.mxu0 %v1841_v17  ;;  %v9504_v56 = vpop.f32.mrf.mxu1 }
 0x357   : > { %13180 = vst [vmem:[#allocation142_spill] sm:$0xff] %v9479_v3  ;;  %v1645_v13 = vpop.f32.mrf.mxu3  ;;  %v3952_v3 = vsel %vm3888_vm7, 1, %v12881_v11 }
 0x358   : > { %v1646_v17 = vadd.f32 %v1645_v13, %v9428_v9 }
 0x35a   : > { %4033 = vperm.xlu2 %6315, %v3950_v50   ;;  %v1802_v59 = vmax.f32 %v1646_v17, 0.0 }
 0x35b   : > { %4030 = vperm.xlu1 %6316, %v3949_v10   ;;  %4214 = vperm.xlu0 %6314, %v4181_v6   ;;  %v3953_v6 = vsel %vm3889_vm6, 1, %v12881_v11  ;;  %vm4125_vm6 = vcmp.eq.s32.totalorder %v9042_v58, %v9047_v40 }
 0x35c   : > { %v9488_v16 = vpop.permute.xlu2 %3774  ;;  %v4189_v58 = vsel %vm4125_vm6, 1, %v12881_v11 }
 0x35d   : > { %13181 = vst [vmem:[#allocation143_spill] sm:$0xff] %v9488_v16  ;;  %v9495_v1 = vpop.permute.xlu1 %3744  ;;  %v9502_v50 = vpop.permute.xlu0 %3768  ;;  %v1758_v16 = vmax.f32 %v1591_v26, 0.0 }
 0x35e   : > { %13182 = vst [vmem:[#allocation144_spill] sm:$0xff] %v9495_v1  ;;  %v4184_v1 = vsel %vm4120_vm9, 1, %v12881_v11  ;;  %v9530_v61 = vpop.f32.mrf.mxu1  ;;  %vm4132_vm9 = vcmp.eq.s32.totalorder %v9090_v52, %v9392_v30 }
 0x35f   : > { %13183 = vst [vmem:[#allocation145_spill] sm:$0xff] %v9502_v50  ;;  %v1647_v10 = vpop.f32.mrf.mxu3  ;;  %v1820_v36 = vpack.c.bf16 %v1760_v53, %v1758_v16  ;;  %v3956_v16 = vsel %vm3892_vm11, 1, %v12881_v11  ;;  %vm4128_vm11 = vcmp.eq.s32.totalorder %v9068_v54, %v9073_v27  ;;  %v1608_v27 = vadd.f32 %v9530_v61, %v9428_v9 }
 0x360   : > { %v1648_v60 = vadd.f32 %v1647_v10, %v9428_v9  ;;  %v9519_v10 = vld [vmem:[%s6568_s22 + $0xf0] sm:$0xff] }
 0x361   : > { %vm3891_vm12 = vcmp.eq.s32.totalorder %v9197_v20, %v9519_v10  ;;  %vm4123_vm13 = vcmp.eq.s32.totalorder %v9519_v10, %v9319_v46  ;;  %v1772_v61 = vmax.f32 %v1608_v27, 0.0 }
 0x362   : > { %v1804_v7 = vmax.f32 %v1648_v60, 0.0  ;;  %4042 = vperm.xlu2 %6315, %v3953_v6  }
 0x363   : > { %4039 = vperm.xlu1 %6316, %v3952_v3   ;;  %4223 = vperm.xlu0 %6314, %v4184_v1   ;;  %v3955_v1 = vsel %vm3891_vm12, 1, %v12881_v11  ;;  %vm4127_vm12 = vcmp.eq.s32.totalorder %v9004_v31, %v9110_v35  ;;  %v1606_v31 = vadd.f32 %v9504_v56, %v9428_v9 }
 0x364   : > { %1995 = vmatmul.bf16.gmra.mxu3 %v1820_v36  ;;  %v9510_v13 = vpop.permute.xlu2 %3783  ;;  %v9514_v50 = vpack.c.bf16 %v1804_v7, %v1802_v59  ;;  %v4187_v7 = vsel %vm4123_vm13, 1, %v12881_v11  ;;  %v1596_v59 = vadd.f32 %v9380_v0, %v9428_v9  ;;  %v4183_v0 = vsel %vm4119_vm14, 1, %v12881_v11 }
 0x365   : > { %13184 = vst [vmem:[#allocation146_spill] sm:$0xff] %v9510_v13  ;;  %v9516_v26 = vpop.permute.xlu1 %3753  ;;  %v9525_v60 = vpop.permute.xlu0 %3777  ;;  %v4190_v13 = vsel %vm4126_vm2, 1, %v12881_v11  ;;  %vm4147_vm13 = vcmp.eq.s32.totalorder %v9420_v28, %v9519_v10  ;;  %vm4131_vm14 = vcmp.eq.s32.totalorder %v9319_v46, %v9140_v4 }
 0x366   : > { %13185 = vst [vmem:[#allocation147_spill] sm:$0xff] %v9516_v26  ;;  %v9553_v18 = vpop.f32.mrf.mxu1  ;;  %v4211_v54 = vsel %vm4147_vm13, 1, %v12881_v11  ;;  %vm4145_vm13 = vcmp.eq.s32.totalorder %v9192_v12, %v9491_v25 }
 0x367   : > { %13186 = vst [vmem:[#allocation148_spill] sm:$0xff] %v9525_v60  ;;  %v1650_v3 = vpop.f32.mrf.mxu3 }
 0x368   : > { %v1651_v6 = vadd.f32 %v1650_v3, %v9428_v9 }
 0x36a   : > { %4051 = vperm.xlu2 %6315, %v3956_v16   ;;  %v1806_v60 = vmax.f32 %v1651_v6, 0.0  ;;  %v4193_v6 = vsel %vm4129_vm5, 1, %v12881_v11 }
 0x36b   : > { %4048 = vperm.xlu1 %6316, %v3955_v1   ;;  %4232 = vperm.xlu0 %6314, %v4187_v7   ;;  %v1762_v1 = vmax.f32 %v1596_v59, 0.0 }
 0x36c   : > { %v9536_v53 = vpop.permute.xlu2 %3792 }
 0x36d   : > { %13187 = vst [vmem:[#allocation149_spill] sm:$0xff] %v9536_v53  ;;  %v9540_v17 = vpop.permute.xlu1 %3762  ;;  %v9547_v36 = vpop.permute.xlu0 %3786  ;;  %v4182_v53 = vsel %vm4118_vm15, 1, %v12881_v11  ;;  %v1822_v26 = vpack.c.bf16 %v1764_v47, %v1762_v1  ;;  %v9585_v1 = vld [vmem:[%s6568_s22 + $0xf8] sm:$0xff]  ;;  %vm4130_vm15 = vcmp.eq.s32.totalorder %v9024_v43, %v9133_v23 }
 0x36e   : > { %13188 = vst [vmem:[#allocation150_spill] sm:$0xff] %v9540_v17  ;;  %v9580_v19 = vpop.f32.mrf.mxu1  ;;  %vm4124_vm7 = vcmp.eq.s32.totalorder %v9585_v1, %v9090_v52  ;;  %vm4404_vm2 = vcmp.eq.s32.totalorder %v9392_v30, %v9585_v1 }
 0x36f   : > { %13189 = vst [vmem:[#allocation151_spill] sm:$0xff] %v9547_v36  ;;  %v1652_v16 = vpop.f32.mrf.mxu3 }
 0x370   : > { %v1653_v7 = vadd.f32 %v1652_v16, %v9428_v9 }
 0x372   : > { %v1808_v17 = vmax.f32 %v1653_v7, 0.0  ;;  %4220 = vperm.xlu2 %6315, %v4183_v0  }
 0x373   : > { %4217 = vperm.xlu1 %6316, %v4182_v53   ;;  %4241 = vperm.xlu0 %6314, %v4190_v13   ;;  %v4185_v53 = vsel %vm4121_vm4, 1, %v12881_v11  ;;  %vm4134_vm4 = vcmp.eq.s32.totalorder %v9345_v48, %v9163_v51 }
 0x374   : > { %2000 = vmatmul.bf16.gmra.mxu3 %v1822_v26  ;;  %v9555_v3 = vpop.permute.xlu2 %3961  ;;  %v9559_v29 = vpack.c.bf16 %v1808_v17, %v1806_v60  ;;  %v4186_v26 = vsel %vm4122_vm3, 1, %v12881_v11  ;;  %v1603_v60 = vadd.f32 %v9468_v8, %v9428_v9  ;;  %v1601_v17 = vadd.f32 %v9434_v57, %v9428_v9 }
 0x375   : > { %13190 = vst [vmem:[#allocation152_spill] sm:$0xff] %v9555_v3  ;;  %v9561_v59 = vpop.permute.xlu1 %3771  ;;  %v9567_v47 = vpop.permute.xlu0 %3795  ;;  %v4196_v3 = vsel %vm4132_vm9, 1, %v12881_v11  ;;  %vm12794_vm3 = vcmp.lt.s32.totalorder %v7251_v24, 7  ;;  %vm4148_vm9 = vcmp.eq.s32.totalorder %v9168_v33, %v9585_v1 }
 0x376   : > { %13191 = vst [vmem:[#allocation153_spill] sm:$0xff] %v9561_v59  ;;  %v1768_v8 = vmax.f32 %v1603_v60, 0.0  ;;  %v1766_v40 = vmax.f32 %v1601_v17, 0.0  ;;  %v4212_v33 = vsel %vm4148_vm9, 1, %v12881_v11 }
 0x377   : > { %13192 = vst [vmem:[#allocation154_spill] sm:$0xff] %v9567_v47  ;;  %v1655_v13 = vpop.f32.mrf.mxu3 }
 0x378   : > { %v1656_v57 = vadd.f32 %v1655_v13, %v9428_v9  ;;  %v1824_v36 = vpack.c.bf16 %v1768_v8, %v1766_v40  ;;  %v9612_v8 = vpop.f32.mrf.mxu1 }
 0x37a   : > { %4229 = vperm.xlu2 %6315, %v4186_v26  }
 0x37b   : > { %4226 = vperm.xlu1 %6316, %v4185_v53   ;;  %4250 = vperm.xlu0 %6314, %v4193_v6   ;;  %v4188_v6 = vsel %vm4124_vm7, 1, %v12881_v11  ;;  %vm4403_vm7 = vcmp.eq.s32.totalorder %v9140_v4, %v9519_v10 }
 0x37c   : > { %v9576_v16 = vpop.permute.xlu2 %3970  ;;  %v4451_v4 = vsel %vm4403_vm7, 1, %v12881_v11 }
 0x37d   : > { %13193 = vst [vmem:[#allocation155_spill] sm:$0xff] %v9576_v16  ;;  %v9582_v0 = vpop.permute.xlu1 %3780  ;;  %v9592_v7 = vpop.permute.xlu0 %3964  ;;  %v1810_v16 = vmax.f32 %v1656_v57, 0.0  ;;  %v4191_v57 = vsel %vm4127_vm12, 1, %v12881_v11  ;;  %vm4146_vm12 = vcmp.eq.s32.totalorder %v9445_v39, %v9450_v45 }
 0x37e   : > { %13194 = vst [vmem:[#allocation156_spill] sm:$0xff] %v9582_v0 }
 0x37f   : > { %13195 = vst [vmem:[#allocation157_spill] sm:$0xff] %v9592_v7  ;;  %v1657_v26 = vpop.f32.mrf.mxu3 }
 0x380   : > { %v1658_v53 = vadd.f32 %v1657_v26, %v9428_v9 }
 0x382   : > { %v1812_v47 = vmax.f32 %v1658_v53, 0.0  ;;  %4238 = vperm.xlu2 %6315, %v4189_v58   ;;  %v4195_v53 = vsel %vm4131_vm14, 1, %v12881_v11 }
 0x383   : > { %4235 = vperm.xlu1 %6316, %v4188_v6   ;;  %4259 = vperm.xlu0 %6314, %v4196_v3   ;;  %v4192_v3 = vsel %vm4128_vm11, 1, %v12881_v11  ;;  %v1770_v6 = vmax.f32 %v1606_v31, 0.0  ;;  %vm4402_vm11 = vcmp.eq.s32.totalorder %v9133_v23, %v9450_v45 }
 0x384   : > { %2005 = vmatmul.bf16.gmra.mxu3 %v1824_v36  ;;  %v9598_v52 = vpop.permute.xlu2 %3979  ;;  %v9602_v13 = vpack.c.bf16 %v1812_v47, %v1810_v16  ;;  %v4450_v7 = vsel %vm4402_vm11, 1, %v12881_v11 }
 0x385   : > { %13196 = vst [vmem:[#allocation158_spill] sm:$0xff] %v9598_v52  ;;  %v9604_v60 = vpop.permute.xlu1 %3789  ;;  %v9610_v17 = vpop.permute.xlu0 %3973  ;;  %v1826_v58 = vpack.c.bf16 %v1772_v61, %v1770_v6  ;;  %v9660_v61 = vld [vmem:[%s6568_s22 + $0x40] sm:$0xff] }
 0x386   : > { %13197 = vst [vmem:[#allocation159_spill] sm:$0xff] %v9604_v60  ;;  %vm4133_vm5 = vcmp.eq.s32.totalorder %v9660_v61, %v9156_v49  ;;  %v1611_v49 = vadd.f32 %v9553_v18, %v9428_v9  ;;  %v12731_v18 = vrot.slane %v9491_v25, 1 }
 0x387   : > { %13198 = vst [vmem:[#allocation160_spill] sm:$0xff] %v9610_v17  ;;  %v1660_v36 = vpop.f32.mrf.mxu3 }
 0x388   : > { %v1661_v16 = vadd.f32 %v1660_v36, %v9428_v9  ;;  %v9641_v36 = vpop.f32.mrf.mxu1 }
 0x389   : > { %v1618_v12 = vadd.f32 %v9641_v36, %v9428_v9  ;;  %v9741_v36 = vld [vmem:[%s6568_s22 + $0x58] sm:$0xff] }
 0x38a   : > { %4247 = vperm.xlu2 %6315, %v4192_v3   ;;  %v4194_v3 = vsel %vm4130_vm15, 1, %v12881_v11  ;;  %v1814_v27 = vmax.f32 %v1661_v16, 0.0  ;;  %vm4401_vm15 = vcmp.eq.s32.totalorder %v9372_v38, %v9491_v25 }
 0x38b   : > { %4244 = vperm.xlu1 %6316, %v4191_v57   ;;  %4304 = vperm.xlu0 %6314, %v4211_v54   ;;  %v4452_v57 = vsel %vm4404_vm2, 1, %v12881_v11  ;;  %v9643_v54 = vpop.f32.mrf.mxu0 }
 0x38c   : > { %v9621_v35 = vpop.permute.xlu2 %3988 }
 0x38d   : > { %v9625_v47 = vpop.permute.xlu1 %3958  ;;  %v9632_v26 = vpop.permute.xlu0 %3982 }
 0x38e   : > { %13199 = vst [vmem:[#allocation161_spill] sm:$0xff] %v9625_v47  ;;  %v13202_v47 = vrot.slane %v9519_v10, 1 }
 0x38f   : > { %13200 = vst [vmem:[#allocation162_spill] sm:$0xff] %v9632_v26  ;;  %v1662_v40 = vpop.f32.mrf.mxu3  ;;  %v13201_v26 = vrot.slane %v9585_v1, 1 }
 0x390   : > { %v1663_v43 = vadd.f32 %v1662_v40, %v9428_v9  ;;  %v9672_v6 = vpop.f32.mrf.mxu1 }
 0x391   : > { %v4661_v31 = vsel %vm12794_vm3, %v13202_v47, %v13201_v26 }
 0x392   : > { %v1816_v56 = vmax.f32 %v1663_v43, 0.0  ;;  %4256 = vperm.xlu2 %6315, %v4195_v53   ;;  %vm4786_vm6 = vcmp.ne.s32.totalorder %v4661_v31, %v9519_v10  ;;  %v4197_v53 = vsel %vm4133_vm5, 1, %v12881_v11 }
 0x393   : > { %4253 = vperm.xlu1 %6316, %v4194_v3   ;;  %4547 = vperm.xlu0 %6314, %v4452_v57   ;;  %v4886_v51 = vsel %vm4786_vm6, 1, %v12881_v11  ;;  %v9676_v43 = vpop.f32.mrf.mxu0  ;;  %vm4143_vm6 = vcmp.eq.s32.totalorder %v9415_v63, %v9197_v20  ;;  %v13218_v63 = vrot.slane %v9519_v10, 1 }
 0x394   : > { %2010 = vmatmul.bf16.gmra.mxu3 %v1826_v58  ;;  %v9651_v40 = vpop.permute.xlu2 %3997  ;;  %v9655_v17 = vpack.c.bf16 %v1816_v56, %v1814_v27  ;;  %v4198_v58 = vsel %vm4134_vm4, 1, %v12881_v11  ;;  %v1613_v56 = vadd.f32 %v9580_v19, %v9428_v9 }
 0x395   : > { %13203 = vst [vmem:[#allocation163_spill] sm:$0xff] %v9651_v40  ;;  %v9657_v16 = vpop.permute.xlu1 %3967  ;;  %v9665_v47 = vpop.permute.xlu0 %3991 }
 0x396   : > { %13204 = vst [vmem:[#allocation164_spill] sm:$0xff] %v9657_v16  ;;  %v1776_v19 = vmax.f32 %v1613_v56, 0.0 }
 0x397   : > { %v1734_v26 = vpop.f32.mrf.mxu3 }
 0x398   : > { %v1735_v27 = vadd.f32 %v1734_v26, %v8894_v42 }
 0x39a   : > { %4265 = vperm.xlu2 %6315, %v4198_v58   ;;  %v12732_v58 = vrot.slane %v9450_v45, 1  ;;  %v1803_v23 = vmax.f32 %v1735_v27, 0.0 }
 0x39b   : > { %4262 = vperm.xlu1 %6316, %v4197_v53   ;;  %4979 = vperm.xlu0 %6314, %v4886_v51   ;;  %v1774_v51 = vmax.f32 %v1611_v49, 0.0  ;;  %v9703_v49 = vpop.f32.mrf.mxu0 }
 0x39c   : > { %v9678_v3 = vpop.permute.xlu2 %4006 }
 0x39d   : > { %13205 = vst [vmem:[#allocation165_spill] sm:$0xff] %v9678_v3  ;;  %v9682_v57 = vpop.permute.xlu1 %3976  ;;  %v9689_v31 = vpop.permute.xlu0 %4000  ;;  %v1828_v26 = vpack.c.bf16 %v1776_v19, %v1774_v51 }
 0x39e   : > { %13206 = vst [vmem:[#allocation166_spill] sm:$0xff] %v9682_v57  ;;  %v4663_v57 = vsel %vm12794_vm3, %v12731_v18, %v12732_v58  ;;  %v1622_v19 = vpop.f32.mrf.mxu1 }
 0x39f   : > { %13207 = vst [vmem:[#allocation167_spill] sm:$0xff] %v9689_v31  ;;  %v1736_v53 = vpop.f32.mrf.mxu3  ;;  %vm4784_vm14 = vcmp.ne.s32.totalorder %v4663_v57, %v9491_v25  ;;  %v9826_v31 = vld [vmem:[%s6568_s22 + $0x88] sm:$0xff] }
 0x3a0   : > { %v1737_v16 = vadd.f32 %v1736_v53, %v8894_v42 }
 0x3a2   : > { %v1805_v56 = vmax.f32 %v1737_v16, 0.0  ;;  %4544 = vperm.xlu2 %6315, %v4451_v4  }
 0x3a3   : > { %4307 = vperm.xlu1 %6316, %v4212_v33   ;;  %4541 = vperm.xlu0 %6314, %v4450_v7   ;;  %v9717_v7 = vld [vmem:[%s6568_s22] sm:$0xff]  ;;  %v4210_v33 = vsel %vm4146_vm12, 1, %v12881_v11  ;;  %vm4398_vm12 = vcmp.eq.s32.totalorder %v9345_v48, %v9453_v41 }
 0x3a4   : > { %2015 = vmatmul.bf16.gmra.mxu3 %v1828_v26  ;;  %v9705_v53 = vpop.permute.xlu2 %4015  ;;  %v1843_v52 = vpack.c.bf16 %v1805_v56, %v1803_v23  ;;  %v12733_v4 = vrot.slane %v9717_v7, 1  ;;  %v4209_v23 = vsel %vm4145_vm13, 1, %v12881_v11  ;;  %v4884_v56 = vsel %vm4784_vm14, 1, %v12881_v11 }
 0x3a5   : > { %13208 = vst [vmem:[#allocation168_spill] sm:$0xff] %v9705_v53  ;;  %v9709_v16 = vpop.permute.xlu1 %3985  ;;  %v9714_v27 = vpop.permute.xlu0 %4009  ;;  %v1616_v26 = vadd.f32 %v9612_v8, %v9428_v9  ;;  %v4446_v48 = vsel %vm4398_vm12, 1, %v12881_v11  ;;  %vm4142_vm13 = vcmp.eq.s32.totalorder %v9826_v31, %v9453_v41 }
 0x3a6   : > { %13209 = vst [vmem:[#allocation169_spill] sm:$0xff] %v9709_v16  ;;  %2139 = vmatmul.bf16.gmra.mxu0 %v1843_v52  ;;  %v13211_v52 = vrot.slane %v9585_v1, 1  ;;  %v9756_v59 = vpop.f32.mrf.mxu1 }
 0x3a7   : > { %13210 = vst [vmem:[#allocation170_spill] sm:$0xff] %v9714_v27  ;;  %v1739_v51 = vpop.f32.mrf.mxu3  ;;  %v1778_v0 = vmax.f32 %v1616_v26, 0.0 }
 0x3a8   : > { %v4692_v57 = vsel %vm12794_vm3, %v13211_v52, %v12733_v4  ;;  %v1740_v8 = vadd.f32 %v1739_v51, %v8894_v42  ;;  %v12735_v4 = vrot.slane %v9197_v20, 1 }
 0x3a9   : > { %vm4787_vm2 = vcmp.ne.s32.totalorder %v4692_v57, %v9585_v1  ;;  %v4449_v57 = vsel %vm4401_vm15, 1, %v12881_v11 }
 0x3aa   : > { %4301 = vperm.xlu2 %6315, %v4210_v33   ;;  %v9744_v33 = vld [vmem:[%s6568_s22 + $0xd8] sm:$0xff]  ;;  %v1807_v27 = vmax.f32 %v1740_v8, 0.0 }
 0x3ab   : > { %4298 = vperm.xlu1 %6316, %v4209_v23   ;;  %4973 = vperm.xlu0 %6314, %v4884_v56   ;;  %vm4400_vm4 = vcmp.eq.s32.totalorder %v9741_v36, %v9744_v33  ;;  %v1780_v23 = vmax.f32 %v1618_v12, 0.0  ;;  %v9748_v56 = vpop.f32.mrf.mxu0  ;;  %v12736_v16 = vrot.slane %v9744_v33, 1  ;;  %v4887_v12 = vsel %vm4787_vm2, 1, %v12881_v11 }
 0x3ac   : > { %v9733_v18 = vpop.permute.xlu2 %4024  ;;  %v4448_v53 = vsel %vm4400_vm4, 1, %v12881_v11  ;;  %vm4144_vm5 = vcmp.eq.s32.totalorder %v9185_v37, %v9744_v33  ;;  %vm4397_vm2 = vcmp.eq.s32.totalorder %v9660_v61, %v9473_v62 }
 0x3ad   : > { %13212 = vst [vmem:[#allocation171_spill] sm:$0xff] %v9733_v18  ;;  %v9737_v58 = vpop.permute.xlu1 %3994  ;;  %v9751_v52 = vpop.permute.xlu0 %4018  ;;  %v4665_v3 = vsel %vm12794_vm3, %v12735_v4, %v12736_v16  ;;  %v9795_v4 = vld [vmem:[%s6568_s22 + $0x50] sm:$0xff] }
 0x3ae   : > { %13213 = vst [vmem:[#allocation172_spill] sm:$0xff] %v9737_v58  ;;  %vm4782_vm7 = vcmp.ne.s32.totalorder %v4665_v3, %v9197_v20  ;;  %v13219_v3 = vrot.slane %v9450_v45, 1  ;;  %vm4399_vm9 = vcmp.eq.s32.totalorder %v9795_v4, %v9197_v20 }
 0x3af   : > { %13214 = vst [vmem:[#allocation173_spill] sm:$0xff] %v9751_v52  ;;  %v1741_v60 = vpop.f32.mrf.mxu3  ;;  %v1830_v52 = vpack.c.bf16 %v1780_v23, %v1778_v0  ;;  %v4882_v37 = vsel %vm4782_vm7, 1, %v12881_v11  ;;  %v4447_v16 = vsel %vm4399_vm9, 1, %v12881_v11 }
 0x3b0   : > { %v1742_v18 = vadd.f32 %v1741_v60, %v8894_v42 }
 0x3b2   : > { %v1809_v51 = vmax.f32 %v1742_v18, 0.0  ;;  %4538 = vperm.xlu2 %6315, %v4449_v57   ;;  %v1627_v57 = vpop.f32.mrf.mxu1 }
 0x3b3   : > { %4982 = vperm.xlu1 %6316, %v4887_v12   ;;  %4535 = vperm.xlu0 %6314, %v4448_v53   ;;  %v4208_v53 = vsel %vm4144_vm5, 1, %v12881_v11  ;;  %v9779_v23 = vpop.f32.mrf.mxu0  ;;  %v4662_v12 = vsel %vm12794_vm3, %v13219_v3, %v13218_v63  ;;  %v12737_v63 = vrot.slane %v9453_v41, 1  ;;  %vm4388_vm5 = vcmp.eq.s32.totalorder %v9585_v1, %v9392_v30 }
 0x3b4   : > { %2020 = vmatmul.bf16.gmra.mxu3 %v1830_v52  ;;  %v9767_v26 = vpop.permute.xlu2 %4033  ;;  %v1845_v60 = vpack.c.bf16 %v1809_v51, %v1807_v27  ;;  %v4207_v27 = vsel %vm4143_vm6, 1, %v12881_v11  ;;  %v1623_v52 = vadd.f32 %v1622_v19, %v9428_v9  ;;  %v1621_v51 = vadd.f32 %v9672_v6, %v9428_v9 }
 0x3b5   : > { %13215 = vst [vmem:[#allocation174_spill] sm:$0xff] %v9767_v26  ;;  %v9771_v8 = vpop.permute.xlu1 %4003  ;;  %v9776_v0 = vpop.permute.xlu0 %4027  ;;  %vm4785_vm11 = vcmp.ne.s32.totalorder %v4662_v12, %v9450_v45 }
 0x3b6   : > { %13216 = vst [vmem:[#allocation175_spill] sm:$0xff] %v9771_v8  ;;  %2144 = vmatmul.bf16.gmra.mxu0 %v1845_v60  ;;  %v4885_v12 = vsel %vm4785_vm11, 1, %v12881_v11 }
 0x3b7   : > { %13217 = vst [vmem:[#allocation176_spill] sm:$0xff] %v9776_v0  ;;  %v1744_v18 = vpop.f32.mrf.mxu3  ;;  %v13223_v0 = vrot.slane %v9473_v62, 1 }
 0x3ba   : > { %4295 = vperm.xlu2 %6315, %v4208_v53   ;;  %v1784_v53 = vmax.f32 %v1623_v52, 0.0 }
 0x3bb   : > { %4292 = vperm.xlu1 %6316, %v4207_v27   ;;  %4967 = vperm.xlu0 %6314, %v4882_v37   ;;  %v1745_v27 = vadd.f32 %v1744_v18, %v8894_v42  ;;  %v9813_v52 = vpop.f32.mrf.mxu0 }
 0x3bc   : > { %v9792_v60 = vpop.permute.xlu2 %4042 }
 0x3bd   : > { %13220 = vst [vmem:[#allocation177_spill] sm:$0xff] %v9792_v60  ;;  %v9799_v19 = vpop.permute.xlu1 %4012  ;;  %v9805_v37 = vpop.permute.xlu0 %4036  ;;  %v1782_v60 = vmax.f32 %v1621_v51, 0.0  ;;  %v1811_v18 = vmax.f32 %v1745_v27, 0.0  ;;  %v4667_v51 = vsel %vm12794_vm3, %v13223_v0, %v12737_v63 }
 0x3be   : > { %13221 = vst [vmem:[#allocation178_spill] sm:$0xff] %v9799_v19  ;;  %vm4780_vm15 = vcmp.ne.s32.totalorder %v4667_v51, %v9473_v62 }
 0x3bf   : > { %13222 = vst [vmem:[#allocation179_spill] sm:$0xff] %v9805_v37  ;;  %v1746_v3 = vpop.f32.mrf.mxu3  ;;  %v1832_v6 = vpack.c.bf16 %v1784_v53, %v1782_v60  ;;  %v4206_v53 = vsel %vm4142_vm13, 1, %v12881_v11 }
 0x3c0   : > { %v1747_v26 = vadd.f32 %v1746_v3, %v8894_v42  ;;  %v9821_v3 = vpop.f32.mrf.mxu1 }
 0x3c1   : > { %v1631_v58 = vadd.f32 %v9821_v3, %v9428_v9 }
 0x3c2   : > { %v1813_v37 = vmax.f32 %v1747_v26, 0.0  ;;  %4532 = vperm.xlu2 %6315, %v4447_v16   ;;  %v9833_v26 = vld [vmem:[%s6568_s22 + $0x80] sm:$0xff] }
 0x3c3   : > { %4976 = vperm.xlu1 %6316, %v4885_v12   ;;  %4529 = vperm.xlu0 %6314, %v4446_v48   ;;  %vm4141_vm14 = vcmp.eq.s32.totalorder %v9833_v26, %v9473_v62  ;;  %v13227_v12 = vrot.slane %v9491_v25, 1  ;;  %v13228_v48 = vrot.slane %v9744_v33, 1  ;;  %v9852_v51 = vpop.f32.mrf.mxu0 }
 0x3c4   : > { %2025 = vmatmul.bf16.gmra.mxu3 %v1832_v6  ;;  %v9823_v19 = vpop.permute.xlu2 %4051  ;;  %v1847_v8 = vpack.c.bf16 %v1813_v37, %v1811_v18  ;;  %v4205_v27 = vsel %vm4141_vm14, 1, %v12881_v11  ;;  %v4880_v37 = vsel %vm4780_vm15, 1, %v12881_v11  ;;  %v1628_v6 = vadd.f32 %v1627_v57, %v9428_v9 }
 0x3c5   : > { %13224 = vst [vmem:[#allocation180_spill] sm:$0xff] %v9823_v19  ;;  %v9830_v16 = vpop.permute.xlu1 %4021  ;;  %v9838_v0 = vpop.permute.xlu0 %4045  ;;  %v4664_v18 = vsel %vm12794_vm3, %v13228_v48, %v13227_v12  ;;  %v4445_v48 = vsel %vm4397_vm2, 1, %v12881_v11  ;;  %vm4395_vm15 = vcmp.eq.s32.totalorder %v9319_v46, %v9420_v28  ;;  %vm4385_vm2 = vcmp.eq.s32.totalorder %v9491_v25, %v9372_v38 }
 0x3c6   : > { %13225 = vst [vmem:[#allocation181_spill] sm:$0xff] %v9830_v16  ;;  %2149 = vmatmul.bf16.gmra.mxu0 %v1847_v8  ;;  %v1626_v8 = vadd.f32 %v9756_v59, %v9428_v9  ;;  %vm4783_vm4 = vcmp.ne.s32.totalorder %v4664_v18, %v9744_v33  ;;  %v4436_v18 = vsel %vm4388_vm5, 1, %v12881_v11  ;;  %v9873_v16 = vld [vmem:[%s6568_s22 + $0xb8] sm:$0xff]  ;;  %v4443_v25 = vsel %vm4395_vm15, 1, %v12881_v11 }
 0x3c7   : > { %13226 = vst [vmem:[#allocation182_spill] sm:$0xff] %v9838_v0  ;;  %v1749_v60 = vpop.f32.mrf.mxu3  ;;  %v4883_v0 = vsel %vm4783_vm4, 1, %v12881_v11  ;;  %vm4140_vm6 = vcmp.eq.s32.totalorder %v9392_v30, %v9873_v16  ;;  %vm2516_vm4 = vcmp.eq.s32.totalorder %v7992_v55, 1  ;;  %vm2518_vm15 = vcmp.eq.s32.totalorder %v7908_v21, 1 }
 0x3ca   : > { %4289 = vperm.xlu2 %6315, %v4206_v53   ;;  %v1788_v53 = vmax.f32 %v1628_v6, 0.0 }
 0x3cb   : > { %4286 = vperm.xlu1 %6316, %v4205_v27   ;;  %4961 = vperm.xlu0 %6314, %v4880_v37   ;;  %v1632_v27 = vpop.f32.mrf.mxu1  ;;  %v1750_v37 = vadd.f32 %v1749_v60, %v8894_v42 }
 0x3cc   : > { %v9854_v63 = vpop.permute.xlu2 %4220 }
 0x3cd   : > { %13229 = vst [vmem:[#allocation183_spill] sm:$0xff] %v9854_v63  ;;  %v9858_v57 = vpop.permute.xlu1 %4030  ;;  %v9864_v12 = vpop.permute.xlu0 %4214  ;;  %v1786_v63 = vmax.f32 %v1626_v8, 0.0  ;;  %v1815_v1 = vmax.f32 %v1750_v37, 0.0  ;;  %v9880_v8 = vld [vmem:[%s6568_s22 + $0x70] sm:$0xff] }
 0x3ce   : > { %13230 = vst [vmem:[#allocation184_spill] sm:$0xff] %v9858_v57  ;;  %vm4139_vm7 = vcmp.eq.s32.totalorder %v9880_v8, %v9420_v28  ;;  %vm4387_vm11 = vcmp.eq.s32.totalorder %v9519_v10, %v9880_v8 }
 0x3cf   : > { %13231 = vst [vmem:[#allocation185_spill] sm:$0xff] %v9864_v12  ;;  %v1751_v59 = vpop.f32.mrf.mxu3  ;;  %v1834_v57 = vpack.c.bf16 %v1788_v53, %v1786_v63  ;;  %v9889_v63 = vpop.f32.mrf.mxu0  ;;  %v13236_v53 = vrot.slane %v9453_v41, 1 }
 0x3d0   : > { %v1752_v19 = vadd.f32 %v1751_v59, %v8894_v42  ;;  %v4204_v59 = vsel %vm4140_vm6, 1, %v12881_v11 }
 0x3d2   : > { %v1817_v6 = vmax.f32 %v1752_v19, 0.0  ;;  %4526 = vperm.xlu2 %6315, %v4445_v48   ;;  %v9885_v19 = vld [vmem:[%s6568_s22 + $0xa0] sm:$0xff] }
 0x3d3   : > { %4970 = vperm.xlu1 %6316, %v4883_v0   ;;  %4499 = vperm.xlu0 %6314, %v4436_v18   ;;  %vm4137_vm9 = vcmp.eq.s32.totalorder %v9372_v38, %v9885_v19  ;;  %v1635_v48 = vpop.f32.mrf.mxu1  ;;  %v9899_v18 = vld [vmem:[%s12594_s11] ss:$0 sm:$0xff] }
 0x3d4   : > { %2030 = vmatmul.bf16.gmra.mxu3 %v1834_v57  ;;  %v9870_v60 = vpop.permute.xlu2 %4229  ;;  %v1849_v12 = vpack.c.bf16 %v1817_v6, %v1815_v1  ;;  %v4643_v57 = vrot.slane %v9392_v30, 1  ;;  %v4203_v1 = vsel %vm4139_vm7, 1, %v12881_v11  ;;  %v4201_v6 = vsel %vm4137_vm9, 1, %v12881_v11 }
 0x3d5   : > { %13232 = vst [vmem:[#allocation186_spill] sm:$0xff] %v9870_v60  ;;  %v9877_v42 = vpop.permute.xlu1 %4039  ;;  %v9891_v0 = vpop.permute.xlu0 %4223  ;;  %vm2517_vm9 = vcmp.eq.s32.totalorder %v8135_v44, 1 }
 0x3d6   : > { %13233 = vst [vmem:[#allocation187_spill] sm:$0xff] %v9877_v42  ;;  %2154 = vmatmul.bf16.gmra.mxu0 %v1849_v12  ;;  %v1633_v12 = vadd.f32 %v1632_v27, %v9428_v9  ;;  %v13237_v42 = vrot.slane %v9833_v26, 1 }
 0x3d7   : > { %13234 = vst [vmem:[#allocation188_spill] sm:$0xff] %v9891_v0  ;;  %v1991_v37 = vpop.f32.mrf.mxu3  ;;  %v13235_v0 = vrot.slane %v9197_v20, 1 }
 0x3d8   : > { %v4676_v40 = vsel %vm12794_vm3, %v4643_v57, %v13237_v42  ;;  %v1992_v27 = vadd.f32 %v9899_v18, %v1991_v37 }
 0x3d9   : > { %v4666_v60 = vsel %vm12794_vm3, %v13236_v53, %v13235_v0  ;;  %vm4771_vm13 = vcmp.ne.s32.totalorder %v4676_v40, %v9392_v30  ;;  %v1792_v0 = vmax.f32 %v1633_v12, 0.0  ;;  %v1790_v53 = vmax.f32 %v1631_v58, 0.0 }
 0x3da   : > { %4283 = vperm.xlu2 %6315, %v4204_v59   ;;  %vm4781_vm12 = vcmp.ne.s32.totalorder %v4666_v60, %v9453_v41  ;;  %v9929_v37 = vadd.f32 %v9643_v54, %v1992_v27  ;;  %v9939_v54 = vld [vmem:[%s6568_s22 + $0x38] sm:$0xff] }
 0x3db   : > { %4280 = vperm.xlu1 %6316, %v4203_v1   ;;  %4274 = vperm.xlu0 %6314, %v4201_v6   ;;  %v4435_v1 = vsel %vm4387_vm11, 1, %v12881_v11  ;;  %v4881_v10 = vsel %vm4781_vm12, 1, %v12881_v11  ;;  %v1637_v41 = vpop.f32.mrf.mxu1  ;;  %v1836_v40 = vpack.c.bf16 %v1792_v0, %v1790_v53  ;;  %vm4396_vm14 = vcmp.eq.s32.totalorder %v9939_v54, %v9873_v16 }
 0x3dc   : > { %v9917_v59 = vpop.permute.xlu2 %4238  ;;  %13241 = vst [vmem:[#allocation192_spill] sm:$0xff] %v9929_v37  ;;  %v12747_v58 = vrot.slane %v9929_v37, 7  ;;  %v1638_v46 = vadd.f32 %v1637_v41, %v9428_v9  ;;  %v1636_v41 = vadd.f32 %v1635_v48, %v9428_v9  ;;  %v4651_v48 = vrot.slane %v9873_v16, 1 }
 0x3dd   : > { %13238 = vst [vmem:[#allocation189_spill] sm:$0xff] %v9917_v59  ;;  %v9921_v20 = vpop.permute.xlu1 %4048  ;;  %v9925_v42 = vpop.permute.xlu0 %4232  ;;  %v4871_v59 = vsel %vm4771_vm13, 1, %v12881_v11 }
 0x3de   : > { %13239 = vst [vmem:[#allocation190_spill] sm:$0xff] %v9921_v20 }
 0x3df   : > { %13240 = vst [vmem:[#allocation191_spill] sm:$0xff] %v9925_v42  ;;  %v1993_v3 = vpop.f32.mrf.mxu3  ;;  %v9978_v42 = vld [vmem:[%s6568_s22 + $0x68] sm:$0xff] }
 0x3e0   : > { %v1994_v6 = vadd.f32 %v9899_v18, %v1993_v3  ;;  %vm4138_vm6 = vcmp.eq.s32.totalorder %v9978_v42, %v9445_v39 }
 0x3e1   : > { %v4202_v20 = vsel %vm4138_vm6, 1, %v12881_v11 }
 0x3e2   : > { %v2083_v30 = vadd.f32 %v9676_v43, %v1994_v6  ;;  %4496 = vperm.xlu2 %6315, %v4435_v1   ;;  %v12751_v43 = vrot.slane %v9880_v8, 1  ;;  %v4444_v1 = vsel %vm4396_vm14, 1, %v12881_v11  ;;  %vm2902_vm14 = vcmp.eq.s32.totalorder %v8648_v14, 1 }
 0x3e3   : > { %4964 = vperm.xlu1 %6316, %v4881_v10   ;;  %4934 = vperm.xlu0 %6314, %v4871_v59   ;;  %v4433_v10 = vsel %vm4385_vm2, 1, %v12881_v11  ;;  %vm4386_vm2 = vcmp.eq.s32.totalorder %v9450_v45, %v9978_v42 }
 0x3e4   : > { %v2193_v60 = vrot.slane %v2083_v30, 7  ;;  %2035 = vmatmul.bf16.gmra.mxu3 %v1836_v40  ;;  %v9936_v12 = vpop.permute.xlu2 %4247  ;;  %v4677_v55 = vsel %vm12794_vm3, %v12751_v43, %v4643_v57  ;;  %v4650_v57 = vrot.slane %v9420_v28, 1 }
 0x3e5   : > { %13242 = vst [vmem:[#allocation193_spill] sm:$0xff] %v9936_v12  ;;  %v9943_v27 = vpop.permute.xlu1 %4217  ;;  %v9954_v0 = vpop.permute.xlu0 %4241  ;;  %vm4770_vm5 = vcmp.ne.s32.totalorder %v4677_v55, %v9880_v8 }
 0x3e6   : > { %13243 = vst [vmem:[#allocation194_spill] sm:$0xff] %v9943_v27  ;;  %v2257_v59 = vsel %vm12793_vm1, %v12747_v58, %v2193_v60  ;;  %v1640_v58 = vpop.f32.mrf.mxu1  ;;  %v4870_v12 = vsel %vm4770_vm5, 1, %v12881_v11  ;;  %vm2519_vm5 = vcmp.eq.s32.totalorder %v8179_v5, 1 }
 0x3e7   : > { %13244 = vst [vmem:[#allocation195_spill] sm:$0xff] %v9954_v0  ;;  %v2356_v53 = vmax.f32 %v2083_v30, %v2257_v59  ;;  %v1996_v3 = vpop.f32.mrf.mxu3 }
 0x3e8   : > { %v1997_v6 = vadd.f32 %v9899_v18, %v1996_v3  ;;  %v1796_v3 = vmax.f32 %v1638_v46, 0.0 }
 0x3e9   : > { %v9962_v40 = vsel %vm2516_vm4, %v2356_v53, %v2083_v30  ;;  %v9973_v30 = vpop.f32.mrf.mxu0 }
 0x3ea   : > { %v2086_v59 = vadd.f32 %v9703_v49, %v1997_v6  ;;  %4523 = vperm.xlu2 %6315, %v4444_v1   ;;  %v9983_v49 = vld [vmem:[%s6568_s22 + $0x28] sm:$0xff]  ;;  %v4669_v6 = vsel %vm12794_vm3, %v4650_v57, %v4651_v48  ;;  %v12759_v55 = vrot.slane %v9962_v40, 6 }
 0x3eb   : > { %4520 = vperm.xlu1 %6316, %v4443_v25   ;;  %4490 = vperm.xlu0 %6314, %v4433_v10   ;;  %vm4394_vm7 = vcmp.eq.s32.totalorder %v9983_v49, %v9445_v39  ;;  %v12760_v25 = vrot.slane %v9978_v42, 1  ;;  %v1794_v10 = vmax.f32 %v1636_v41, 0.0  ;;  %v13248_v41 = vrot.slane %v9473_v62, 1 }
 0x3ec   : > { %v2194_v27 = vrot.slane %v2086_v59, 7  ;;  %v9970_v0 = vpop.permute.xlu2 %4256  ;;  %vm4778_vm12 = vcmp.ne.s32.totalorder %v4669_v6, %v9420_v28 }
 0x3ed   : > { %13245 = vst [vmem:[#allocation196_spill] sm:$0xff] %v9970_v0  ;;  %v9975_v53 = vpop.permute.xlu1 %4226  ;;  %v9991_v46 = vpop.permute.xlu0 %4250  ;;  %v1838_v37 = vpack.c.bf16 %v1796_v3, %v1794_v10  ;;  %v4878_v6 = vsel %vm4778_vm12, 1, %v12881_v11 }
 0x3ee   : > { %13246 = vst [vmem:[#allocation197_spill] sm:$0xff] %v9975_v53  ;;  %v2256_v1 = vsel %vm12793_vm1, %v2193_v60, %v2194_v27  ;;  %v4442_v60 = vsel %vm4394_vm7, 1, %v12881_v11  ;;  %vm2903_vm7 = vcmp.eq.s32.totalorder %v8507_v22, 1 }
 0x3ef   : > { %13247 = vst [vmem:[#allocation198_spill] sm:$0xff] %v9991_v46  ;;  %v2357_v43 = vmax.f32 %v2086_v59, %v2256_v1  ;;  %v1998_v53 = vpop.f32.mrf.mxu3  ;;  %v4668_v1 = vsel %vm12794_vm3, %v4651_v48, %v13248_v41 }
 0x3f0   : > { %v1999_v0 = vadd.f32 %v9899_v18, %v1998_v53  ;;  %vm4779_vm11 = vcmp.ne.s32.totalorder %v4668_v1, %v9873_v16 }
 0x3f1   : > { %v2549_v46 = vsel %vm2517_vm9, %v2357_v43, %v2086_v59  ;;  %v13249_v43 = vrot.slane %v9372_v38, 1  ;;  %v10033_v41 = vpop.f32.mrf.mxu0  ;;  %v4879_v28 = vsel %vm4779_vm11, 1, %v12881_v11  ;;  %vm3288_vm9 = vcmp.eq.s32.totalorder %v8919_v2, 1 }
 0x3f2   : > { %v2581_v44 = vrot.slane %v2549_v46, 6  ;;  %v2088_v53 = vadd.f32 %v9748_v56, %v1999_v0  ;;  %4931 = vperm.xlu2 %6315, %v4870_v12   ;;  %v6400_v0 = vld [vmem:[%s6568_s22 + $0x60] sm:$0xff] }
 0x3f3   : > { %v4679_v59 = vsel %vm12794_vm3, %v13249_v43, %v12760_v25  ;;  %4277 = vperm.xlu1 %6316, %v4202_v20   ;;  %4517 = vperm.xlu0 %6314, %v4442_v60   ;;  %v1642_v20 = vpop.f32.mrf.mxu1 }
 0x3f4   : > { %v2641_v62 = vsel %vm12825_vm0, %v12759_v55, %v2581_v44  ;;  %v2195_v3 = vrot.slane %v2088_v53, 7  ;;  %2040 = vmatmul.bf16.gmra.mxu3 %v1838_v37  ;;  %v10020_v48 = vpop.permute.xlu2 %4265  ;;  %vm4768_vm13 = vcmp.ne.s32.totalorder %v4679_v59, %v6400_v0  ;;  %v12761_v37 = vrot.slane %v9445_v39, 1 }
 0x3f5   : > { %13250 = vst [vmem:[#allocation199_spill] sm:$0xff] %v10020_v48  ;;  %v2742_v56 = vmax.f32 %v2549_v46, %v2641_v62  ;;  %v10023_v12 = vpop.permute.xlu1 %4235  ;;  %v10030_v60 = vpop.permute.xlu0 %4259  ;;  %v1641_v59 = vadd.f32 %v1640_v58, %v9428_v9  ;;  %v1643_v55 = vadd.f32 %v1642_v20, %v9428_v9  ;;  %v10056_v9 = vld [vmem:[%s6568_s22 + $0x20] sm:$0xff] }
 0x3f6   : > { %13251 = vst [vmem:[#allocation200_spill] sm:$0xff] %v10023_v12  ;;  %v2255_v10 = vsel %vm12793_vm1, %v2194_v27, %v2195_v3  ;;  %v4868_v27 = vsel %vm4768_vm13, 1, %v12881_v11  ;;  %v4670_v21 = vsel %vm12794_vm3, %v12761_v37, %v4650_v57  ;;  %vm4393_vm4 = vcmp.eq.s32.totalorder %v10056_v9, %v9885_v19  ;;  %v10089_v37 = vld [vmem:[%s6568_s22 + $0x90] sm:$0xff] }
 0x3f7   : > { %13252 = vst [vmem:[#allocation201_spill] sm:$0xff] %v10030_v60  ;;  %v10035_v1 = vsel %vm2902_vm14, %v2742_v56, %v2549_v46  ;;  %v2358_v43 = vmax.f32 %v2088_v53, %v2255_v10  ;;  %v2001_v62 = vpop.f32.mrf.mxu3  ;;  %vm4777_vm6 = vcmp.ne.s32.totalorder %v4670_v21, %v9445_v39  ;;  %v1798_v57 = vmax.f32 %v1641_v59, 0.0  ;;  %v13293_v60 = vld [vmem:[#allocation24_spill] sm:$0xff] }
 0x3f8   : > { %13253 = vst [vmem:[#allocation202_spill] sm:$0xff] %v10035_v1  ;;  %v2002_v14 = vadd.f32 %v9899_v18, %v2001_v62  ;;  %v4877_v22 = vsel %vm4777_vm6, 1, %v12881_v11  ;;  %vm4135_vm11 = vcmp.eq.s32.totalorder %v9795_v4, %v10089_v37  ;;  %vm2904_vm14 = vcmp.eq.s32.totalorder %v8560_v15, 1 }
 0x3f9   : > { %v2550_v0 = vsel %vm2518_vm15, %v2358_v43, %v2088_v53  ;;  %vm2520_vm15 = vcmp.eq.s32.totalorder %v7988_v32, 1  ;;  %v4199_v15 = vsel %vm4135_vm11, 1, %v12881_v11  ;;  %v13262_v32 = vrot.slane %v9978_v42, 1 }
 0x3fa   : > { %v2582_v46 = vrot.slane %v2550_v0, 6  ;;  %v2091_v56 = vadd.f32 %v9779_v23, %v2002_v14  ;;  %4958 = vperm.xlu2 %6315, %v4879_v28   ;;  %v4434_v14 = vsel %vm4386_vm2, 1, %v12881_v11  ;;  %vm3289_vm2 = vcmp.eq.s32.totalorder %v8857_v34, 1 }
 0x3fb   : > { %4955 = vperm.xlu1 %6316, %v4878_v6   ;;  %4925 = vperm.xlu0 %6314, %v4868_v27   ;;  %v4441_v6 = vsel %vm4393_vm4, 1, %v12881_v11  ;;  %v12762_v27 = vrot.slane %v10035_v1, 4 }
 0x3fc   : > { %v2640_v10 = vsel %vm12825_vm0, %v2581_v44, %v2582_v46  ;;  %v2196_v62 = vrot.slane %v2091_v56, 7  ;;  %v10051_v25 = vpop.permute.xlu2 %4544  ;;  %v1800_v44 = vmax.f32 %v1643_v55, 0.0  ;;  %v10074_v55 = vpop.f32.mrf.mxu0 }
 0x3fd   : > { %13254 = vst [vmem:[#allocation203_spill] sm:$0xff] %v10051_v25  ;;  %v2743_v23 = vmax.f32 %v2550_v0, %v2640_v10  ;;  %v10061_v58 = vpop.permute.xlu1 %4244  ;;  %v10067_v45 = vpop.permute.xlu0 %4304 }
 0x3fe   : > { %13255 = vst [vmem:[#allocation204_spill] sm:$0xff] %v10061_v58  ;;  %v2254_v53 = vsel %vm12793_vm1, %v2195_v3, %v2196_v62  ;;  %v13288_v58 = vrot.slane %v10089_v37, 1 }
 0x3ff   : > { %13256 = vst [vmem:[#allocation205_spill] sm:$0xff] %v10067_v45  ;;  %v2935_v20 = vsel %vm2903_vm7, %v2743_v23, %v2550_v0  ;;  %v2359_v43 = vmax.f32 %v2091_v56, %v2254_v53  ;;  %v2003_v28 = vpop.f32.mrf.mxu3  ;;  %v1840_v53 = vpack.c.bf16 %v1800_v44, %v1798_v57  ;;  %v13309_v45 = vld [vmem:[#allocation100_spill] sm:$0xff] }
 0x400   : > { %v2967_v10 = vrot.slane %v2935_v20, 4  ;;  %v2004_v21 = vadd.f32 %v9899_v18, %v2003_v28 }
 0x401   : > { %v2551_v3 = vsel %vm2519_vm5, %v2359_v43, %v2091_v56 }
 0x402   : > { %v3025_v59 = vsel %vm12823_vm10, %v12762_v27, %v2967_v10  ;;  %v2583_v0 = vrot.slane %v2551_v3, 6  ;;  %v2093_v23 = vadd.f32 %v9813_v52, %v2004_v21  ;;  %4514 = vperm.xlu2 %6315, %v4441_v6   ;;  %v10094_v52 = vld [vmem:[%s6568_s22 + $0x98] sm:$0xff] }
 0x403   : > { %v3128_v28 = vmax.f32 %v2935_v20, %v3025_v59  ;;  %4493 = vperm.xlu1 %6316, %v4434_v14   ;;  %4952 = vperm.xlu0 %6314, %v4877_v22   ;;  %vm4136_vm12 = vcmp.eq.s32.totalorder %v9741_v36, %v10094_v52 }
 0x404   : > { %v2639_v5 = vsel %vm12825_vm0, %v2582_v46, %v2583_v0  ;;  %v2197_v56 = vrot.slane %v2093_v23, 7  ;;  %2045 = vmatmul.bf16.gmra.mxu3 %v1840_v53  ;;  %v10086_v43 = vpop.permute.xlu2 %4301  ;;  %v10103_v46 = vld [vmem:[%s6568_s22 + $0x10] sm:$0xff] }
 0x405   : > { %13257 = vst [vmem:[#allocation206_spill] sm:$0xff] %v10086_v43  ;;  %v10098_v2 = vsel %vm3288_vm9, %v3128_v28, %v2935_v20  ;;  %v2744_v57 = vmax.f32 %v2551_v3, %v2639_v5  ;;  %v10100_v44 = vpop.permute.xlu1 %4253  ;;  %vm4391_vm13 = vcmp.eq.s32.totalorder %v10103_v46, %v10089_v37  ;;  %v10111_v21 = vpop.permute.xlu0 %4547  ;;  %v4200_v28 = vsel %vm4136_vm12, 1, %v12881_v11 }
 0x406   : > { %13258 = vst [vmem:[#allocation207_spill] sm:$0xff] %v10098_v2  ;;  %v2253_v6 = vsel %vm12793_vm1, %v2196_v62, %v2197_v56  ;;  %v4439_v62 = vsel %vm4391_vm13, 1, %v12881_v11  ;;  %v13261_v20 = vrot.slane %v9880_v8, 1  ;;  %v13265_v8 = vrot.slane %v9372_v38, 1  ;;  %v13268_v38 = vld [vmem:[#allocation11_spill] sm:$0xff] }
 0x407   : > { %13259 = vst [vmem:[#allocation208_spill] sm:$0xff] %v10100_v44  ;;  %v2936_v22 = vsel %vm2904_vm14, %v2744_v57, %v2551_v3  ;;  %v2360_v59 = vmax.f32 %v2093_v23, %v2253_v6  ;;  %v2006_v53 = vpop.f32.mrf.mxu3  ;;  %v13263_v57 = vrot.slane %v9445_v39, 1  ;;  %v13264_v6 = vrot.slane %v9885_v19, 1  ;;  %v10144_v39 = vpop.f32.mrf.mxu0 }
 0x408   : > { %13260 = vst [vmem:[#allocation209_spill] sm:$0xff] %v10111_v21  ;;  %v2968_v5 = vrot.slane %v2936_v22, 4  ;;  %v2007_v27 = vadd.f32 %v9899_v18, %v2006_v53  ;;  %v4678_v3 = vsel %vm12794_vm3, %v13262_v32, %v13261_v20  ;;  %vm2521_vm6 = vcmp.eq.s32.totalorder %v13268_v38, 1 }
 0x409   : > { %v2552_v14 = vsel %vm2520_vm15, %v2360_v59, %v2093_v23  ;;  %v4671_v53 = vsel %vm12794_vm3, %v13264_v6, %v13263_v57  ;;  %v13266_v59 = vrot.slane %v9741_v36, 1  ;;  %vm4769_vm4 = vcmp.ne.s32.totalorder %v4678_v3, %v9978_v42 }
 0x40a   : > { %v3024_v48 = vsel %vm12823_vm10, %v2967_v10, %v2968_v5  ;;  %v2584_v12 = vrot.slane %v2552_v14, 6  ;;  %v2096_v23 = vadd.f32 %v9852_v51, %v2007_v27  ;;  %4271 = vperm.xlu2 %6315, %v4200_v28   ;;  %vm4776_vm5 = vcmp.ne.s32.totalorder %v4671_v53, %v9885_v19 }
 0x40b   : > { %v4680_v20 = vsel %vm12794_vm3, %v13266_v59, %v13265_v8  ;;  %v3129_v32 = vmax.f32 %v2936_v22, %v3024_v48  ;;  %4268 = vperm.xlu1 %6316, %v4199_v15   ;;  %4508 = vperm.xlu0 %6314, %v4439_v62   ;;  %v13270_v48 = vld [vmem:[#allocation54_spill] sm:$0xff]  ;;  %v4876_v8 = vsel %vm4776_vm5, 1, %v12881_v11  ;;  %vm4384_vm15 = vcmp.eq.s32.totalorder %v9744_v33, %v9741_v36 }
 0x40c   : > { %v2638_v10 = vsel %vm12825_vm0, %v2583_v0, %v2584_v12  ;;  %v2198_v57 = vrot.slane %v2096_v23, 7  ;;  %v10148_v51 = vpop.permute.xlu2 %4538  ;;  %vm4767_vm7 = vcmp.ne.s32.totalorder %v4680_v20, %v9741_v36  ;;  %vm2905_vm9 = vcmp.eq.s32.totalorder %v13270_v48, 1  ;;  %v13271_v15 = vld [vmem:[#allocation102_spill] sm:$0xff] }
 0x40d   : > { %13267 = vst [vmem:[#allocation210_spill] sm:$0xff] %v10148_v51  ;;  %v3321_v27 = vsel %vm3289_vm2, %v3129_v32, %v2936_v22  ;;  %v2745_v28 = vmax.f32 %v2552_v14, %v2638_v10  ;;  %v10153_v34 = vpop.permute.xlu1 %4262  ;;  %vm3545_vm11 = vcmp.eq.s32.totalorder %v13271_v15, 1  ;;  %v10161_v42 = vpop.permute.xlu0 %4979  ;;  %v4869_v22 = vsel %vm4769_vm4, 1, %v12881_v11  ;;  %v13273_v15 = vld [vmem:[#allocation34_spill] sm:$0xff] }
 0x40e   : > { %13269 = vst [vmem:[#allocation11_spill] sm:$0xff] %v10153_v34  ;;  %v3385_v0 = vmax.f32 %v3321_v27, %v10098_v2  ;;  %v2252_v62 = vsel %vm12793_vm1, %v2197_v56, %v2198_v57  ;;  %v4867_v10 = vsel %vm4767_vm7, 1, %v12881_v11  ;;  %vm2522_vm12 = vcmp.eq.s32.totalorder %v13273_v15, 1  ;;  %v13283_v15 = vld [vmem:[#allocation72_spill] sm:$0xff] }
 0x40f   : > { %v2937_v3 = vsel %vm2905_vm9, %v2745_v28, %v2552_v14  ;;  %v2361_v6 = vmax.f32 %v2096_v23, %v2252_v62  ;;  %v2008_v53 = vpop.f32.mrf.mxu3  ;;  %vm3291_vm9 = vcmp.eq.s32.totalorder %v13283_v15, 1  ;;  %v4647_v15 = vrot.slane %v10094_v52, 1 }
 0x410   : > { %v10165_v59 = vsel %vm3545_vm11, %v3385_v0, %v3321_v27  ;;  %v2969_v20 = vrot.slane %v2937_v3, 4  ;;  %v2009_v32 = vadd.f32 %v9899_v18, %v2008_v53  ;;  %v13274_v0 = vld [vmem:[#allocation65_spill] sm:$0xff] }
 0x411   : > { %13272 = vst [vmem:[#allocation54_spill] sm:$0xff] %v10165_v59  ;;  %v2553_v56 = vsel %vm2521_vm6, %v2361_v6, %v2096_v23  ;;  %vm3290_vm13 = vcmp.eq.s32.totalorder %v13274_v0, 1  ;;  %v10188_v6 = vpop.f32.mrf.mxu0 }
 0x412   : > { %v3023_v14 = vsel %vm12823_vm10, %v2968_v5, %v2969_v20  ;;  %v2585_v28 = vrot.slane %v2553_v56, 6  ;;  %v10174_v48 = vadd.f32 %v9889_v63, %v2009_v32  ;;  %4949 = vperm.xlu2 %6315, %v4876_v8   ;;  %v6405_v63 = vld [vmem:[%s6568_s22 + $0xd0] sm:$0xff]  ;;  %v6406_v32 = vld [vmem:[%s6568_s22 + $0xc0] sm:$0xff] }
 0x413   : > { %v3130_v62 = vmax.f32 %v2937_v3, %v3023_v14  ;;  %4928 = vperm.xlu1 %6316, %v4869_v22   ;;  %4922 = vperm.xlu0 %6314, %v4867_v10   ;;  %vm4383_vm14 = vcmp.eq.s32.totalorder %v6405_v63, %v9795_v4  ;;  %vm4381_vm2 = vcmp.eq.s32.totalorder %v6406_v32, %v9660_v61  ;;  %v13277_v10 = vld [vmem:[#allocation92_spill] sm:$0xff] }
 0x414   : > { %v2637_v38 = vsel %vm12825_vm0, %v2584_v12, %v2585_v28  ;;  %v2199_v23 = vrot.slane %v10174_v48, 7  ;;  %2050 = vmatmul.bf16.gmra.mxu3 %v9514_v50  ;;  %v10182_v5 = vpop.permute.xlu2 %4295  ;;  %v12767_v12 = vrot.slane %v9795_v4, 1  ;;  %v13276_v50 = vld [vmem:[#allocation50_spill] sm:$0xff]  ;;  %vm3546_vm5 = vcmp.eq.s32.totalorder %v13277_v10, 1 }
 0x415   : > { %v3322_v53 = vsel %vm3290_vm13, %v3130_v62, %v2937_v3  ;;  %v2746_v22 = vmax.f32 %v2553_v56, %v2637_v38  ;;  %v10190_v8 = vpop.permute.xlu1 %4307  ;;  %vm2906_vm4 = vcmp.eq.s32.totalorder %v13276_v50, 1  ;;  %v10199_v34 = vpop.permute.xlu0 %4541  ;;  %v4431_v61 = vsel %vm4383_vm14, 1, %v12881_v11  ;;  %v13282_v10 = vld [vmem:[#allocation58_spill] sm:$0xff] }
 0x416   : > { %13275 = vst [vmem:[#allocation102_spill] sm:$0xff] %v10190_v8  ;;  %v3386_v14 = vmax.f32 %v3322_v53, %v3321_v27  ;;  %v2251_v0 = vsel %vm12793_vm1, %v2198_v57, %v2199_v23  ;;  %v4432_v38 = vsel %vm4384_vm15, 1, %v12881_v11  ;;  %v13281_v50 = vrot.slane %v9741_v36, 1 }
 0x417   : > { %13278 = vst [vmem:[#allocation34_spill] sm:$0xff] %v10199_v34  ;;  %v2938_v51 = vsel %vm2906_vm4, %v2746_v22, %v2553_v56  ;;  %v2362_v3 = vmax.f32 %v10174_v48, %v2251_v0  ;;  %v2011_v62 = vpop.f32.mrf.mxu3  ;;  %v4429_v56 = vsel %vm4381_vm2, 1, %v12881_v11  ;;  %v13280_v22 = vld [vmem:[#allocation45_spill] sm:$0xff]  ;;  %vm2907_vm7 = vcmp.eq.s32.totalorder %v13282_v10, 1 }
 0x418   : > { %v10209_v32 = vsel %vm3546_vm5, %v3386_v14, %v3322_v53  ;;  %v2970_v27 = vrot.slane %v2938_v51, 4  ;;  %v2012_v57 = vadd.f32 %v9899_v18, %v2011_v62  ;;  %vm2523_vm6 = vcmp.eq.s32.totalorder %v13280_v22, 1 }
 0x419   : > { %13279 = vst [vmem:[#allocation65_spill] sm:$0xff] %v10209_v32  ;;  %v2554_v63 = vsel %vm2522_vm12, %v2362_v3, %v10174_v48  ;;  %v4681_v33 = vsel %vm12794_vm3, %v12767_v12, %v13281_v50  ;;  %v13284_v48 = vld [vmem:[#allocation97_spill] sm:$0xff]  ;;  %v10232_v3 = vld [vmem:[%s6568_s22 + $0x18] sm:$0xff]  ;;  %v10257_v21 = vpop.f32.mrf.mxu0  ;;  %v13290_v22 = vrot.slane %v9826_v31, 1  ;;  %vm3292_vm5 = vcmp.eq.s32.totalorder %v13293_v60, 1 }
 0x41a   : > { %v3022_v14 = vsel %vm12823_vm10, %v2969_v20, %v2970_v27  ;;  %v2586_v0 = vrot.slane %v2554_v63, 6  ;;  %v10227_v62 = vadd.f32 %v9973_v30, %v2012_v57  ;;  %4487 = vperm.xlu2 %6315, %v4432_v38   ;;  %vm3547_vm11 = vcmp.eq.s32.totalorder %v13284_v48, 1  ;;  %v10243_v38 = vld [vmem:[%s6568_s22 + $0x8] sm:$0xff]  ;;  %v13294_v60 = vld [vmem:[#allocation105_spill] sm:$0xff] }
 0x41b   : > { %v3131_v36 = vmax.f32 %v2938_v51, %v3022_v14  ;;  %4484 = vperm.xlu1 %6316, %v4431_v61   ;;  %4478 = vperm.xlu0 %6314, %v4429_v56   ;;  %vm4392_vm12 = vcmp.eq.s32.totalorder %v10232_v3, %v10094_v52  ;;  %vm4766_vm13 = vcmp.ne.s32.totalorder %v4681_v33, %v9795_v4  ;;  %v13287_v14 = vld [vmem:[#allocation16_spill] sm:$0xff]  ;;  %v13289_v48 = vrot.slane %v9885_v19, 1 }
 0x41c   : > { %v2636_v20 = vsel %vm12825_vm0, %v2585_v28, %v2586_v0  ;;  %v2200_v50 = vrot.slane %v10227_v62, 7  ;;  %v10239_v30 = vpop.permute.xlu2 %4532  ;;  %vm4390_vm14 = vcmp.eq.s32.totalorder %v10243_v38, %v9826_v31  ;;  %v13286_v28 = vld [vmem:[#allocation125_spill] sm:$0xff]  ;;  %vm2524_vm2 = vcmp.eq.s32.totalorder %v13287_v14, 1 }
 0x41d   : > { %13285 = vst [vmem:[#allocation50_spill] sm:$0xff] %v10239_v30  ;;  %v3323_v61 = vsel %vm3291_vm9, %v3131_v36, %v2938_v51  ;;  %v2747_v57 = vmax.f32 %v2554_v63, %v2636_v20  ;;  %v10247_v56 = vpop.permute.xlu1 %4298  ;;  %vm3803_vm15 = vcmp.eq.s32.totalorder %v13286_v28, 1  ;;  %v10254_v34 = vpop.permute.xlu0 %4973  ;;  %vm3548_vm9 = vcmp.eq.s32.totalorder %v13294_v60, 1 }
 0x41e   : > { %v3387_v12 = vmax.f32 %v3323_v61, %v3322_v53  ;;  %v2250_v30 = vsel %vm12793_vm1, %v2199_v23, %v2200_v50  ;;  %v4440_v53 = vsel %vm4392_vm12, 1, %v12881_v11  ;;  %v4866_v23 = vsel %vm4766_vm13, 1, %v12881_v11 }
 0x41f   : > { %v2939_v51 = vsel %vm2907_vm7, %v2747_v57, %v2554_v63  ;;  %v2363_v36 = vmax.f32 %v10227_v62, %v2250_v30  ;;  %v2013_v20 = vpop.f32.mrf.mxu3  ;;  %v4438_v30 = vsel %vm4390_vm14, 1, %v12881_v11  ;;  %vm5014_vm12 = vcmp.eq.s32.totalorder %v10161_v42, 1 }
 0x420   : > { %v10272_v44 = vsel %vm3547_vm11, %v3387_v12, %v3323_v61  ;;  %v2971_v10 = vrot.slane %v2939_v51, 4  ;;  %v2014_v63 = vadd.f32 %v9899_v18, %v2013_v20  ;;  %v4673_v12 = vsel %vm12794_vm3, %v13288_v58, %v4647_v15 }
 0x421   : > { %v3643_v57 = vmax.f32 %v10272_v44, %v10165_v59  ;;  %v2555_v33 = vsel %vm2523_vm6, %v2363_v36, %v10227_v62  ;;  %v4672_v20 = vsel %vm12794_vm3, %v4647_v15, %v13289_v48  ;;  %v13291_v62 = vrot.slane %v9833_v26, 1  ;;  %v13292_v36 = vld [vmem:[#allocation12_spill] sm:$0xff] }
 0x422   : > { %v3021_v25 = vsel %vm12823_vm10, %v2970_v27, %v2971_v10  ;;  %v2587_v8 = vrot.slane %v2555_v33, 6  ;;  %v10295_v59 = vadd.f32 %v10033_v41, %v2014_v63  ;;  %4919 = vperm.xlu2 %6315, %v4866_v23   ;;  %vm2908_vm4 = vcmp.eq.s32.totalorder %v13292_v36, 1 }
 0x423   : > { %v4675_v58 = vsel %vm12794_vm3, %v13291_v62, %v13290_v22  ;;  %v10308_v27 = vsel %vm3803_vm15, %v3643_v57, %v10272_v44  ;;  %v3132_v15 = vmax.f32 %v2939_v51, %v3021_v25  ;;  %4511 = vperm.xlu1 %6316, %v4440_v53   ;;  %4505 = vperm.xlu0 %6314, %v4438_v30   ;;  %v13296_v48 = vmov 0 }
 0x424   : > { %v2635_v41 = vsel %vm12825_vm0, %v2586_v0, %v2587_v8  ;;  %v2201_v23 = vrot.slane %v10295_v59, 7  ;;  %2055 = vmatmul.bf16.gmra.mxu3 %v9559_v29  ;;  %v10314_v63 = vpop.permute.xlu2 %4289  ;;  %vm4774_vm6 = vcmp.ne.s32.totalorder %v4673_v12, %v10089_v37  ;;  %vm4775_vm7 = vcmp.ne.s32.totalorder %v4672_v20, %v10094_v52  ;;  %v13301_v20 = vld [vmem:[#allocation130_spill] sm:$0xff] }
 0x425   : > { %v10319_v28 = vsel %vm3292_vm5, %v3132_v15, %v2939_v51  ;;  %v2748_v25 = vmax.f32 %v2555_v33, %v2635_v41  ;;  %v4983_v53 = vpop.permute.xlu1 %4982  ;;  %vm4772_vm11 = vcmp.ne.s32.totalorder %v4675_v58, %v9833_v26  ;;  %v10326_v30 = vpop.permute.xlu0 %4535  ;;  %v4874_v42 = vsel %vm4774_vm6, 1, %v12881_v11  ;;  %v13300_v15 = vld [vmem:[#allocation68_spill] sm:$0xff] }
 0x426   : > { %v3388_v0 = vmax.f32 %v10319_v28, %v3323_v61  ;;  %v2249_v29 = vsel %vm12793_vm1, %v2200_v50, %v2201_v23  ;;  %vm5015_vm13 = vcmp.eq.s32.totalorder %v4983_v53, 1  ;;  %13295 = vst [vmem:[#allocation92_spill] sm:$0xff] %v10326_v30  ;;  %v4875_v50 = vsel %vm4775_vm7, 1, %v12881_v11  ;;  %v13299_v61 = vld [vmem:[#allocation37_spill] sm:$0xff]  ;;  %v10356_v41 = vpop.f32.mrf.mxu0  ;;  %v13305_v30 = vld [vmem:[#allocation56_spill] sm:$0xff] }
 0x427   : > { %v10330_v57 = vsel %vm2908_vm4, %v2748_v25, %v2555_v33  ;;  %v2364_v51 = vmax.f32 %v10295_v59, %v2249_v29  ;;  %vm10333_vm14 = vmpackc.low %vm5015_vm13, %vm5014_vm12  ;;  %v2016_v22 = vpop.f32.mrf.mxu3  ;;  %vm2525_vm15 = vcmp.eq.s32.totalorder %v13299_v61, 1  ;;  %v4872_v12 = vsel %vm4772_vm11, 1, %v12881_v11  ;;  %v10369_v29 = vld [vmem:[%s6568_s22 + $0x48] sm:$0xff] }
 0x428   : > { %v13297_v48 = vsel %vm10333_vm14, 4294967295, %v13296_v48  ;;  %v10347_v33 = vsel %vm3548_vm9, %v3388_v0, %v10319_v28  ;;  %v2972_v62 = vrot.slane %v10330_v57, 4  ;;  %v2017_v36 = vadd.f32 %v9899_v18, %v2016_v22  ;;  %v6410_v22 = vld [vmem:[%s6568_s22 + $0xc8] sm:$0xff] }
 0x429   : > { %13298 = vst [vmem:[#allocation45_spill] sm:$0xff] %v13297_v48  ;;  %vm3293_vm4 = vcmp.eq.s32.totalorder %v13300_v15, 1  ;;  %vm3804_vm5 = vcmp.eq.s32.totalorder %v13301_v20, 1  ;;  %v3644_v60 = vmax.f32 %v10347_v33, %v10209_v32  ;;  %v2556_v25 = vsel %vm2524_vm2, %v2364_v51, %v10295_v59  ;;  %v10379_v59 = vld [vmem:[%s6568_s22 + $0x40] sm:$0xff] }
 0x42a   : > { %v3020_v53 = vsel %vm12823_vm10, %v2971_v10, %v2972_v62  ;;  %v2588_v0 = vrot.slane %v2556_v25, 6  ;;  %v10366_v58 = vadd.f32 %v10074_v55, %v2017_v36  ;;  %4946 = vperm.xlu2 %6315, %v4875_v50   ;;  %vm4382_vm6 = vcmp.eq.s32.totalorder %v6410_v22, %v10369_v29  ;;  %v13303_v36 = vld [vmem:[#allocation9_spill] sm:$0xff] }
 0x42b   : > { %v3133_v48 = vmax.f32 %v10330_v57, %v3020_v53  ;;  %4943 = vperm.xlu1 %6316, %v4874_v42   ;;  %4937 = vperm.xlu0 %6314, %v4872_v12   ;;  %vm4389_vm2 = vcmp.eq.s32.totalorder %v9717_v7, %v9833_v26  ;;  %vm4380_vm7 = vcmp.eq.s32.totalorder %v9873_v16, %v9939_v54  ;;  %v4637_v42 = vrot.slane %v10369_v29, 1  ;;  %v13304_v12 = vld [vmem:[#allocation75_spill] sm:$0xff] }
 0x42c   : > { %v2634_v14 = vsel %vm12825_vm0, %v2587_v8, %v2588_v0  ;;  %v2202_v10 = vrot.slane %v10366_v58, 7  ;;  %v10385_v51 = vpop.permute.xlu2 %4526  ;;  %v10391_v50 = vsel %vm3804_vm5, %v3644_v60, %v10347_v33  ;;  %vm2909_vm9 = vcmp.eq.s32.totalorder %v13303_v36, 1 }
 0x42d   : > { %13302 = vst [vmem:[#allocation58_spill] sm:$0xff] %v10385_v51  ;;  %vm3294_vm11 = vcmp.eq.s32.totalorder %v13304_v12, 1  ;;  %v3325_v53 = vsel %vm3293_vm4, %v3133_v48, %v10330_v57  ;;  %v2749_v8 = vmax.f32 %v2556_v25, %v2634_v14  ;;  %v10398_v55 = vpop.permute.xlu1 %4292  ;;  %vm2910_vm12 = vcmp.eq.s32.totalorder %v13305_v30, 1  ;;  %v13306_v51 = vld [vmem:[#allocation95_spill] sm:$0xff]  ;;  %v10405_v60 = vpop.permute.xlu0 %4967 }
 0x42e   : > { %vm3549_vm13 = vcmp.eq.s32.totalorder %v13306_v51, 1  ;;  %v3389_v32 = vmax.f32 %v3325_v53, %v10319_v28  ;;  %v2248_v20 = vsel %vm12793_vm1, %v2201_v23, %v2202_v10  ;;  %v4430_v36 = vsel %vm4382_vm6, 1, %v12881_v11  ;;  %v13307_v28 = vld [vmem:[#allocation15_spill] sm:$0xff] }
 0x42f   : > { %v2941_v15 = vsel %vm2909_vm9, %v2749_v8, %v2556_v25  ;;  %v2365_v57 = vmax.f32 %v10366_v58, %v2248_v20  ;;  %v2018_v48 = vpop.f32.mrf.mxu3  ;;  %v4437_v14 = vsel %vm4389_vm2, 1, %v12881_v11  ;;  %v4428_v23 = vsel %vm4380_vm7, 1, %v12881_v11 }
 0x430   : > { %vm2526_vm4 = vcmp.eq.s32.totalorder %v13307_v28, 1  ;;  %v10420_v51 = vsel %vm3549_vm13, %v3389_v32, %v3325_v53  ;;  %v2973_v22 = vrot.slane %v2941_v15, 4  ;;  %v2019_v25 = vadd.f32 %v9899_v18, %v2018_v48  ;;  %v13311_v48 = vld [vmem:[#allocation138_spill] sm:$0xff]  ;;  %v6413_v28 = vld [vmem:[%s6568_s22 + $0xb0] sm:$0xff] }
 0x431   : > { %v13308_v8 = vrot.slane %v10379_v59, 1  ;;  %vm3550_vm5 = vcmp.eq.s32.totalorder %v13309_v45, 1  ;;  %v3645_v26 = vmax.f32 %v10420_v51, %v10272_v44  ;;  %v2557_v16 = vsel %vm2525_vm15, %v2365_v57, %v10366_v58  ;;  %v10443_v44 = vpop.f32.mrf.mxu0 }
 0x432   : > { %v13310_v32 = vrot.slane %v9795_v4, 1  ;;  %vm3805_vm6 = vcmp.eq.s32.totalorder %v13311_v48, 1  ;;  %v3019_v1 = vsel %vm12823_vm10, %v2972_v62, %v2973_v22  ;;  %v10441_v43 = vadd.f32 %v10144_v39, %v2019_v25  ;;  %4502 = vperm.xlu2 %6315, %v4437_v14  }
 0x433   : > { %v4683_v20 = vsel %vm12794_vm3, %v13308_v8, %v4637_v42  ;;  %v2589_v8 = vrot.slane %v2557_v16, 6  ;;  %v10446_v61 = vsel %vm3805_vm6, %v3645_v26, %v10420_v51  ;;  %vm5012_vm15 = vcmp.eq.s32.totalorder %v10254_v34, 1  ;;  %4481 = vperm.xlu1 %6316, %v4430_v36   ;;  %4475 = vperm.xlu0 %6314, %v4428_v23  }
 0x434   : > { %v4682_v2 = vsel %vm12794_vm3, %v4637_v42, %v13310_v32  ;;  %13312 = vst [vmem:[#allocation72_spill] sm:$0xff] %v10446_v61  ;;  %v3134_v4 = vmax.f32 %v2941_v15, %v3019_v1  ;;  %vm4764_vm2 = vcmp.ne.s32.totalorder %v4683_v20, %v10379_v59  ;;  %v2203_v39 = vrot.slane %v10441_v43, 7  ;;  %2060 = vmatmul.bf16.gmra.mxu3 %v9602_v13  ;;  %v10454_v58 = vpop.permute.xlu2 %4283  ;;  %v13313_v13 = vld [vmem:[#allocation57_spill] sm:$0xff] }
 0x435   : > { %v2633_v62 = vsel %vm12825_vm0, %v2588_v0, %v2589_v8  ;;  %vm4765_vm7 = vcmp.ne.s32.totalorder %v4682_v2, %v10369_v29  ;;  %vm4377_vm9 = vcmp.eq.s32.totalorder %v9885_v19, %v10056_v9  ;;  %v4977_v36 = vpop.permute.xlu1 %4976  ;;  %v12789_v57 = vrot.slane %v9983_v49, 1  ;;  %v10465_v0 = vld [vmem:[%s6568_s22 + $0x30] sm:$0xff]  ;;  %v10472_v26 = vpop.permute.xlu0 %4529 }
 0x436   : > { %v10461_v1 = vsel %vm3294_vm11, %v3134_v4, %v2941_v15  ;;  %v2750_v42 = vmax.f32 %v2557_v16, %v2633_v62  ;;  %v12790_v14 = vrot.slane %v10465_v0, 1  ;;  %vm2911_vm13 = vcmp.eq.s32.totalorder %v13313_v13, 1  ;;  %13314 = vst [vmem:[#allocation97_spill] sm:$0xff] %v10472_v26 }
 0x437   : > { %v3390_v23 = vmax.f32 %v10461_v1, %v3325_v53  ;;  %v2247_v25 = vsel %vm12793_vm1, %v2202_v10, %v2203_v39  ;;  %vm5013_vm6 = vcmp.eq.s32.totalorder %v4977_v36, 1  ;;  %v4864_v12 = vsel %vm4764_vm2, 1, %v12881_v11  ;;  %v2021_v10 = vpop.f32.mrf.mxu3 }
 0x438   : > { %v10479_v15 = vsel %vm2910_vm12, %v2750_v42, %v2557_v16  ;;  %v2366_v32 = vmax.f32 %v10441_v43, %v2247_v25  ;;  %vm10484_vm11 = vmpackc.low %vm5013_vm6, %vm5012_vm15  ;;  %v13315_v53 = vmov 0  ;;  %v4865_v48 = vsel %vm4765_vm7, 1, %v12881_v11  ;;  %v13320_v16 = vld [vmem:[#allocation19_spill] sm:$0xff]  ;;  %v13321_v42 = vld [vmem:[#allocation128_spill] sm:$0xff] }
 0x439   : > { %v13316_v53 = vsel %vm10484_vm11, 4294967295, %v13315_v53  ;;  %v13318_v20 = vrot.slane %v10089_v37, 1  ;;  %v13319_v4 = vrot.slane %v9826_v31, 1  ;;  %vm2527_vm12 = vcmp.eq.s32.totalorder %v13320_v16, 1 }
 0x43a   : > { %13317 = vst [vmem:[#allocation125_spill] sm:$0xff] %v13316_v53  ;;  %v10501_v34 = vsel %vm3550_vm5, %v3390_v23, %v10461_v1  ;;  %v2974_v62 = vrot.slane %v10479_v15, 4  ;;  %v2022_v2 = vadd.f32 %v9899_v18, %v2021_v10  ;;  %v4425_v29 = vsel %vm4377_vm9, 1, %v12881_v11  ;;  %4916 = vperm.xlu2 %6315, %v4865_v48  }
 0x43b   : > { %v4674_v30 = vsel %vm12794_vm3, %v13319_v4, %v13318_v20  ;;  %vm3806_vm15 = vcmp.eq.s32.totalorder %v13321_v42, 1  ;;  %v3646_v36 = vmax.f32 %v10501_v34, %v10347_v33  ;;  %v2558_v45 = vsel %vm2526_vm4, %v2366_v32, %v10441_v43  ;;  %v13322_v33 = vld [vmem:[#allocation66_spill] sm:$0xff]  ;;  %4913 = vperm.xlu1 %6316, %v4864_v12   ;;  %4466 = vperm.xlu0 %6314, %v4425_v29   ;;  %v13325_v4 = vld [vmem:[#allocation108_spill] sm:$0xff] }
 0x43c   : > { %v4686_v23 = vsel %vm12794_vm3, %v12789_v57, %v12790_v14  ;;  %v3018_v19 = vsel %vm12823_vm10, %v2973_v22, %v2974_v62  ;;  %v2590_v25 = vrot.slane %v2558_v45, 6  ;;  %v10524_v10 = vadd.f32 %v10188_v6, %v2022_v2  ;;  %v13324_v22 = vld [vmem:[#allocation70_spill] sm:$0xff]  ;;  %v10538_v20 = vpop.permute.xlu2 %4496  ;;  %v10543_v2 = vpop.f32.mrf.mxu0 }
 0x43d   : > { %vm4773_vm5 = vcmp.ne.s32.totalorder %v4674_v30, %v9826_v31  ;;  %vm3295_vm2 = vcmp.eq.s32.totalorder %v13322_v33, 1  ;;  %v3135_v43 = vmax.f32 %v10479_v15, %v3018_v19  ;;  %vm4379_vm4 = vcmp.eq.s32.totalorder %v6413_v28, %v10465_v0  ;;  %v13326_v19 = vld [vmem:[#allocation6_spill] sm:$0xff]  ;;  %v10558_v14 = vpop.permute.xlu0 %4961 }
 0x43e   : > { %v10532_v32 = vsel %vm3806_vm15, %v3646_v36, %v10501_v34  ;;  %vm3296_vm7 = vcmp.eq.s32.totalorder %v13324_v22, 1  ;;  %v2632_v6 = vsel %vm12825_vm0, %v2589_v8, %v2590_v25  ;;  %v2204_v48 = vrot.slane %v10524_v10, 7  ;;  %v10548_v36 = vpop.permute.xlu1 %4286 }
 0x43f   : > { %13323 = vst [vmem:[#allocation16_spill] sm:$0xff] %v10532_v32  ;;  %vm4761_vm9 = vcmp.ne.s32.totalorder %v4686_v23, %v9983_v49  ;;  %v4635_v12 = vrot.slane %v9939_v54, 1  ;;  %vm3551_vm6 = vcmp.eq.s32.totalorder %v13325_v4, 1  ;;  %v10546_v29 = vsel %vm3295_vm2, %v3135_v43, %v10479_v15  ;;  %v2023_v53 = vpop.f32.mrf.mxu3  ;;  %v13328_v15 = vld [vmem:[#allocation40_spill] sm:$0xff]  ;;  %v13330_v43 = vld [vmem:[#allocation133_spill] sm:$0xff] }
 0x440   : > { %v2751_v42 = vmax.f32 %v2558_v45, %v2632_v6  ;;  %v4873_v8 = vsel %vm4773_vm5, 1, %v12881_v11  ;;  %vm2912_vm15 = vcmp.eq.s32.totalorder %v13326_v19, 1  ;;  %v3391_v33 = vmax.f32 %v10546_v29, %v10461_v1  ;;  %v13327_v6 = vld [vmem:[#allocation98_spill] sm:$0xff] }
 0x441   : > { %v2246_v57 = vsel %vm12793_vm1, %v2203_v39, %v2204_v48  ;;  %vm3552_vm2 = vcmp.eq.s32.totalorder %v13327_v6, 1  ;;  %v4427_v1 = vsel %vm4379_vm4, 1, %v12881_v11  ;;  %v4861_v39 = vsel %vm4761_vm9, 1, %v12881_v11 }
 0x442   : > { %v10565_v31 = vsel %vm2911_vm13, %v2751_v42, %v2558_v45  ;;  %v2367_v30 = vmax.f32 %v10524_v10, %v2246_v57  ;;  %vm2528_vm5 = vcmp.eq.s32.totalorder %v13328_v15, 1  ;;  %v10579_v13 = vsel %vm3551_vm6, %v3391_v33, %v10546_v29  ;;  %4472 = vperm.xlu2 %6315, %v4427_v1  }
 0x443   : > { %v2975_v45 = vrot.slane %v10565_v31, 4  ;;  %v2024_v57 = vadd.f32 %v9899_v18, %v2023_v53  ;;  %v13329_v42 = vrot.slane %v10465_v0, 1  ;;  %vm3807_vm13 = vcmp.eq.s32.totalorder %v13330_v43, 1  ;;  %4940 = vperm.xlu1 %6316, %v4873_v8   ;;  %4904 = vperm.xlu0 %6314, %v4861_v39  }
 0x444   : > { %v3647_v23 = vmax.f32 %v10579_v13, %v10420_v51  ;;  %v10593_v4 = vsel %vm2527_vm12, %v2367_v30, %v10524_v10  ;;  %v13331_v33 = vrot.slane %v10379_v59, 1  ;;  %v13332_v51 = vrot.slane %v10232_v3, 1  ;;  %2065 = vmatmul.bf16.gmra.mxu3 %v9655_v17  ;;  %v10625_v30 = vpop.permute.xlu2 %4523 }
 0x445   : > { %v4685_v28 = vsel %vm12794_vm3, %v13329_v42, %v4635_v12  ;;  %v3017_v53 = vsel %vm12823_vm10, %v2974_v62, %v2975_v45  ;;  %v2591_v42 = vrot.slane %v10593_v4, 6  ;;  %v10603_v43 = vadd.f32 %v10257_v21, %v2024_v57  ;;  %13334 = vst [vmem:[#allocation12_spill] sm:$0xff] %v10625_v30 }
 0x446   : > { %v4684_v18 = vsel %vm12794_vm3, %v4635_v12, %v13331_v33  ;;  %v13333_v16 = vrot.slane %v10103_v46, 1  ;;  %vm4063_vm12 = vcmp.eq.s32.totalorder %v9621_v35, 1  ;;  %v3136_v59 = vmax.f32 %v10565_v31, %v3017_v53 }
 0x447   : > { %vm4762_vm4 = vcmp.ne.s32.totalorder %v4685_v28, %v10465_v0  ;;  %v10617_v21 = vsel %vm3807_vm13, %v3647_v23, %v10579_v13  ;;  %v2631_v62 = vsel %vm12825_vm0, %v2590_v25, %v2591_v42  ;;  %v2205_v12 = vrot.slane %v10603_v43, 7  ;;  %v4971_v25 = vpop.permute.xlu1 %4970  ;;  %v10650_v23 = vpop.f32.mrf.mxu0 }
 0x448   : > { %v4689_v10 = vsel %vm12794_vm3, %v13333_v16, %v13332_v51  ;;  %vm4763_vm9 = vcmp.ne.s32.totalorder %v4684_v18, %v9939_v54  ;;  %v3903_v8 = vmax.f32 %v10617_v21, %v10308_v27  ;;  %v10633_v1 = vsel %vm3296_vm7, %v3136_v59, %v10565_v31  ;;  %v10647_v31 = vpop.permute.xlu0 %4499  ;;  %v2026_v53 = vpop.f32.mrf.mxu3  ;;  %v13338_v16 = vld [vmem:[#allocation31_spill] sm:$0xff] }
 0x449   : > { %v2752_v39 = vmax.f32 %v10593_v4, %v2631_v62  ;;  %vm4758_vm6 = vcmp.ne.s32.totalorder %v4689_v10, %v10103_v46  ;;  %v12795_v17 = vrot.slane %v10056_v9, 1  ;;  %vm5010_vm13 = vcmp.eq.s32.totalorder %v10405_v60, 1  ;;  %v10678_v62 = vld [vmem:[%s12594_s11] ss:$0 sm:$0xff] }
 0x44a   : > { %v3392_v57 = vmax.f32 %v10633_v1, %v10546_v29  ;;  %v2245_v22 = vsel %vm12793_vm1, %v2204_v48, %v2205_v12  ;;  %vm5011_vm7 = vcmp.eq.s32.totalorder %v4971_v25, 1  ;;  %v13335_v29 = vmov 0  ;;  %v13340_v25 = vld [vmem:[#allocation141_spill] sm:$0xff] }
 0x44b   : > { %v10655_v33 = vsel %vm2912_vm15, %v2752_v39, %v10593_v4  ;;  %v2368_v60 = vmax.f32 %v10603_v43, %v2245_v22  ;;  %vm10658_vm8 = vmpackc.low %vm5011_vm7, %vm5010_vm13  ;;  %v4862_v48 = vsel %vm4762_vm4, 1, %v12881_v11  ;;  %v4863_v51 = vsel %vm4763_vm9, 1, %v12881_v11  ;;  %v13341_v22 = vld [vmem:[#allocation36_spill] sm:$0xff] }
 0x44c   : > { %v13336_v29 = vsel %vm10658_vm8, 4294967295, %v13335_v29  ;;  %vm2529_vm1 = vcmp.eq.s32.totalorder %v13338_v16, 1  ;;  %v10672_v19 = vsel %vm3552_vm2, %v3392_v57, %v10633_v1  ;;  %v2976_v59 = vrot.slane %v10655_v33, 4  ;;  %4910 = vperm.xlu2 %6315, %v4863_v51   ;;  %4907 = vperm.xlu1 %6316, %v4862_v48   ;;  %v10723_v51 = vpop.permute.xlu2 %4931  ;;  %v13344_v48 = vld [vmem:[#allocation103_spill] sm:$0xff] }
 0x44d   : > { %13337 = vst [vmem:[#allocation24_spill] sm:$0xff] %v13336_v29  ;;  %v2027_v0 = vadd.f32 %v10678_v62, %v2026_v53  ;;  %v4858_v54 = vsel %vm4758_vm6, 1, %v12881_v11  ;;  %v3648_v28 = vmax.f32 %v10672_v19, %v10501_v34  ;;  %v10689_v6 = vsel %vm2528_vm5, %v2368_v60, %v10603_v43  ;;  %v13342_v60 = vld [vmem:[#allocation78_spill] sm:$0xff] }
 0x44e   : > { %v13339_v18 = vrot.slane %v9983_v49, 1  ;;  %v10700_v10 = vsel %vm4063_vm12, %v3903_v8, %v10617_v21  ;;  %vm3808_vm15 = vcmp.eq.s32.totalorder %v13340_v25, 1  ;;  %v3016_v34 = vsel %vm12823_vm10, %v2975_v45, %v2976_v59  ;;  %4895 = vperm.xlu0 %6314, %v4858_v54   ;;  %v13343_v45 = vld [vmem:[#allocation69_spill] sm:$0xff]  ;;  %v13346_v25 = vld [vmem:[#allocation131_spill] sm:$0xff] }
 0x44f   : > { %v2592_v15 = vrot.slane %v10689_v6, 6  ;;  %v10707_v57 = vadd.f32 %v10356_v41, %v2027_v0  ;;  %vm2913_vm2 = vcmp.eq.s32.totalorder %v13341_v22, 1  ;;  %vm3297_vm5 = vcmp.eq.s32.totalorder %v13342_v60, 1  ;;  %v6415_v0 = vld [vmem:[%s6568_s22 + $0xa8] sm:$0xff] }
 0x450   : > { %v4687_v39 = vsel %vm12794_vm3, %v12795_v17, %v13339_v18  ;;  %v10712_v35 = vsel %vm3808_vm15, %v3648_v28, %v10672_v19  ;;  %v3137_v8 = vmax.f32 %v10655_v33, %v3016_v34  ;;  %vm4378_vm4 = vcmp.eq.s32.totalorder %v6415_v0, %v9983_v49  ;;  %v10735_v28 = vpop.permute.xlu1 %4280  ;;  %v13345_v18 = vld [vmem:[#allocation22_spill] sm:$0xff]  ;;  %v10748_v60 = vpop.permute.xlu0 %4274 }
 0x451   : > { %v2630_v41 = vsel %vm12825_vm0, %v2591_v42, %v2592_v15  ;;  %v2206_v53 = vrot.slane %v10707_v57, 7  ;;  %vm4760_vm9 = vcmp.ne.s32.totalorder %v4687_v39, %v10056_v9  ;;  %vm3553_vm6 = vcmp.eq.s32.totalorder %v13344_v48, 1  ;;  %v6416_v42 = vld [vmem:[%s6568_s22 + $0x88] sm:$0xff]  ;;  %v2028_v29 = vpop.f32.mrf.mxu3  ;;  %v10774_v0 = vpop.f32.mrf.mxu0 }
 0x452   : > { %v10732_v54 = vsel %vm3297_vm5, %v3137_v8, %v10655_v33  ;;  %v2753_v4 = vmax.f32 %v10689_v6, %v2630_v41  ;;  %vm4374_vm13 = vcmp.eq.s32.totalorder %v6416_v42, %v10243_v38  ;;  %vm2914_vm7 = vcmp.eq.s32.totalorder %v13345_v18, 1  ;;  %v13348_v8 = vld [vmem:[#allocation111_spill] sm:$0xff] }
 0x453   : > { %vm3809_vm15 = vcmp.eq.s32.totalorder %v13346_v25, 1  ;;  %vm4064_vm3 = vcmp.eq.s32.totalorder %v9665_v47, 1  ;;  %v3393_v34 = vmax.f32 %v10732_v54, %v10633_v1  ;;  %vm13347_vm5 = vcmp.lt.s32.totalorder %v7251_v24, 1 }
 0x454   : > { %v2244_v33 = vsel %vm13347_vm5, %v2205_v12, %v2206_v53  ;;  %vm3554_vm12 = vcmp.eq.s32.totalorder %v13348_v8, 1  ;;  %v10754_v41 = vsel %vm2913_vm2, %v2753_v4, %v10689_v6  ;;  %v4426_v1 = vsel %vm4378_vm4, 1, %v12881_v11  ;;  %v13349_v12 = vld [vmem:[#allocation41_spill] sm:$0xff]  ;;  %v13365_v8 = vld [vmem:[#allocation136_spill] sm:$0xff] }
 0x455   : > { %v2369_v17 = vmax.f32 %v10707_v57, %v2244_v33  ;;  %v4860_v43 = vsel %vm4760_vm9, 1, %v12881_v11  ;;  %vm2530_vm5 = vcmp.eq.s32.totalorder %v13349_v12, 1  ;;  %v10767_v26 = vsel %vm3553_vm6, %v3393_v34, %v10732_v54  ;;  %4469 = vperm.xlu1 %6316, %v4426_v1   ;;  %v6417_v12 = vld [vmem:[%s6568_s22] sm:$0xff] }
 0x456   : > { %v2977_v6 = vrot.slane %v10754_v41, 4  ;;  %v2029_v22 = vadd.f32 %v10678_v62, %v2028_v29  ;;  %v4422_v49 = vsel %vm4374_vm13, 1, %v12881_v11  ;;  %v3649_v39 = vmax.f32 %v10767_v26, %v10579_v13  ;;  %4901 = vperm.xlu2 %6315, %v4860_v43  }
 0x457   : > { %v10781_v4 = vsel %vm2529_vm1, %v2369_v17, %v10707_v57  ;;  %vm4375_vm2 = vcmp.eq.s32.totalorder %v10089_v37, %v10103_v46  ;;  %v3904_v29 = vmax.f32 %v10712_v35, %v10391_v50  ;;  %vm4376_vm1 = vcmp.eq.s32.totalorder %v10094_v52, %v10232_v3  ;;  %v13350_v17 = vld [vmem:[#allocation172_spill] sm:$0xff]  ;;  %4457 = vperm.xlu0 %6314, %v4422_v49   ;;  %v10837_v52 = vpop.permute.xlu2 %4958 }
 0x458   : > { %v3015_v48 = vsel %vm12823_vm10, %v2976_v59, %v2977_v6  ;;  %v2593_v42 = vrot.slane %v10781_v4, 6  ;;  %v10791_v13 = vadd.f32 %v10443_v44, %v2029_v22  ;;  %vm4065_vm4 = vcmp.eq.s32.totalorder %v13350_v17, 1  ;;  %v13351_v59 = vld [vmem:[#allocation73_spill] sm:$0xff]  ;;  %v4965_v43 = vpop.permute.xlu1 %4964 }
 0x459   : > { %v3138_v16 = vmax.f32 %v10754_v41, %v3015_v48  ;;  %v10800_v57 = vsel %vm3809_vm15, %v3649_v39, %v10767_v26  ;;  %v10805_v44 = vsel %vm4064_vm3, %v3904_v29, %v10712_v35  ;;  %vm5008_vm6 = vcmp.eq.s32.totalorder %v10558_v14, 1  ;;  %v13356_v29 = vld [vmem:[#allocation32_spill] sm:$0xff]  ;;  %v4935_v48 = vpop.permute.xlu0 %4934 }
 0x45a   : > { %v2629_v34 = vsel %vm12825_vm0, %v2592_v15, %v2593_v42  ;;  %v2207_v33 = vrot.slane %v10791_v13, 7  ;;  %v3905_v25 = vmax.f32 %v10800_v57, %v10446_v61  ;;  %vm13352_vm13 = vcmp.eq.s32.totalorder %v13343_v45, 1 }
 0x45b   : > { %v10819_v1 = vsel %vm13352_vm13, %v3138_v16, %v10754_v41  ;;  %v2754_v47 = vmax.f32 %v10781_v4, %v2629_v34  ;;  %v4424_v22 = vsel %vm4376_vm1, 1, %v12881_v11  ;;  %v13353_v15 = vrot.slane %v10056_v9, 1  ;;  %v2031_v34 = vpop.f32.mrf.mxu3 }
 0x45c   : > { %v13354_v49 = vrot.slane %v10232_v3, 1  ;;  %vm13355_vm3 = vcmp.lt.s32.totalorder %v7251_v24, 7  ;;  %v3394_v45 = vmax.f32 %v10819_v1, %v10732_v54  ;;  %vm13357_vm13 = vcmp.lt.s32.totalorder %v7251_v24, 1 }
 0x45d   : > { %v2243_v41 = vsel %vm13357_vm13, %v2206_v53, %v2207_v33  ;;  %vm5009_vm9 = vcmp.eq.s32.totalorder %v4965_v43, 1  ;;  %v10842_v9 = vsel %vm4065_vm4, %v3905_v25, %v10800_v57  ;;  %v2946_v16 = vsel %vm2914_vm7, %v2754_v47, %v10781_v4  ;;  %v13361_v43 = vld [vmem:[#allocation17_spill] sm:$0xff] }
 0x45e   : > { %v4688_v39 = vsel %vm13355_vm3, %v13354_v49, %v13353_v15  ;;  %vm4998_vm1 = vcmp.eq.s32.totalorder %v10723_v51, 1  ;;  %v2370_v54 = vmax.f32 %v10791_v13, %v2243_v41  ;;  %vm10851_vm3 = vmpackc.low %vm5009_vm9, %vm5008_vm6  ;;  %v13358_v53 = vmov 0  ;;  %4463 = vperm.xlu2 %6315, %v4424_v22   ;;  %v13366_v41 = vld [vmem:[#allocation101_spill] sm:$0xff] }
 0x45f   : > { %v13359_v53 = vsel %vm10851_vm3, 4294967295, %v13358_v53  ;;  %vm4999_vm13 = vcmp.eq.s32.totalorder %v4935_v48, 1  ;;  %vm2531_vm15 = vcmp.eq.s32.totalorder %v13361_v43, 1  ;;  %v10859_v17 = vsel %vm3554_vm12, %v3394_v45, %v10819_v1 }
 0x460   : > { %13360 = vst [vmem:[#allocation105_spill] sm:$0xff] %v13359_v53  ;;  %v2978_v18 = vrot.slane %v2946_v16, 4  ;;  %vm10861_vm7 = vmpackc.low %vm4999_vm13, %vm4998_vm1  ;;  %v13362_v51 = vmov 0  ;;  %v2032_v14 = vadd.f32 %v10678_v62, %v2031_v34  ;;  %v4423_v4 = vsel %vm4375_vm2, 1, %v12881_v11 }
 0x461   : > { %v13363_v51 = vsel %vm10861_vm7, 4294967295, %v13362_v51  ;;  %vm3810_vm12 = vcmp.eq.s32.totalorder %v13365_v8, 1  ;;  %v3650_v25 = vmax.f32 %v10859_v17, %v10672_v19  ;;  %v2562_v47 = vsel %vm2530_vm5, %v2370_v54, %v10791_v13  ;;  %v10889_v19 = vpop.f32.mrf.mxu0  ;;  %4460 = vperm.xlu1 %6316, %v4423_v4   ;;  %v6418_v13 = vld [vmem:[%s6568_s22 + $0x80] sm:$0xff]  ;;  %v10915_v53 = vpop.permute.xlu0 %4490 }
 0x462   : > { %13364 = vst [vmem:[#allocation37_spill] sm:$0xff] %v13363_v51  ;;  %vm4759_vm4 = vcmp.ne.s32.totalorder %v4688_v39, %v10232_v3  ;;  %v3014_v37 = vsel %vm12823_vm10, %v2977_v6, %v2978_v18  ;;  %v2594_v15 = vrot.slane %v2562_v47, 6  ;;  %v10885_v49 = vadd.f32 %v10543_v2, %v2032_v14  ;;  %v13367_v14 = vld [vmem:[#allocation163_spill] sm:$0xff] }
 0x463   : > { %v4629_v45 = vrot.slane %v10243_v38, 1  ;;  %vm3555_vm2 = vcmp.eq.s32.totalorder %v13366_v41, 1  ;;  %v3139_v48 = vmax.f32 %v2946_v16, %v3014_v37  ;;  %vm4373_vm5 = vcmp.eq.s32.totalorder %v6418_v13, %v6417_v12  ;;  %v10907_v13 = vpop.permute.xlu1 %4520  ;;  %v2033_v39 = vpop.f32.mrf.mxu3 }
 0x464   : > { %v10896_v6 = vsel %vm3810_vm12, %v3650_v25, %v10859_v17  ;;  %v2628_v2 = vsel %vm12825_vm0, %v2593_v42, %v2594_v15  ;;  %v2208_v22 = vrot.slane %v10885_v49, 7  ;;  %v4790_v54 = vstv %s10873_s29  ;;  %13369 = vst [vmem:[#allocation68_spill] sm:$0xff] %v10907_v13 }
 0x465   : > { %v3906_v34 = vmax.f32 %v10896_v6, %v10532_v32  ;;  %vm4066_vm9 = vcmp.eq.s32.totalorder %v13367_v14, 1  ;;  %vm13368_vm6 = vcmp.eq.s32.totalorder %v13351_v59, 1  ;;  %v2755_v37 = vmax.f32 %v2562_v47, %v2628_v2 }
 0x466   : > { %v3331_v4 = vsel %vm13368_vm6, %v3139_v48, %v2946_v16  ;;  %v4859_v8 = vsel %vm4759_vm4, 1, %v12881_v11  ;;  %vm13370_vm1 = vcmp.lt.s32.totalorder %v7251_v24, 1  ;;  %v4421_v32 = vsel %vm4373_vm5, 1, %v12881_v11  ;;  %v10934_v48 = vpop.permute.xlu2 %4514 }
 0x467   : > { %v3395_v42 = vmax.f32 %v3331_v4, %v10819_v1  ;;  %v2242_v25 = vsel %vm13370_vm1, %v2207_v33, %v2208_v22  ;;  %v13371_v30 = vrot.slane %v9717_v7, 1  ;;  %vm13372_vm13 = vcmp.lt.s32.totalorder %v7251_v24, 7  ;;  %13376 = vst [vmem:[#allocation130_spill] sm:$0xff] %v10934_v48  ;;  %4454 = vperm.xlu2 %6315, %v4421_v32  }
 0x468   : > { %vm13373_vm12 = vcmp.eq.s32.totalorder %v13356_v29, 1  ;;  %v2371_v3 = vmax.f32 %v10885_v49, %v2242_v25  ;;  %vm4724_vm4 = vcmp.eq.s32.totalorder %v7251_v24, 0  ;;  %vm10926_vm6 = vcmp.eq.s32.totalorder %v4790_v54, 1  ;;  %v13384_v25 = vld [vmem:[#allocation167_spill] sm:$0xff] }
 0x469   : > { %v4691_v59 = vsel %vm13372_vm13, %v13371_v30, %v4629_v45  ;;  %v2947_v16 = vsel %vm13373_vm12, %v2755_v37, %v2562_v47  ;;  %v10932_v33 = vsel %vm3555_vm2, %v3395_v42, %v3331_v4  ;;  %v2034_v30 = vadd.f32 %v10678_v62, %v2033_v39  ;;  %v13377_v47 = vld [vmem:[#allocation144_spill] sm:$0xff]  ;;  %vm13379_vm2 = vmmov %vm13372_vm13  ;;  %4898 = vperm.xlu1 %6316, %v4859_v8  }
 0x46a   : > { %v2979_v7 = vrot.slane %v2947_v16, 4  ;;  %v10940_v29 = vsel %vm4066_vm9, %v3906_v34, %v10896_v6  ;;  %vm3811_vm5 = vcmp.eq.s32.totalorder %v13377_v47, 1  ;;  %v3651_v2 = vmax.f32 %v10932_v33, %v10767_v26  ;;  %vm10959_vm1 = vmand %vm4724_vm4, %vm10926_vm6  ;;  %v10984_v47 = vpop.permute.xlu0 %4517 }
 0x46b   : > { %v2563_v41 = vsel %vm2531_vm15, %v2371_v3, %v10885_v49  ;;  %v13378_v54 = vrot.slane %v10103_v46, 1  ;;  %v2123_v34 = vadd.f32 %v10650_v23, %v2034_v30  ;;  %vm4756_vm9 = vcmp.ne.s32.totalorder %v4691_v59, %v6417_v12  ;;  %v13382_v46 = vld [vmem:[#allocation81_spill] sm:$0xff]  ;;  %v10974_v3 = vpop.f32.mrf.mxu0  ;;  %v10976_v1 = vpop.permute.xlu1 %4277  ;;  %13387 = vst [vmem:[#allocation9_spill] sm:$0xff] %v10984_v47 }
 0x46c   : > { %v3013_v42 = vsel %vm12823_vm10, %v2978_v18, %v2979_v7  ;;  %v2595_v14 = vrot.slane %v2563_v41, 6  ;;  %vm3300_vm15 = vcmp.eq.s32.totalorder %v13382_v46, 1  ;;  %v10965_v49 = vsel %vm3811_vm5, %v3651_v2, %v10932_v33  ;;  %vm4824_vm6 = vmor %vm4756_vm9, %vm10959_vm1  ;;  %v2036_v46 = vpop.f32.mrf.mxu3 }
 0x46d   : > { %v4690_v37 = vsel %vm13379_vm2, %v4629_v45, %v13378_v54  ;;  %v3140_v43 = vmax.f32 %v2947_v16, %v3013_v42  ;;  %v2209_v32 = vrot.slane %v2123_v34, 7  ;;  %v3907_v18 = vmax.f32 %v10965_v49, %v10617_v21  ;;  %v13383_v45 = vld [vmem:[#allocation26_spill] sm:$0xff] }
 0x46e   : > { %v2627_v23 = vsel %vm12825_vm0, %v2594_v15, %v2595_v14  ;;  %vm4757_vm13 = vcmp.ne.s32.totalorder %v4690_v37, %v10243_v38  ;;  %vm2532_vm12 = vcmp.eq.s32.totalorder %v13383_v45, 1  ;;  %vm4067_vm4 = vcmp.eq.s32.totalorder %v13384_v25, 1  ;;  %v13385_v15 = vld [vmem:[#allocation20_spill] sm:$0xff]  ;;  %v13388_v54 = vld [vmem:[#allocation106_spill] sm:$0xff]  ;;  %v11004_v37 = vpop.permute.xlu2 %4271  ;;  %v13391_v45 = vld [vmem:[#allocation71_spill] sm:$0xff] }
 0x46f   : > { %v3332_v39 = vsel %vm3300_vm15, %v3140_v43, %v2947_v16  ;;  %v2756_v8 = vmax.f32 %v2563_v41, %v2627_v23  ;;  %vm2916_vm5 = vcmp.eq.s32.totalorder %v13385_v15, 1  ;;  %vm13386_vm2 = vcmp.lt.s32.totalorder %v7251_v24, 1 }
 0x470   : > { %v3396_v30 = vmax.f32 %v3332_v39, %v3331_v4  ;;  %v2241_v21 = vsel %vm13386_vm2, %v2208_v22, %v2209_v32  ;;  %v10987_v2 = vsel %vm4067_vm4, %v3907_v18, %v10965_v49  ;;  %vm3556_vm15 = vcmp.eq.s32.totalorder %v13388_v54, 1 }
 0x471   : > { %v2948_v16 = vsel %vm2916_vm5, %v2756_v8, %v2563_v41  ;;  %v2372_v42 = vmax.f32 %v2123_v34, %v2241_v21  ;;  %v4857_v12 = vsel %vm4757_vm13, 1, %v12881_v11  ;;  %v2037_v26 = vadd.f32 %v10678_v62, %v2036_v46  ;;  %v13389_v41 = vld [vmem:[#allocation134_spill] sm:$0xff]  ;;  %v13390_v8 = vld [vmem:[#allocation7_spill] sm:$0xff] }
 0x472   : > { %v10993_v59 = vsel %vm3556_vm15, %v3396_v30, %v3332_v39  ;;  %v2980_v4 = vrot.slane %v2948_v16, 4  ;;  %v4856_v22 = vsel %vm4824_vm6, 1, %v12881_v11  ;;  %vm3812_vm9 = vcmp.eq.s32.totalorder %v13389_v41, 1  ;;  %4892 = vperm.xlu2 %6315, %v4857_v12   ;;  %v13392_v30 = vld [vmem:[#allocation175_spill] sm:$0xff]  ;;  %vm13393_vm6 = vmmov %vm13386_vm2  ;;  %v11020_v12 = vpop.permute.xlu0 %4925 }
 0x473   : > { %v3652_v43 = vmax.f32 %v10993_v59, %v10859_v17  ;;  %v2564_v23 = vsel %vm2532_vm12, %v2372_v42, %v2123_v34  ;;  %v2126_v25 = vadd.f32 %v10774_v0, %v2037_v26  ;;  %vm2917_vm1 = vcmp.eq.s32.totalorder %v13390_v8, 1  ;;  %4889 = vperm.xlu1 %6316, %v4856_v22   ;;  %v4956_v54 = vpop.permute.xlu1 %4955  ;;  %v13394_v26 = vld [vmem:[#allocation114_spill] sm:$0xff] }
 0x474   : > { %v3012_v18 = vsel %vm12823_vm10, %v2979_v7, %v2980_v4  ;;  %v2596_v38 = vrot.slane %v2564_v23, 6  ;;  %vm3301_vm13 = vcmp.eq.s32.totalorder %v13391_v45, 1  ;;  %vm4068_vm12 = vcmp.eq.s32.totalorder %v13392_v30, 1 }
 0x475   : > { %v3141_v11 = vmax.f32 %v2948_v16, %v3012_v18  ;;  %v11009_v17 = vsel %vm3812_vm9, %v3652_v43, %v10993_v59  ;;  %v2210_v15 = vrot.slane %v2126_v25, 7  ;;  %vm5007_vm4 = vcmp.eq.s32.totalorder %v10837_v52, 1 }
 0x476   : > { %v2626_v34 = vsel %vm12825_vm0, %v2595_v14, %v2596_v38  ;;  %v3908_v7 = vmax.f32 %v11009_v17, %v10712_v35  ;;  %vm5006_vm5 = vcmp.eq.s32.totalorder %v4956_v54, 1  ;;  %vm3557_vm2 = vcmp.eq.s32.totalorder %v13394_v26, 1  ;;  %v11026_v35 = vpop.f32.mrf.mxu0  ;;  %v13400_v54 = vld [vmem:[#allocation76_spill] sm:$0xff]  ;;  %v13401_v26 = vld [vmem:[#allocation61_spill] sm:$0xff] }
 0x477   : > { %v3333_v0 = vsel %vm3301_vm13, %v3141_v11, %v2948_v16  ;;  %v2757_v21 = vmax.f32 %v2564_v23, %v2626_v34  ;;  %v2240_v46 = vsel %vm13393_vm6, %v2209_v32, %v2210_v15  ;;  %vm11030_vm15 = vmpackc.low %vm5007_vm4, %vm5006_vm5  ;;  %v13395_v22 = vmov 0  ;;  %v13398_v32 = vld [vmem:[#allocation46_spill] sm:$0xff]  ;;  %v13399_v34 = vld [vmem:[#allocation139_spill] sm:$0xff] }
 0x478   : > { %v3397_v42 = vmax.f32 %v3333_v0, %v3332_v39  ;;  %v11023_v14 = vsel %vm4068_vm12, %v3908_v7, %v11009_v17  ;;  %v2373_v16 = vmax.f32 %v2126_v25, %v2240_v46  ;;  %v13396_v22 = vsel %vm11030_vm15, 4294967295, %v13395_v22  ;;  %v2038_v39 = vpop.f32.mrf.mxu3  ;;  %v4950_v46 = vpop.permute.xlu2 %4949 }
 0x479   : > { %v2949_v52 = vsel %vm2917_vm1, %v2757_v21, %v2564_v23  ;;  %13397 = vst [vmem:[#allocation75_spill] sm:$0xff] %v13396_v22  ;;  %vm2533_vm9 = vcmp.eq.s32.totalorder %v13398_v32, 1  ;;  %v2039_v18 = vadd.f32 %v10678_v62, %v2038_v39  ;;  %vm3813_vm13 = vcmp.eq.s32.totalorder %v13399_v34, 1  ;;  %v13403_v39 = vld [vmem:[#allocation104_spill] sm:$0xff]  ;;  %v13417_v22 = vld [vmem:[#allocation35_spill] sm:$0xff] }
 0x47a   : > { %v11035_v43 = vsel %vm3557_vm2, %v3397_v42, %v3333_v0  ;;  %v2981_v41 = vrot.slane %v2949_v52, 4  ;;  %v2565_v45 = vsel %vm2533_vm9, %v2373_v16, %v2126_v25  ;;  %vm3302_vm1 = vcmp.eq.s32.totalorder %v13400_v54, 1  ;;  %v13406_v54 = vld [vmem:[#allocation43_spill] sm:$0xff] }
 0x47b   : > { %v3653_v11 = vmax.f32 %v11035_v43, %v10932_v33  ;;  %v2597_v8 = vrot.slane %v2565_v45, 6  ;;  %v2128_v7 = vadd.f32 %v10889_v19, %v2039_v18  ;;  %vm2918_vm12 = vcmp.eq.s32.totalorder %v13401_v26, 1 }
 0x47c   : > { %v3011_v23 = vsel %vm12823_vm10, %v2980_v4, %v2981_v41  ;;  %v13402_v4 = vld [vmem:[#allocation165_spill] sm:$0xff]  ;;  %vm3558_vm6 = vcmp.eq.s32.totalorder %v13403_v39, 1  ;;  %vm13404_vm5 = vcmp.lt.s32.totalorder %v7251_v24, 1  ;;  %vm5004_vm2 = vcmp.eq.s32.totalorder %v4950_v46, 1  ;;  %v13410_v46 = vld [vmem:[#allocation147_spill] sm:$0xff] }
 0x47d   : > { %v11045_v30 = vsel %vm3813_vm13, %v3653_v11, %v11035_v43  ;;  %v3142_v21 = vmax.f32 %v2949_v52, %v3011_v23  ;;  %v2625_v42 = vsel %vm12825_vm0, %v2596_v38, %v2597_v8  ;;  %v2211_v33 = vrot.slane %v2128_v7, 7  ;;  %v4953_v11 = vpop.permute.xlu0 %4952 }
 0x47e   : > { %v3909_v25 = vmax.f32 %v11045_v30, %v10800_v57  ;;  %vm4069_vm4 = vcmp.eq.s32.totalorder %v13402_v4, 1  ;;  %v2758_v19 = vmax.f32 %v2565_v45, %v2625_v42  ;;  %vm5005_vm9 = vcmp.eq.s32.totalorder %v4953_v11, 1  ;;  %v13411_v11 = vld [vmem:[#allocation84_spill] sm:$0xff] }
 0x47f   : > { %v3334_v16 = vsel %vm3302_vm1, %v3142_v21, %v2949_v52  ;;  %v2239_v18 = vsel %vm13404_vm5, %v2210_v15, %v2211_v33  ;;  %vm2534_vm13 = vcmp.eq.s32.totalorder %v13406_v54, 1  ;;  %vm11063_vm1 = vmpackc.low %vm5005_vm9, %vm5004_vm2  ;;  %v13407_v21 = vmov 0 }
 0x480   : > { %v3398_v32 = vmax.f32 %v3334_v16, %v3333_v0  ;;  %v11058_v38 = vsel %vm4069_vm4, %v3909_v25, %v11045_v30  ;;  %v2950_v34 = vsel %vm2918_vm12, %v2758_v19, %v2565_v45  ;;  %v2374_v23 = vmax.f32 %v2128_v7, %v2239_v18  ;;  %v2041_v57 = vpop.f32.mrf.mxu3  ;;  %v11068_v0 = vpop.f32.mrf.mxu0 }
 0x481   : > { %13405 = vst [vmem:[#allocation56_spill] sm:$0xff] %v11058_v38  ;;  %v2982_v52 = vrot.slane %v2950_v34, 4  ;;  %v13408_v21 = vsel %vm11063_vm1, 4294967295, %v13407_v21  ;;  %v2042_v15 = vadd.f32 %v10678_v62, %v2041_v57  ;;  %vm3814_vm12 = vcmp.eq.s32.totalorder %v13410_v46, 1  ;;  %v11079_v18 = vpop.permute.xlu1 %4493  ;;  %v13412_v57 = vld [vmem:[#allocation170_spill] sm:$0xff] }
 0x482   : > { %v11061_v26 = vsel %vm3558_vm6, %v3398_v32, %v3334_v16  ;;  %13409 = vst [vmem:[#allocation95_spill] sm:$0xff] %v13408_v21  ;;  %v2566_v42 = vsel %vm2534_vm13, %v2374_v23, %v2128_v7  ;;  %vm3303_vm4 = vcmp.eq.s32.totalorder %v13411_v11, 1  ;;  %vm4070_vm6 = vcmp.eq.s32.totalorder %v13412_v57, 1 }
 0x483   : > { %v3654_v45 = vmax.f32 %v11061_v26, %v10993_v59  ;;  %v3010_v25 = vsel %vm12823_vm10, %v2981_v41, %v2982_v52  ;;  %v2598_v4 = vrot.slane %v2566_v42, 6  ;;  %v2131_v19 = vadd.f32 %v10974_v3, %v2042_v15  ;;  %v13413_v3 = vld [vmem:[#allocation51_spill] sm:$0xff] }
 0x484   : > { %v3143_v32 = vmax.f32 %v2950_v34, %v3010_v25  ;;  %vm2919_vm5 = vcmp.eq.s32.totalorder %v13413_v3, 1  ;;  %vm13414_vm2 = vcmp.lt.s32.totalorder %v7251_v24, 1  ;;  %v13416_v25 = vld [vmem:[#allocation109_spill] sm:$0xff]  ;;  %vm2535_vm13 = vcmp.eq.s32.totalorder %v13417_v22, 1 }
 0x485   : > { %v11077_v39 = vsel %vm3814_vm12, %v3654_v45, %v11061_v26  ;;  %v2624_v59 = vsel %vm12825_vm0, %v2597_v8, %v2598_v4  ;;  %v2212_v7 = vrot.slane %v2131_v19, 7  ;;  %vm3559_vm9 = vcmp.eq.s32.totalorder %v13416_v25, 1 }
 0x486   : > { %v3910_v23 = vmax.f32 %v11077_v39, %v10896_v6  ;;  %v3335_v41 = vsel %vm3303_vm4, %v3143_v32, %v2950_v34  ;;  %v2759_v54 = vmax.f32 %v2566_v42, %v2624_v59 }
 0x487   : > { %v3399_v15 = vmax.f32 %v3335_v41, %v3334_v16  ;;  %v2238_v45 = vsel %vm13414_vm2, %v2211_v33, %v2212_v7  ;;  %v13418_v33 = vld [vmem:[#allocation137_spill] sm:$0xff] }
 0x488   : > { %v11091_v46 = vsel %vm4070_vm6, %v3910_v23, %v11077_v39  ;;  %v2951_v8 = vsel %vm2919_vm5, %v2759_v54, %v2566_v42  ;;  %v2375_v11 = vmax.f32 %v2131_v19, %v2238_v45  ;;  %v2043_v21 = vpop.f32.mrf.mxu3  ;;  %vm3815_vm12 = vcmp.eq.s32.totalorder %v13418_v33, 1  ;;  %v2137_v54 = vpop.f32.mrf.mxu0  ;;  %v13420_v45 = vld [vmem:[#allocation44_spill] sm:$0xff] }
 0x489   : > { %13415 = vst [vmem:[#allocation15_spill] sm:$0xff] %v11091_v46  ;;  %v2983_v6 = vrot.slane %v2951_v8, 4  ;;  %v11095_v57 = vsel %vm3559_vm9, %v3399_v15, %v3335_v41  ;;  %v2044_v34 = vadd.f32 %v10678_v62, %v2043_v21  ;;  %v13419_v15 = vld [vmem:[#allocation74_spill] sm:$0xff]  ;;  %vm2536_vm6 = vcmp.eq.s32.totalorder %v13420_v45, 1 }
 0x48a   : > { %v2567_v32 = vsel %vm2535_vm13, %v2375_v11, %v2131_v19  ;;  %v3655_v16 = vmax.f32 %v11095_v57, %v11035_v43  ;;  %vm3304_vm4 = vcmp.eq.s32.totalorder %v13419_v15, 1  ;;  %v4269_v11 = vpop.permute.xlu1 %4268  ;;  %vm13423_vm9 = vcmp.lt.s32.totalorder %v7251_v24, 1 }
 0x48b   : > { %v3009_v59 = vsel %vm12823_vm10, %v2982_v52, %v2983_v6  ;;  %v2599_v23 = vrot.slane %v2567_v32, 6  ;;  %v2133_v42 = vadd.f32 %v11026_v35, %v2044_v34  ;;  %v13421_v52 = vld [vmem:[#allocation178_spill] sm:$0xff]  ;;  %v13422_v34 = vld [vmem:[#allocation13_spill] sm:$0xff] }
 0x48c   : > { %v3144_v3 = vmax.f32 %v2951_v8, %v3009_v59  ;;  %v11105_v22 = vsel %vm3815_vm12, %v3655_v16, %v11095_v57  ;;  %vm4071_vm5 = vcmp.eq.s32.totalorder %v13421_v52, 1  ;;  %vm2920_vm2 = vcmp.eq.s32.totalorder %v13422_v34, 1  ;;  %v13424_v59 = vld [vmem:[#allocation117_spill] sm:$0xff] }
 0x48d   : > { %v2623_v21 = vsel %vm12825_vm0, %v2598_v4, %v2599_v23  ;;  %v3911_v43 = vmax.f32 %v11105_v22, %v10965_v49  ;;  %v2213_v19 = vrot.slane %v2133_v42, 7  ;;  %vm3560_vm13 = vcmp.eq.s32.totalorder %v13424_v59, 1 }
 0x48e   : > { %v3336_v25 = vsel %vm3304_vm4, %v3144_v3, %v2951_v8  ;;  %v2760_v35 = vmax.f32 %v2567_v32, %v2623_v21  ;;  %vm4327_vm12 = vcmp.eq.s32.totalorder %v4269_v11, 1 }
 0x48f   : > { %v3400_v16 = vmax.f32 %v3336_v25, %v3335_v41  ;;  %v11116_v33 = vsel %vm4071_vm5, %v3911_v43, %v11105_v22  ;;  %v2237_v4 = vsel %vm13423_vm9, %v2212_v7, %v2213_v19 }
 0x490   : > { %v2952_v49 = vsel %vm2920_vm2, %v2760_v35, %v2567_v32  ;;  %v4167_v15 = vmax.f32 %v11116_v33, %v10700_v10  ;;  %v2376_v47 = vmax.f32 %v2133_v42, %v2237_v4  ;;  %v2046_v52 = vpop.f32.mrf.mxu3  ;;  %v13426_v32 = vld [vmem:[#allocation142_spill] sm:$0xff]  ;;  %v2140_v11 = vpop.f32.mrf.mxu0 }
 0x491   : > { %v11123_v8 = vsel %vm3560_vm13, %v3400_v16, %v3336_v25  ;;  %v2984_v3 = vrot.slane %v2952_v49, 4  ;;  %v2047_v41 = vadd.f32 %v10678_v62, %v2046_v52  ;;  %vm3816_vm4 = vcmp.eq.s32.totalorder %v13426_v32, 1 }
 0x492   : > { %v3656_v21 = vmax.f32 %v11123_v8, %v11061_v26  ;;  %v11129_v43 = vsel %vm4327_vm12, %v4167_v15, %v11116_v33  ;;  %v2568_v7 = vsel %vm2536_vm6, %v2376_v47, %v2133_v42  ;;  %v13427_v26 = vld [vmem:[#allocation79_spill] sm:$0xff]  ;;  %v13428_v42 = vld [vmem:[#allocation18_spill] sm:$0xff]  ;;  %vm13431_vm13 = vcmp.lt.s32.totalorder %v7251_v24, 1 }
 0x493   : > { %13425 = vst [vmem:[#allocation100_spill] sm:$0xff] %v11129_v43  ;;  %v3008_v35 = vsel %vm12823_vm10, %v2983_v6, %v2984_v3  ;;  %v2600_v34 = vrot.slane %v2568_v7, 6  ;;  %v2136_v16 = vadd.f32 %v11068_v0, %v2047_v41  ;;  %vm3305_vm5 = vcmp.eq.s32.totalorder %v13427_v26, 1  ;;  %v13429_v6 = vld [vmem:[#allocation168_spill] sm:$0xff]  ;;  %v13430_v41 = vld [vmem:[#allocation63_spill] sm:$0xff] }
 0x494   : > { %v11138_v4 = vsel %vm3816_vm4, %v3656_v21, %v11123_v8  ;;  %v3145_v59 = vmax.f32 %v2952_v49, %v3008_v35  ;;  %vm2537_vm6 = vcmp.eq.s32.totalorder %v13428_v42, 1  ;;  %vm4072_vm2 = vcmp.eq.s32.totalorder %v13429_v6, 1  ;;  %v13437_v42 = vld [vmem:[#allocation173_spill] sm:$0xff] }
 0x495   : > { %v2622_v15 = vsel %vm12825_vm0, %v2599_v23, %v2600_v34  ;;  %v2214_v45 = vrot.slane %v2136_v16, 7  ;;  %v3912_v47 = vmax.f32 %v11138_v4, %v11009_v17  ;;  %vm2921_vm9 = vcmp.eq.s32.totalorder %v13430_v41, 1  ;;  %v13432_v23 = vld [vmem:[#allocation107_spill] sm:$0xff] }
 0x496   : > { %v3337_v52 = vsel %vm3305_vm5, %v3145_v59, %v2952_v49  ;;  %v2761_v0 = vmax.f32 %v2568_v7, %v2622_v15  ;;  %vm3561_vm12 = vcmp.eq.s32.totalorder %v13432_v23, 1  ;;  %vm4328_vm4 = vcmp.eq.s32.totalorder %v11004_v37, 1 }
 0x497   : > { %v3401_v21 = vmax.f32 %v3337_v52, %v3336_v25  ;;  %v2236_v32 = vsel %vm13431_vm13, %v2213_v19, %v2214_v45  ;;  %v11151_v35 = vsel %vm4072_vm2, %v3912_v47, %v11138_v4  ;;  %v13434_v47 = vld [vmem:[#allocation150_spill] sm:$0xff] }
 0x498   : > { %v2953_v26 = vsel %vm2921_vm9, %v2761_v0, %v2568_v7  ;;  %v2377_v43 = vmax.f32 %v2136_v16, %v2236_v32  ;;  %v2048_v17 = vpop.f32.mrf.mxu3  ;;  %v4168_v48 = vmax.f32 %v11151_v35, %v10805_v44  ;;  %vm3817_vm5 = vcmp.eq.s32.totalorder %v13434_v47, 1  ;;  %v13435_v32 = vld [vmem:[#allocation87_spill] sm:$0xff] }
 0x499   : > { %v11157_v49 = vsel %vm3561_vm12, %v3401_v21, %v3337_v52  ;;  %v2985_v59 = vrot.slane %v2953_v26, 4  ;;  %v2049_v25 = vadd.f32 %v10678_v62, %v2048_v17  ;;  %vm3306_vm2 = vcmp.eq.s32.totalorder %v13435_v32, 1  ;;  %v13438_v17 = vld [vmem:[#allocation25_spill] sm:$0xff] }
 0x49a   : > { %v3657_v19 = vmax.f32 %v11157_v49, %v11095_v57  ;;  %v2569_v15 = vsel %vm2537_vm6, %v2377_v43, %v2136_v16  ;;  %v11165_v7 = vsel %vm4328_vm4, %v4168_v48, %v11151_v35  ;;  %v13436_v16 = vld [vmem:[#allocation28_spill] sm:$0xff]  ;;  %vm4073_vm9 = vcmp.eq.s32.totalorder %v13437_v42, 1 }
 0x49b   : > { %13433 = vst [vmem:[#allocation138_spill] sm:$0xff] %v11165_v7  ;;  %v3007_v6 = vsel %vm12823_vm10, %v2984_v3, %v2985_v59  ;;  %v2601_v37 = vrot.slane %v2569_v15, 6  ;;  %v2138_v0 = vadd.f32 %v2137_v54, %v2049_v25  ;;  %vm2538_vm6 = vcmp.eq.s32.totalorder %v13436_v16, 1  ;;  %v2142_v3 = vpop.f32.mrf.mxu0 }
 0x49c   : > { %v3146_v41 = vmax.f32 %v2953_v26, %v3007_v6  ;;  %v11171_v21 = vsel %vm3817_vm5, %v3657_v19, %v11157_v49  ;;  %vm2922_vm13 = vcmp.eq.s32.totalorder %v13438_v17, 1  ;;  %vm13439_vm12 = vcmp.lt.s32.totalorder %v7251_v24, 1 }
 0x49d   : > { %v2621_v57 = vsel %vm12825_vm0, %v2600_v34, %v2601_v37  ;;  %v2215_v43 = vrot.slane %v2138_v0, 7  ;;  %v3913_v48 = vmax.f32 %v11171_v21, %v11045_v30  ;;  %v13440_v34 = vld [vmem:[#allocation112_spill] sm:$0xff]  ;;  %vm4329_vm5 = vcmp.eq.s32.totalorder %v10748_v60, 1 }
 0x49e   : > { %v3338_v23 = vsel %vm3306_vm2, %v3146_v41, %v2953_v26  ;;  %v2762_v54 = vmax.f32 %v2569_v15, %v2621_v57  ;;  %vm3562_vm4 = vcmp.eq.s32.totalorder %v13440_v34, 1  ;;  %v13443_v34 = vld [vmem:[#allocation77_spill] sm:$0xff] }
 0x49f   : > { %v3402_v25 = vmax.f32 %v3338_v23, %v3337_v52  ;;  %v2235_v19 = vsel %vm13439_vm12, %v2214_v45, %v2215_v43  ;;  %v11184_v47 = vsel %vm4073_vm9, %v3913_v48, %v11171_v21  ;;  %v13442_v48 = vld [vmem:[#allocation140_spill] sm:$0xff]  ;;  %vm3307_vm9 = vcmp.eq.s32.totalorder %v13443_v34, 1 }
 0x4a0   : > { %v2954_v6 = vsel %vm2922_vm13, %v2762_v54, %v2569_v15  ;;  %v2378_v30 = vmax.f32 %v2138_v0, %v2235_v19  ;;  %v2051_v32 = vpop.f32.mrf.mxu3  ;;  %v4169_v42 = vmax.f32 %v11184_v47, %v10842_v9  ;;  %vm3818_vm2 = vcmp.eq.s32.totalorder %v13442_v48, 1 }
 0x4a1   : > { %v11190_v26 = vsel %vm3562_vm4, %v3402_v25, %v3338_v23  ;;  %v2986_v41 = vrot.slane %v2954_v6, 4  ;;  %v2052_v52 = vadd.f32 %v10678_v62, %v2051_v32  ;;  %v13445_v32 = vld [vmem:[#allocation181_spill] sm:$0xff]  ;;  %vm13447_vm4 = vcmp.lt.s32.totalorder %v7251_v24, 1 }
 0x4a2   : > { %v3658_v45 = vmax.f32 %v11190_v26, %v11123_v8  ;;  %v2570_v57 = vsel %vm2538_vm6, %v2378_v30, %v2138_v0  ;;  %v11198_v15 = vsel %vm4329_vm5, %v4169_v42, %v11184_v47  ;;  %v13444_v30 = vld [vmem:[#allocation21_spill] sm:$0xff]  ;;  %vm4074_vm13 = vcmp.eq.s32.totalorder %v13445_v32, 1 }
 0x4a3   : > { %13441 = vst [vmem:[#allocation57_spill] sm:$0xff] %v11198_v15  ;;  %v3006_v54 = vsel %vm12823_vm10, %v2985_v59, %v2986_v41  ;;  %v2602_v60 = vrot.slane %v2570_v57, 6  ;;  %v2141_v17 = vadd.f32 %v2140_v11, %v2052_v52  ;;  %vm2539_vm6 = vcmp.eq.s32.totalorder %v13444_v30, 1  ;;  %v13446_v11 = vld [vmem:[#allocation60_spill] sm:$0xff] }
 0x4a4   : > { %v11204_v25 = vsel %vm3818_vm2, %v3658_v45, %v11190_v26  ;;  %v3147_v19 = vmax.f32 %v2954_v6, %v3006_v54  ;;  %vm2923_vm12 = vcmp.eq.s32.totalorder %v13446_v11, 1  ;;  %v2145_v54 = vpop.f32.mrf.mxu0  ;;  %vm4330_vm2 = vcmp.eq.s32.totalorder %v10976_v1, 1 }
 0x4a5   : > { %v3914_v8 = vmax.f32 %v11204_v25, %v11077_v39  ;;  %v2620_v0 = vsel %vm12825_vm0, %v2601_v37, %v2602_v60  ;;  %v2216_v16 = vrot.slane %v2141_v17, 7  ;;  %v13448_v39 = vld [vmem:[#allocation120_spill] sm:$0xff] }
 0x4a6   : > { %v3339_v59 = vsel %vm3307_vm9, %v3147_v19, %v2954_v6  ;;  %v2763_v42 = vmax.f32 %v2570_v57, %v2620_v0  ;;  %vm3563_vm5 = vcmp.eq.s32.totalorder %v13448_v39, 1  ;;  %v13451_v39 = vld [vmem:[#allocation82_spill] sm:$0xff] }
 0x4a7   : > { %v3403_v52 = vmax.f32 %v3339_v59, %v3338_v23  ;;  %v2234_v45 = vsel %vm13447_vm4, %v2215_v43, %v2216_v16  ;;  %v11217_v48 = vsel %vm4074_vm13, %v3914_v8, %v11204_v25  ;;  %v11226_v43 = vpop.permute.xlu1 %4928  ;;  %vm3308_vm13 = vcmp.eq.s32.totalorder %v13451_v39, 1 }
 0x4a8   : > { %v2955_v37 = vsel %vm2923_vm12, %v2763_v42, %v2570_v57  ;;  %v2379_v34 = vmax.f32 %v2141_v17, %v2234_v45  ;;  %v2053_v7 = vpop.f32.mrf.mxu3  ;;  %v4170_v32 = vmax.f32 %v11217_v48, %v10940_v29  ;;  %v13450_v42 = vld [vmem:[#allocation145_spill] sm:$0xff] }
 0x4a9   : > { %v11223_v6 = vsel %vm3563_vm5, %v3403_v52, %v3339_v59  ;;  %v2987_v23 = vrot.slane %v2955_v37, 4  ;;  %v2054_v19 = vadd.f32 %v10678_v62, %v2053_v7  ;;  %vm3819_vm9 = vcmp.eq.s32.totalorder %v13450_v42, 1 }
 0x4aa   : > { %v3659_v8 = vmax.f32 %v11223_v6, %v11157_v49  ;;  %v2571_v57 = vsel %vm2539_vm6, %v2379_v34, %v2141_v17  ;;  %v11233_v0 = vsel %vm4330_vm2, %v4170_v32, %v11217_v48  ;;  %v13452_v34 = vld [vmem:[#allocation47_spill] sm:$0xff]  ;;  %vm13455_vm5 = vcmp.lt.s32.totalorder %v7251_v24, 1 }
 0x4ab   : > { %13449 = vst [vmem:[#allocation19_spill] sm:$0xff] %v11233_v0  ;;  %v3005_v1 = vsel %vm12823_vm10, %v2986_v41, %v2987_v23  ;;  %v2603_v11 = vrot.slane %v2571_v57, 6  ;;  %v2143_v52 = vadd.f32 %v2142_v3, %v2054_v19  ;;  %vm2540_vm6 = vcmp.eq.s32.totalorder %v13452_v34, 1  ;;  %v13453_v32 = vld [vmem:[#allocation171_spill] sm:$0xff]  ;;  %v13454_v3 = vld [vmem:[#allocation62_spill] sm:$0xff] }
 0x4ac   : > { %v11239_v7 = vsel %vm3819_vm9, %v3659_v8, %v11223_v6  ;;  %v3148_v45 = vmax.f32 %v2955_v37, %v3005_v1  ;;  %vm4075_vm12 = vcmp.eq.s32.totalorder %v13453_v32, 1  ;;  %vm2924_vm4 = vcmp.eq.s32.totalorder %v13454_v3, 1  ;;  %v13458_v32 = vld [vmem:[#allocation153_spill] sm:$0xff] }
 0x4ad   : > { %v3915_v49 = vmax.f32 %v11239_v7, %v11105_v22  ;;  %v2619_v17 = vsel %vm12825_vm0, %v2602_v60, %v2603_v11  ;;  %v2217_v30 = vrot.slane %v2143_v52, 7  ;;  %v13456_v22 = vld [vmem:[#allocation110_spill] sm:$0xff]  ;;  %vm4331_vm9 = vcmp.eq.s32.totalorder %v10735_v28, 1 }
 0x4ae   : > { %v3340_v41 = vsel %vm3308_vm13, %v3148_v45, %v2955_v37  ;;  %v2764_v42 = vmax.f32 %v2571_v57, %v2619_v17  ;;  %vm3564_vm2 = vcmp.eq.s32.totalorder %v13456_v22, 1  ;;  %v2147_v17 = vpop.f32.mrf.mxu0  ;;  %vm3820_vm13 = vcmp.eq.s32.totalorder %v13458_v32, 1  ;;  %v13460_v22 = vld [vmem:[#allocation5_spill] sm:$0xff] }
 0x4af   : > { %v3404_v19 = vmax.f32 %v3340_v41, %v3339_v59  ;;  %v2233_v8 = vsel %vm13455_vm5, %v2216_v16, %v2217_v30  ;;  %v11252_v1 = vsel %vm4075_vm12, %v3915_v49, %v11239_v7 }
 0x4b0   : > { %v2956_v39 = vsel %vm2924_vm4, %v2764_v42, %v2571_v57  ;;  %v2380_v60 = vmax.f32 %v2143_v52, %v2233_v8  ;;  %v2056_v0 = vpop.f32.mrf.mxu3  ;;  %v4171_v15 = vmax.f32 %v11252_v1, %v10987_v2 }
 0x4b1   : > { %v11258_v37 = vsel %vm3564_vm2, %v3404_v19, %v3340_v41  ;;  %v2988_v45 = vrot.slane %v2956_v39, 4  ;;  %v2057_v59 = vadd.f32 %v10678_v62, %v2056_v0  ;;  %v11271_v19 = vpop.permute.xlu1 %4484  ;;  %vm13463_vm2 = vcmp.lt.s32.totalorder %v7251_v24, 1 }
 0x4b2   : > { %v3660_v16 = vmax.f32 %v11258_v37, %v11190_v26  ;;  %v2572_v49 = vsel %vm2540_vm6, %v2380_v60, %v2143_v52  ;;  %v11266_v57 = vsel %vm4331_vm9, %v4171_v15, %v11252_v1  ;;  %v13459_v26 = vld [vmem:[#allocation90_spill] sm:$0xff]  ;;  %vm2541_vm6 = vcmp.eq.s32.totalorder %v13460_v22, 1  ;;  %v13469_v22 = vld [vmem:[#allocation29_spill] sm:$0xff] }
 0x4b3   : > { %13457 = vst [vmem:[#allocation128_spill] sm:$0xff] %v11266_v57  ;;  %v3004_v28 = vsel %vm12823_vm10, %v2987_v23, %v2988_v45  ;;  %v2604_v42 = vrot.slane %v2572_v49, 6  ;;  %v2146_v3 = vadd.f32 %v2145_v54, %v2057_v59  ;;  %vm3309_vm12 = vcmp.eq.s32.totalorder %v13459_v26, 1  ;;  %v13461_v23 = vld [vmem:[#allocation176_spill] sm:$0xff]  ;;  %v11283_v54 = vpop.permute.xlu2 %4487  ;;  %v13464_v26 = vld [vmem:[#allocation115_spill] sm:$0xff] }
 0x4b4   : > { %v11274_v0 = vsel %vm3820_vm13, %v3660_v16, %v11258_v37  ;;  %v3149_v8 = vmax.f32 %v2956_v39, %v3004_v28  ;;  %vm4076_vm4 = vcmp.eq.s32.totalorder %v13461_v23, 1  ;;  %v13462_v16 = vld [vmem:[#allocation59_spill] sm:$0xff]  ;;  %vm3565_vm9 = vcmp.eq.s32.totalorder %v13464_v26, 1 }
 0x4b5   : > { %v3916_v52 = vmax.f32 %v11274_v0, %v11138_v4  ;;  %v2618_v15 = vsel %vm12825_vm0, %v2603_v11, %v2604_v42  ;;  %v2218_v34 = vrot.slane %v2146_v3, 7  ;;  %vm2925_vm5 = vcmp.eq.s32.totalorder %v13462_v16, 1  ;;  %v11292_v11 = vpop.permute.xlu0 %4508 }
 0x4b6   : > { %v3341_v60 = vsel %vm3309_vm12, %v3149_v8, %v2956_v39  ;;  %v2765_v59 = vmax.f32 %v2572_v49, %v2618_v15  ;;  %13465 = vst [vmem:[#allocation66_spill] sm:$0xff] %v11292_v11  ;;  %vm4332_vm13 = vcmp.eq.s32.totalorder %v10454_v58, 1  ;;  %v13468_v11 = vld [vmem:[#allocation80_spill] sm:$0xff] }
 0x4b7   : > { %v3405_v32 = vmax.f32 %v3341_v60, %v3340_v41  ;;  %v2232_v28 = vsel %vm13463_vm2, %v2217_v30, %v2218_v34  ;;  %v11289_v4 = vsel %vm4076_vm4, %v3916_v52, %v11274_v0  ;;  %vm3310_vm4 = vcmp.eq.s32.totalorder %v13468_v11, 1 }
 0x4b8   : > { %v2957_v57 = vsel %vm2925_vm5, %v2765_v59, %v2572_v49  ;;  %v2381_v51 = vmax.f32 %v2146_v3, %v2232_v28  ;;  %v2058_v23 = vpop.f32.mrf.mxu3  ;;  %v4172_v39 = vmax.f32 %v11289_v4, %v11023_v14  ;;  %v13467_v59 = vld [vmem:[#allocation143_spill] sm:$0xff]  ;;  %v2150_v28 = vpop.f32.mrf.mxu0 }
 0x4b9   : > { %v11297_v8 = vsel %vm3565_vm9, %v3405_v32, %v3341_v60  ;;  %v2989_v41 = vrot.slane %v2957_v57, 4  ;;  %v2059_v30 = vadd.f32 %v10678_v62, %v2058_v23  ;;  %vm3821_vm12 = vcmp.eq.s32.totalorder %v13467_v59, 1 }
 0x4ba   : > { %v3661_v52 = vmax.f32 %v11297_v8, %v11223_v6  ;;  %v2573_v15 = vsel %vm2541_vm6, %v2381_v51, %v2146_v3  ;;  %v11305_v49 = vsel %vm4332_vm13, %v4172_v39, %v11289_v4  ;;  %vm2542_vm6 = vcmp.eq.s32.totalorder %v13469_v22, 1  ;;  %v13470_v39 = vld [vmem:[#allocation184_spill] sm:$0xff]  ;;  %v13480_v22 = vld [vmem:[#allocation33_spill] sm:$0xff] }
 0x4bb   : > { %13466 = vst [vmem:[#allocation70_spill] sm:$0xff] %v11305_v49  ;;  %v3003_v16 = vsel %vm12823_vm10, %v2988_v45, %v2989_v41  ;;  %v2605_v58 = vrot.slane %v2573_v15, 6  ;;  %v2148_v32 = vadd.f32 %v2147_v17, %v2059_v30  ;;  %vm4077_vm5 = vcmp.eq.s32.totalorder %v13470_v39, 1  ;;  %v11320_v45 = vpop.permute.xlu1 %4511 }
 0x4bc   : > { %v11311_v26 = vsel %vm3821_vm12, %v3661_v52, %v11297_v8  ;;  %v3150_v23 = vmax.f32 %v2957_v57, %v3003_v16  ;;  %13471 = vst [vmem:[#allocation108_spill] sm:$0xff] %v11320_v45  ;;  %v13472_v52 = vld [vmem:[#allocation14_spill] sm:$0xff]  ;;  %vm13473_vm9 = vcmp.lt.s32.totalorder %v7251_v24, 1  ;;  %v13475_v16 = vld [vmem:[#allocation123_spill] sm:$0xff]  ;;  %vm4333_vm12 = vcmp.eq.s32.totalorder %v10548_v36, 1 }
 0x4bd   : > { %v2617_v51 = vsel %vm12825_vm0, %v2604_v42, %v2605_v58  ;;  %v2219_v6 = vrot.slane %v2148_v32, 7  ;;  %v3917_v3 = vmax.f32 %v11311_v26, %v11171_v21  ;;  %vm2926_vm2 = vcmp.eq.s32.totalorder %v13472_v52, 1  ;;  %v11329_v21 = vpop.permute.xlu2 %4919  ;;  %v13478_v52 = vld [vmem:[#allocation148_spill] sm:$0xff] }
 0x4be   : > { %v3342_v17 = vsel %vm3310_vm4, %v3150_v23, %v2957_v57  ;;  %v2766_v30 = vmax.f32 %v2573_v15, %v2617_v51  ;;  %vm3566_vm13 = vcmp.eq.s32.totalorder %v13475_v16, 1  ;;  %13476 = vst [vmem:[#allocation98_spill] sm:$0xff] %v11329_v21  ;;  %v11337_v51 = vpop.permute.xlu0 %4922  ;;  %vm3822_vm4 = vcmp.eq.s32.totalorder %v13478_v52, 1 }
 0x4bf   : > { %v3406_v59 = vmax.f32 %v3342_v17, %v3341_v60  ;;  %v2231_v11 = vsel %vm13473_vm9, %v2218_v34, %v2219_v6  ;;  %v11326_v42 = vsel %vm4077_vm5, %v3917_v3, %v11311_v26 }
 0x4c0   : > { %13474 = vst [vmem:[#allocation6_spill] sm:$0xff] %v11326_v42  ;;  %v2958_v49 = vsel %vm2926_vm2, %v2766_v30, %v2573_v15  ;;  %v2382_v13 = vmax.f32 %v2148_v32, %v2231_v11  ;;  %v2061_v39 = vpop.f32.mrf.mxu3  ;;  %v4173_v57 = vmax.f32 %v11326_v42, %v11058_v38 }
 0x4c1   : > { %v11334_v23 = vsel %vm3566_vm13, %v3406_v59, %v3342_v17  ;;  %v2990_v60 = vrot.slane %v2958_v49, 4  ;;  %v2062_v34 = vadd.f32 %v10678_v62, %v2061_v39  ;;  %v13479_v39 = vld [vmem:[#allocation85_spill] sm:$0xff]  ;;  %vm13483_vm13 = vcmp.lt.s32.totalorder %v7251_v24, 1 }
 0x4c2   : > { %v3662_v3 = vmax.f32 %v11334_v23, %v11258_v37  ;;  %v2574_v15 = vsel %vm2542_vm6, %v2382_v13, %v2148_v32  ;;  %v11344_v30 = vsel %vm4333_vm12, %v4173_v57, %v11326_v42  ;;  %vm3311_vm5 = vcmp.eq.s32.totalorder %v13479_v39, 1  ;;  %v13481_v57 = vld [vmem:[#allocation174_spill] sm:$0xff] }
 0x4c3   : > { %13477 = vst [vmem:[#allocation40_spill] sm:$0xff] %v11344_v30  ;;  %v3002_v36 = vsel %vm12823_vm10, %v2989_v41, %v2990_v60  ;;  %v2606_v59 = vrot.slane %v2574_v15, 6  ;;  %v2151_v11 = vadd.f32 %v2150_v28, %v2062_v34  ;;  %vm2543_vm6 = vcmp.eq.s32.totalorder %v13480_v22, 1  ;;  %v2152_v41 = vpop.f32.mrf.mxu0  ;;  %v13482_v34 = vld [vmem:[#allocation52_spill] sm:$0xff]  ;;  %v11366_v42 = vpop.permute.xlu1 %4943 }
 0x4c4   : > { %v11350_v62 = vsel %vm3822_vm4, %v3662_v3, %v11334_v23  ;;  %v3151_v16 = vmax.f32 %v2958_v49, %v3002_v36  ;;  %vm4078_vm2 = vcmp.eq.s32.totalorder %v13481_v57, 1  ;;  %vm2927_vm9 = vcmp.eq.s32.totalorder %v13482_v34, 1  ;;  %13486 = vst [vmem:[#allocation31_spill] sm:$0xff] %v11366_v42 }
 0x4c5   : > { %v2616_v37 = vsel %vm12825_vm0, %v2605_v58, %v2606_v59  ;;  %v2220_v13 = vrot.slane %v2151_v11, 7  ;;  %v3918_v32 = vmax.f32 %v11350_v62, %v11204_v25  ;;  %v13485_v58 = vld [vmem:[#allocation113_spill] sm:$0xff]  ;;  %vm4334_vm4 = vcmp.eq.s32.totalorder %v10314_v63, 1 }
 0x4c6   : > { %v3343_v52 = vsel %vm3311_vm5, %v3151_v16, %v2958_v49  ;;  %v2767_v28 = vmax.f32 %v2574_v15, %v2616_v37  ;;  %vm3567_vm12 = vcmp.eq.s32.totalorder %v13485_v58, 1  ;;  %v11391_v58 = vpop.permute.xlu0 %4478 }
 0x4c7   : > { %v3407_v3 = vmax.f32 %v3343_v52, %v3342_v17  ;;  %v2230_v36 = vsel %vm13483_vm13, %v2219_v6, %v2220_v13  ;;  %v11363_v39 = vsel %vm4078_vm2, %v3918_v32, %v11350_v62  ;;  %v11376_v6 = vld [vmem:[%s12594_s11] ss:$0 sm:$0xff]  ;;  %v11379_v32 = vpop.permute.xlu2 %4946  ;;  %13490 = vst [vmem:[#allocation78_spill] sm:$0xff] %v11391_v58 }
 0x4c8   : > { %13484 = vst [vmem:[#allocation133_spill] sm:$0xff] %v11363_v39  ;;  %v2959_v25 = vsel %vm2927_vm9, %v2767_v28, %v2574_v15  ;;  %v2383_v45 = vmax.f32 %v2151_v11, %v2230_v36  ;;  %v2063_v30 = vpop.f32.mrf.mxu3  ;;  %v4174_v49 = vmax.f32 %v11363_v39, %v11091_v46  ;;  %v13489_v28 = vld [vmem:[#allocation156_spill] sm:$0xff]  ;;  %v13568_v58 = vld [vmem:[#allocation129_spill] sm:$0xff] }
 0x4c9   : > { %v11371_v16 = vsel %vm3567_vm12, %v3407_v3, %v3343_v52  ;;  %v2991_v17 = vrot.slane %v2959_v25, 4  ;;  %v2064_v37 = vadd.f32 %v11376_v6, %v2063_v30  ;;  %13487 = vst [vmem:[#allocation141_spill] sm:$0xff] %v11379_v32  ;;  %vm3823_vm5 = vcmp.eq.s32.totalorder %v13489_v28, 1  ;;  %v13494_v28 = vld [vmem:[#allocation27_spill] sm:$0xff] }
 0x4ca   : > { %v3663_v15 = vmax.f32 %v11371_v16, %v11297_v8  ;;  %v2575_v57 = vsel %vm2543_vm6, %v2383_v45, %v2151_v11  ;;  %v11386_v63 = vsel %vm4334_vm4, %v4174_v49, %v11363_v39  ;;  %v13491_v8 = vld [vmem:[#allocation93_spill] sm:$0xff]  ;;  %vm2928_vm13 = vcmp.eq.s32.totalorder %v13494_v28, 1 }
 0x4cb   : > { %13488 = vst [vmem:[#allocation36_spill] sm:$0xff] %v11386_v63  ;;  %v3001_v34 = vsel %vm12823_vm10, %v2990_v60, %v2991_v17  ;;  %v2607_v3 = vrot.slane %v2575_v57, 6  ;;  %v2153_v36 = vadd.f32 %v2152_v41, %v2064_v37  ;;  %vm3312_vm2 = vcmp.eq.s32.totalorder %v13491_v8, 1  ;;  %v13492_v49 = vld [vmem:[#allocation49_spill] sm:$0xff]  ;;  %v13493_v60 = vld [vmem:[#allocation179_spill] sm:$0xff]  ;;  %v2155_v42 = vpop.f32.mrf.mxu0 }
 0x4cc   : > { %v11394_v30 = vsel %vm3823_vm5, %v3663_v15, %v11371_v16  ;;  %v3152_v32 = vmax.f32 %v2959_v25, %v3001_v34  ;;  %vm2544_vm6 = vcmp.eq.s32.totalorder %v13492_v49, 1  ;;  %vm4079_vm9 = vcmp.eq.s32.totalorder %v13493_v60, 1 }
 0x4cd   : > { %v2615_v45 = vsel %vm12825_vm0, %v2606_v59, %v2607_v3  ;;  %v2221_v11 = vrot.slane %v2153_v36, 7  ;;  %v3919_v22 = vmax.f32 %v11394_v30, %v11239_v7  ;;  %vm13495_vm12 = vcmp.lt.s32.totalorder %v7251_v24, 1  ;;  %v13497_v59 = vld [vmem:[#allocation118_spill] sm:$0xff] }
 0x4ce   : > { %v3344_v41 = vsel %vm3312_vm2, %v3152_v32, %v2959_v25  ;;  %v2768_v37 = vmax.f32 %v2575_v57, %v2615_v45  ;;  %vm3568_vm4 = vcmp.eq.s32.totalorder %v13497_v59, 1  ;;  %vm4335_vm5 = vcmp.eq.s32.totalorder %v10398_v55, 1 }
 0x4cf   : > { %v3408_v15 = vmax.f32 %v3344_v41, %v3343_v52  ;;  %v2229_v34 = vsel %vm13495_vm12, %v2220_v13, %v2221_v11  ;;  %v11407_v8 = vsel %vm4079_vm9, %v3919_v22, %v11394_v30  ;;  %v11416_v13 = vpop.permute.xlu1 %4481 }
 0x4d0   : > { %13496 = vst [vmem:[#allocation69_spill] sm:$0xff] %v11407_v8  ;;  %v2960_v39 = vsel %vm2928_vm13, %v2768_v37, %v2575_v57  ;;  %v2384_v7 = vmax.f32 %v2153_v36, %v2229_v34  ;;  %v2066_v63 = vpop.f32.mrf.mxu3  ;;  %v4175_v60 = vmax.f32 %v11407_v8, %v11116_v33  ;;  %v13500_v37 = vld [vmem:[#allocation146_spill] sm:$0xff] }
 0x4d1   : > { %v11413_v25 = vsel %vm3568_vm4, %v3408_v15, %v3344_v41  ;;  %v2992_v52 = vrot.slane %v2960_v39, 4  ;;  %v2067_v32 = vadd.f32 %v11376_v6, %v2066_v63  ;;  %13498 = vst [vmem:[#allocation103_spill] sm:$0xff] %v11416_v13  ;;  %vm3824_vm2 = vcmp.eq.s32.totalorder %v13500_v37, 1  ;;  %v11428_v15 = vpop.permute.xlu2 %4502  ;;  %v13556_v13 = vld [vmem:[#allocation99_spill] sm:$0xff] }
 0x4d2   : > { %v3664_v45 = vmax.f32 %v11413_v25, %v11334_v23  ;;  %v2576_v57 = vsel %vm2544_vm6, %v2384_v7, %v2153_v36  ;;  %v11423_v22 = vsel %vm4335_vm5, %v4175_v60, %v11407_v8  ;;  %13501 = vst [vmem:[#allocation131_spill] sm:$0xff] %v11428_v15  ;;  %v13502_v23 = vld [vmem:[#allocation83_spill] sm:$0xff]  ;;  %v13503_v7 = vld [vmem:[#allocation53_spill] sm:$0xff]  ;;  %vm13507_vm4 = vcmp.lt.s32.totalorder %v7251_v24, 1 }
 0x4d3   : > { %13499 = vst [vmem:[#allocation22_spill] sm:$0xff] %v11423_v22  ;;  %v3000_v55 = vsel %vm12823_vm10, %v2991_v17, %v2992_v52  ;;  %v2608_v33 = vrot.slane %v2576_v57, 6  ;;  %v2156_v28 = vadd.f32 %v2155_v42, %v2067_v32  ;;  %vm3313_vm9 = vcmp.eq.s32.totalorder %v13502_v23, 1  ;;  %v13504_v17 = vld [vmem:[#allocation187_spill] sm:$0xff]  ;;  %v11440_v42 = vpop.permute.xlu0 %4505  ;;  %v13509_v23 = vld [vmem:[#allocation126_spill] sm:$0xff] }
 0x4d4   : > { %v11431_v63 = vsel %vm3824_vm2, %v3664_v45, %v11413_v25  ;;  %v3153_v34 = vmax.f32 %v2960_v39, %v3000_v55  ;;  %vm2545_vm6 = vcmp.eq.s32.totalorder %v13503_v7, 1  ;;  %vm4080_vm13 = vcmp.eq.s32.totalorder %v13504_v17, 1  ;;  %13505 = vst [vmem:[#allocation111_spill] sm:$0xff] %v11440_v42  ;;  %v13506_v45 = vld [vmem:[#allocation55_spill] sm:$0xff]  ;;  %v13524_v42 = vld [vmem:[#allocation192_spill] sm:$0xff] }
 0x4d5   : > { %v2614_v36 = vsel %vm12825_vm0, %v2607_v3, %v2608_v33  ;;  %v2222_v49 = vrot.slane %v2156_v28, 7  ;;  %v3920_v59 = vmax.f32 %v11431_v63, %v11274_v0  ;;  %vm2929_vm12 = vcmp.eq.s32.totalorder %v13506_v45, 1 }
 0x4d6   : > { %v3345_v60 = vsel %vm3313_vm9, %v3153_v34, %v2960_v39  ;;  %v2769_v32 = vmax.f32 %v2576_v57, %v2614_v36  ;;  %vm3569_vm5 = vcmp.eq.s32.totalorder %v13509_v23, 1  ;;  %vm4336_vm2 = vcmp.eq.s32.totalorder %v10182_v5, 1  ;;  %v2157_v36 = vpop.f32.mrf.mxu0  ;;  %v13516_v23 = vld [vmem:[#allocation39_spill] sm:$0xff] }
 0x4d7   : > { %v3409_v37 = vmax.f32 %v3345_v60, %v3344_v41  ;;  %v2228_v55 = vsel %vm13507_vm4, %v2221_v11, %v2222_v49  ;;  %v11446_v3 = vsel %vm4080_vm13, %v3920_v59, %v11431_v63  ;;  %vm2930_vm4 = vcmp.eq.s32.totalorder %v13516_v23, 1 }
 0x4d8   : > { %13508 = vst [vmem:[#allocation41_spill] sm:$0xff] %v11446_v3  ;;  %v2961_v0 = vsel %vm2929_vm12, %v2769_v32, %v2576_v57  ;;  %v2385_v8 = vmax.f32 %v2156_v28, %v2228_v55  ;;  %v2068_v15 = vpop.f32.mrf.mxu3  ;;  %v4176_v17 = vmax.f32 %v11446_v3, %v11151_v35  ;;  %v13511_v32 = vld [vmem:[#allocation151_spill] sm:$0xff]  ;;  %vm13523_vm12 = vcmp.lt.s32.totalorder %v7251_v24, 1 }
 0x4d9   : > { %v11452_v39 = vsel %vm3569_vm5, %v3409_v37, %v3345_v60  ;;  %v2993_v34 = vrot.slane %v2961_v0, 4  ;;  %v2069_v41 = vadd.f32 %v11376_v6, %v2068_v15  ;;  %vm3825_vm9 = vcmp.eq.s32.totalorder %v13511_v32, 1  ;;  %v13512_v37 = vld [vmem:[#allocation38_spill] sm:$0xff]  ;;  %v13513_v6 = vld [vmem:[#allocation23_spill] sm:$0xff]  ;;  %v11467_v15 = vpop.permute.xlu1 %4913  ;;  %vm13526_vm13 = vmmov %vm13523_vm12 }
 0x4da   : > { %v3665_v11 = vmax.f32 %v11452_v39, %v11371_v16  ;;  %v2577_v59 = vsel %vm2545_vm6, %v2385_v8, %v2156_v28  ;;  %v11460_v57 = vsel %vm4336_vm2, %v4176_v17, %v11446_v3  ;;  %13514 = vst [vmem:[#allocation73_spill] sm:$0xff] %v11467_v15  ;;  %v13515_v8 = vld [vmem:[#allocation88_spill] sm:$0xff]  ;;  %v13522_v3 = vld [vmem:[#allocation177_spill] sm:$0xff]  ;;  %v13525_v23 = vrot.slane %v13524_v42, 7 }
 0x4db   : > { %13510 = vst [vmem:[#allocation172_spill] sm:$0xff] %v11460_v57  ;;  %v2999_v5 = vsel %vm12823_vm10, %v2992_v52, %v2993_v34  ;;  %v2609_v35 = vrot.slane %v2577_v59, 6  ;;  %v2158_v45 = vadd.f32 %v2157_v36, %v2069_v41  ;;  %vm3314_vm6 = vcmp.eq.s32.totalorder %v13515_v8, 1  ;;  %v13517_v17 = vld [vmem:[#allocation116_spill] sm:$0xff]  ;;  %v11479_v41 = vpop.permute.xlu2 %4916  ;;  %v13521_v8 = vld [vmem:[#allocation42_spill] sm:$0xff]  ;;  %v11491_v38 = vpop.permute.xlu0 %4937 }
 0x4dc   : > { %v3154_v16 = vmax.f32 %v2961_v0, %v2999_v5  ;;  %v11470_v7 = vsel %vm3825_vm9, %v3665_v11, %v11452_v39  ;;  %vm3570_vm5 = vcmp.eq.s32.totalorder %v13517_v17, 1  ;;  %13518 = vst [vmem:[#allocation32_spill] sm:$0xff] %v11479_v41  ;;  %v13519_v5 = vld [vmem:[#allocation10_spill] sm:$0xff]  ;;  %v13520_v11 = vld [vmem:[#allocation48_spill] sm:$0xff]  ;;  %v13529_v41 = vld [vmem:[#allocation159_spill] sm:$0xff]  ;;  %vm13540_vm2 = vcmp.lt.s32.totalorder %v7251_v24, 2 }
 0x4dd   : > { %v2613_v28 = vsel %vm12825_vm0, %v2608_v33, %v2609_v35  ;;  %v2223_v55 = vrot.slane %v2158_v45, 7  ;;  %v3921_v52 = vmax.f32 %v11470_v7, %v11311_v26  ;;  %vm4081_vm0 = vcmp.eq.s32.totalorder %v13522_v3, 1  ;;  %13527 = vst [vmem:[#allocation17_spill] sm:$0xff] %v11491_v38  ;;  %vm13543_vm10 = vmmov %vm13540_vm2  ;;  %v13570_v57 = vld [vmem:[#allocation154_spill] sm:$0xff] }
 0x4de   : > { %v3346_v36 = vsel %vm3314_vm6, %v3154_v16, %v2961_v0  ;;  %v2770_v32 = vmax.f32 %v2577_v59, %v2613_v28  ;;  %vm3826_vm6 = vcmp.eq.s32.totalorder %v13529_v41, 1  ;;  %vm13555_vm9 = vcmp.eq.s32.totalorder %v13521_v8, 1  ;;  %v13562_v8 = vld [vmem:[#allocation202_spill] sm:$0xff] }
 0x4df   : > { %v3410_v33 = vmax.f32 %v3346_v36, %v3345_v60  ;;  %v2227_v26 = vsel %vm13523_vm12, %v2222_v49, %v2223_v55  ;;  %v2258_v46 = vsel %vm13526_vm13, %v2223_v55, %v13525_v23  ;;  %v11495_v15 = vsel %vm4081_vm0, %v3921_v52, %v11470_v7 }
 0x4e0   : > { %v2962_v0 = vsel %vm2930_vm4, %v2770_v32, %v2577_v59  ;;  %v2355_v16 = vmax.f32 %v13524_v42, %v2258_v46  ;;  %v2386_v28 = vmax.f32 %v2158_v45, %v2227_v26  ;;  %13528 = vst [vmem:[#allocation136_spill] sm:$0xff] %v11495_v15  ;;  %v4177_v3 = vmax.f32 %v11495_v15, %v11184_v47  ;;  %v13534_v47 = vld [vmem:[#allocation96_spill] sm:$0xff] }
 0x4e1   : > { %v11500_v60 = vsel %vm3570_vm5, %v3410_v33, %v3346_v36  ;;  %v2994_v49 = vrot.slane %v2962_v0, 4  ;;  %vm4337_vm13 = vcmp.eq.s32.totalorder %v10247_v56, 1  ;;  %vm13530_vm12 = vcmp.eq.s32.totalorder %v13512_v37, 1  ;;  %v13535_v56 = vld [vmem:[#allocation182_spill] sm:$0xff]  ;;  %v13537_v37 = vld [vmem:[#allocation64_spill] sm:$0xff] }
 0x4e2   : > { %v3666_v59 = vmax.f32 %v11500_v60, %v11413_v25  ;;  %v2547_v46 = vsel %vm13530_vm12, %v2355_v16, %v13524_v42  ;;  %vm13531_vm0 = vcmp.eq.s32.totalorder %v13513_v6, 1  ;;  %vm13532_vm4 = vcmp.lt.s32.totalorder %v7251_v24, 4  ;;  %v13536_v42 = vld [vmem:[#allocation8_spill] sm:$0xff] }
 0x4e3   : > { %v2578_v55 = vsel %vm13531_vm0, %v2386_v28, %v2158_v45  ;;  %v2998_v52 = vsel %vm13532_vm4, %v2993_v34, %v2994_v49  ;;  %v2579_v17 = vrot.slane %v2547_v46, 6  ;;  %v11515_v32 = vsel %vm4337_vm13, %v4177_v3, %v11495_v15  ;;  %v13538_v45 = vld [vmem:[#allocation67_spill] sm:$0xff]  ;;  %v13539_v34 = vld [vmem:[#allocation86_spill] sm:$0xff]  ;;  %vm13542_vm13 = vmmov %vm13540_vm2  ;;  %v11536_v3 = vpop.permute.xlu1 %4940 }
 0x4e4   : > { %v2610_v41 = vrot.slane %v2578_v55, 6  ;;  %13533 = vst [vmem:[#allocation101_spill] sm:$0xff] %v11515_v32  ;;  %vm3315_vm5 = vcmp.eq.s32.totalorder %v13534_v47, 1  ;;  %v3155_v25 = vmax.f32 %v2962_v0, %v2998_v52  ;;  %v11520_v33 = vsel %vm3826_vm6, %v3666_v59, %v11500_v60  ;;  %v13546_v15 = vld [vmem:[#allocation206_spill] sm:$0xff]  ;;  %v13580_v24 = vld [vmem:[#allocation180_spill] sm:$0xff] }
 0x4e5   : > { %v13541_v26 = vrot.slane %v9962_v40, 6  ;;  %v3922_v28 = vmax.f32 %v11520_v33, %v11350_v62  ;;  %13544 = vst [vmem:[#allocation163_spill] sm:$0xff] %v11536_v3  ;;  %vm4338_vm6 = vcmp.eq.s32.totalorder %v13546_v15, 1  ;;  %v13549_v62 = vld [vmem:[#allocation89_spill] sm:$0xff]  ;;  %vm13553_vm0 = vcmp.eq.s32.totalorder %v13519_v5, 1  ;;  %v13594_v32 = vld [vmem:[#allocation102_spill] sm:$0xff] }
 0x4e6   : > { %v2612_v6 = vsel %vm13540_vm2, %v2609_v35, %v2610_v41  ;;  %v2643_v16 = vsel %vm13543_vm10, %v2610_v41, %v2579_v17  ;;  %v11538_v59 = vsel %vm3315_vm5, %v3155_v25, %v2962_v0  ;;  %v13545_v35 = vld [vmem:[#allocation121_spill] sm:$0xff]  ;;  %vm13547_vm10 = vcmp.eq.s32.totalorder %v13535_v56, 1  ;;  %v13550_v41 = vld [vmem:[#allocation91_spill] sm:$0xff]  ;;  %v13551_v0 = vld [vmem:[#allocation94_spill] sm:$0xff]  ;;  %v11552_v25 = vpop.permute.xlu2 %4472 }
 0x4e7   : > { %v2642_v23 = vsel %vm13542_vm13, %v2579_v17, %v13541_v26  ;;  %v2740_v52 = vmax.f32 %v2547_v46, %v2643_v16  ;;  %v2771_v38 = vmax.f32 %v2578_v55, %v2612_v6  ;;  %vm3571_vm2 = vcmp.eq.s32.totalorder %v13545_v35, 1  ;;  %13552 = vst [vmem:[#allocation81_spill] sm:$0xff] %v11552_v25  ;;  %v13557_v5 = vld [vmem:[#allocation149_spill] sm:$0xff] }
 0x4e8   : > { %v2741_v47 = vmax.f32 %v9962_v40, %v2642_v23  ;;  %v3411_v26 = vmax.f32 %v11538_v59, %v3346_v36  ;;  %v11547_v17 = vsel %vm13547_vm10, %v3922_v28, %v11520_v33  ;;  %vm13554_vm12 = vcmp.eq.s32.totalorder %v13520_v11, 1 }
 0x4e9   : > { %13548 = vst [vmem:[#allocation144_spill] sm:$0xff] %v11547_v17  ;;  %v2932_v6 = vsel %vm13553_vm0, %v2740_v52, %v2547_v46  ;;  %v2963_v56 = vsel %vm13555_vm9, %v2771_v38, %v2578_v55  ;;  %v4178_v23 = vmax.f32 %v11547_v17, %v11217_v48  ;;  %vm3827_vm0 = vcmp.eq.s32.totalorder %v13557_v5, 1  ;;  %v11568_v46 = vpop.permute.xlu0 %4475  ;;  %v13560_v48 = vld [vmem:[#allocation122_spill] sm:$0xff] }
 0x4ea   : > { %v2933_v36 = vsel %vm13554_vm12, %v2741_v47, %v9962_v40  ;;  %v11564_v16 = vsel %vm3571_vm2, %v3411_v26, %v11538_v59  ;;  %v2964_v28 = vrot.slane %v2932_v6, 4  ;;  %v2995_v3 = vrot.slane %v2963_v56, 4  ;;  %13558 = vst [vmem:[#allocation26_spill] sm:$0xff] %v11568_v46  ;;  %vm13561_vm12 = vmmov %vm13532_vm4  ;;  %v13567_v46 = vld [vmem:[#allocation119_spill] sm:$0xff] }
 0x4eb   : > { %v2965_v35 = vrot.slane %v2933_v36, 4  ;;  %v3667_v40 = vmax.f32 %v11564_v16, %v11452_v39  ;;  %v11575_v38 = vsel %vm4338_vm6, %v4178_v23, %v11547_v17  ;;  %v13563_v55 = vrot.slane %v13562_v8, 4  ;;  %vm13564_vm2 = vmmov %vm13532_vm4 }
 0x4ec   : > { %13559 = vst [vmem:[#allocation167_spill] sm:$0xff] %v11575_v38  ;;  %v2997_v11 = vsel %vm13561_vm12, %v2994_v49, %v2995_v3  ;;  %vm13565_vm4 = vmmov %vm13564_vm2  ;;  %vm3572_vm12 = vcmp.eq.s32.totalorder %v13568_v58, 1  ;;  %v13569_v49 = vld [vmem:[#allocation132_spill] sm:$0xff]  ;;  %vm13575_vm6 = vcmp.eq.s32.totalorder %v13538_v45, 1  ;;  %vm13576_vm9 = vcmp.eq.s32.totalorder %v13536_v42, 1  ;;  %v13581_v38 = vld [vmem:[#allocation207_spill] sm:$0xff] }
 0x4ed   : > { %v3026_v52 = vsel %vm13564_vm2, %v2965_v35, %v13563_v55  ;;  %v3027_v47 = vsel %vm13565_vm4, %v2964_v28, %v2965_v35  ;;  %vm13566_vm13 = vmmov %vm13564_vm2  ;;  %v3156_v17 = vmax.f32 %v2963_v56, %v2997_v11  ;;  %v11596_v35 = vsel %vm3827_vm0, %v3667_v40, %v11564_v16  ;;  %v13571_v55 = vld [vmem:[#allocation124_spill] sm:$0xff]  ;;  %v13574_v11 = vld [vmem:[#allocation166_spill] sm:$0xff] }
 0x4ee   : > { %v3028_v39 = vsel %vm13566_vm13, %v2995_v3, %v2964_v28  ;;  %v3126_v15 = vmax.f32 %v2933_v36, %v3027_v47  ;;  %v3127_v23 = vmax.f32 %v13562_v8, %v3026_v52  ;;  %v13572_v3 = vld [vmem:[#allocation127_spill] sm:$0xff]  ;;  %v13573_v28 = vld [vmem:[#allocation158_spill] sm:$0xff]  ;;  %vm13577_vm10 = vcmp.eq.s32.totalorder %v13537_v37, 1  ;;  %v13583_v42 = vld [vmem:[#allocation205_spill] sm:$0xff]  ;;  %v11636_v21 = vpop.permute.xlu2 %4910 }
 0x4ef   : > { %v3125_v26 = vmax.f32 %v2932_v6, %v3028_v39  ;;  %vm13578_vm0 = vcmp.eq.s32.totalorder %v13539_v34, 1  ;;  %v13579_v39 = vld [vmem:[#allocation135_spill] sm:$0xff]  ;;  %v3923_v34 = vmax.f32 %v11596_v35, %v11394_v30  ;;  %vm13588_vm13 = vcmp.eq.s32.totalorder %v13550_v41, 1  ;;  %13595 = vst [vmem:[#allocation106_spill] sm:$0xff] %v11636_v21  ;;  %v13606_v21 = vld [vmem:[#allocation209_spill] sm:$0xff] }
 0x4f0   : > { %v3318_v47 = vsel %vm13576_vm9, %v3126_v15, %v2933_v36  ;;  %v3319_v5 = vsel %vm13577_vm10, %v3127_v23, %v13562_v8  ;;  %v3348_v40 = vsel %vm13578_vm0, %v3156_v17, %v2963_v56  ;;  %v11616_v36 = vpop.permute.xlu1 %4907  ;;  %v13585_v17 = vld [vmem:[#allocation157_spill] sm:$0xff]  ;;  %v13586_v56 = vld [vmem:[#allocation196_spill] sm:$0xff]  ;;  %vm13589_vm2 = vcmp.eq.s32.totalorder %v13556_v13, 1  ;;  %v13592_v30 = vld [vmem:[#allocation155_spill] sm:$0xff] }
 0x4f1   : > { %v3317_v52 = vsel %vm13575_vm6, %v3125_v26, %v2932_v6  ;;  %v3383_v22 = vmax.f32 %v3319_v5, %v3318_v47  ;;  %v3384_v45 = vmax.f32 %v13581_v38, %v3319_v5  ;;  %v13582_v6 = vld [vmem:[#allocation190_spill] sm:$0xff]  ;;  %13584 = vst [vmem:[#allocation20_spill] sm:$0xff] %v11616_v36  ;;  %v3412_v37 = vmax.f32 %v3348_v40, %v11538_v59  ;;  %v13587_v8 = vld [vmem:[#allocation201_spill] sm:$0xff]  ;;  %v13593_v36 = vld [vmem:[#allocation164_spill] sm:$0xff]  ;;  %v11651_v58 = vpop.permute.xlu0 %4466 }
 0x4f2   : > { %v3381_v25 = vmax.f32 %v3317_v52, %v3348_v40  ;;  %v3382_v61 = vmax.f32 %v3318_v47, %v3317_v52  ;;  %vm4324_vm4 = vcmp.eq.s32.totalorder %v13587_v8, 1  ;;  %vm13590_vm5 = vcmp.eq.s32.totalorder %v13549_v62, 1  ;;  %13600 = vst [vmem:[#allocation134_spill] sm:$0xff] %v11651_v58 }
 0x4f3   : > { %v3575_v23 = vsel %vm13590_vm5, %v3383_v22, %v3319_v5  ;;  %vm13591_vm9 = vcmp.eq.s32.totalorder %v13551_v0, 1  ;;  %vm4340_vm0 = vcmp.eq.s32.totalorder %v13594_v32, 1  ;;  %v3604_v41 = vsel %vm3572_vm12, %v3412_v37, %v3348_v40  ;;  %v13596_v22 = vld [vmem:[#allocation160_spill] sm:$0xff]  ;;  %v13599_v5 = vld [vmem:[#allocation203_spill] sm:$0xff]  ;;  %v13604_v37 = vld [vmem:[#allocation198_spill] sm:$0xff] }
 0x4f4   : > { %v3573_v26 = vsel %vm13588_vm13, %v3381_v25, %v3317_v52  ;;  %v3574_v15 = vsel %vm13589_vm2, %v3382_v61, %v3318_v47  ;;  %v3576_v59 = vsel %vm13591_vm9, %v3384_v45, %v13581_v38  ;;  %v3668_v0 = vmax.f32 %v3604_v41, %v11500_v60  ;;  %v13598_v52 = vld [vmem:[#allocation54_spill] sm:$0xff]  ;;  %v13603_v45 = vld [vmem:[#allocation65_spill] sm:$0xff] }
 0x4f5   : > { %v3637_v61 = vmax.f32 %v3573_v26, %v11564_v16  ;;  %v3639_v13 = vmax.f32 %v3575_v23, %v3573_v26  ;;  %v3640_v62 = vmax.f32 %v3576_v59, %v3574_v15  ;;  %v3638_v25 = vmax.f32 %v3574_v15, %v3604_v41 }
 0x4f6   : > { %vm13597_vm13 = vcmp.eq.s32.totalorder %v13582_v6, 1  ;;  %v3641_v47 = vmax.f32 %v13598_v52, %v3575_v23  ;;  %vm13601_vm9 = vcmp.eq.s32.totalorder %v13569_v49, 1  ;;  %vm13602_vm5 = vcmp.eq.s32.totalorder %v13560_v48, 1 }
 0x4f7   : > { %v11646_v38 = vsel %vm13597_vm13, %v3923_v34, %v11596_v35  ;;  %v3831_v16 = vsel %vm13601_vm9, %v3639_v13, %v3575_v23  ;;  %v3832_v40 = vsel %vm13602_vm5, %v3640_v62, %v3576_v59  ;;  %v3642_v6 = vmax.f32 %v13603_v45, %v3576_v59 }
 0x4f8   : > { %v4179_v60 = vmax.f32 %v11646_v38, %v11252_v1  ;;  %vm4564_vm12 = vcmp.eq.s32.totalorder %v10647_v31, 1  ;;  %vm13607_vm6 = vcmp.eq.s32.totalorder %v13570_v57, 1  ;;  %v3895_v23 = vmax.f32 %v3831_v16, %v11596_v35  ;;  %v13608_v1 = vld [vmem:[#allocation208_spill] sm:$0xff]  ;;  %v13611_v57 = vld [vmem:[#allocation193_spill] sm:$0xff] }
 0x4f9   : > { %v3860_v49 = vsel %vm13607_vm6, %v3668_v0, %v3604_v41  ;;  %v3899_v48 = vmax.f32 %v10308_v27, %v3831_v16  ;;  %v3900_v13 = vmax.f32 %v10391_v50, %v3832_v40  ;;  %vm13609_vm9 = vcmp.eq.s32.totalorder %v13583_v42, 1  ;;  %v13616_v42 = vld [vmem:[#allocation210_spill] sm:$0xff] }
 0x4fa   : > { %v3896_v59 = vmax.f32 %v3832_v40, %v3860_v49  ;;  %v3924_v62 = vmax.f32 %v3860_v49, %v11431_v63  ;;  %v4371_v58 = vsel %vm13609_vm9, %v4179_v60, %v11646_v38  ;;  %vm13610_vm10 = vcmp.eq.s32.totalorder %v13567_v46, 1  ;;  %v13624_v60 = vld [vmem:[#allocation161_spill] sm:$0xff] }
 0x4fb   : > { %v11676_v34 = vsel %vm13610_vm10, %v3637_v61, %v3573_v26  ;;  %vm13612_vm13 = vcmp.eq.s32.totalorder %v13574_v11, 1  ;;  %vm13613_vm5 = vcmp.eq.s32.totalorder %v13573_v28, 1  ;;  %vm13614_vm2 = vcmp.eq.s32.totalorder %v13571_v55, 1  ;;  %v13619_v28 = vld [vmem:[#allocation34_spill] sm:$0xff]  ;;  %v13621_v61 = vld [vmem:[#allocation92_spill] sm:$0xff] }
 0x4fc   : > { %v11682_v35 = vsel %vm13612_vm13, %v3899_v48, %v10308_v27  ;;  %v11687_v41 = vsel %vm13613_vm5, %v3900_v13, %v10391_v50  ;;  %v11691_v63 = vsel %vm13614_vm2, %v3638_v25, %v3574_v15  ;;  %vm13615_vm10 = vcmp.eq.s32.totalorder %v13572_v3, 1  ;;  %v13620_v11 = vld [vmem:[#allocation50_spill] sm:$0xff]  ;;  %v11728_v25 = vpop.permute.xlu1 %4469  ;;  %v13633_v13 = vld [vmem:[#allocation191_spill] sm:$0xff] }
 0x4fd   : > { %v11696_v46 = vsel %vm13615_vm10, %v3641_v47, %v13598_v52  ;;  %vm13617_vm13 = vcmp.eq.s32.totalorder %v13580_v24, 1  ;;  %v4163_v50 = vmax.f32 %v10987_v2, %v11682_v35  ;;  %v4164_v55 = vmax.f32 %v11023_v14, %v11687_v41 }
 0x4fe   : > { %v11702_v27 = vsel %vm13617_vm13, %v3924_v62, %v3860_v49  ;;  %vm13618_vm2 = vcmp.eq.s32.totalorder %v13579_v39, 1  ;;  %vm4578_vm5 = vcmp.eq.s32.totalorder %v13619_v28, 1  ;;  %vm4562_vm9 = vcmp.eq.s32.totalorder %v11079_v18, 1 }
 0x4ff   : > { %v11711_v3 = vsel %vm13618_vm2, %v3642_v6, %v13603_v45  ;;  %v4180_v24 = vmax.f32 %v11702_v27, %v11289_v4  ;;  %v3893_v26 = vmax.f32 %v11676_v34, %v11470_v7  ;;  %v3897_v15 = vmax.f32 %v11696_v46, %v11676_v34  ;;  %v11758_v45 = vpop.permute.xlu2 %4901 }
 0x500   : > { %vm13622_vm13 = vcmp.eq.s32.totalorder %v13586_v56, 1  ;;  %v4356_v4 = vsel %vm4324_vm4, %v4164_v55, %v11023_v14  ;;  %v3898_v52 = vmax.f32 %v11711_v3, %v11691_v63  ;;  %vm13623_vm6 = vcmp.eq.s32.totalorder %v13585_v17, 1  ;;  %v13627_v17 = vld [vmem:[#allocation152_spill] sm:$0xff]  ;;  %v13638_v55 = vld [vmem:[#allocation189_spill] sm:$0xff] }
 0x501   : > { %v4355_v0 = vsel %vm13622_vm13, %v4163_v50, %v10987_v2  ;;  %v11740_v47 = vsel %vm13623_vm6, %v3895_v23, %v3831_v16  ;;  %v4372_v56 = vsel %vm4340_vm0, %v4180_v24, %v11702_v27  ;;  %vm13625_vm13 = vcmp.eq.s32.totalorder %v13592_v30, 1  ;;  %v13628_v16 = vld [vmem:[#allocation162_spill] sm:$0xff]  ;;  %v13639_v24 = vld [vmem:[#allocation200_spill] sm:$0xff] }
 0x502   : > { %v4419_v2 = vmax.f32 %v4355_v0, %v4371_v58  ;;  %v11750_v14 = vsel %vm13625_vm13, %v3897_v15, %v11696_v46  ;;  %vm13626_vm4 = vcmp.eq.s32.totalorder %v13593_v36, 1  ;;  %v4420_v6 = vmax.f32 %v4356_v4, %v4372_v56  ;;  %v13640_v15 = vld [vmem:[#allocation98_spill] sm:$0xff] }
 0x503   : > { %v11754_v8 = vsel %vm13626_vm4, %v3896_v59, %v3832_v40  ;;  %vm13629_vm0 = vcmp.eq.s32.totalorder %v13596_v22, 1  ;;  %v4161_v30 = vmax.f32 %v10842_v9, %v11750_v14  ;;  %v4159_v36 = vmax.f32 %v10700_v10, %v11740_v47  ;;  %v13630_v40 = vld [vmem:[#allocation169_spill] sm:$0xff]  ;;  %v11780_v59 = vpop.permute.xlu0 %4904 }
 0x504   : > { %v11763_v32 = vsel %vm13629_vm0, %v3898_v52, %v11711_v3  ;;  %vm13631_vm2 = vcmp.eq.s32.totalorder %v10538_v20, 1  ;;  %vm13632_vm6 = vcmp.eq.s32.totalorder %v13599_v5, 1  ;;  %v4160_v48 = vmax.f32 %v10805_v44, %v11754_v8 }
 0x505   : > { %v4595_v49 = vsel %vm13631_vm2, %v4419_v2, %v4355_v0  ;;  %v4611_v23 = vsel %vm13632_vm6, %v4419_v2, %v4371_v58  ;;  %v4162_v22 = vmax.f32 %v10940_v29, %v11763_v32  ;;  %v4596_v62 = vsel %vm4564_vm12, %v4420_v6, %v4356_v4  ;;  %v13636_v58 = vld [vmem:[#allocation204_spill] sm:$0xff]  ;;  %v13642_v4 = vld [vmem:[#allocation101_spill] sm:$0xff]  ;;  %v13646_v2 = vld [vmem:[#allocation22_spill] sm:$0xff] }
 0x506   : > { %vm13634_vm4 = vcmp.eq.s32.totalorder %v13606_v21, 1  ;;  %vm13635_vm2 = vcmp.eq.s32.totalorder %v13604_v37, 1  ;;  %vm13637_vm6 = vcmp.eq.s32.totalorder %v13636_v58, 1  ;;  %vm4994_vm10 = vcmp.eq.s32.totalorder %v13640_v15, 1  ;;  %v13643_v37 = vld [vmem:[#allocation195_spill] sm:$0xff]  ;;  %v13658_v58 = vld [vmem:[#allocation26_spill] sm:$0xff] }
 0x507   : > { %v4612_v20 = vsel %vm13634_vm4, %v4420_v6, %v4372_v56  ;;  %v4353_v5 = vsel %vm13635_vm2, %v4161_v30, %v10842_v9  ;;  %v4351_v50 = vsel %vm13637_vm6, %v4159_v36, %v10700_v10  ;;  %v6090_v0 = vpack.c.bf16 %v4596_v62, %v4595_v49  ;;  %v13644_v9 = vld [vmem:[#allocation167_spill] sm:$0xff]  ;;  %v13647_v30 = vld [vmem:[#allocation72_spill] sm:$0xff]  ;;  %v13648_v49 = vld [vmem:[#allocation197_spill] sm:$0xff] }
 0x508   : > { %v6148_v31 = vpack.c.bf16 %v4612_v20, %v4611_v23  ;;  %vm13641_vm12 = vcmp.eq.s32.totalorder %v13608_v1, 1  ;;  %v4417_v52 = vmax.f32 %v4353_v5, %v13642_v4  ;;  %vm13645_vm2 = vcmp.eq.s32.totalorder %v13611_v57, 1  ;;  %v13649_v23 = vld [vmem:[#allocation68_spill] sm:$0xff]  ;;  %v13657_v20 = vld [vmem:[#allocation78_spill] sm:$0xff] }
 0x509   : > { %v4354_v21 = vsel %vm13641_vm12, %v4162_v22, %v10940_v29  ;;  %v4352_v10 = vsel %vm13645_vm2, %v4160_v48, %v10805_v44  ;;  %v4415_v6 = vmax.f32 %v4351_v50, %v13646_v2  ;;  %v3901_v36 = vmax.f32 %v13647_v30, %v11696_v46  ;;  %v13650_v29 = vld [vmem:[#allocation81_spill] sm:$0xff]  ;;  %6091 = vmatpush.bf16.msk.msrb.mxu1 %vm10861_vm7, %v6090_v0  ;;  %v13654_v46 = vld [vmem:[#allocation172_spill] sm:$0xff]  ;;  %v13655_v48 = vld [vmem:[#allocation58_spill] sm:$0xff] }
 0x50a   : > { %v4418_v56 = vmax.f32 %v4354_v21, %v13644_v9  ;;  %6267 = vmatpush.bf16.msk.msra.mxu3 %vm10861_vm7, %v6090_v0  ;;  %vm13652_vm4 = vcmp.eq.s32.totalorder %v10915_v53, 1  ;;  %vm13653_vm2 = vcmp.eq.s32.totalorder %v13616_v42, 1  ;;  %v4416_v22 = vmax.f32 %v4352_v10, %v13654_v46  ;;  %v13656_v62 = vld [vmem:[#allocation12_spill] sm:$0xff]  ;;  %6149 = vmatpush.bf16.msk.msrb.mxu2 %vm10333_vm14, %v6148_v31  ;;  %v13694_v15 = vld [vmem:[#allocation194_spill] sm:$0xff] }
 0x50b   : > { %v4593_v44 = vsel %vm13652_vm4, %v4417_v52, %v4353_v5  ;;  %v4609_v57 = vsel %vm13653_vm2, %v4417_v52, %v13642_v4  ;;  %vm4573_vm6 = vcmp.eq.s32.totalorder %v13655_v48, 1  ;;  %vm4557_vm12 = vcmp.eq.s32.totalorder %v13657_v20, 1  ;;  %v13662_v4 = vld [vmem:[#allocation97_spill] sm:$0xff]  ;;  %v13663_v52 = vld [vmem:[#allocation103_spill] sm:$0xff] }
 0x50c   : > { %v4594_v53 = vsel %vm4562_vm9, %v4418_v56, %v4354_v21  ;;  %v4610_v42 = vsel %vm4578_vm5, %v4418_v56, %v13644_v9  ;;  %vm13660_vm7 = vcmp.eq.s32.totalorder %v11271_v19, 1  ;;  %vm13661_vm4 = vcmp.eq.s32.totalorder %v13620_v11, 1  ;;  %v13666_v21 = vld [vmem:[#allocation186_spill] sm:$0xff]  ;;  %v11848_v19 = vpop.permute.xlu1 %4460  ;;  %v13669_v9 = vld [vmem:[#allocation16_spill] sm:$0xff]  ;;  %v13711_v48 = vld [vmem:[#allocation111_spill] sm:$0xff] }
 0x50d   : > { %v4591_v5 = vsel %vm13660_vm7, %v4415_v6, %v4351_v50  ;;  %v4607_v0 = vsel %vm13661_vm4, %v4415_v6, %v13646_v2  ;;  %vm4574_vm2 = vcmp.eq.s32.totalorder %v13662_v4, 1  ;;  %vm4558_vm0 = vcmp.eq.s32.totalorder %v13663_v52, 1  ;;  %v13681_v6 = vld [vmem:[#allocation183_spill] sm:$0xff]  ;;  %v13703_v2 = vld [vmem:[#allocation36_spill] sm:$0xff]  ;;  %v13713_v52 = vld [vmem:[#allocation57_spill] sm:$0xff] }
 0x50e   : > { %v6093_v39 = vpack.c.bf16 %v4594_v53, %v4593_v44  ;;  %v6151_v31 = vpack.c.bf16 %v4610_v42, %v4609_v57  ;;  %vm13664_vm14 = vcmp.eq.s32.totalorder %v11283_v54, 1  ;;  %vm13665_vm9 = vcmp.eq.s32.totalorder %v13621_v61, 1  ;;  %v13671_v61 = vld [vmem:[#allocation32_spill] sm:$0xff]  ;;  %v13685_v44 = vld [vmem:[#allocation15_spill] sm:$0xff]  ;;  %v11914_v53 = vpop.permute.xlu0 %4895 }
 0x50f   : > { %v4592_v18 = vsel %vm13664_vm14, %v4416_v22, %v4352_v10  ;;  %v4608_v28 = vsel %vm13665_vm9, %v4416_v22, %v13654_v46  ;;  %vm13667_vm7 = vcmp.eq.s32.totalorder %v11020_v12, 1  ;;  %vm13668_vm13 = vcmp.eq.s32.totalorder %v11226_v43, 1  ;;  %v13672_v12 = vld [vmem:[#allocation73_spill] sm:$0xff]  ;;  %v11879_v10 = vpop.permute.xlu2 %4463  ;;  %v13687_v46 = vld [vmem:[#allocation136_spill] sm:$0xff] }
 0x510   : > { %vm6092_vm4 = vmpackc.low %vm13668_vm13, %vm13667_vm7  ;;  %v6096_v11 = vpack.c.bf16 %v4592_v18, %v4591_v5  ;;  %v6154_v50 = vpack.c.bf16 %v4608_v28, %v4607_v0  ;;  %v3902_v56 = vmax.f32 %v13669_v9, %v11711_v3  ;;  %vm13670_vm14 = vcmp.eq.s32.totalorder %v13624_v60, 1  ;;  %v13677_v60 = vld [vmem:[#allocation134_spill] sm:$0xff]  ;;  %6152 = vmatpush.bf16.msk.msrb.mxu2 %vm10484_vm11, %v6151_v31  ;;  %v13692_v0 = vld [vmem:[#allocation144_spill] sm:$0xff] }
 0x511   : > { %v11858_v54 = vsel %vm13670_vm14, %v3893_v26, %v11676_v34  ;;  %6094 = vmatpush.bf16.msk.msrb.mxu1 %vm6092_vm4, %v6093_v39  ;;  %6268 = vmatpush.bf16.msk.msra.mxu3 %vm6092_vm4, %v6093_v39  ;;  %v13673_v43 = vmax.f32 %v11691_v63, %v11520_v33  ;;  %vm13674_vm13 = vcmp.eq.s32.totalorder %v13627_v17, 1  ;;  %vm13675_vm7 = vcmp.eq.s32.totalorder %v13628_v16, 1  ;;  %v13676_v26 = vld [vmem:[#allocation130_spill] sm:$0xff]  ;;  %v13680_v17 = vld [vmem:[#allocation56_spill] sm:$0xff]  ;;  %v13693_v31 = vld [vmem:[#allocation185_spill] sm:$0xff] }
 0x512   : > { %v11873_v7 = vsel %vm13675_vm7, %v3901_v36, %v13647_v30  ;;  %v4155_v34 = vmax.f32 %v11682_v35, %v11646_v38  ;;  %v4156_v16 = vmax.f32 %v11687_v41, %v11702_v27  ;;  %v13682_v30 = vld [vmem:[#allocation188_spill] sm:$0xff]  ;;  %v13683_v36 = vld [vmem:[#allocation9_spill] sm:$0xff]  ;;  %vm13686_vm4 = vcmp.eq.s32.totalorder %v13633_v13, 1  ;;  %v13696_v18 = vld [vmem:[#allocation11_spill] sm:$0xff] }
 0x513   : > { %v11868_v3 = vsel %vm13674_vm13, %v13673_v43, %v11691_v63  ;;  %vm13679_vm13 = vcmp.eq.s32.totalorder %v13630_v40, 1  ;;  %v4157_v63 = vmax.f32 %v11873_v7, %v11858_v54  ;;  %v4165_v38 = vmax.f32 %v13680_v17, %v11873_v7  ;;  %v13684_v40 = vld [vmem:[#allocation20_spill] sm:$0xff]  ;;  %v13697_v28 = vld [vmem:[#allocation106_spill] sm:$0xff] }
 0x514   : > { %v11886_v33 = vsel %vm13679_vm13, %v3902_v56, %v13669_v9  ;;  %v4347_v27 = vsel %vm13686_vm4, %v4155_v34, %v11682_v35  ;;  %v4153_v22 = vmax.f32 %v11750_v14, %v13687_v46  ;;  %vm13688_vm14 = vcmp.eq.s32.totalorder %v11337_v51, 1  ;;  %v13691_v13 = vld [vmem:[#allocation128_spill] sm:$0xff]  ;;  %v13695_v51 = vld [vmem:[#allocation199_spill] sm:$0xff]  ;;  %v13700_v9 = vld [vmem:[#allocation70_spill] sm:$0xff]  ;;  %6155 = vmatpush.bf16.msk.msrb.mxu2 %vm10658_vm8, %v6154_v50  ;;  %v11977_v4 = vpop.permute.xlu1 %4898 }
 0x515   : > { %v4158_v1 = vmax.f32 %v11886_v33, %v11868_v3  ;;  %v4166_v57 = vmax.f32 %v13685_v44, %v11886_v33  ;;  %vm6095_vm7 = vmpackc.low %vm13688_vm14, %vm4994_vm10  ;;  %vm13689_vm13 = vcmp.eq.s32.totalorder %v13638_v55, 1  ;;  %vm13690_vm11 = vcmp.eq.s32.totalorder %v13639_v24, 1  ;;  %v13699_v55 = vld [vmem:[#allocation40_spill] sm:$0xff]  ;;  %v13701_v43 = vld [vmem:[#allocation66_spill] sm:$0xff] }
 0x516   : > { %v4349_v42 = vsel %vm13689_vm13, %v4157_v63, %v11873_v7  ;;  %v4348_v5 = vsel %vm13690_vm11, %v4156_v16, %v11687_v41  ;;  %v4411_v35 = vmax.f32 %v4347_v27, %v13691_v13  ;;  %v4154_v39 = vmax.f32 %v11763_v32, %v13692_v0  ;;  %6097 = vmatpush.bf16.msk.msrb.mxu1 %vm6095_vm7, %v6096_v11  ;;  %v13717_v0 = vld [vmem:[#allocation69_spill] sm:$0xff] }
 0x517   : > { %vm4991_vm5 = vcmp.eq.s32.totalorder %v13697_v28, 1  ;;  %vm4554_vm13 = vcmp.eq.s32.totalorder %v11728_v25, 1  ;;  %6269 = vmatpush.bf16.msk.msra.mxu3 %vm6095_vm7, %v6096_v11  ;;  %vm13698_vm11 = vcmp.eq.s32.totalorder %v13643_v37, 1  ;;  %v4413_v24 = vmax.f32 %v4349_v42, %v13699_v55  ;;  %v4455_v34 = vpop.permute.xlu2 %4454  ;;  %v4458_v25 = vpop.permute.xlu0 %4457 }
 0x518   : > { %v4350_v41 = vsel %vm13698_vm11, %v4158_v1, %v11886_v33  ;;  %v4412_v56 = vmax.f32 %v4348_v5, %v13700_v9  ;;  %vm4552_vm10 = vcmp.eq.s32.totalorder %v11879_v10, 1  ;;  %vm4551_vm14 = vcmp.eq.s32.totalorder %v11848_v19, 1  ;;  %v13707_v1 = vld [vmem:[#allocation108_spill] sm:$0xff] }
 0x519   : > { %v4414_v63 = vmax.f32 %v4350_v41, %v13703_v2  ;;  %vm13704_vm7 = vcmp.eq.s32.totalorder %v13650_v29, 1  ;;  %vm13705_vm11 = vcmp.eq.s32.totalorder %v13649_v23, 1  ;;  %vm13706_vm4 = vcmp.eq.s32.totalorder %v13648_v49, 1 }
 0x51a   : > { %v4587_v11 = vsel %vm13704_vm7, %v4411_v35, %v4347_v27  ;;  %v4603_v37 = vsel %vm13705_vm11, %v4411_v35, %v13691_v13  ;;  %v4345_v16 = vsel %vm13706_vm4, %v4153_v22, %v11750_v14  ;;  %vm4568_vm9 = vcmp.eq.s32.totalorder %v13707_v1, 1  ;;  %v13710_v22 = vld [vmem:[#allocation131_spill] sm:$0xff] }
 0x51b   : > { %v4589_v46 = vsel %vm4557_vm12, %v4413_v24, %v4349_v42  ;;  %v4605_v50 = vsel %vm4573_vm6, %v4413_v24, %v13699_v55  ;;  %vm13708_vm8 = vcmp.eq.s32.totalorder %v13658_v58, 1  ;;  %vm13709_vm7 = vcmp.eq.s32.totalorder %v13656_v62, 1  ;;  %v13716_v13 = vld [vmem:[#allocation19_spill] sm:$0xff]  ;;  %v13718_v55 = vld [vmem:[#allocation41_spill] sm:$0xff] }
 0x51c   : > { %v4588_v29 = vsel %vm13708_vm8, %v4412_v56, %v4348_v5  ;;  %v4604_v23 = vsel %vm13709_vm7, %v4412_v56, %v13700_v9  ;;  %v4590_v49 = vsel %vm4558_vm0, %v4414_v63, %v4350_v41  ;;  %v4606_v14 = vsel %vm4574_vm2, %v4414_v63, %v13703_v2  ;;  %v13719_v9 = vld [vmem:[#allocation6_spill] sm:$0xff] }
 0x51d   : > { %v6102_v20 = vpack.c.bf16 %v4588_v29, %v4587_v11  ;;  %v6160_v27 = vpack.c.bf16 %v4604_v23, %v4603_v37  ;;  %vm4565_vm12 = vcmp.eq.s32.totalorder %v13710_v22, 1  ;;  %vm4566_vm6 = vcmp.eq.s32.totalorder %v13711_v48, 1  ;;  %v13728_v29 = vld [vmem:[#allocation138_spill] sm:$0xff]  ;;  %v13740_v22 = vld [vmem:[#allocation163_spill] sm:$0xff] }
 0x51e   : > { %vm4988_vm4 = vcmp.eq.s32.totalorder %v11758_v45, 1  ;;  %v6099_v58 = vpack.c.bf16 %v4590_v49, %v4589_v46  ;;  %v6157_v42 = vpack.c.bf16 %v4606_v14, %v4605_v50  ;;  %vm13712_vm11 = vcmp.eq.s32.totalorder %v13666_v21, 1  ;;  %v13727_v46 = vld [vmem:[#allocation100_spill] sm:$0xff]  ;;  %v4890_v45 = vpop.permute.xlu1 %4889  ;;  %v13738_v49 = vld [vmem:[#allocation30_spill] sm:$0xff] }
 0x51f   : > { %v4346_v62 = vsel %vm13712_vm11, %v4154_v39, %v11763_v32  ;;  %v4409_v5 = vmax.f32 %v4345_v16, %v13713_v52  ;;  %vm13714_vm0 = vcmp.eq.s32.totalorder %v13672_v12, 1  ;;  %vm13715_vm2 = vcmp.eq.s32.totalorder %v13671_v61, 1  ;;  %v13722_v12 = vld [vmem:[#allocation133_spill] sm:$0xff]  ;;  %v4893_v48 = vpop.permute.xlu2 %4892 }
 0x520   : > { %vm6098_vm8 = vmpackc.low %vm13715_vm2, %vm13714_vm0  ;;  %v4410_v35 = vmax.f32 %v4346_v62, %v13716_v13  ;;  %v4151_v41 = vmax.f32 %v11740_v47, %v13717_v0  ;;  %v4152_v24 = vmax.f32 %v11754_v8, %v13718_v55  ;;  %v4149_v32 = vmax.f32 %v11858_v54, %v13719_v9  ;;  %6158 = vmatpush.bf16.msk.msrb.mxu2 %vm10851_vm3, %v6157_v42 }
 0x521   : > { %6100 = vmatpush.bf16.msk.msrb.mxu1 %vm6098_vm8, %v6099_v58  ;;  %6270 = vmatpush.bf16.msk.msra.mxu3 %vm6098_vm8, %v6099_v58  ;;  %vm13720_vm7 = vcmp.eq.s32.totalorder %v13677_v60, 1  ;;  %vm13721_vm11 = vcmp.eq.s32.totalorder %v13676_v26, 1  ;;  %v4150_v39 = vmax.f32 %v11868_v3, %v13722_v12  ;;  %v5065_v56 = vstv %s11898_s30  ;;  %v13741_v58 = vld [vmem:[#allocation17_spill] sm:$0xff] }
 0x522   : > { %v4585_v21 = vsel %vm13720_vm7, %v4409_v5, %v4345_v16  ;;  %v4601_v61 = vsel %vm13721_vm11, %v4409_v5, %v13713_v52  ;;  %v4586_v63 = vsel %vm4554_vm13, %v4410_v35, %v4346_v62  ;;  %vm13724_vm0 = vcmp.eq.s32.totalorder %v13683_v36, 1  ;;  %v5064_v36 = vld [vmem:[%s6558_s16] sm:$0x3]  ;;  %s5523_s16 = ssub.s32 %s10728_s28, %s11898_s30 }
 0x523   : > { %v4602_v60 = vsel %vm13724_vm0, %v4410_v35, %v13716_v13  ;;  %vm13725_vm2 = vcmp.eq.s32.totalorder %v13681_v6, 1  ;;  %vm13726_vm8 = vcmp.eq.s32.totalorder %v13682_v30, 1  ;;  %v6105_v37 = vpack.c.bf16 %v4586_v63, %v4585_v21 }
 0x524   : > { %v4343_v26 = vsel %vm13725_vm2, %v4151_v41, %v11740_v47  ;;  %v4344_v11 = vsel %vm13726_vm8, %v4152_v24, %v11754_v8  ;;  %v6163_v16 = vpack.c.bf16 %v4602_v60, %v4601_v61  ;;  %vm13729_vm3 = vcmp.eq.s32.totalorder %v13684_v40, 1  ;;  %6161 = vmatpush.bf16.msk.msrb.mxu2 %vm11030_vm15, %v6160_v27  ;;  %v13739_v27 = vld [vmem:[#allocation141_spill] sm:$0xff] }
 0x525   : > { %v4407_v50 = vmax.f32 %v4343_v26, %v13727_v46  ;;  %v4408_v23 = vmax.f32 %v4344_v11, %v13728_v29  ;;  %vm6101_vm13 = vmpackc.low %vm4991_vm5, %vm13729_vm3  ;;  %vm13730_vm7 = vcmp.eq.s32.totalorder %v13693_v31, 1  ;;  %vm13731_vm11 = vcmp.eq.s32.totalorder %v13694_v15, 1  ;;  %v5691_v60 = vld [vmem:[%s12224_s15] sm:$0xff] }
 0x526   : > { %v4341_v47 = vsel %vm13730_vm7, %v4149_v32, %v11858_v54  ;;  %v4342_v8 = vsel %vm13731_vm11, %v4150_v39, %v11868_v3  ;;  %vm13732_vm0 = vcmp.eq.s32.totalorder %v13696_v18, 1  ;;  %vm13733_vm5 = vcmp.eq.s32.totalorder %v13695_v51, 1  ;;  %6103 = vmatpush.bf16.msk.msrb.mxu1 %vm6101_vm13, %v6102_v20  ;;  %6271 = vmatpush.bf16.msk.msra.mxu3 %vm6101_vm13, %v6102_v20 }
 0x527   : > { %v4357_v6 = vsel %vm13732_vm0, %v4165_v38, %v13680_v17  ;;  %v4358_v30 = vsel %vm13733_vm5, %v4166_v57, %v13685_v44  ;;  %vm4989_vm2 = vcmp.eq.s32.totalorder %v11780_v59, 1  ;;  %v4583_v54 = vsel %vm4551_vm14, %v4407_v50, %v4343_v26 }
 0x528   : > { %v4584_v3 = vsel %vm4552_vm10, %v4408_v23, %v4344_v11  ;;  %vm13734_vm8 = vcmp.eq.s32.totalorder %v13701_v43, 1  ;;  %v4600_v38 = vsel %vm4568_vm9, %v4408_v23, %v13728_v29  ;;  %v4405_v40 = vmax.f32 %v4341_v47, %v4357_v6  ;;  %vm6104_vm10 = vmpackc.low %vm4989_vm2, %vm4988_vm4  ;;  %v13736_v43 = vld [vmem:[#allocation31_spill] sm:$0xff]  ;;  %6164 = vmatpush.bf16.msk.msrb.mxu2 %vm11063_vm1, %v6163_v16  ;;  %v5692_v23 = vld [vmem:[%s12224_s15 + $0x8] sm:$0xff] }
 0x529   : > { %v4599_v7 = vsel %vm13734_vm8, %v4407_v50, %v13727_v46  ;;  %v6108_v33 = vpack.c.bf16 %v4584_v3, %v4583_v54  ;;  %v4406_v44 = vmax.f32 %v4342_v8, %v4358_v30  ;;  %vm4549_vm3 = vcmp.eq.s32.totalorder %v4455_v34, 1 }
 0x52a   : > { %vm4550_vm13 = vcmp.eq.s32.totalorder %v4458_v25, 1  ;;  %v6166_v19 = vpack.c.bf16 %v4600_v38, %v4599_v7  ;;  %v5066_v57 = vsub.s32 %v5064_v36, %v5065_v56  ;;  %v4581_v10 = vsel %vm4549_vm3, %v4405_v40, %v4341_v47  ;;  %6106 = vmatpush.bf16.msk.msrb.mxu1 %vm6104_vm10, %v6105_v37  ;;  %6272 = vmatpush.bf16.msk.msra.mxu3 %vm6104_vm10, %v6105_v37  ;;  %v5693_v36 = vld [vmem:[%s12224_s15 + $0x10] sm:$0xff] }
 0x52b   : > { %v4582_v31 = vsel %vm4550_vm13, %v4406_v44, %v4342_v8  ;;  %v4597_v15 = vsel %vm4565_vm12, %v4405_v40, %v4357_v6  ;;  %v4598_v51 = vsel %vm4566_vm6, %v4406_v44, %v4358_v30  ;;  %vm4987_vm15 = vcmp.eq.s32.totalorder %v11977_v4, 1  ;;  %v5694_v44 = vld [vmem:[%s12224_s15 + $0x18] sm:$0xff] }
 0x52c   : > { %v6111_v18 = vpack.c.bf16 %v4582_v31, %v4581_v10  ;;  %v6169_v28 = vpack.c.bf16 %v4598_v51, %v4597_v15  ;;  %vm5002_vm9 = vcmp.eq.s32.totalorder %v13736_v43, 1  ;;  %v12057_v59 = vperm.slane %v5066_v57, 0  ;;  %v5695_v51 = vld [vmem:[%s12224_s15 + $0x20] sm:$0xff] }
 0x52d   : > { %vm4986_vm14 = vcmp.eq.s32.totalorder %v11914_v53, 1  ;;  %v12061_v14 = vadd.s32 8, %v13738_v49  ;;  %v12063_v20 = vperm.slane %v5066_v57, 1  ;;  %vm5003_vm12 = vcmp.eq.s32.totalorder %v13739_v27, 1 }
 0x52e   : > { %vm5001_vm6 = vcmp.eq.s32.totalorder %v13740_v22, 1  ;;  %vm6107_vm4 = vmpackc.low %vm4987_vm15, %vm4986_vm14  ;;  %vm4984_vm11 = vcmp.eq.s32.totalorder %v4890_v45, 1  ;;  %vm5000_vm1 = vcmp.eq.s32.totalorder %v13741_v58, 1  ;;  %vm5070_vm0 = vcmp.eq.s32.totalorder %v13738_v49, %v12057_v59  ;;  %v5696_v22 = vld [vmem:[%s12224_s15 + $0x28] sm:$0xff] }
 0x52f   : > { %vm6165_vm7 = vmpackc.low %vm5003_vm12, %vm5002_vm9  ;;  %6109 = vmatpush.bf16.msk.msrb.mxu1 %vm6107_vm4, %v6108_v33  ;;  %6273 = vmatpush.bf16.msk.msra.mxu3 %vm6107_vm4, %v6108_v33  ;;  %vm5072_vm5 = vcmp.eq.s32.totalorder %v12061_v14, %v12057_v59  ;;  %vm4985_vm8 = vcmp.eq.s32.totalorder %v4893_v48, 1  ;;  %vm5071_vm3 = vcmp.eq.s32.totalorder %v13738_v49, %v12063_v20  ;;  %vm5073_vm13 = vcmp.eq.s32.totalorder %v12061_v14, %v12063_v20 }
 0x530   : > { %6167 = vmatpush.bf16.msk.msrb.mxu2 %vm6165_vm7, %v6166_v19  ;;  %vm6168_vm2 = vmpackc.low %vm5001_vm6, %vm5000_vm1  ;;  %v6463_v53 = vmov 1.0|1.0   ;;  %v12081_v42 = vadd.s32 16, %v13738_v49  ;;  %v12084_v62 = vadd.s32 24, %v13738_v49  ;;  %v12097_v52 = vadd.s32 32, %v13738_v49 }
 0x531   : > { %vm6110_vm10 = vmpackc.low %vm4985_vm8, %vm4984_vm11  ;;  %v12100_v5 = vadd.s32 40, %v13738_v49  ;;  %v12113_v4 = vadd.s32 48, %v13738_v49  ;;  %v12116_v13 = vadd.s32 56, %v13738_v49  ;;  %v12129_v35 = vadd.s32 64, %v13738_v49 }
 0x532   : > { %vm6113_vm15 = vmpackc.low %vm5072_vm5, %vm5070_vm0  ;;  %vm5074_vm14 = vcmp.eq.s32.totalorder %v12081_v42, %v12057_v59  ;;  %vm5076_vm12 = vcmp.eq.s32.totalorder %v12084_v62, %v12057_v59  ;;  %vm5075_vm6 = vcmp.eq.s32.totalorder %v12081_v42, %v12063_v20  ;;  %vm5077_vm4 = vcmp.eq.s32.totalorder %v12084_v62, %v12063_v20 }
 0x533   : > { %6112 = vmatpush.bf16.msk.msrb.mxu1 %vm6110_vm10, %v6111_v18  ;;  %6274 = vmatpush.bf16.msk.msra.mxu3 %vm6110_vm10, %v6111_v18  ;;  %vm6171_vm9 = vmpackc.low %vm5073_vm13, %vm5071_vm3  ;;  %vm5078_vm1 = vcmp.eq.s32.totalorder %v12097_v52, %v12057_v59  ;;  %vm5080_vm0 = vcmp.eq.s32.totalorder %v12100_v5, %v12057_v59  ;;  %vm5079_vm5 = vcmp.eq.s32.totalorder %v12097_v52, %v12063_v20  ;;  %v12132_v0 = vadd.s32 72, %v13738_v49 }
 0x534   : > { %6170 = vmatpush.bf16.msk.msrb.mxu2 %vm6168_vm2, %v6169_v28  ;;  %vm6115_vm7 = vmpackc.low %vm5076_vm12, %vm5074_vm14  ;;  %vm5081_vm2 = vcmp.eq.s32.totalorder %v12100_v5, %v12063_v20  ;;  %vm5082_vm13 = vcmp.eq.s32.totalorder %v12113_v4, %v12057_v59  ;;  %vm5084_vm10 = vcmp.eq.s32.totalorder %v12116_v13, %v12057_v59  ;;  %v12145_v41 = vadd.s32 80, %v13738_v49 }
 0x535   : > { %vm6173_vm11 = vmpackc.low %vm5077_vm4, %vm5075_vm6  ;;  %vm5086_vm6 = vcmp.eq.s32.totalorder %v12129_v35, %v12057_v59  ;;  %vm5088_vm4 = vcmp.eq.s32.totalorder %v12132_v0, %v12057_v59  ;;  %v12148_v55 = vadd.s32 88, %v13738_v49  ;;  %v12161_v24 = vadd.s32 96, %v13738_v49 }
 0x536   : > { %6114 = vmatmul.msk.bf16.vlgmr.msrb.gmra.mxu1 %vm6113_vm15, %v6463_v53  ;;  %vm6117_vm8 = vmpackc.low %vm5080_vm0, %vm5078_vm1  ;;  %vm5083_vm15 = vcmp.eq.s32.totalorder %v12113_v4, %v12063_v20  ;;  %v12164_v9 = vadd.s32 104, %v13738_v49  ;;  %v12177_v32 = vadd.s32 112, %v13738_v49  ;;  %v12180_v21 = vadd.s32 120, %v13738_v49 }
 0x537   : > { %6172 = vmatmul.msk.bf16.vlgmr.msrb.gmra.mxu2 %vm6171_vm9, %v6463_v53  ;;  %vm6175_vm3 = vmpackc.low %vm5081_vm2, %vm5079_vm5  ;;  %vm5085_vm9 = vcmp.eq.s32.totalorder %v12116_v13, %v12063_v20  ;;  %vm5090_vm5 = vcmp.eq.s32.totalorder %v12145_v41, %v12057_v59  ;;  %vm5092_vm2 = vcmp.eq.s32.totalorder %v12148_v55, %v12057_v59  ;;  %v12193_v61 = vadd.s32 128, %v13738_v49 }
 0x538   : > { %vm6119_vm14 = vmpackc.low %vm5084_vm10, %vm5082_vm13  ;;  %v12196_v12 = vadd.s32 136, %v13738_v49  ;;  %v12210_v56 = vstv %s5488_s25  ;;  %v12212_v34 = vstv %s5523_s16  ;;  %v12228_v37 = vadd.s32 144, %v13738_v49 }
 0x539   : > { %vm6177_vm12 = vmpackc.low %vm5085_vm9, %vm5083_vm15  ;;  %vm5094_vm15 = vcmp.eq.s32.totalorder %v12161_v24, %v12057_v59  ;;  %vm5096_vm9 = vcmp.eq.s32.totalorder %v12164_v9, %v12057_v59  ;;  %v12231_v16 = vadd.s32 152, %v13738_v49  ;;  %v12258_v7 = vadd.s32 160, %v13738_v49 }
 0x53a   : > { %vm6121_vm1 = vmpackc.low %vm5088_vm4, %vm5086_vm6  ;;  %v12261_v17 = vadd.s32 168, %v13738_v49  ;;  %v12288_v43 = vadd.s32 176, %v13738_v49  ;;  %v12291_v45 = vadd.s32 184, %v13738_v49 }
 0x53b   : > { %vm6123_vm13 = vmpackc.low %vm5092_vm2, %vm5090_vm5 }
 0x53c   : > { %vm6125_vm6 = vmpackc.low %vm5096_vm9, %vm5094_vm15 }
 0x546   : > { %6116 = vmatmul.msk.bf16.gmra.mxu1 %vm6115_vm7, %v6463_v53  ;;  %vm5087_vm7 = vcmp.eq.s32.totalorder %v12129_v35, %v12063_v20 }
 0x547   : > { %6174 = vmatmul.msk.bf16.gmra.mxu2 %vm6173_vm11, %v6463_v53  ;;  %vm5089_vm11 = vcmp.eq.s32.totalorder %v12132_v0, %v12063_v20 }
 0x548   : > { %vm6179_vm0 = vmpackc.low %vm5089_vm11, %vm5087_vm7  ;;  %vm5098_vm7 = vcmp.eq.s32.totalorder %v12177_v32, %v12057_v59  ;;  %vm5100_vm11 = vcmp.eq.s32.totalorder %v12180_v21, %v12057_v59 }
 0x549   : > { %vm6127_vm5 = vmpackc.low %vm5100_vm11, %vm5098_vm7  ;;  %vm5526_vm7 = vcmp.le.s32.totalorder %v12061_v14, %v12212_v34  ;;  %vm13742_vm11 = vcmask 523264  }
 0x556   : > { %6118 = vmatmul.msk.bf16.gmra.mxu1 %vm6117_vm8, %v6463_v53  ;;  %vm5091_vm8 = vcmp.eq.s32.totalorder %v12145_v41, %v12063_v20 }
 0x557   : > { %6176 = vmatmul.msk.bf16.gmra.mxu2 %vm6175_vm3, %v6463_v53  ;;  %vm5093_vm3 = vcmp.eq.s32.totalorder %v12148_v55, %v12063_v20 }
 0x558   : > { %vm6181_vm10 = vmpackc.low %vm5093_vm3, %vm5091_vm8  ;;  %vm5102_vm8 = vcmp.eq.s32.totalorder %v12193_v61, %v12057_v59  ;;  %vm5104_vm3 = vcmp.eq.s32.totalorder %v12196_v12, %v12057_v59 }
 0x559   : > { %vm6129_vm15 = vmpackc.low %vm5104_vm3, %vm5102_vm8 }
 0x566   : > { %6120 = vmatmul.msk.bf16.gmra.mxu1 %vm6119_vm14, %v6463_v53  ;;  %vm5095_vm14 = vcmp.eq.s32.totalorder %v12161_v24, %v12063_v20 }
 0x567   : > { %6178 = vmatmul.msk.bf16.gmra.mxu2 %vm6177_vm12, %v6463_v53  ;;  %vm5097_vm12 = vcmp.eq.s32.totalorder %v12164_v9, %v12063_v20 }
 0x568   : > { %vm6183_vm4 = vmpackc.low %vm5097_vm12, %vm5095_vm14  ;;  %vm5490_vm14 = vcmp.ge.s32.totalorder %v13738_v49, %v12210_v56  ;;  %vm5525_vm12 = vcmp.le.s32.totalorder %v13738_v49, %v12212_v34 }
 0x576   : > { %6122 = vmatmul.msk.bf16.gmra.mxu1 %vm6121_vm1, %v6463_v53  ;;  %vm5099_vm1 = vcmp.eq.s32.totalorder %v12177_v32, %v12063_v20 }
 0x577   : > { %6180 = vmatmul.msk.bf16.gmra.mxu2 %vm6179_vm0, %v6463_v53  ;;  %vm5101_vm0 = vcmp.eq.s32.totalorder %v12180_v21, %v12063_v20 }
 0x578   : > { %vm6185_vm2 = vmpackc.low %vm5101_vm0, %vm5099_vm1  ;;  %vm5106_vm1 = vcmp.eq.s32.totalorder %v12228_v37, %v12057_v59  ;;  %vm5108_vm0 = vcmp.eq.s32.totalorder %v12231_v16, %v12057_v59 }
 0x579   : > { %vm6131_vm3 = vmpackc.low %vm5108_vm0, %vm5106_vm1  ;;  %vm5111_vm1 = vcmp.eq.s32.totalorder %v12258_v7, %v12063_v20  ;;  %vm5113_vm0 = vcmp.eq.s32.totalorder %v12261_v17, %v12063_v20 }
 0x586   : > { %6124 = vmatmul.msk.bf16.gmra.mxu1 %vm6123_vm13, %v6463_v53  ;;  %vm5103_vm13 = vcmp.eq.s32.totalorder %v12193_v61, %v12063_v20 }
 0x587   : > { %6182 = vmatmul.msk.bf16.gmra.mxu2 %vm6181_vm10, %v6463_v53  ;;  %vm5105_vm10 = vcmp.eq.s32.totalorder %v12196_v12, %v12063_v20 }
 0x588   : > { %vm6187_vm9 = vmpackc.low %vm5105_vm10, %vm5103_vm13  ;;  %vm5492_vm10 = vcmp.ge.s32.totalorder %v12081_v42, %v12210_v56 }
 0x596   : > { %6126 = vmatmul.msk.bf16.gmra.mxu1 %vm6125_vm6, %v6463_v53  ;;  %vm5558_vm6 = vmand %vm5490_vm14, %vm5525_vm12  ;;  %vm5493_vm12 = vcmp.ge.s32.totalorder %v12084_v62, %v12210_v56 }
 0x597   : > { %6184 = vmatmul.msk.bf16.gmra.mxu2 %vm6183_vm4, %v6463_v53  ;;  %vm5491_vm4 = vcmp.ge.s32.totalorder %v12061_v14, %v12210_v56 }
 0x598   : > { %vm5559_vm8 = vmand %vm5491_vm4, %vm5526_vm7  ;;  %vm5110_vm7 = vcmp.eq.s32.totalorder %v12258_v7, %v12057_v59 }
 0x5a6   : > { %6128 = vmatmul.msk.bf16.gmra.mxu1 %vm6127_vm5, %v6463_v53  ;;  %vm5107_vm5 = vcmp.eq.s32.totalorder %v12228_v37, %v12063_v20 }
 0x5a7   : > { %6186 = vmatmul.msk.bf16.gmra.mxu2 %vm6185_vm2, %v6463_v53  ;;  %vm5109_vm2 = vcmp.eq.s32.totalorder %v12231_v16, %v12063_v20 }
 0x5a8   : > { %vm6189_vm13 = vmpackc.low %vm5109_vm2, %vm5107_vm5 }
 0x5b3   : > { %v5311_v39 = vpop.f32.mrf.mxu1 }
 0x5b6   : > { %6130 = vmatmul.msk.bf16.gmra.mxu1 %vm6129_vm15, %v6463_v53  ;;  %vm5527_vm15 = vcmp.le.s32.totalorder %v12081_v42, %v12212_v34 }
 0x5b7   : > { %6188 = vmatmul.msk.bf16.gmra.mxu2 %vm6187_vm9, %v6463_v53  ;;  %vm13743_vm9 = vmmov %vm13742_vm11 }
 0x5b8   : > { %vm5560_vm14 = vmand %vm5492_vm10, %vm5527_vm15 }
 0x5b9   : > { %vm13744_vm4 = vmmov %vm13743_vm9 }
 0x5ba   : > { %v5404_v2 = vpop.f32.mrf.mxu2  ;;  %vm13745_vm10 = vmmov %vm13744_vm4 }
 0x5bb   : > { %v5405_v63 = vadd.f32 %v5404_v2, %v5311_v39  ;;  %v5313_v26 = vpop.f32.mrf.mxu1 }
 0x5bd   : > { %v5657_v11 = vsel %vm5558_vm6, %v5405_v63, -inf  ;;  %vm5528_vm6 = vcmp.le.s32.totalorder %v12084_v62, %v12212_v34  ;;  %v12318_v63 = vadd.s32 192, %v13738_v49 }
 0x5be   : > { %v5724_v46 = vmax.f32 %v5691_v60, %v5657_v11  ;;  %vm5561_vm5 = vmand %vm5493_vm12, %vm5528_vm6  ;;  %vm5114_vm6 = vcmp.eq.s32.totalorder %v12288_v43, %v12057_v59  ;;  %v12321_v60 = vadd.s32 200, %v13738_v49 }
 0x5bf   : > { %vm13746_vm12 = vmmov %vm13744_vm4 }
 0x5c0   : > { %5757 = vst.msk [vmem:[%s12224_s15] sm:$0xff] %vm13742_vm11, %v5724_v46  ;;  %vm5112_vm11 = vcmp.eq.s32.totalorder %v12261_v17, %v12057_v59 }
 0x5c1   : > { %vm6133_vm2 = vmpackc.low %vm5112_vm11, %vm5110_vm7  ;;  %vm5115_vm7 = vcmp.eq.s32.totalorder %v12288_v43, %v12063_v20  ;;  %vm5117_vm11 = vcmp.eq.s32.totalorder %v12291_v45, %v12063_v20 }
 0x5c2   : > { %v5406_v50 = vpop.f32.mrf.mxu2 }
 0x5c3   : > { %v5407_v29 = vadd.f32 %v5406_v50, %v5313_v26  ;;  %v5316_v25 = vpop.f32.mrf.mxu1 }
 0x5c5   : > { %v5658_v47 = vsel %vm5559_vm8, %v5407_v29, -inf  ;;  %vm6191_vm8 = vmpackc.low %vm5113_vm0, %vm5111_vm1 }
 0x5c6   : > { %v5725_v8 = vmax.f32 %v5692_v23, %v5658_v47  ;;  %6132 = vmatmul.msk.bf16.gmra.mxu1 %vm6131_vm3, %v6463_v53  ;;  %vm5494_vm3 = vcmp.ge.s32.totalorder %v12097_v52, %v12210_v56  ;;  %v5699_v47 = vld [vmem:[%s12224_s15 + $0x40] sm:$0xff] }
 0x5c7   : > { %6190 = vmatmul.msk.bf16.gmra.mxu2 %vm6189_vm13, %v6463_v53  ;;  %vm5529_vm13 = vcmp.le.s32.totalorder %v12097_v52, %v12212_v34 }
 0x5c8   : > { %5758 = vst.msk [vmem:[%s12224_s15 + $0x8] sm:$0xff] %vm13743_vm9, %v5725_v8  ;;  %vm5562_vm15 = vmand %vm5494_vm3, %vm5529_vm13  ;;  %vm5495_vm9 = vcmp.ge.s32.totalorder %v12100_v5, %v12210_v56 }
 0x5c9   : > { %vm13747_vm3 = vmmov %vm13745_vm10 }
 0x5ca   : > { %v5409_v6 = vpop.f32.mrf.mxu2 }
 0x5cb   : > { %v5410_v30 = vadd.f32 %v5409_v6, %v5316_v25  ;;  %v5318_v54 = vpop.f32.mrf.mxu1 }
 0x5cd   : > { %v5659_v3 = vsel %vm5560_vm14, %v5410_v30, -inf  ;;  %vm5530_vm14 = vcmp.le.s32.totalorder %v12100_v5, %v12212_v34  ;;  %v5697_v5 = vld [vmem:[%s12224_s15 + $0x30] sm:$0xff]  ;;  %v12348_v30 = vadd.s32 208, %v13738_v49 }
 0x5ce   : > { %v5726_v33 = vmax.f32 %v5693_v36, %v5659_v3  ;;  %vm5563_vm1 = vmand %vm5495_vm9, %vm5530_vm14  ;;  %vm5118_vm14 = vcmp.eq.s32.totalorder %v12318_v63, %v12057_v59  ;;  %v12351_v36 = vadd.s32 216, %v13738_v49 }
 0x5cf   : > { %vm13748_vm9 = vmmov %vm13747_vm3 }
 0x5d0   : > { %5759 = vst.msk [vmem:[%s12224_s15 + $0x10] sm:$0xff] %vm13744_vm4, %v5726_v33  ;;  %vm5116_vm4 = vcmp.eq.s32.totalorder %v12291_v45, %v12057_v59 }
 0x5d1   : > { %vm6135_vm0 = vmpackc.low %vm5116_vm4, %vm5114_vm6  ;;  %vm5119_vm6 = vcmp.eq.s32.totalorder %v12318_v63, %v12063_v20  ;;  %vm5121_vm4 = vcmp.eq.s32.totalorder %v12321_v60, %v12063_v20 }
 0x5d2   : > { %v5411_v38 = vpop.f32.mrf.mxu2 }
 0x5d3   : > { %v5412_v40 = vadd.f32 %v5411_v38, %v5318_v54  ;;  %v5321_v19 = vpop.f32.mrf.mxu1 }
 0x5d5   : > { %v5660_v57 = vsel %vm5561_vm5, %v5412_v40, -inf  ;;  %vm6193_vm5 = vmpackc.low %vm5117_vm11, %vm5115_vm7 }
 0x5d6   : > { %v5727_v10 = vmax.f32 %v5694_v44, %v5660_v57  ;;  %6134 = vmatmul.msk.bf16.gmra.mxu1 %vm6133_vm2, %v6463_v53  ;;  %vm5496_vm2 = vcmp.ge.s32.totalorder %v12113_v4, %v12210_v56  ;;  %v5701_v57 = vld [vmem:[%s12224_s15 + $0x50] sm:$0xff] }
 0x5d7   : > { %6192 = vmatmul.msk.bf16.gmra.mxu2 %vm6191_vm8, %v6463_v53  ;;  %vm5531_vm8 = vcmp.le.s32.totalorder %v12113_v4, %v12212_v34 }
 0x5d8   : > { %5760 = vst.msk [vmem:[%s12224_s15 + $0x18] sm:$0xff] %vm13745_vm10, %v5727_v10  ;;  %vm5564_vm13 = vmand %vm5496_vm2, %vm5531_vm8  ;;  %vm5497_vm10 = vcmp.ge.s32.totalorder %v12116_v13, %v12210_v56 }
 0x5d9   : > { %vm13749_vm2 = vmmov %vm13747_vm3 }
 0x5da   : > { %v5414_v31 = vpop.f32.mrf.mxu2 }
 0x5db   : > { %v5415_v15 = vadd.f32 %v5414_v31, %v5321_v19  ;;  %v5323_v18 = vpop.f32.mrf.mxu1 }
 0x5dd   : > { %v5661_v28 = vsel %vm5562_vm15, %v5415_v15, -inf  ;;  %vm5532_vm15 = vcmp.le.s32.totalorder %v12116_v13, %v12212_v34  ;;  %v5698_v13 = vld [vmem:[%s12224_s15 + $0x38] sm:$0xff]  ;;  %v12378_v15 = vadd.s32 224, %v13738_v49 }
 0x5de   : > { %v5728_v1 = vmax.f32 %v5695_v51, %v5661_v28  ;;  %vm5565_vm7 = vmand %vm5497_vm10, %vm5532_vm15  ;;  %vm5122_vm15 = vcmp.eq.s32.totalorder %v12348_v30, %v12057_v59  ;;  %v12381_v51 = vadd.s32 232, %v13738_v49 }
 0x5df   : > { %vm13750_vm10 = vmmov %vm13749_vm2 }
 0x5e0   : > { %5761 = vst.msk [vmem:[%s12224_s15 + $0x20] sm:$0xff] %vm13746_vm12, %v5728_v1  ;;  %vm5120_vm12 = vcmp.eq.s32.totalorder %v12321_v60, %v12057_v59  ;;  %v5702_v1 = vld [vmem:[%s12224_s15 + $0x58] sm:$0xff] }
 0x5e1   : > { %vm6137_vm11 = vmpackc.low %vm5120_vm12, %vm5118_vm14  ;;  %vm5123_vm14 = vcmp.eq.s32.totalorder %v12348_v30, %v12063_v20  ;;  %vm5125_vm12 = vcmp.eq.s32.totalorder %v12351_v36, %v12063_v20 }
 0x5e2   : > { %v5416_v14 = vpop.f32.mrf.mxu2 }
 0x5e3   : > { %v5417_v27 = vadd.f32 %v5416_v14, %v5323_v18  ;;  %v5326_v48 = vpop.f32.mrf.mxu1 }
 0x5e5   : > { %v5662_v58 = vsel %vm5563_vm1, %v5417_v27, -inf  ;;  %vm6195_vm1 = vmpackc.low %vm5121_vm4, %vm5119_vm6 }
 0x5e6   : > { %v5729_v42 = vmax.f32 %v5696_v22, %v5662_v58  ;;  %6136 = vmatmul.msk.bf16.gmra.mxu1 %vm6135_vm0, %v6463_v53  ;;  %vm5498_vm0 = vcmp.ge.s32.totalorder %v12129_v35, %v12210_v56  ;;  %v12407_v22 = vadd.s32 256, %v13738_v49 }
 0x5e7   : > { %6194 = vmatmul.msk.bf16.gmra.mxu2 %vm6193_vm5, %v6463_v53  ;;  %vm5533_vm5 = vcmp.le.s32.totalorder %v12129_v35, %v12212_v34 }
 0x5e8   : > { %5762 = vst.msk [vmem:[%s12224_s15 + $0x28] sm:$0xff] %vm13747_vm3, %v5729_v42  ;;  %vm5566_vm8 = vmand %vm5498_vm0, %vm5533_vm5  ;;  %vm5499_vm3 = vcmp.ge.s32.totalorder %v12132_v0, %v12210_v56  ;;  %v5703_v42 = vld [vmem:[%s12224_s15 + $0x60] sm:$0xff] }
 0x5e9   : > { %vm13751_vm0 = vmmov %vm13749_vm2 }
 0x5ea   : > { %v5419_v62 = vpop.f32.mrf.mxu2 }
 0x5eb   : > { %v5420_v52 = vadd.f32 %v5419_v62, %v5326_v48  ;;  %v5328_v39 = vpop.f32.mrf.mxu1 }
 0x5ed   : > { %v5663_v2 = vsel %vm5564_vm13, %v5420_v52, -inf  ;;  %vm5534_vm13 = vcmp.le.s32.totalorder %v12132_v0, %v12212_v34  ;;  %v5700_v0 = vld [vmem:[%s12224_s15 + $0x48] sm:$0xff] }
 0x5ee   : > { %v5730_v26 = vmax.f32 %v5697_v5, %v5663_v2  ;;  %vm5567_vm6 = vmand %vm5499_vm3, %vm5534_vm13  ;;  %vm5126_vm13 = vcmp.eq.s32.totalorder %v12378_v15, %v12057_v59  ;;  %v12417_v5 = vadd.s32 248, %v13738_v49 }
 0x5ef   : > { %vm13752_vm3 = vmmov %vm13751_vm0 }
 0x5f0   : > { %5763 = vst.msk [vmem:[%s12224_s15 + $0x30] sm:$0xff] %vm13748_vm9, %v5730_v26  ;;  %vm5124_vm9 = vcmp.eq.s32.totalorder %v12351_v36, %v12057_v59 }
 0x5f1   : > { %vm6139_vm4 = vmpackc.low %vm5124_vm9, %vm5122_vm15  ;;  %vm5127_vm15 = vcmp.eq.s32.totalorder %v12378_v15, %v12063_v20  ;;  %vm5129_vm9 = vcmp.eq.s32.totalorder %v12381_v51, %v12063_v20 }
 0x5f2   : > { %v5421_v4 = vpop.f32.mrf.mxu2 }
 0x5f3   : > { %v5422_v11 = vadd.f32 %v5421_v4, %v5328_v39  ;;  %v5331_v46 = vpop.f32.mrf.mxu1 }
 0x5f5   : > { %v5664_v50 = vsel %vm5565_vm7, %v5422_v11, -inf  ;;  %vm6197_vm7 = vmpackc.low %vm5125_vm12, %vm5123_vm14 }
 0x5f6   : > { %v5731_v29 = vmax.f32 %v5698_v13, %v5664_v50  ;;  %6138 = vmatmul.msk.bf16.gmra.mxu1 %vm6137_vm11, %v6463_v53  ;;  %vm5500_vm11 = vcmp.ge.s32.totalorder %v12145_v41, %v12210_v56 }
 0x5f7   : > { %6196 = vmatmul.msk.bf16.gmra.mxu2 %vm6195_vm1, %v6463_v53  ;;  %vm5535_vm1 = vcmp.le.s32.totalorder %v12145_v41, %v12212_v34 }
 0x5f8   : > { %5764 = vst.msk [vmem:[%s12224_s15 + $0x38] sm:$0xff] %vm13749_vm2, %v5731_v29  ;;  %vm5568_vm5 = vmand %vm5500_vm11, %vm5535_vm1  ;;  %vm5501_vm2 = vcmp.ge.s32.totalorder %v12148_v55, %v12210_v56 }
 0x5f9   : > { %vm13753_vm11 = vmmov %vm13751_vm0 }
 0x5fa   : > { %v5424_v23 = vpop.f32.mrf.mxu2 }
 0x5fb   : > { %v5425_v25 = vadd.f32 %v5424_v23, %v5331_v46  ;;  %v5333_v8 = vpop.f32.mrf.mxu1  ;;  %v5705_v46 = vld [vmem:[%s12224_s15 + $0x70] sm:$0xff] }
 0x5fd   : > { %v5665_v6 = vsel %vm5566_vm8, %v5425_v25, -inf  ;;  %vm5536_vm8 = vcmp.le.s32.totalorder %v12148_v55, %v12212_v34 }
 0x5fe   : > { %v5732_v54 = vmax.f32 %v5699_v47, %v5665_v6  ;;  %vm5569_vm14 = vmand %vm5501_vm2, %vm5536_vm8  ;;  %vm5503_vm2 = vcmp.ge.s32.totalorder %v12164_v9, %v12210_v56  ;;  %vm5538_vm8 = vcmp.le.s32.totalorder %v12164_v9, %v12212_v34  ;;  %v5704_v9 = vld [vmem:[%s12224_s15 + $0x68] sm:$0xff]  ;;  %v5706_v47 = vld [vmem:[%s12224_s15 + $0x78] sm:$0xff] }
 0x600   : > { %5765 = vst.msk [vmem:[%s12224_s15 + $0x40] sm:$0xff] %vm13750_vm10, %v5732_v54  ;;  %vm5128_vm10 = vcmp.eq.s32.totalorder %v12381_v51, %v12057_v59 }
 0x601   : > { %vm6141_vm12 = vmpackc.low %vm5128_vm10, %vm5126_vm13  ;;  %vm5132_vm10 = vcmp.eq.s32.totalorder %v12417_v5, %v12057_v59 }
 0x602   : > { %v5426_v35 = vpop.f32.mrf.mxu2 }
 0x603   : > { %v5427_v3 = vadd.f32 %v5426_v35, %v5333_v8  ;;  %v5336_v33 = vpop.f32.mrf.mxu1  ;;  %v5707_v35 = vld [vmem:[%s12224_s15 + $0x80] sm:$0xff] }
 0x605   : > { %v5666_v38 = vsel %vm5567_vm6, %v5427_v3, -inf  ;;  %vm6199_vm6 = vmpackc.low %vm5129_vm9, %vm5127_vm15  ;;  %vm5133_vm9 = vcmp.eq.s32.totalorder %v12417_v5, %v12063_v20 }
 0x606   : > { %v5733_v40 = vmax.f32 %v5700_v0, %v5666_v38  ;;  %6140 = vmatmul.msk.bf16.gmra.mxu1 %vm6139_vm4, %v6463_v53  ;;  %vm5502_vm4 = vcmp.ge.s32.totalorder %v12161_v24, %v12210_v56  ;;  %v5708_v38 = vld [vmem:[%s12224_s15 + $0x88] sm:$0xff] }
 0x607   : > { %6198 = vmatmul.msk.bf16.gmra.mxu2 %vm6197_vm7, %v6463_v53  ;;  %vm5537_vm7 = vcmp.le.s32.totalorder %v12161_v24, %v12212_v34  ;;  %v12414_v24 = vadd.s32 240, %v13738_v49 }
 0x608   : > { %5766 = vst.msk [vmem:[%s12224_s15 + $0x48] sm:$0xff] %vm13751_vm0, %v5733_v40  ;;  %vm5570_vm1 = vmand %vm5502_vm4, %vm5537_vm7  ;;  %vm5134_vm0 = vcmp.eq.s32.totalorder %v12407_v22, %v12057_v59  ;;  %vm5504_vm4 = vcmp.ge.s32.totalorder %v12177_v32, %v12210_v56  ;;  %vm5539_vm7 = vcmp.le.s32.totalorder %v12177_v32, %v12212_v34 }
 0x609   : > { %vm5130_vm13 = vcmp.eq.s32.totalorder %v12414_v24, %v12057_v59  ;;  %vm5131_vm15 = vcmp.eq.s32.totalorder %v12414_v24, %v12063_v20 }
 0x60a   : > { %v5429_v44 = vpop.f32.mrf.mxu2 }
 0x60b   : > { %v5430_v19 = vadd.f32 %v5429_v44, %v5336_v33  ;;  %v5338_v10 = vpop.f32.mrf.mxu1 }
 0x60d   : > { %v5667_v31 = vsel %vm5568_vm5, %v5430_v19, -inf  ;;  %vm6145_vm5 = vmpackc.low %vm5134_vm0, %vm5134_vm0  ;;  %vm5505_vm0 = vcmp.ge.s32.totalorder %v12180_v21, %v12210_v56 }
 0x60e   : > { %v5734_v18 = vmax.f32 %v5701_v57, %v5667_v31  ;;  %6146 = vmatmul.msk.bf16.vlgmr.msra.gmra.mxu3 %vm6145_vm5, %v6463_v53  ;;  %vm5540_vm5 = vcmp.le.s32.totalorder %v12180_v21, %v12212_v34 }
 0x610   : > { %5767 = vst.msk [vmem:[%s12224_s15 + $0x50] sm:$0xff] %vm13752_vm3, %v5734_v18 }
 0x612   : > { %v5431_v41 = vpop.f32.mrf.mxu2 }
 0x613   : > { %v5432_v28 = vadd.f32 %v5431_v41, %v5338_v10  ;;  %v5341_v55 = vpop.f32.mrf.mxu1  ;;  %v5709_v10 = vld [vmem:[%s12224_s15 + $0x90] sm:$0xff] }
 0x615   : > { %v5668_v14 = vsel %vm5569_vm14, %v5432_v28, -inf  ;;  %vm5571_vm14 = vmand %vm5503_vm2, %vm5538_vm8  ;;  %vm5135_vm8 = vcmp.eq.s32.totalorder %v12407_v22, %v12063_v20 }
 0x616   : > { %v5735_v27 = vmax.f32 %v5702_v1, %v5668_v14  ;;  %6142 = vmatmul.msk.bf16.gmra.mxu1 %vm6141_vm12, %v6463_v53  ;;  %vm6143_vm12 = vmpackc.low %vm5132_vm10, %vm5130_vm13  ;;  %vm5506_vm10 = vcmp.ge.s32.totalorder %v12193_v61, %v12210_v56  ;;  %v5710_v1 = vld [vmem:[%s12224_s15 + $0x98] sm:$0xff] }
 0x617   : > { %6200 = vmatmul.msk.bf16.gmra.mxu2 %vm6199_vm6, %v6463_v53  ;;  %vm6201_vm6 = vmpackc.low %vm5133_vm9, %vm5131_vm15  ;;  %vm5541_vm15 = vcmp.le.s32.totalorder %v12193_v61, %v12212_v34 }
 0x618   : > { %5768 = vst.msk [vmem:[%s12224_s15 + $0x58] sm:$0xff] %vm13753_vm11, %v5735_v27  ;;  %vm13754_vm11 = vmmov %vm13752_vm3 }
 0x619   : > { %vm13755_vm2 = vmmov %vm13752_vm3 }
 0x61a   : > { %v5434_v48 = vpop.f32.mrf.mxu2  ;;  %vm6203_vm13 = vmpackc.low %vm5135_vm8, %vm5135_vm8  ;;  %vm5544_vm8 = vcmp.le.s32.totalorder %v12231_v16, %v12212_v34 }
 0x61b   : > { %v5435_v58 = vadd.f32 %v5434_v48, %v5341_v55  ;;  %v5343_v62 = vpop.f32.mrf.mxu1  ;;  %vm13756_vm9 = vmmov %vm13755_vm2 }
 0x61d   : > { %v5669_v52 = vsel %vm5570_vm1, %v5435_v58, -inf  ;;  %vm5572_vm1 = vmand %vm5504_vm4, %vm5539_vm7  ;;  %v5711_v58 = vld [vmem:[%s12224_s15 + $0xa0] sm:$0xff] }
 0x61e   : > { %v5736_v39 = vmax.f32 %v5703_v42, %v5669_v52  ;;  %vm13757_vm4 = vmmov %vm13755_vm2 }
 0x620   : > { %5769 = vst.msk [vmem:[%s12224_s15 + $0x60] sm:$0xff] %vm13752_vm3, %v5736_v39  ;;  %vm5573_vm3 = vmand %vm5505_vm0, %vm5540_vm5 }
 0x621   : > { %vm13758_vm0 = vmmov %vm13755_vm2 }
 0x622   : > { %v5436_v49 = vpop.f32.mrf.mxu2 }
 0x623   : > { %v5437_v2 = vadd.f32 %v5436_v49, %v5343_v62  ;;  %v5346_v26 = vpop.f32.mrf.mxu1  ;;  %v5712_v49 = vld [vmem:[%s12224_s15 + $0xa8] sm:$0xff] }
 0x625   : > { %v5670_v4 = vsel %vm5571_vm14, %v5437_v2, -inf  ;;  %vm5574_vm14 = vmand %vm5506_vm10, %vm5541_vm15  ;;  %vm5510_vm10 = vcmp.ge.s32.totalorder %v12258_v7, %v12210_v56  ;;  %vm5545_vm15 = vcmp.le.s32.totalorder %v12258_v7, %v12212_v34 }
 0x626   : > { %v5737_v11 = vmax.f32 %v5704_v9, %v5670_v4  ;;  %6144 = vmatmul.msk.bf16.gmra.mxu1 %vm6143_vm12, %v6463_v53  ;;  %vm5507_vm12 = vcmp.ge.s32.totalorder %v12196_v12, %v12210_v56 }
 0x627   : > { %6202 = vmatmul.msk.bf16.gmra.mxu2 %vm6201_vm6, %v6463_v53  ;;  %vm5542_vm6 = vcmp.le.s32.totalorder %v12196_v12, %v12212_v34 }
 0x628   : > { %5770 = vst.msk [vmem:[%s12224_s15 + $0x68] sm:$0xff] %vm13754_vm11, %v5737_v11  ;;  %vm5575_vm7 = vmand %vm5507_vm12, %vm5542_vm6  ;;  %vm5508_vm11 = vcmp.ge.s32.totalorder %v12228_v37, %v12210_v56  ;;  %vm5511_vm12 = vcmp.ge.s32.totalorder %v12261_v17, %v12210_v56  ;;  %vm5546_vm6 = vcmp.le.s32.totalorder %v12261_v17, %v12212_v34  ;;  %v5713_v11 = vld [vmem:[%s12224_s15 + $0xb0] sm:$0xff] }
 0x62a   : > { %v5439_v59 = vpop.f32.mrf.mxu2 }
 0x62b   : > { %v5440_v13 = vadd.f32 %v5439_v59, %v5346_v26  ;;  %v5348_v50 = vpop.f32.mrf.mxu1 }
 0x62d   : > { %v5671_v29 = vsel %vm5572_vm1, %v5440_v13, -inf  ;;  %vm5543_vm1 = vcmp.le.s32.totalorder %v12228_v37, %v12212_v34 }
 0x62e   : > { %v5738_v23 = vmax.f32 %v5705_v46, %v5671_v29  ;;  %vm5576_vm5 = vmand %vm5508_vm11, %vm5543_vm1  ;;  %vm5512_vm11 = vcmp.ge.s32.totalorder %v12288_v43, %v12210_v56  ;;  %vm5547_vm1 = vcmp.le.s32.totalorder %v12288_v43, %v12212_v34  ;;  %v5714_v29 = vld [vmem:[%s12224_s15 + $0xb8] sm:$0xff] }
 0x630   : > { %5771 = vst.msk [vmem:[%s12224_s15 + $0x70] sm:$0xff] %vm13755_vm2, %v5738_v23  ;;  %vm5509_vm2 = vcmp.ge.s32.totalorder %v12231_v16, %v12210_v56 }
 0x632   : > { %v5441_v32 = vpop.f32.mrf.mxu2 }
 0x633   : > { %v5442_v25 = vadd.f32 %v5441_v32, %v5348_v50  ;;  %v5351_v8 = vpop.f32.mrf.mxu1 }
 0x635   : > { %v5672_v6 = vsel %vm5573_vm3, %v5442_v25, -inf  ;;  %vm13759_vm3 = vmmov %vm13758_vm0 }
 0x636   : > { %v5739_v54 = vmax.f32 %v5706_v47, %v5672_v6 }
 0x637   : > { %6204 = vmatmul.msk.bf16.gmra.mxu2 %vm6203_vm13, %v6463_v53  ;;  %vm5577_vm13 = vmand %vm5509_vm2, %vm5544_vm8  ;;  %vm5513_vm2 = vcmp.ge.s32.totalorder %v12291_v45, %v12210_v56  ;;  %vm5548_vm8 = vcmp.le.s32.totalorder %v12291_v45, %v12212_v34 }
 0x638   : > { %5772 = vst.msk [vmem:[%s12224_s15 + $0x78] sm:$0xff] %vm13756_vm9, %v5739_v54  ;;  %vm13760_vm9 = vmmov %vm13758_vm0 }
 0x63a   : > { %v5444_v20 = vpop.f32.mrf.mxu2 }
 0x63b   : > { %v5445_v21 = vadd.f32 %v5444_v20, %v5351_v8  ;;  %v5353_v3 = vpop.f32.mrf.mxu1  ;;  %v5715_v8 = vld [vmem:[%s12224_s15 + $0xc0] sm:$0xff] }
 0x63d   : > { %v5673_v0 = vsel %vm5574_vm14, %v5445_v21, -inf  ;;  %vm5578_vm14 = vmand %vm5510_vm10, %vm5545_vm15  ;;  %vm5514_vm10 = vcmp.ge.s32.totalorder %v12318_v63, %v12210_v56  ;;  %vm5549_vm15 = vcmp.le.s32.totalorder %v12318_v63, %v12212_v34 }
 0x63e   : > { %v5740_v33 = vmax.f32 %v5707_v35, %v5673_v0  ;;  %v5716_v35 = vld [vmem:[%s12224_s15 + $0xc8] sm:$0xff] }
 0x640   : > { %5773 = vst.msk [vmem:[%s12224_s15 + $0x80] sm:$0xff] %vm13757_vm4, %v5740_v33  ;;  %vm13761_vm4 = vmmov %vm13758_vm0 }
 0x642   : > { %v5446_v53 = vpop.f32.mrf.mxu2 }
 0x643   : > { %v5447_v61 = vadd.f32 %v5446_v53, %v5353_v3  ;;  %v5356_v40 = vpop.f32.mrf.mxu1 }
 0x645   : > { %v5674_v44 = vsel %vm5575_vm7, %v5447_v61, -inf  ;;  %vm5579_vm7 = vmand %vm5511_vm12, %vm5546_vm6  ;;  %vm5515_vm12 = vcmp.ge.s32.totalorder %v12321_v60, %v12210_v56  ;;  %vm5550_vm6 = vcmp.le.s32.totalorder %v12321_v60, %v12212_v34  ;;  %v5717_v61 = vld [vmem:[%s12224_s15 + $0xd0] sm:$0xff] }
 0x646   : > { %v5741_v19 = vmax.f32 %v5708_v38, %v5674_v44 }
 0x648   : > { %5774 = vst.msk [vmem:[%s12224_s15 + $0x88] sm:$0xff] %vm13758_vm0, %v5741_v19 }
 0x64a   : > { %v5449_v12 = vpop.f32.mrf.mxu2 }
 0x64b   : > { %v5450_v57 = vadd.f32 %v5449_v12, %v5356_v40  ;;  %v5358_v31 = vpop.f32.mrf.mxu1  ;;  %v5718_v12 = vld [vmem:[%s12224_s15 + $0xd8] sm:$0xff] }
 0x64d   : > { %v5675_v18 = vsel %vm5576_vm5, %v5450_v57, -inf  ;;  %vm5580_vm5 = vmand %vm5512_vm11, %vm5547_vm1  ;;  %vm5516_vm11 = vcmp.ge.s32.totalorder %v12348_v30, %v12210_v56  ;;  %vm5551_vm1 = vcmp.le.s32.totalorder %v12348_v30, %v12212_v34 }
 0x64e   : > { %v5742_v41 = vmax.f32 %v5709_v10, %v5675_v18 }
 0x650   : > { %5775 = vst.msk [vmem:[%s12224_s15 + $0x90] sm:$0xff] %vm13759_vm3, %v5742_v41  ;;  %vm13762_vm3 = vmmov %vm13758_vm0  ;;  %v5719_v41 = vld [vmem:[%s12224_s15 + $0xe0] sm:$0xff] }
 0x652   : > { %v5451_v37 = vpop.f32.mrf.mxu2 }
 0x653   : > { %v5452_v28 = vadd.f32 %v5451_v37, %v5358_v31  ;;  %v5361_v55 = vpop.f32.mrf.mxu1 }
 0x655   : > { %v5676_v14 = vsel %vm5577_vm13, %v5452_v28, -inf  ;;  %vm5581_vm13 = vmand %vm5513_vm2, %vm5548_vm8  ;;  %vm5517_vm2 = vcmp.ge.s32.totalorder %v12351_v36, %v12210_v56  ;;  %vm5552_vm8 = vcmp.le.s32.totalorder %v12351_v36, %v12212_v34 }
 0x656   : > { %v5743_v27 = vmax.f32 %v5710_v1, %v5676_v14 }
 0x658   : > { %5776 = vst.msk [vmem:[%s12224_s15 + $0x98] sm:$0xff] %vm13760_vm9, %v5743_v27  ;;  %vm13763_vm9 = vmmov %vm13758_vm0  ;;  %v5720_v27 = vld [vmem:[%s12224_s15 + $0xe8] sm:$0xff] }
 0x65a   : > { %v5454_v16 = vpop.f32.mrf.mxu2 }
 0x65b   : > { %v5455_v48 = vadd.f32 %v5454_v16, %v5361_v55  ;;  %v5363_v42 = vpop.f32.mrf.mxu1 }
 0x65d   : > { %v5677_v62 = vsel %vm5578_vm14, %v5455_v48, -inf  ;;  %vm5582_vm14 = vmand %vm5514_vm10, %vm5549_vm15  ;;  %vm5518_vm10 = vcmp.ge.s32.totalorder %v12378_v15, %v12210_v56  ;;  %vm5553_vm15 = vcmp.le.s32.totalorder %v12378_v15, %v12212_v34 }
 0x65e   : > { %v5744_v52 = vmax.f32 %v5711_v58, %v5677_v62 }
 0x660   : > { %5777 = vst.msk [vmem:[%s12224_s15 + $0xa0] sm:$0xff] %vm13761_vm4, %v5744_v52  ;;  %vm13764_vm4 = vmmov %vm13758_vm0  ;;  %v5721_v52 = vld [vmem:[%s12224_s15 + $0xf0] sm:$0xff] }
 0x662   : > { %v5456_v7 = vpop.f32.mrf.mxu2 }
 0x663   : > { %v5457_v39 = vadd.f32 %v5456_v7, %v5363_v42  ;;  %v5366_v2 = vpop.f32.mrf.mxu1 }
 0x665   : > { %v5678_v9 = vsel %vm5579_vm7, %v5457_v39, -inf  ;;  %vm5583_vm7 = vmand %vm5515_vm12, %vm5550_vm6  ;;  %vm5519_vm12 = vcmp.ge.s32.totalorder %v12381_v51, %v12210_v56  ;;  %vm5554_vm6 = vcmp.le.s32.totalorder %v12381_v51, %v12212_v34 }
 0x666   : > { %v5745_v26 = vmax.f32 %v5712_v49, %v5678_v9  ;;  %v5722_v9 = vld [vmem:[%s12224_s15 + $0xf8] sm:$0xff] }
 0x668   : > { %5778 = vst.msk [vmem:[%s12224_s15 + $0xa8] sm:$0xff] %vm13758_vm0, %v5745_v26 }
 0x66a   : > { %v5459_v17 = vpop.f32.mrf.mxu2 }
 0x66b   : > { %v5460_v4 = vadd.f32 %v5459_v17, %v5366_v2  ;;  %v5368_v59 = vpop.f32.mrf.mxu1 }
 0x66d   : > { %v5679_v13 = vsel %vm5580_vm5, %v5460_v4, -inf  ;;  %vm5584_vm5 = vmand %vm5516_vm11, %vm5551_vm1  ;;  %vm5520_vm11 = vcmp.ge.s32.totalorder %v12414_v24, %v12210_v56  ;;  %vm5555_vm1 = vcmp.le.s32.totalorder %v12414_v24, %v12212_v34 }
 0x66e   : > { %v5746_v46 = vmax.f32 %v5713_v11, %v5679_v13  ;;  %v5723_v11 = vld [vmem:[%s12224_s15 + $0x100] sm:$0xff] }
 0x670   : > { %5779 = vst.msk [vmem:[%s12224_s15 + $0xb0] sm:$0xff] %vm13762_vm3, %v5746_v46  ;;  %vm13765_vm3 = vmmov %vm13758_vm0 }
 0x672   : > { %v5461_v43 = vpop.f32.mrf.mxu2 }
 0x673   : > { %v5462_v50 = vadd.f32 %v5461_v43, %v5368_v59  ;;  %v5371_v23 = vpop.f32.mrf.mxu1 }
 0x675   : > { %v5680_v32 = vsel %vm5581_vm13, %v5462_v50, -inf  ;;  %vm5585_vm13 = vmand %vm5517_vm2, %vm5552_vm8  ;;  %vm5521_vm2 = vcmp.ge.s32.totalorder %v12417_v5, %v12210_v56  ;;  %vm5556_vm8 = vcmp.le.s32.totalorder %v12417_v5, %v12212_v34 }
 0x676   : > { %v5747_v25 = vmax.f32 %v5714_v29, %v5680_v32 }
 0x678   : > { %5780 = vst.msk [vmem:[%s12224_s15 + $0xb8] sm:$0xff] %vm13763_vm9, %v5747_v25  ;;  %vm13766_vm9 = vmmov %vm13758_vm0 }
 0x67a   : > { %v5464_v45 = vpop.f32.mrf.mxu2 }
 0x67b   : > { %v5465_v47 = vadd.f32 %v5464_v45, %v5371_v23  ;;  %v5373_v6 = vpop.f32.mrf.mxu1 }
 0x67d   : > { %v5681_v54 = vsel %vm5582_vm14, %v5465_v47, -inf  ;;  %vm5586_vm14 = vmand %vm5518_vm10, %vm5553_vm15  ;;  %vm5522_vm10 = vcmp.ge.s32.totalorder %v12407_v22, %v12210_v56  ;;  %vm5557_vm15 = vcmp.le.s32.totalorder %v12407_v22, %v12212_v34 }
 0x67e   : > { %v5748_v20 = vmax.f32 %v5715_v8, %v5681_v54 }
 0x680   : > { %5781 = vst.msk [vmem:[%s12224_s15 + $0xc0] sm:$0xff] %vm13764_vm4, %v5748_v20  ;;  %vm13767_vm4 = vmmov %vm13758_vm0 }
 0x682   : > { %v5466_v63 = vpop.f32.mrf.mxu2 }
 0x683   : > { %v5467_v21 = vadd.f32 %v5466_v63, %v5373_v6  ;;  %v5376_v3 = vpop.f32.mrf.mxu1 }
 0x685   : > { %v5682_v0 = vsel %vm5583_vm7, %v5467_v21, -inf  ;;  %vm5587_vm7 = vmand %vm5519_vm12, %vm5554_vm6 }
 0x686   : > { %v5749_v33 = vmax.f32 %v5716_v35, %v5682_v0  ;;  %vm13770_vm12 = vmmov %vm13758_vm0 }
 0x688   : > { %5782 = vst.msk [vmem:[%s12224_s15 + $0xc8] sm:$0xff] %vm13758_vm0, %v5749_v33 }
 0x68a   : > { %v5469_v60 = vpop.f32.mrf.mxu2 }
 0x68b   : > { %v5470_v53 = vadd.f32 %v5469_v60, %v5376_v3  ;;  %v5378_v38 = vpop.f32.mrf.mxu1 }
 0x68d   : > { %v5683_v40 = vsel %vm5584_vm5, %v5470_v53, -inf  ;;  %vm5588_vm5 = vmand %vm5520_vm11, %vm5555_vm1 }
 0x68e   : > { %v5750_v44 = vmax.f32 %v5717_v61, %v5683_v40 }
 0x690   : > { %5783 = vst.msk [vmem:[%s12224_s15 + $0xd0] sm:$0xff] %vm13765_vm3, %v5750_v44  ;;  %vm13768_vm3 = vmmov %vm13758_vm0 }
 0x691   : > { %v5391_v55 = vpop.f32.mrf.mxu3 }
 0x692   : > { %v5471_v30 = vpop.f32.mrf.mxu2 }
 0x693   : > { %v5472_v19 = vadd.f32 %v5471_v30, %v5378_v38  ;;  %v5381_v57 = vpop.f32.mrf.mxu1 }
 0x695   : > { %v5684_v10 = vsel %vm5585_vm13, %v5472_v19, -inf  ;;  %vm5589_vm13 = vmand %vm5521_vm2, %vm5556_vm8 }
 0x696   : > { %v5751_v31 = vmax.f32 %v5718_v12, %v5684_v10 }
 0x698   : > { %5784 = vst.msk [vmem:[%s12224_s15 + $0xd8] sm:$0xff] %vm13766_vm9, %v5751_v31  ;;  %vm13769_vm9 = vmmov %vm13758_vm0 }
 0x699   : > { %v5393_v51 = vpop.f32.mrf.mxu3 }
 0x69a   : > { %v5474_v36 = vpop.f32.mrf.mxu2 }
 0x69b   : > { %v5475_v18 = vadd.f32 %v5474_v36, %v5381_v57  ;;  %v5383_v37 = vpop.f32.mrf.mxu1 }
 0x69d   : > { %v5685_v28 = vsel %vm5586_vm14, %v5475_v18, -inf  ;;  %vm5590_vm14 = vmand %vm5522_vm10, %vm5557_vm15 }
 0x69e   : > { %v5752_v1 = vmax.f32 %v5719_v41, %v5685_v28 }
 0x6a0   : > { %5785 = vst.msk [vmem:[%s12224_s15 + $0xe0] sm:$0xff] %vm13767_vm4, %v5752_v1 }
 0x6a2   : > { %v5476_v15 = vpop.f32.mrf.mxu2 }
 0x6a3   : > { %v5477_v14 = vadd.f32 %v5476_v15, %v5383_v37  ;;  %v5386_v58 = vpop.f32.mrf.mxu1 }
 0x6a5   : > { %v5686_v16 = vsel %vm5587_vm7, %v5477_v14, -inf }
 0x6a6   : > { %v5753_v48 = vmax.f32 %v5720_v27, %v5686_v16 }
 0x6a8   : > { %5786 = vst.msk [vmem:[%s12224_s15 + $0xe8] sm:$0xff] %vm13758_vm0, %v5753_v48 }
 0x6aa   : > { %v5479_v42 = vpop.f32.mrf.mxu2 }
 0x6ab   : > { %v5480_v62 = vadd.f32 %v5479_v42, %v5386_v58  ;;  %v5388_v24 = vpop.f32.mrf.mxu1 }
 0x6ad   : > { %v5687_v7 = vsel %vm5588_vm5, %v5480_v62, -inf }
 0x6ae   : > { %v5754_v39 = vmax.f32 %v5721_v52, %v5687_v7 }
 0x6b0   : > { %5787 = vst.msk [vmem:[%s12224_s15 + $0xf0] sm:$0xff] %vm13768_vm3, %v5754_v39 }
 0x6b2   : > { %v5481_v49 = vpop.f32.mrf.mxu2 }
 0x6b3   : > { %v5482_v2 = vadd.f32 %v5481_v49, %v5388_v24 }
 0x6b5   : > { %v5688_v26 = vsel %vm5589_vm13, %v5482_v2, -inf }
 0x6b6   : > { %v5755_v17 = vmax.f32 %v5722_v9, %v5688_v26 }
 0x6b8   : > { %5788 = vst.msk [vmem:[%s12224_s15 + $0xf8] sm:$0xff] %vm13769_vm9, %v5755_v17 }
 0x6ba   : > { %v5484_v4 = vpop.f32.mrf.mxu2 }
 0x6bb   : > { %v5485_v5 = vadd.f32 %v5484_v4, %v5391_v55 }
 0x6bd   : > { %v5689_v59 = vsel %vm5590_vm14, %v5485_v5, -inf }
 0x6be   : > { %v5756_v13 = vmax.f32 %v5723_v11, %v5689_v59 }
 0x6c0   : > { %5789 = vst.msk [vmem:[%s12224_s15 + $0x100] sm:$0xff] %vm13770_vm12, %v5756_v13 }
 0x6c2   : > { %v5486_v46 = vpop.f32.mrf.mxu2 }
 0x6c3 PF: > { %s30_s27 = sadd.s32 1, %s6456_s27   ;;  %s13771_s25 = smov %s6452_s26 }
 0x6c4   : > { %p27_p8 = scmp.ge.s32.totalorder %s30_s27, 6   ;;  %s13772_s26 = smov %s13774_s0 }
 0x6c6   :  { %29 = sbr.rel (!%p27_p8) target bundleno = 8 (0x8), region = 101 }

</bundles_post_ra>
